<compile_context>
chip_gen: v7x
topology: tpu7x:2x2x1
jax: 0.10.0
libtpu: 0.0.40
codegen_flags: <defaults>
</compile_context>

<pallas_src>
import functools

import jax
import jax.numpy as jnp
from jax import lax
from jax.experimental import pallas as pl
from jax.experimental.pallas import tpu as pltpu


def _round_up(x, m):
    return ((x + m - 1) // m) * m


def _is_single_tensorcore_chip():
    """True for chips with one TensorCore (v5e / v6e): fold the batch into one grid step.
    On v7x / megacore chips keep grid=(N,) 'parallel' so images split across TensorCores."""
    try:
        kind = jax.devices()[0].device_kind.lower()
    except Exception:
        return False
    return any(t in kind for t in ("v5e", "v5 lite", "v5litepod", "v6e", "v6 lite"))


_SINGLE_TC = _is_single_tensorcore_chip()


# ----------------------------------------------------------------------------
# Fused kernel: Conv3x3(pad=1)+ReLU -> Conv3x3(pad=1)+ReLU -> MaxPool2x2
# ----------------------------------------------------------------------------
def _fused_conv_stack_kernel(xp_ref, w1_ref, b1_ref, w2_ref, b2_ref, o_ref,
                             p1_ref, y1_ref, p2_ref, *, H, W):
    """Processes NB images per grid step.

    xp_ref : (NB, E+2, E+2, Cin) bf16  zero-padded NHWC input; real image at [2:2+H, 2:2+W]
    w1_ref : (9*Cin, C1) bf16          im2col conv1 weights, K ordered (kh, kw, cin)
    b1_ref : (1, C1) f32
    w2_ref : (9*C1, C2) bf16           im2col conv2 weights
    b2_ref : (1, C2) f32
    o_ref  : (NB, Ho, Wo*C2) f32       lane-dense pooled output (last dim multiple of 128)
    p1_ref : (NB*E*E, 9*Cin) bf16      VMEM scratch: conv1 im2col patches
    y1_ref : (NB, E, E, C1)  bf16      VMEM scratch: conv1 output with zeroed halo ring
    p2_ref : (NB*H*W, 9*C1)  bf16      VMEM scratch: conv2 im2col patches
    """
    NB = xp_ref.shape[0]
    E = xp_ref.shape[1] - 2          # extended conv1 output domain (multiple of 8)
    Cin = xp_ref.shape[3]
    C1 = w1_ref.shape[1]
    C2 = w2_ref.shape[1]
    Ho, Wo = H // 2, W // 2
    M1 = NB * E * E
    M2 = NB * H * W

    # ---- conv1 im2col: 9 tap writes straight into VMEM scratch (no lane concat) ----
    for k in range(9):
        kh, kw = divmod(k, 3)
        p1_ref[:, k * Cin:(k + 1) * Cin] = (
            xp_ref[:, kh:kh + E, kw:kw + E, :].reshape(M1, Cin))

    # One MXU matmul (M1 x 9Cin)@(9Cin x C1) with f32 accumulation; fused bias + ReLU.
    y1 = jnp.dot(p1_ref[...], w1_ref[...], preferred_element_type=jnp.float32)
    y1 = jnp.maximum(y1 + b1_ref[...], 0.0).astype(jnp.bfloat16)
    y1 = y1.reshape(NB, E, E, C1)

    # Zero the 1-pixel halo ring: y1_ref then holds conv1's output already zero-padded for
    # conv2, entirely in VMEM (never round-trips to HBM).
    r = lax.broadcasted_iota(jnp.int32, (E, E, 1), 0)
    c = lax.broadcasted_iota(jnp.int32, (E, E, 1), 1)
    inb = ((r >= 1) & (r <= H) & (c >= 1) & (c <= W))[None]       # (1, E, E, 1)
    y1_ref[...] = jnp.where(inb, y1, 0.0).astype(jnp.bfloat16)

    # ---- conv2 im2col taps, assembled directly in bf16 from the VMEM-resident y1 ----
    for k in range(9):
        kh, kw = divmod(k, 3)
        p2_ref[:, k * C1:(k + 1) * C1] = (
            y1_ref[:, kh:kh + H, kw:kw + W, :].reshape(M2, C1))

    y2 = jnp.dot(p2_ref[...], w2_ref[...], preferred_element_type=jnp.float32)
    y2 = jnp.maximum(y2 + b2_ref[...], 0.0)                       # (M2, C2) f32

    # ---- fused 2x2 max pool: two reshape-based maxes, no per-column loop / concat ----
    y2 = y2.reshape(NB * H * Wo, 2, C2)
    wp = jnp.maximum(y2[:, 0, :], y2[:, 1, :])                    # pool along W
    wp = wp.reshape(NB * Ho, 2 * Wo, C2)
    hp = jnp.maximum(wp[:, :Wo, :], wp[:, Wo:, :])                # pool along H (8-aligned)
    o_ref[...] = hp.reshape(NB, Ho, Wo * C2)                      # lane-dense full-width store


# ----------------------------------------------------------------------------
# Wrapper (layout plumbing only)
# ----------------------------------------------------------------------------
def _prep_conv_weight(w_oihw):
    """PyTorch OIHW -> im2col (kh*kw*cin, cout), bf16 for the MXU."""
    cout, cin, kh, kw = w_oihw.shape
    w = jnp.transpose(w_oihw, (2, 3, 1, 0)).reshape(kh * kw * cin, cout)
    return w.astype(jnp.bfloat16)


def prepare_params(params):
    """One-time weight preprocessing (done once at model-load time, not per call)."""
    return {
        "w1": _prep_conv_weight(params["w1"]),
        "b1": params["b1"].reshape(1, -1).astype(jnp.float32),
        "w2": _prep_conv_weight(params["w2"]),
        "b2": params["b2"].reshape(1, -1).astype(jnp.float32),
    }


@jax.jit
def simpleconv_forward(x_nchw, prep):
    N, Cin, H, W = x_nchw.shape
    C1 = prep["w1"].shape[1]
    C2 = prep["w2"].shape[1]
    if H % 2 or W % 2:
        raise ValueError("MaxPool2d(2) requires even H and W")
    Ho, Wo = H // 2, W // 2
    E = _round_up(max(H, W) + 2, 8)      # extended conv1 output domain

    # Batch blocking: whole batch in one grid step on 1-TC chips (v5e/v6e); one image per
    # grid step on multi-TC chips (v7x / megacore) so "parallel" uses both TensorCores.
    NB = N if (_SINGLE_TC or N == 1) else 1

    # NCHW -> NHWC, bf16, zero-pad so conv1 runs on the E x E extended domain
    # (real image at [2:2+H, 2:2+W]).  bf16 halves input DMA and patch-assembly traffic.
    x = jnp.transpose(x_nchw, (0, 2, 3, 1)).astype(jnp.bfloat16)
    xp = jnp.pad(x, ((0, 0), (2, E - H), (2, E - W), (0, 0)))     # (N, E+2, E+2, Cin)

    w1, b1, w2, b2 = prep["w1"], prep["b1"], prep["w2"], prep["b2"]

    flops = 2 * N * (E * E * 9 * Cin * C1 + H * W * 9 * C1 * C2)
    bytes_accessed = (xp.size * 2 + w1.size * 2 + w2.size * 2
                      + (b1.size + b2.size) * 4 + N * Ho * Wo * C2 * 4)

    kernel = functools.partial(_fused_conv_stack_kernel, H=H, W=W)
    out = pl.pallas_call(
        kernel,
        out_shape=jax.ShapeDtypeStruct((N, Ho, Wo * C2), jnp.float32),
        grid=(N // NB,),
        in_specs=[
            pl.BlockSpec((NB, E + 2, E + 2, Cin), lambda g: (g, 0, 0, 0)),
            pl.BlockSpec((9 * Cin, C1), lambda g: (0, 0)),
            pl.BlockSpec((1, C1), lambda g: (0, 0)),
            pl.BlockSpec((9 * C1, C2), lambda g: (0, 0)),
            pl.BlockSpec((1, C2), lambda g: (0, 0)),
        ],
        out_specs=pl.BlockSpec((NB, Ho, Wo * C2), lambda g: (g, 0, 0)),
        scratch_shapes=[
            pltpu.VMEM((NB * E * E, 9 * Cin), jnp.bfloat16),     # p1: conv1 im2col patches
            pltpu.VMEM((NB, E, E, C1), jnp.bfloat16),            # y1: halo-zeroed conv1 out
            pltpu.VMEM((NB * H * W, 9 * C1), jnp.bfloat16),      # p2: conv2 im2col patches
        ],
        compiler_params=pltpu.CompilerParams(dimension_semantics=("parallel",)),
        cost_estimate=pl.CostEstimate(flops=flops, transcendentals=0,
                                      bytes_accessed=bytes_accessed),
    )(xp, w1, b1, w2, b2)

    # (N, Ho, Wo*C2) -> NHWC -> NCHW (PyTorch layout).
    # TODO(synk): if the surrounding model is NHWC JAX, drop both wrapper transposes and
    #             consume the (N, Ho, Wo, C2) view directly.
    out = out.reshape(N, Ho, Wo, C2)
    return jnp.transpose(out, (0, 3, 1, 2))


# ----------------------------------------------------------------------------
# Params / reference
# ----------------------------------------------------------------------------
def init_params(key):
    k1, k2, k3, k4 = jax.random.split(key, 4)
    # Conv2d(3, 16, 3, padding=1) / Conv2d(16, 32, 3, padding=1), PyTorch OIHW.
    w1 = 0.1 * jax.random.normal(k1, (16, 3, 3, 3), jnp.float32)
    b1 = 0.1 * jax.random.normal(k2, (16,), jnp.float32)
    w2 = 0.1 * jax.random.normal(k3, (32, 16, 3, 3), jnp.float32)
    b2 = 0.1 * jax.random.normal(k4, (32,), jnp.float32)
    return {"w1": w1, "b1": b1, "w2": w2, "b2": b2}


def reference_forward(x_nchw, params):
    dn = ("NCHW", "OIHW", "NCHW")
    x = lax.conv_general_dilated(x_nchw, params["w1"], (1, 1), "SAME",
                                 dimension_numbers=dn)
    x = jnp.maximum(x + params["b1"][None, :, None, None], 0.0)
    x = lax.conv_general_dilated(x, params["w2"], (1, 1), "SAME",
                                 dimension_numbers=dn)
    x = jnp.maximum(x + params["b2"][None, :, None, None], 0.0)
    return lax.reduce_window(x, -jnp.inf, lax.max,
                             (1, 1, 2, 2), (1, 1, 2, 2), "VALID")


if __name__ == "__main__":
    key = jax.random.PRNGKey(0)
    kx, kp = jax.random.split(key)
    x = jax.random.normal(kx, (2, 3, 16, 16), jnp.float32)   # small CIFAR-like NCHW input
    params = init_params(kp)
    prep = prepare_params(params)

    out = jax.block_until_ready(simpleconv_forward(x, prep))
    ref = reference_forward(x, params)

    assert out.shape == ref.shape == (2, 32, 8, 8), out.shape
    # bf16 MXU operands (f32 accumulation) -> not bit-exact vs. the f32 reference.
    err = float(jnp.max(jnp.abs(out - ref)))
    assert err < 5e-2, err
    print("KERNEL_OK")
</pallas_src>

<mosaic_0001>
module attributes {stable_mosaic.version = 11 : i64} {
  func.func @_fused_conv_stack_kernel(%arg0: i32, %arg1: memref<1x26x26x3xbf16, #tpu.memory_space<vmem>>, %arg2: memref<27x16xbf16, #tpu.memory_space<vmem>>, %arg3: memref<1x16xf32, #tpu.memory_space<vmem>>, %arg4: memref<144x32xbf16, #tpu.memory_space<vmem>>, %arg5: memref<1x32xf32, #tpu.memory_space<vmem>>, %arg6: memref<1x8x256xf32, #tpu.memory_space<vmem>>, %arg7: memref<576x27xbf16, #tpu.memory_space<vmem>>, %arg8: memref<1x24x24x16xbf16, #tpu.memory_space<vmem>>, %arg9: memref<256x144xbf16, #tpu.memory_space<vmem>>) attributes {dimension_semantics = [#tpu.dimension_semantics<parallel>], iteration_bounds = array<i64: 2>, scalar_prefetch = 0 : i64, scratch_operands = 3 : i64, tpu.core_type = #tpu.core_type<tc>, window_params = [{transform_indices = @transform_0, window_bounds = array<i64: 1, 26, 26, 3>}, {pipeline_mode = #tpu.pipeline_mode<synchronous>, transform_indices = @transform_1, window_bounds = array<i64: 27, 16>}, {pipeline_mode = #tpu.pipeline_mode<synchronous>, transform_indices = @transform_2, window_bounds = array<i64: 1, 16>}, {pipeline_mode = #tpu.pipeline_mode<synchronous>, transform_indices = @transform_3, window_bounds = array<i64: 144, 32>}, {pipeline_mode = #tpu.pipeline_mode<synchronous>, transform_indices = @transform_4, window_bounds = array<i64: 1, 32>}, {transform_indices = @transform_5, window_bounds = array<i64: 1, 8, 256>}]} {
    %c0 = arith.constant 0 : index
    %c0_0 = arith.constant 0 : index
    %c0_1 = arith.constant 0 : index
    %c0_2 = arith.constant 0 : index
    %0 = vector.load %arg1[%c0, %c0_0, %c0_1, %c0_2] : memref<1x26x26x3xbf16, #tpu.memory_space<vmem>>, vector<1x24x24x3xbf16>
    %1 = vector.shape_cast %0 : vector<1x24x24x3xbf16> to vector<576x3xbf16>
    %c0_3 = arith.constant 0 : index
    %c0_4 = arith.constant 0 : index
    %2 = vector.load %arg7[%c0_3, %c0_4] : memref<576x27xbf16, #tpu.memory_space<vmem>>, vector<576x3xbf16>
    tpu.vector_store %arg7[%c0_3, %c0_4], %1 {strides = array<i32>} : memref<576x27xbf16, #tpu.memory_space<vmem>>, vector<576x3xbf16>,
    %c0_5 = arith.constant 0 : index
    %c0_6 = arith.constant 0 : index
    %c1 = arith.constant 1 : index
    %c0_7 = arith.constant 0 : index
    %3 = vector.load %arg1[%c0_5, %c0_6, %c1, %c0_7] : memref<1x26x26x3xbf16, #tpu.memory_space<vmem>>, vector<1x24x24x3xbf16>
    %4 = vector.shape_cast %3 : vector<1x24x24x3xbf16> to vector<576x3xbf16>
    %c0_8 = arith.constant 0 : index
    %c3 = arith.constant 3 : index
    %5 = vector.load %arg7[%c0_8, %c3] : memref<576x27xbf16, #tpu.memory_space<vmem>>, vector<576x3xbf16>
    tpu.vector_store %arg7[%c0_8, %c3], %4 {strides = array<i32>} : memref<576x27xbf16, #tpu.memory_space<vmem>>, vector<576x3xbf16>,
    %c0_9 = arith.constant 0 : index
    %c0_10 = arith.constant 0 : index
    %c2 = arith.constant 2 : index
    %c0_11 = arith.constant 0 : index
    %6 = vector.load %arg1[%c0_9, %c0_10, %c2, %c0_11] : memref<1x26x26x3xbf16, #tpu.memory_space<vmem>>, vector<1x24x24x3xbf16>
    %7 = vector.shape_cast %6 : vector<1x24x24x3xbf16> to vector<576x3xbf16>
    %c0_12 = arith.constant 0 : index
    %c6 = arith.constant 6 : index
    %8 = vector.load %arg7[%c0_12, %c6] : memref<576x27xbf16, #tpu.memory_space<vmem>>, vector<576x3xbf16>
    tpu.vector_store %arg7[%c0_12, %c6], %7 {strides = array<i32>} : memref<576x27xbf16, #tpu.memory_space<vmem>>, vector<576x3xbf16>,
    %c0_13 = arith.constant 0 : index
    %c1_14 = arith.constant 1 : index
    %c0_15 = arith.constant 0 : index
    %c0_16 = arith.constant 0 : index
    %9 = vector.load %arg1[%c0_13, %c1_14, %c0_15, %c0_16] : memref<1x26x26x3xbf16, #tpu.memory_space<vmem>>, vector<1x24x24x3xbf16>
    %10 = vector.shape_cast %9 : vector<1x24x24x3xbf16> to vector<576x3xbf16>
    %c0_17 = arith.constant 0 : index
    %c9 = arith.constant 9 : index
    %11 = vector.load %arg7[%c0_17, %c9] : memref<576x27xbf16, #tpu.memory_space<vmem>>, vector<576x3xbf16>
    tpu.vector_store %arg7[%c0_17, %c9], %10 {strides = array<i32>} : memref<576x27xbf16, #tpu.memory_space<vmem>>, vector<576x3xbf16>,
    %c0_18 = arith.constant 0 : index
    %c1_19 = arith.constant 1 : index
    %c1_20 = arith.constant 1 : index
    %c0_21 = arith.constant 0 : index
    %12 = vector.load %arg1[%c0_18, %c1_19, %c1_20, %c0_21] : memref<1x26x26x3xbf16, #tpu.memory_space<vmem>>, vector<1x24x24x3xbf16>
    %13 = vector.shape_cast %12 : vector<1x24x24x3xbf16> to vector<576x3xbf16>
    %c0_22 = arith.constant 0 : index
    %c12 = arith.constant 12 : index
    %14 = vector.load %arg7[%c0_22, %c12] : memref<576x27xbf16, #tpu.memory_space<vmem>>, vector<576x3xbf16>
    tpu.vector_store %arg7[%c0_22, %c12], %13 {strides = array<i32>} : memref<576x27xbf16, #tpu.memory_space<vmem>>, vector<576x3xbf16>,
    %c0_23 = arith.constant 0 : index
    %c1_24 = arith.constant 1 : index
    %c2_25 = arith.constant 2 : index
    %c0_26 = arith.constant 0 : index
    %15 = vector.load %arg1[%c0_23, %c1_24, %c2_25, %c0_26] : memref<1x26x26x3xbf16, #tpu.memory_space<vmem>>, vector<1x24x24x3xbf16>
    %16 = vector.shape_cast %15 : vector<1x24x24x3xbf16> to vector<576x3xbf16>
    %c0_27 = arith.constant 0 : index
    %c15 = arith.constant 15 : index
    %17 = vector.load %arg7[%c0_27, %c15] : memref<576x27xbf16, #tpu.memory_space<vmem>>, vector<576x3xbf16>
    tpu.vector_store %arg7[%c0_27, %c15], %16 {strides = array<i32>} : memref<576x27xbf16, #tpu.memory_space<vmem>>, vector<576x3xbf16>,
    %c0_28 = arith.constant 0 : index
    %c2_29 = arith.constant 2 : index
    %c0_30 = arith.constant 0 : index
    %c0_31 = arith.constant 0 : index
    %18 = vector.load %arg1[%c0_28, %c2_29, %c0_30, %c0_31] : memref<1x26x26x3xbf16, #tpu.memory_space<vmem>>, vector<1x24x24x3xbf16>
    %19 = vector.shape_cast %18 : vector<1x24x24x3xbf16> to vector<576x3xbf16>
    %c0_32 = arith.constant 0 : index
    %c18 = arith.constant 18 : index
    %20 = vector.load %arg7[%c0_32, %c18] : memref<576x27xbf16, #tpu.memory_space<vmem>>, vector<576x3xbf16>
    tpu.vector_store %arg7[%c0_32, %c18], %19 {strides = array<i32>} : memref<576x27xbf16, #tpu.memory_space<vmem>>, vector<576x3xbf16>,
    %c0_33 = arith.constant 0 : index
    %c2_34 = arith.constant 2 : index
    %c1_35 = arith.constant 1 : index
    %c0_36 = arith.constant 0 : index
    %21 = vector.load %arg1[%c0_33, %c2_34, %c1_35, %c0_36] : memref<1x26x26x3xbf16, #tpu.memory_space<vmem>>, vector<1x24x24x3xbf16>
    %22 = vector.shape_cast %21 : vector<1x24x24x3xbf16> to vector<576x3xbf16>
    %c0_37 = arith.constant 0 : index
    %c21 = arith.constant 21 : index
    %23 = vector.load %arg7[%c0_37, %c21] : memref<576x27xbf16, #tpu.memory_space<vmem>>, vector<576x3xbf16>
    tpu.vector_store %arg7[%c0_37, %c21], %22 {strides = array<i32>} : memref<576x27xbf16, #tpu.memory_space<vmem>>, vector<576x3xbf16>,
    %c0_38 = arith.constant 0 : index
    %c2_39 = arith.constant 2 : index
    %c2_40 = arith.constant 2 : index
    %c0_41 = arith.constant 0 : index
    %24 = vector.load %arg1[%c0_38, %c2_39, %c2_40, %c0_41] : memref<1x26x26x3xbf16, #tpu.memory_space<vmem>>, vector<1x24x24x3xbf16>
    %25 = vector.shape_cast %24 : vector<1x24x24x3xbf16> to vector<576x3xbf16>
    %c0_42 = arith.constant 0 : index
    %c24 = arith.constant 24 : index
    %26 = vector.load %arg7[%c0_42, %c24] : memref<576x27xbf16, #tpu.memory_space<vmem>>, vector<576x3xbf16>
    tpu.vector_store %arg7[%c0_42, %c24], %25 {strides = array<i32>} : memref<576x27xbf16, #tpu.memory_space<vmem>>, vector<576x3xbf16>,
    %c0_43 = arith.constant 0 : index
    %c0_44 = arith.constant 0 : index
    %27 = vector.load %arg7[%c0_43, %c0_44] : memref<576x27xbf16, #tpu.memory_space<vmem>>, vector<576x27xbf16>
    %c0_45 = arith.constant 0 : index
    %c0_46 = arith.constant 0 : index
    %28 = vector.load %arg2[%c0_45, %c0_46] : memref<27x16xbf16, #tpu.memory_space<vmem>>, vector<27x16xbf16>
    %cst = arith.constant dense<0.000000e+00> : vector<576x16xf32>
    %29 = tpu.matmul %27, %28, %cst {dimension_numbers = #tpu.dot_dimension_numbers<[1], [0], [0], [1], [0, 0, 1, 1], [], []>} : vector<576x27xbf16>, vector<27x16xbf16>, vector<576x16xf32> -> vector<576x16xf32>
    %c0_47 = arith.constant 0 : index
    %c0_48 = arith.constant 0 : index
    %30 = vector.load %arg3[%c0_47, %c0_48] : memref<1x16xf32, #tpu.memory_space<vmem>>, vector<1x16xf32>
    %31 = vector.broadcast %30 : vector<1x16xf32> to vector<576x16xf32>
    %32 = arith.addf %29, %31 : vector<576x16xf32>
    %cst_49 = arith.constant 0.000000e+00 : f32
    %33 = vector.broadcast %cst_49 : f32 to vector<576x16xf32>
    %34 = arith.maximumf %32, %33 : vector<576x16xf32>
    %35 = arith.truncf %34 : vector<576x16xf32> to vector<576x16xbf16>
    %36 = vector.shape_cast %35 : vector<576x16xbf16> to vector<1x24x24x16xbf16>
    %37 = tpu.iota {dimensions = array<i32: 0>} : vector<24x24x1xi32>
    %38 = tpu.iota {dimensions = array<i32: 1>} : vector<24x24x1xi32>
    %c1_i32 = arith.constant 1 : i32
    %39 = vector.broadcast %c1_i32 : i32 to vector<24x24x1xi32>
    %40 = arith.cmpi sge, %37, %39 : vector<24x24x1xi32>
    %c16_i32 = arith.constant 16 : i32
    %41 = vector.broadcast %c16_i32 : i32 to vector<24x24x1xi32>
    %42 = arith.cmpi sle, %37, %41 : vector<24x24x1xi32>
    %43 = arith.andi %40, %42 : vector<24x24x1xi1>
    %c1_i32_50 = arith.constant 1 : i32
    %44 = vector.broadcast %c1_i32_50 : i32 to vector<24x24x1xi32>
    %45 = arith.cmpi sge, %38, %44 : vector<24x24x1xi32>
    %46 = arith.andi %43, %45 : vector<24x24x1xi1>
    %c16_i32_51 = arith.constant 16 : i32
    %47 = vector.broadcast %c16_i32_51 : i32 to vector<24x24x1xi32>
    %48 = arith.cmpi sle, %38, %47 : vector<24x24x1xi32>
    %49 = arith.andi %46, %48 : vector<24x24x1xi1>
    %50 = vector.shape_cast %49 : vector<24x24x1xi1> to vector<1x24x24x1xi1>
    %cst_52 = arith.constant 0.000000e+00 : f32
    %51 = arith.truncf %cst_52 : f32 to bf16
    %52 = vector.shape_cast %50 : vector<1x24x24x1xi1> to vector<1x24x24x1xi1>
    %53 = vector.broadcast %52 : vector<1x24x24x1xi1> to vector<1x24x24x16xi1>
    %54 = vector.broadcast %51 : bf16 to vector<1x24x24x16xbf16>
    %55 = arith.select %53, %36, %54 : vector<1x24x24x16xi1>, vector<1x24x24x16xbf16>
    %c0_53 = arith.constant 0 : index
    %c0_54 = arith.constant 0 : index
    %c0_55 = arith.constant 0 : index
    %c0_56 = arith.constant 0 : index
    %56 = vector.load %arg8[%c0_53, %c0_54, %c0_55, %c0_56] : memref<1x24x24x16xbf16, #tpu.memory_space<vmem>>, vector<1x24x24x16xbf16>
    tpu.vector_store %arg8[%c0_53, %c0_54, %c0_55, %c0_56], %55 {strides = array<i32>} : memref<1x24x24x16xbf16, #tpu.memory_space<vmem>>, vector<1x24x24x16xbf16>,
    %c0_57 = arith.constant 0 : index
    %c0_58 = arith.constant 0 : index
    %c0_59 = arith.constant 0 : index
    %c0_60 = arith.constant 0 : index
    %57 = vector.load %arg8[%c0_57, %c0_58, %c0_59, %c0_60] : memref<1x24x24x16xbf16, #tpu.memory_space<vmem>>, vector<1x16x16x16xbf16>
    %58 = vector.shape_cast %57 : vector<1x16x16x16xbf16> to vector<256x16xbf16>
    %c0_61 = arith.constant 0 : index
    %c0_62 = arith.constant 0 : index
    %59 = vector.load %arg9[%c0_61, %c0_62] : memref<256x144xbf16, #tpu.memory_space<vmem>>, vector<256x16xbf16>
    tpu.vector_store %arg9[%c0_61, %c0_62], %58 {strides = array<i32>} : memref<256x144xbf16, #tpu.memory_space<vmem>>, vector<256x16xbf16>,
    %c0_63 = arith.constant 0 : index
    %c0_64 = arith.constant 0 : index
    %c1_65 = arith.constant 1 : index
    %c0_66 = arith.constant 0 : index
    %60 = vector.load %arg8[%c0_63, %c0_64, %c1_65, %c0_66] : memref<1x24x24x16xbf16, #tpu.memory_space<vmem>>, vector<1x16x16x16xbf16>
    %61 = vector.shape_cast %60 : vector<1x16x16x16xbf16> to vector<256x16xbf16>
    %c0_67 = arith.constant 0 : index
    %c16 = arith.constant 16 : index
    %62 = vector.load %arg9[%c0_67, %c16] : memref<256x144xbf16, #tpu.memory_space<vmem>>, vector<256x16xbf16>
    tpu.vector_store %arg9[%c0_67, %c16], %61 {strides = array<i32>} : memref<256x144xbf16, #tpu.memory_space<vmem>>, vector<256x16xbf16>,
    %c0_68 = arith.constant 0 : index
    %c0_69 = arith.constant 0 : index
    %c2_70 = arith.constant 2 : index
    %c0_71 = arith.constant 0 : index
    %63 = vector.load %arg8[%c0_68, %c0_69, %c2_70, %c0_71] : memref<1x24x24x16xbf16, #tpu.memory_space<vmem>>, vector<1x16x16x16xbf16>
    %64 = vector.shape_cast %63 : vector<1x16x16x16xbf16> to vector<256x16xbf16>
    %c0_72 = arith.constant 0 : index
    %c32 = arith.constant 32 : index
    %65 = vector.load %arg9[%c0_72, %c32] : memref<256x144xbf16, #tpu.memory_space<vmem>>, vector<256x16xbf16>
    tpu.vector_store %arg9[%c0_72, %c32], %64 {strides = array<i32>} : memref<256x144xbf16, #tpu.memory_space<vmem>>, vector<256x16xbf16>,
    %c0_73 = arith.constant 0 : index
    %c1_74 = arith.constant 1 : index
    %c0_75 = arith.constant 0 : index
    %c0_76 = arith.constant 0 : index
    %66 = vector.load %arg8[%c0_73, %c1_74, %c0_75, %c0_76] : memref<1x24x24x16xbf16, #tpu.memory_space<vmem>>, vector<1x16x16x16xbf16>
    %67 = vector.shape_cast %66 : vector<1x16x16x16xbf16> to vector<256x16xbf16>
    %c0_77 = arith.constant 0 : index
    %c48 = arith.constant 48 : index
    %68 = vector.load %arg9[%c0_77, %c48] : memref<256x144xbf16, #tpu.memory_space<vmem>>, vector<256x16xbf16>
    tpu.vector_store %arg9[%c0_77, %c48], %67 {strides = array<i32>} : memref<256x144xbf16, #tpu.memory_space<vmem>>, vector<256x16xbf16>,
    %c0_78 = arith.constant 0 : index
    %c1_79 = arith.constant 1 : index
    %c1_80 = arith.constant 1 : index
    %c0_81 = arith.constant 0 : index
    %69 = vector.load %arg8[%c0_78, %c1_79, %c1_80, %c0_81] : memref<1x24x24x16xbf16, #tpu.memory_space<vmem>>, vector<1x16x16x16xbf16>
    %70 = vector.shape_cast %69 : vector<1x16x16x16xbf16> to vector<256x16xbf16>
    %c0_82 = arith.constant 0 : index
    %c64 = arith.constant 64 : index
    %71 = vector.load %arg9[%c0_82, %c64] : memref<256x144xbf16, #tpu.memory_space<vmem>>, vector<256x16xbf16>
    tpu.vector_store %arg9[%c0_82, %c64], %70 {strides = array<i32>} : memref<256x144xbf16, #tpu.memory_space<vmem>>, vector<256x16xbf16>,
    %c0_83 = arith.constant 0 : index
    %c1_84 = arith.constant 1 : index
    %c2_85 = arith.constant 2 : index
    %c0_86 = arith.constant 0 : index
    %72 = vector.load %arg8[%c0_83, %c1_84, %c2_85, %c0_86] : memref<1x24x24x16xbf16, #tpu.memory_space<vmem>>, vector<1x16x16x16xbf16>
    %73 = vector.shape_cast %72 : vector<1x16x16x16xbf16> to vector<256x16xbf16>
    %c0_87 = arith.constant 0 : index
    %c80 = arith.constant 80 : index
    %74 = vector.load %arg9[%c0_87, %c80] : memref<256x144xbf16, #tpu.memory_space<vmem>>, vector<256x16xbf16>
    tpu.vector_store %arg9[%c0_87, %c80], %73 {strides = array<i32>} : memref<256x144xbf16, #tpu.memory_space<vmem>>, vector<256x16xbf16>,
    %c0_88 = arith.constant 0 : index
    %c2_89 = arith.constant 2 : index
    %c0_90 = arith.constant 0 : index
    %c0_91 = arith.constant 0 : index
    %75 = vector.load %arg8[%c0_88, %c2_89, %c0_90, %c0_91] : memref<1x24x24x16xbf16, #tpu.memory_space<vmem>>, vector<1x16x16x16xbf16>
    %76 = vector.shape_cast %75 : vector<1x16x16x16xbf16> to vector<256x16xbf16>
    %c0_92 = arith.constant 0 : index
    %c96 = arith.constant 96 : index
    %77 = vector.load %arg9[%c0_92, %c96] : memref<256x144xbf16, #tpu.memory_space<vmem>>, vector<256x16xbf16>
    tpu.vector_store %arg9[%c0_92, %c96], %76 {strides = array<i32>} : memref<256x144xbf16, #tpu.memory_space<vmem>>, vector<256x16xbf16>,
    %c0_93 = arith.constant 0 : index
    %c2_94 = arith.constant 2 : index
    %c1_95 = arith.constant 1 : index
    %c0_96 = arith.constant 0 : index
    %78 = vector.load %arg8[%c0_93, %c2_94, %c1_95, %c0_96] : memref<1x24x24x16xbf16, #tpu.memory_space<vmem>>, vector<1x16x16x16xbf16>
    %79 = vector.shape_cast %78 : vector<1x16x16x16xbf16> to vector<256x16xbf16>
    %c0_97 = arith.constant 0 : index
    %c112 = arith.constant 112 : index
    %80 = vector.load %arg9[%c0_97, %c112] : memref<256x144xbf16, #tpu.memory_space<vmem>>, vector<256x16xbf16>
    tpu.vector_store %arg9[%c0_97, %c112], %79 {strides = array<i32>} : memref<256x144xbf16, #tpu.memory_space<vmem>>, vector<256x16xbf16>,
    %c0_98 = arith.constant 0 : index
    %c2_99 = arith.constant 2 : index
    %c2_100 = arith.constant 2 : index
    %c0_101 = arith.constant 0 : index
    %81 = vector.load %arg8[%c0_98, %c2_99, %c2_100, %c0_101] : memref<1x24x24x16xbf16, #tpu.memory_space<vmem>>, vector<1x16x16x16xbf16>
    %82 = vector.shape_cast %81 : vector<1x16x16x16xbf16> to vector<256x16xbf16>
    %c0_102 = arith.constant 0 : index
    %c128 = arith.constant 128 : index
    %83 = vector.load %arg9[%c0_102, %c128] : memref<256x144xbf16, #tpu.memory_space<vmem>>, vector<256x16xbf16>
    tpu.vector_store %arg9[%c0_102, %c128], %82 {strides = array<i32>} : memref<256x144xbf16, #tpu.memory_space<vmem>>, vector<256x16xbf16>,
    %c0_103 = arith.constant 0 : index
    %c0_104 = arith.constant 0 : index
    %84 = vector.load %arg9[%c0_103, %c0_104] : memref<256x144xbf16, #tpu.memory_space<vmem>>, vector<256x144xbf16>
    %c0_105 = arith.constant 0 : index
    %c0_106 = arith.constant 0 : index
    %85 = vector.load %arg4[%c0_105, %c0_106] : memref<144x32xbf16, #tpu.memory_space<vmem>>, vector<144x32xbf16>
    %cst_107 = arith.constant dense<0.000000e+00> : vector<256x32xf32>
    %86 = tpu.matmul %84, %85, %cst_107 {dimension_numbers = #tpu.dot_dimension_numbers<[1], [0], [0], [1], [0, 0, 1, 1], [], []>} : vector<256x144xbf16>, vector<144x32xbf16>, vector<256x32xf32> -> vector<256x32xf32>
    %c0_108 = arith.constant 0 : index
    %c0_109 = arith.constant 0 : index
    %87 = vector.load %arg5[%c0_108, %c0_109] : memref<1x32xf32, #tpu.memory_space<vmem>>, vector<1x32xf32>
    %88 = vector.broadcast %87 : vector<1x32xf32> to vector<256x32xf32>
    %89 = arith.addf %86, %88 : vector<256x32xf32>
    %cst_110 = arith.constant 0.000000e+00 : f32
    %90 = vector.broadcast %cst_110 : f32 to vector<256x32xf32>
    %91 = arith.maximumf %89, %90 : vector<256x32xf32>
    %92 = vector.shape_cast %91 : vector<256x32xf32> to vector<128x2x32xf32>
    %93 = vector.extract_strided_slice %92 {offsets = [0, 0, 0], sizes = [128, 1, 32], strides = [1, 1, 1]} : vector<128x2x32xf32> to vector<128x1x32xf32>
    %94 = vector.shape_cast %93 : vector<128x1x32xf32> to vector<128x32xf32>
    %95 = vector.extract_strided_slice %92 {offsets = [0, 1, 0], sizes = [128, 1, 32], strides = [1, 1, 1]} : vector<128x2x32xf32> to vector<128x1x32xf32>
    %96 = vector.shape_cast %95 : vector<128x1x32xf32> to vector<128x32xf32>
    %97 = arith.maximumf %94, %96 : vector<128x32xf32>
    %98 = vector.shape_cast %97 : vector<128x32xf32> to vector<8x16x32xf32>
    %99 = vector.extract_strided_slice %98 {offsets = [0, 0, 0], sizes = [8, 8, 32], strides = [1, 1, 1]} : vector<8x16x32xf32> to vector<8x8x32xf32>
    %100 = vector.extract_strided_slice %98 {offsets = [0, 8, 0], sizes = [8, 8, 32], strides = [1, 1, 1]} : vector<8x16x32xf32> to vector<8x8x32xf32>
    %101 = arith.maximumf %99, %100 : vector<8x8x32xf32>
    %102 = vector.shape_cast %101 : vector<8x8x32xf32> to vector<1x8x256xf32>
    %c0_111 = arith.constant 0 : index
    %c0_112 = arith.constant 0 : index
    %c0_113 = arith.constant 0 : index
    %103 = vector.load %arg6[%c0_111, %c0_112, %c0_113] : memref<1x8x256xf32, #tpu.memory_space<vmem>>, vector<1x8x256xf32>
    tpu.vector_store %arg6[%c0_111, %c0_112, %c0_113], %102 {strides = array<i32>} : memref<1x8x256xf32, #tpu.memory_space<vmem>>, vector<1x8x256xf32>,
    return
  }
  func.func @transform_0(%arg0: i32) -> (i32, i32, i32, i32) {
    %c0_i32 = arith.constant 0 : i32
    %c0_i32_0 = arith.constant 0 : i32
    %c0_i32_1 = arith.constant 0 : i32
    %c0_i32_2 = arith.constant 0 : i32
    return %arg0, %c0_i32, %c0_i32_0, %c0_i32_1 : i32, i32, i32, i32
  }
  func.func @transform_1(%arg0: i32) -> (i32, i32) {
    %c0_i32 = arith.constant 0 : i32
    %c0_i32_0 = arith.constant 0 : i32
    %c0_i32_1 = arith.constant 0 : i32
    return %c0_i32, %c0_i32_0 : i32, i32
  }
  func.func @transform_2(%arg0: i32) -> (i32, i32) {
    %c0_i32 = arith.constant 0 : i32
    %c0_i32_0 = arith.constant 0 : i32
    %c0_i32_1 = arith.constant 0 : i32
    return %c0_i32, %c0_i32_0 : i32, i32
  }
  func.func @transform_3(%arg0: i32) -> (i32, i32) {
    %c0_i32 = arith.constant 0 : i32
    %c0_i32_0 = arith.constant 0 : i32
    %c0_i32_1 = arith.constant 0 : i32
    return %c0_i32, %c0_i32_0 : i32, i32
  }
  func.func @transform_4(%arg0: i32) -> (i32, i32) {
    %c0_i32 = arith.constant 0 : i32
    %c0_i32_0 = arith.constant 0 : i32
    %c0_i32_1 = arith.constant 0 : i32
    return %c0_i32, %c0_i32_0 : i32, i32
  }
  func.func @transform_5(%arg0: i32) -> (i32, i32, i32) {
    %c0_i32 = arith.constant 0 : i32
    %c0_i32_0 = arith.constant 0 : i32
    %c0_i32_1 = arith.constant 0 : i32
    return %arg0, %c0_i32, %c0_i32_0 : i32, i32, i32
  }
}

</mosaic_0001>

<bundles_post_ra>
// kernel: simpleconv_forward.1
= control target key start
LH: loop header
LB: loop body
LE: loop exit
PB: predicated region body
PF: predicated region fallthrough
CT: control target
= control target key end

     0   :  { %s15216_s18 = smov 0   ;;  %s20715_s0 = inlined_call_operand.vmem [shape: bf16[2,26,26,3], index: 0, kind: input, shape index: {}]   ;;  %s20716_s1 = inlined_call_operand.vmem [shape: bf16[27,16], index: 1, kind: input, shape index: {}]   ;;  %s20717_s2 = inlined_call_operand.vmem [shape: f32[1,16], index: 2, kind: input, shape index: {}]   ;;  %s20718_s3 = inlined_call_operand.vmem [shape: bf16[144,32], index: 3, kind: input, shape index: {}]   ;;  %s20719_s4 = inlined_call_operand.vmem [shape: f32[1,32], index: 4, kind: input, shape index: {}]   ;;  %s20720_s5 = inlined_call_operand.vmem [shape: f32[2,8,256], index: 5, kind: output, shape index: {}]  }
   0x1 LB: > { %s13365_s19 = sadd.s32 4294967295, %s15163_s18   ;;  %p13369_p0 = scmp.ge.s32.totalorder %s15163_s18, 1  ;;  %s15163_s18 = sphi %s15216_s18, %s15_s18  }
   0x2   : > { %p187_p1 = scmp.lt.s32.totalorder %s15163_s18, 3 }
   0x4   : > { %p188_p2 = pnand %p13369_p0, %p187_p1 }
   0x6   : > { %191 = sbr.rel (%p188_p2) target bundleno = 1433 (0x599), region = 40 }
   0xd   : > { %p215_p3 = scmp.lt.s32.totalorder %s13365_s19, 1  ;;  %vm1911_vm0 = vcmask 1042432   ;;  %vm1912_vm1 = vcmask 1046532   ;;  %s15165_s24 = smov 9   ;;  %vm647_vm3 = vsmask.f32 3328 }
   0xe   : > { %vm15227_vm2 = vmor %vm1911_vm0, %vm1912_vm1  ;;  %vm648_vm4 = vsmask.f32 7440  ;;  %s15166_s25 = smov 15   ;;  %s15167_s26 = smov 6   ;;  %vm20727_vm6 = vcmask 23552   ;;  %vm20721_vm7 = vcmask 48152  }
   0xf   : > { %s20948_s19 = smov (!%p215_p3, %s13365_s19), 1  ;;  %vm15281_vm5 = vmor %vm647_vm3, %vm648_vm4  ;;  %s15168_s27 = smov 3   ;;  %vm2370_vm8 = vcmask 72752   ;;  %vm20722_vm9 = vcmask 97352   ;;  %vm20748_vm10 = vcmask 121952   ;;  %vm20746_vm11 = vcmask 146552  }
  0x10   : > { %s14951_s20 = smul.u32 416, %s20948_s19  ;;  %s15169_s28 = smov 12   ;;  %vm20745_vm12 = vcmask 171152   ;;  %vm20744_vm13 = vcmask 195752   ;;  %vm20743_vm14 = vcmask 220352   ;;  %vm7070_vm15 = vcmask 1044480  }
  0x11   : > { %s15170_s29 = smov 18   ;;  %s15171_s30 = smov 21   ;;  %vm7071_vm0 = vcmask 1045504   ;;  %vm20747_vm1 = vcmask 220160   ;;  %vm15174_vm3 = vmmov 0  }
  0x12   : > { %s15234_s23 = scalar_lea.vmem %s20715_s0, %s14951_s20  ;;  %s15172_s6 = smov 24   ;;  %vm17138_vm4 = vmpackc.low %vm15174_vm3, %vm15174_vm3 }
  0x13   : > { %v14981_v1 = vld [vmem:[%s15234_s23 + $0x18] ss:$8 sps:$4 sm:$0xff]   ;;  %v14982_v2 = vld [vmem:[%s15234_s23 + $0x10] sm:$0xff]   ;;  %v1720_v10 = vld [vmem:[%s15234_s23 + $0x4] sm:$0xf]  ;;  %s15176_s15 = smov 32  }
  0x14   : > { %2662 = vrot.lane.b32.xlu1 %v14981_v1, %s15165_s24  ;;  %v13745_v3 = vld [vmem:[%s15234_s23 + $0x10] sm:$0xe]  ;;  %v13746_v4 = vld [vmem:[%s15234_s23 + $0x14] sm:$0xf]  ;;  %v13747_v5 = vld [vmem:[%s15234_s23 + $0x18] sm:$0xf] }
  0x15   : > { %2660 = vrot.lane.b32.xlu0 %v14982_v2, %s15165_s24  ;;  %v13841_v6 = vrot.slane %v13745_v3, 9  ;;  %v4164_v7 = vrot.slane %v13746_v4, 5  ;;  %v4167_v8 = vrot.slane %v13747_v5, 5  ;;  %v1719_v9 = vld [vmem:[%s15234_s23] sm:$0xe]  ;;  %v1916_v15 = vrot.slane %v1720_v10, 5 }
  0x16   : > { %v1721_v11 = vld [vmem:[%s15234_s23 + $0x8] sm:$0xf]  ;;  %v13445_v12 = vrot.slane %v1719_v9, 9  ;;  %v1722_v17 = vld [vmem:[%s15234_s23 + $0xc] sm:$0x1]  ;;  %s15177_s16 = smov 16  }
  0x17   : > { %v4165_v13 = vsel %vm15227_vm2, %v13841_v6, %v4164_v7  ;;  %v4166_v14 = vrot.slane %v4164_v7, 4  ;;  %v1919_v16 = vrot.slane %v1721_v11, 5  ;;  %v1723_v18 = vld [vmem:[%s15234_s23 + $0x10] sm:$0xe]  ;;  %v15251_v19 = vld [vmem:[%s15234_s23 + $0x14] sm:$0xf] }
  0x18   : > { %v1922_v20 = vrot.slane %v1722_v17, 5  ;;  %v4169_v21 = vrot.slane %v4167_v8, 4  ;;  %v1917_v23 = vsel %vm15227_vm2, %v13445_v12, %v1916_v15  ;;  %v1918_v24 = vrot.slane %v1916_v15, 4  ;;  %v551_v26 = vld [vmem:[%s15234_s23] sm:$0xf]  ;;  %s15178_s17 = smov 64  }
  0x19   : > { %v4168_v22 = vsel %vm15227_vm2, %v4166_v14, %v4167_v8  ;;  %v1921_v25 = vrot.slane %v1919_v16, 4  ;;  %v552_v27 = vld [vmem:[%s15234_s23 + $0x4] sm:$0xf]  ;;  %v13446_v29 = vrot.slane %v1723_v18, 9  ;;  %v1926_v30 = vrot.slane %v15251_v19, 5  ;;  %s15179_s20 = smov 48  }
  0x1a   : > { %v13865_v28 = vcombine.low %v4165_v13, %v4168_v22  ;;  %v553_v31 = vld [vmem:[%s15234_s23 + $0x8] sm:$0xf]  ;;  %v651_v32 = vshrl.u32 %v551_v26, 16  ;;  %v1920_v33 = vsel %vm15227_vm2, %v1918_v24, %v1919_v16  ;;  %v654_v35 = vshll.u32 %v551_v26, 16  ;;  %v13748_v37 = vld [vmem:[%s15234_s23 + $0x1c] sm:$0x1] }
  0x1b   : > { %v1923_v34 = vsel %vm15227_vm2, %v1921_v25, %v1922_v20  ;;  %v660_v36 = vshll.u32 %v552_v27, 16  ;;  %v13749_v38 = vld [vmem:[%s15234_s23 + $0x20] sm:$0xe]  ;;  %v13469_v39 = vcombine.low %v1917_v23, %v1920_v33  ;;  %v1927_v40 = vsel %vm15227_vm2, %v13446_v29, %v1926_v30  ;;  %v15273_v43 = vld [vmem:[%s15234_s23 + $0x24] sm:$0xf]  ;;  %s15180_s21 = smov 96  }
  0x1c   : > { %4510 = vrot.lane.b32.xlu0 %v13865_v28, %s15166_s25  ;;  %v653_v41 = vrot.slane %v651_v32, 4  ;;  %v664_v42 = vshrl.u32 %v552_v27, 16  ;;  %v554_v44 = vld [vmem:[%s15234_s23 + $0xc] sm:$0x1]  ;;  %v13470_v45 = vcombine.low %v1923_v34, %v1927_v40  ;;  %v656_v46 = vrot.slane %v654_v35, 5  ;;  %s15181_s22 = smov 80  }
  0x1d   : > { %v662_v47 = vrot.slane %v660_v36, 5  ;;  %v670_v48 = vshll.u32 %v553_v31, 16  ;;  %v555_v49 = vld [vmem:[%s15234_s23 + $0x10] sm:$0xf]  ;;  %2262 = vrot.lane.b32.xlu1 %v13469_v39, %s15167_s26  ;;  %v674_v51 = vshrl.u32 %v553_v31, 16  ;;  %v4170_v52 = vrot.slane %v13748_v37, 5 }
  0x1e   : > { %v666_v50 = vrot.slane %v664_v42, 4  ;;  %v13842_v53 = vrot.slane %v13749_v38, 9  ;;  %v657_v54 = vor.u32 %v656_v46, %v653_v41  ;;  %v4174_v56 = vrot.slane %v15273_v43, 5  ;;  %v15288_v61 = vld [vmem:[%s15234_s23 + $0x14] sm:$0xf]  ;;  %s15182_s7 = smov 112  }
  0x1f   : > { %v672_v55 = vrot.slane %v670_v48, 5  ;;  %v680_v57 = vshll.u32 %v554_v44, 16  ;;  %v4171_v60 = vsel %vm15227_vm2, %v4169_v21, %v4170_v52  ;;  %v676_v62 = vrot.slane %v674_v51, 4  ;;  %v13615_v1 = vld [vmem:[%s15234_s23 + $0x18] sm:$0xf] }
  0x20   : > { %v667_v59 = vor.u32 %v666_v50, %v662_v47  ;;  %v685_v63 = vshrl.u32 %v555_v49, 16  ;;  %v658_v2 = vrot.slane %v657_v54, 4  ;;  %v4175_v3 = vsel %vm15227_vm2, %v13842_v53, %v4174_v56  ;;  %v13616_v6 = vld [vmem:[%s15234_s23 + $0x1c] sm:$0x1]  ;;  %v13617_v11 = vld [vmem:[%s15234_s23 + $0x20] sm:$0xf] }
  0x21   : > { %v682_v4 = vrot.slane %v680_v57, 5  ;;  %v688_v5 = vshll.u32 %v555_v49, 16  ;;  %2264 = vrot.lane.b32.xlu1 %v13470_v45, %s15167_s26  ;;  %v13866_v8 = vcombine.low %v4171_v60, %v4175_v3  ;;  %v677_v9 = vor.u32 %v676_v62, %v672_v55  ;;  %v15299_v12 = vld [vmem:[%s15234_s23 + $0x24] sm:$0xf]  ;;  %v13613_v26 = vld [vmem:[%s15234_s23 + $0x10] sm:$0xf] }
  0x22   : > { %v668_v7 = vrot.slane %v667_v59, 4  ;;  %v687_v10 = vrot.slane %v685_v63, 4  ;;  %v663_v13 = vsel %vm15281_vm5, %v658_v2, %v662_v47  ;;  %v694_v15 = vshll.u32 %v15288_v61, 16  ;;  %v13614_v36 = vld [vmem:[%s15234_s23 + $0x14] sm:$0xf] }
  0x23   : > { %v690_v14 = vrot.slane %v688_v5, 5  ;;  %v698_v16 = vshrl.u32 %v15288_v61, 16  ;;  %v678_v18 = vrot.slane %v677_v9, 4  ;;  %v2921_v20 = vshll.u32 %v13615_v1, 16  ;;  %v14011_v41 = vld [vmem:[%s15234_s23 + $0x28] sm:$0xf] }
  0x24   : > { %v673_v17 = vsel %vm15281_vm5, %v668_v7, %v672_v55  ;;  %v2925_v21 = vshrl.u32 %v13615_v1, 16  ;;  %v15307_v24 = vrot.slane %v694_v15, 5  ;;  %v2931_v25 = vshll.u32 %v13616_v6, 16  ;;  %v14012_v47 = vld [vmem:[%s15234_s23 + $0x2c] sm:$0x1]  ;;  %v14984_v61 = vld [vmem:[%s15234_s23 + $0x20] sm:$0xff]  }
  0x25   : > { %v13409_v22 = vcombine.low %v663_v13, %v673_v17  ;;  %v691_v23 = vor.u32 %v690_v14, %v687_v10  ;;  %4512 = vrot.lane.b32.xlu1 %v13866_v8, %s15166_s25  ;;  %v683_v27 = vsel %vm15281_vm5, %v678_v18, %v682_v4  ;;  %v15313_v28 = vrot.slane %v2921_v20, 5  ;;  %v14013_v55 = vld [vmem:[%s15234_s23 + $0x30] sm:$0xf]  ;;  %v15332_v62 = vld [vmem:[%s15234_s23 + $0x34] sm:$0xf] }
  0x26   : > { %v2927_v29 = vrot.slane %v2925_v21, 4  ;;  %v2936_v31 = vshrl.u32 %v13617_v11, 16  ;;  %v2933_v33 = vrot.slane %v2931_v25, 5  ;;  %v2939_v34 = vshll.u32 %v13617_v11, 16  ;;  %v14009_v15 = vld [vmem:[%s15234_s23 + $0x20] sm:$0xf] }
  0x27   : > { %1574 = vrot.lane.b32.xlu0 %v13409_v22, %s15168_s27  ;;  %v692_v32 = vrot.slane %v691_v23, 4  ;;  %v2945_v35 = vshll.u32 %v15299_v12, 16  ;;  %v2949_v39 = vshrl.u32 %v15299_v12, 16  ;;  %v2902_v40 = vshrl.u32 %v13613_v26, 16  ;;  %v14010_v22 = vld [vmem:[%s15234_s23 + $0x24] sm:$0xf] }
  0x28   : > { %v2928_v37 = vor.u32 %v2927_v29, %v15313_v28  ;;  %v2938_v38 = vrot.slane %v2936_v31, 4  ;;  %v2941_v44 = vrot.slane %v2939_v34, 5  ;;  %v2905_v46 = vshll.u32 %v13613_v26, 16  ;;  %v14983_v26 = vld [vmem:[%s15234_s23 + $0x28] ss:$8 sps:$4 sm:$0xff]  }
  0x29   : > { %v697_v42 = vsel %vm15281_vm5, %v692_v32, %v15307_v24  ;;  %v15324_v45 = vrot.slane %v2945_v35, 5  ;;  %v2904_v50 = vrot.slane %v2902_v40, 4  ;;  %v2911_v51 = vshll.u32 %v13614_v36, 16  ;;  %v557_v35 = vld [vmem:[%s15234_s23 + $0x18] sm:$0xf] }
  0x2a   : > { %v13410_v48 = vcombine.low %v683_v27, %v697_v42  ;;  %v2929_v49 = vrot.slane %v2928_v37, 4  ;;  %v2942_v52 = vor.u32 %v2941_v44, %v2938_v38  ;;  %v2907_v53 = vrot.slane %v2905_v46, 5  ;;  %v558_v40 = vld [vmem:[%s15234_s23 + $0x1c] sm:$0x1]  ;;  %v14018_v43 = vld [vmem:[%s15234_s23 + $0x44] sm:$0xf] }
  0x2b   : > { %v2915_v54 = vshrl.u32 %v13614_v36, 16  ;;  %v5169_v57 = vshll.u32 %v14011_v41, 16  ;;  %v2913_v60 = vrot.slane %v2911_v51, 5  ;;  %v5173_v63 = vshrl.u32 %v14011_v41, 16 }
  0x2c   : > { %1576 = vrot.lane.b32.xlu0 %v13410_v48, %s15168_s27  ;;  %v2934_v59 = vsel %vm15281_vm5, %v2929_v49, %v2933_v33  ;;  %v5179_v1 = vshll.u32 %v14012_v47, 16  ;;  %v2943_v2 = vrot.slane %v2942_v52, 4  ;;  %v2908_v3 = vor.u32 %v2907_v53, %v2904_v50  ;;  %v14141_v48 = vld [vmem:[%s15234_s23 + $0x20] sm:$0xe]  ;;  %v14142_v52 = vld [vmem:[%s15234_s23 + $0x24] sm:$0xf] }
  0x2d   : > { %v2917_v4 = vrot.slane %v2915_v54, 4  ;;  %v15334_v5 = vrot.slane %v5169_v57, 5  ;;  %v5175_v6 = vrot.slane %v5173_v63, 4  ;;  %v5184_v8 = vshrl.u32 %v14013_v55, 16  ;;  %v14143_v57 = vld [vmem:[%s15234_s23 + $0x28] sm:$0xf] }
  0x2e   : > { %v5181_v7 = vrot.slane %v5179_v1, 5  ;;  %v5187_v9 = vshll.u32 %v14013_v55, 16  ;;  %v2948_v10 = vsel %vm15281_vm5, %v2943_v2, %v15324_v45  ;;  %v2909_v11 = vrot.slane %v2908_v3, 4  ;;  %v559_v1 = vld [vmem:[%s15234_s23 + $0x20] sm:$0xf] }
  0x2f   : > { %v2918_v13 = vor.u32 %v2917_v4, %v2913_v60  ;;  %v5193_v14 = vshll.u32 %v15332_v62, 16  ;;  %v13710_v17 = vcombine.low %v2934_v59, %v2948_v10  ;;  %v5176_v18 = vor.u32 %v5175_v6, %v15334_v5 }
  0x30   : > { %v5186_v20 = vrot.slane %v5184_v8, 4  ;;  %v5189_v21 = vrot.slane %v5187_v9, 5  ;;  %v2914_v23 = vsel %vm15281_vm5, %v2909_v11, %v2913_v60  ;;  %v5197_v29 = vshrl.u32 %v15332_v62, 16  ;;  %v15372_v8 = vld [vmem:[%s15234_s23 + $0x28] sm:$0xf]  ;;  %v14987_v62 = vld [vmem:[%s15234_s23 + $0x40] sm:$0xff]  }
  0x31   : > { %v2919_v25 = vrot.slane %v2918_v13, 4  ;;  %v15346_v27 = vrot.slane %v5193_v14, 5  ;;  %3827 = vrot.lane.b32.xlu1 %v13710_v17, %s15169_s28  ;;  %v5177_v31 = vrot.slane %v5176_v18, 4  ;;  %v5150_v33 = vshrl.u32 %v14009_v15, 16 }
  0x32   : > { %v5190_v32 = vor.u32 %v5189_v21, %v5186_v20  ;;  %v5153_v34 = vshll.u32 %v14009_v15, 16  ;;  %v5159_v37 = vshll.u32 %v14010_v22, 16  ;;  %v5163_v38 = vshrl.u32 %v14010_v22, 16 }
  0x33   : > { %v2924_v36 = vsel %vm15281_vm5, %v2919_v25, %v15313_v28  ;;  %v700_v41 = vrot.slane %v698_v16, 4  ;;  %v5182_v44 = vsel %vm15281_vm5, %v5177_v31, %v5181_v7  ;;  %v5152_v47 = vrot.slane %v5150_v33, 4  ;;  %v560_v7 = vld [vmem:[%s15234_s23 + $0x24] sm:$0xf]  ;;  %v14144_v25 = vld [vmem:[%s15234_s23 + $0x2c] sm:$0x1] }
  0x34   : > { %v13709_v42 = vcombine.low %v2914_v23, %v2924_v36  ;;  %v5191_v46 = vrot.slane %v5190_v32, 4  ;;  %v5155_v49 = vrot.slane %v5153_v34, 5  ;;  %v5161_v50 = vrot.slane %v5159_v37, 5 }
  0x35   : > { %v5165_v51 = vrot.slane %v5163_v38, 4  ;;  %v701_v28 = vor.u32 %v700_v41, %v15307_v24  ;;  %4910 = vrot.lane.b32.xlu1 %v14983_v26, %s15170_s29  ;;  %v704_v53 = vshll.u32 %v557_v35, 16  ;;  %v708_v54 = vshrl.u32 %v557_v35, 16  ;;  %v14145_v26 = vld [vmem:[%s15234_s23 + $0x30] sm:$0xe] }
  0x36   : > { %3825 = vrot.lane.b32.xlu0 %v13709_v42, %s15169_s28  ;;  %v5196_v16 = vsel %vm15281_vm5, %v5191_v46, %v15346_v27  ;;  %v714_v55 = vshll.u32 %v558_v40, 16  ;;  %v5156_v60 = vor.u32 %v5155_v49, %v5152_v47  ;;  %v14237_v6 = vrot.slane %v14141_v48, 9  ;;  %v15388_v35 = vld [vmem:[%s15234_s23 + $0x34] sm:$0xf]  ;;  %v1727_v40 = vld [vmem:[%s15234_s23 + $0x20] sm:$0xe] }
  0x37   : > { %v14106_v59 = vcombine.low %v5182_v44, %v5196_v16  ;;  %v5166_v24 = vor.u32 %v5165_v51, %v5161_v50  ;;  %v702_v63 = vrot.slane %v701_v28, 4  ;;  %v706_v2 = vrot.slane %v704_v53, 5  ;;  %v1728_v47 = vld [vmem:[%s15234_s23 + $0x24] sm:$0xf]  ;;  %v15400_v48 = vld [vmem:[%s15234_s23 + $0x28] sm:$0xf] }
  0x38   : > { %v710_v3 = vrot.slane %v708_v54, 4  ;;  %v716_v4 = vrot.slane %v714_v55, 5  ;;  %v5157_v9 = vrot.slane %v5156_v60, 4  ;;  %v6412_v11 = vrot.slane %v14142_v52, 5  ;;  %v1725_v52 = vld [vmem:[%s15234_s23 + $0x18] sm:$0xf] }
  0x39   : > { %v5167_v10 = vrot.slane %v5166_v24, 4  ;;  %v6415_v13 = vrot.slane %v14143_v57, 5  ;;  %6075 = vrot.lane.b32.xlu1 %v14106_v59, %s15171_s30  ;;  %v707_v14 = vsel %vm15281_vm5, %v702_v63, %v706_v2  ;;  %v719_v17 = vshrl.u32 %v559_v1, 16  ;;  %v1726_v55 = vld [vmem:[%s15234_s23 + $0x1c] sm:$0x1] }
  0x3a   : > { %4908 = vrot.lane.b32.xlu0 %v14984_v61, %s15170_s29  ;;  %v711_v15 = vor.u32 %v710_v3, %v706_v2  ;;  %v722_v18 = vshll.u32 %v559_v1, 16  ;;  %v5162_v20 = vsel %vm15281_vm5, %v5157_v9, %v5161_v50  ;;  %v6413_v22 = vsel %vm15227_vm2, %v14237_v6, %v6412_v11  ;;  %v13621_v63 = vld [vmem:[%s15234_s23 + $0x30] sm:$0xf]  ;;  %v13622_v6 = vld [vmem:[%s15234_s23 + $0x34] sm:$0xf] }
  0x3b   : > { %v5172_v21 = vsel %vm15281_vm5, %v5167_v10, %v15334_v5  ;;  %v6414_v23 = vrot.slane %v6412_v11, 4  ;;  %v721_v33 = vrot.slane %v719_v17, 4  ;;  %v728_v37 = vshll.u32 %v560_v7, 16 }
  0x3c   : > { %v14105_v31 = vcombine.low %v5162_v20, %v5172_v21  ;;  %v712_v32 = vrot.slane %v711_v15, 4  ;;  %v724_v34 = vrot.slane %v722_v18, 5  ;;  %v732_v5 = vshrl.u32 %v560_v7, 16  ;;  %v15432_v18 = vld [vmem:[%s15234_s23 + $0x38] sm:$0xf] }
  0x3d   : > { %v6416_v36 = vsel %vm15227_vm2, %v6414_v23, %v6415_v13  ;;  %v738_v38 = vshll.u32 %v15372_v8, 16  ;;  %v742_v46 = vshrl.u32 %v15372_v8, 16  ;;  %v730_v50 = vrot.slane %v728_v37, 5 }
  0x3e   : > { %6073 = vrot.lane.b32.xlu0 %v14105_v31, %s15171_s30  ;;  %v717_v41 = vsel %vm15281_vm5, %v712_v32, %v716_v4  ;;  %v14261_v42 = vcombine.low %v6413_v22, %v6416_v36  ;;  %v725_v44 = vor.u32 %v724_v34, %v721_v33  ;;  %v734_v51 = vrot.slane %v732_v5, 4  ;;  %v13619_v31 = vld [vmem:[%s15234_s23 + $0x28] sm:$0xf]  ;;  %v15003_v32 = vld [vmem:[%s20716_s1] sm:$0xff]   ;;  %v13620_v5 = vld [vmem:[%s15234_s23 + $0x2c] sm:$0x1] }
  0x3f   : > { %v13411_v49 = vcombine.low %v707_v14, %v717_v41  ;;  %v15402_v28 = vrot.slane %v738_v38, 5  ;;  %v6417_v16 = vrot.slane %v6415_v13, 4  ;;  %v6418_v53 = vrot.slane %v14144_v25, 5  ;;  %14875 = vmatprep.subr.bf16.mxu0 %v15003_v32 }
  0x40   : > { %v726_v61 = vrot.slane %v725_v44, 4  ;;  %v14238_v54 = vrot.slane %v14145_v26, 9  ;;  %v735_v57 = vor.u32 %v734_v51, %v730_v50  ;;  %v6422_v59 = vrot.slane %v15388_v35, 5  ;;  %v13753_v44 = vld [vmem:[%s15234_s23 + $0x30] sm:$0xe]  ;;  %14876 = vmatpush3.bf16.msra.mxu0 %v15003_v32 }
  0x41   : > { %1578 = vrot.lane.b32.xlu1 %v13411_v49, %s15168_s27  ;;  %v13447_v60 = vrot.slane %v1727_v40, 9  ;;  %v1936_v24 = vrot.slane %v1728_v47, 5  ;;  %v6419_v2 = vsel %vm15227_vm2, %v6417_v16, %v6418_v53  ;;  %v1939_v3 = vrot.slane %v15400_v48, 5  ;;  %v14985_v16 = vld [vmem:[%s15234_s23 + $0x30] sm:$0xff]   ;;  %v1734_v35 = vld [vmem:[%s15234_s23 + $0x3c] sm:$0x1] }
  0x42   : > { %6758 = vrot.lane.b32.xlu0 %v14261_v42, %s15172_s6  ;;  %v731_v1 = vsel %vm15281_vm5, %v726_v61, %v730_v50  ;;  %v1928_v4 = vrot.slane %v1926_v30, 4  ;;  %v736_v7 = vrot.slane %v735_v57, 4  ;;  %v6423_v9 = vsel %vm15227_vm2, %v14238_v54, %v6422_v59  ;;  %v15452_v61 = vld [vmem:[%s15234_s23 + $0x38] sm:$0xf]  ;;  %v14986_v57 = vld [vmem:[%s15234_s23 + $0x24] sm:$0xff]  }
  0x43   : > { %v1937_v10 = vsel %vm15227_vm2, %v13447_v60, %v1936_v24  ;;  %v1938_v11 = vrot.slane %v1936_v24, 4  ;;  %v14262_v13 = vcombine.low %v6419_v2, %v6423_v9  ;;  %v1929_v14 = vrot.slane %v1725_v52, 5  ;;  %v13754_v52 = vld [vmem:[%s15234_s23 + $0x34] sm:$0xf]  ;;  %v13752_v2 = vld [vmem:[%s15234_s23 + $0x2c] sm:$0x1] }
  0x44   : > { %v1932_v15 = vrot.slane %v1726_v55, 5  ;;  %v2970_v17 = vshrl.u32 %v13621_v63, 16  ;;  %v741_v19 = vsel %vm15281_vm5, %v736_v7, %v15402_v28  ;;  %v2973_v20 = vshll.u32 %v13621_v63, 16  ;;  %v13751_v55 = vld [vmem:[%s15234_s23 + $0x28] sm:$0xf] }
  0x45   : > { %v1940_v30 = vsel %vm15227_vm2, %v1938_v11, %v1939_v3  ;;  %v2979_v21 = vshll.u32 %v13622_v6, 16  ;;  %v13412_v22 = vcombine.low %v731_v1, %v741_v19  ;;  %v1930_v25 = vsel %vm15227_vm2, %v1928_v4, %v1929_v14 }
  0x46   : > { %6760 = vrot.lane.b32.xlu0 %v14262_v13, %s15172_s6  ;;  %v13472_v23 = vcombine.low %v1937_v10, %v1940_v30  ;;  %v1931_v26 = vrot.slane %v1929_v14, 4  ;;  %v2972_v33 = vrot.slane %v2970_v17, 4  ;;  %v2975_v34 = vrot.slane %v2973_v20, 5 }
  0x47   : > { %v2981_v36 = vrot.slane %v2979_v21, 5  ;;  %v2983_v37 = vshrl.u32 %v13622_v6, 16  ;;  %1580 = vrot.lane.b32.xlu1 %v13412_v22, %s15168_s27  ;;  %v2989_v40 = vshll.u32 %v15432_v18, 16  ;;  %v2993_v41 = vshrl.u32 %v15432_v18, 16 }
  0x48   : > { %v1933_v38 = vsel %vm15227_vm2, %v1931_v26, %v1932_v15  ;;  %v2951_v42 = vrot.slane %v2949_v39, 4  ;;  %v2976_v49 = vor.u32 %v2975_v34, %v2972_v33  ;;  %v2955_v51 = vshll.u32 %v13619_v31, 16 }
  0x49   : > { %v13471_v47 = vcombine.low %v1930_v25, %v1933_v38  ;;  %v2985_v50 = vrot.slane %v2983_v37, 4  ;;  %v15455_v53 = vrot.slane %v2989_v40, 5  ;;  %v2959_v12 = vshrl.u32 %v13619_v31, 16  ;;  %v15484_v31 = vld [vmem:[%s15234_s23 + $0x48] sm:$0xf] }
  0x4a   : > { %v2952_v54 = vor.u32 %v2951_v42, %v15324_v45  ;;  %v2965_v39 = vshll.u32 %v13620_v5, 16  ;;  %v2977_v60 = vrot.slane %v2976_v49, 4  ;;  %v2957_v63 = vrot.slane %v2955_v51, 5  ;;  %v14017_v45 = vld [vmem:[%s15234_s23 + $0x40] sm:$0xf] }
  0x4b   : > { %2266 = vrot.lane.b32.xlu0 %v13471_v47, %s15167_s26  ;;  %v2986_v24 = vor.u32 %v2985_v50, %v2981_v36  ;;  %v13843_v1 = vrot.slane %v13753_v44, 9  ;;  %2268 = vrot.lane.b32.xlu1 %v13472_v23, %s15167_s26  ;;  %v2961_v6 = vrot.slane %v2959_v12, 4  ;;  %v4184_v9 = vrot.slane %v13754_v52, 5  ;;  %v14015_v5 = vld [vmem:[%s15234_s23 + $0x38] sm:$0xf] }
  0x4c   : > { %v2953_v4 = vrot.slane %v2952_v54, 4  ;;  %v2967_v7 = vrot.slane %v2965_v39, 5  ;;  %v2982_v10 = vsel %vm15281_vm5, %v2977_v60, %v2981_v36  ;;  %v4187_v13 = vrot.slane %v15452_v61, 5  ;;  %v14016_v47 = vld [vmem:[%s15234_s23 + $0x3c] sm:$0x1] }
  0x4d   : > { %v2987_v11 = vrot.slane %v2986_v24, 4  ;;  %v4176_v14 = vrot.slane %v4174_v56, 4  ;;  %v2962_v17 = vor.u32 %v2961_v6, %v2957_v63  ;;  %v4185_v19 = vsel %vm15227_vm2, %v13843_v1, %v4184_v9  ;;  %v563_v6 = vld [vmem:[%s15234_s23 + $0x30] sm:$0xf] }
  0x4e   : > { %v2958_v15 = vsel %vm15281_vm5, %v2953_v4, %v2957_v63  ;;  %v4186_v30 = vrot.slane %v4184_v9, 4  ;;  %v4177_v21 = vrot.slane %v13751_v55, 5  ;;  %v4180_v22 = vrot.slane %v13752_v2, 5 }
  0x4f   : > { %2664 = vrot.lane.b32.xlu0 %v14986_v57, %s15165_s24  ;;  %v2992_v20 = vsel %vm15281_vm5, %v2987_v11, %v15455_v53  ;;  %v5218_v23 = vshrl.u32 %v14017_v45, 16  ;;  %2666 = vrot.lane.b32.xlu1 %v14985_v16, %s15165_s24  ;;  %v2963_v25 = vrot.slane %v2962_v17, 4  ;;  %v5221_v32 = vshll.u32 %v14017_v45, 16  ;;  %v562_v16 = vld [vmem:[%s15234_s23 + $0x2c] sm:$0x1] }
  0x50   : > { %v13712_v56 = vcombine.low %v2982_v10, %v2992_v20  ;;  %v4188_v26 = vsel %vm15227_vm2, %v4186_v30, %v4187_v13  ;;  %v4178_v34 = vsel %vm15227_vm2, %v4176_v14, %v4177_v21  ;;  %v4179_v36 = vrot.slane %v4177_v21, 4  ;;  %v564_v11 = vld [vmem:[%s15234_s23 + $0x34] sm:$0xf]  ;;  %v14147_v21 = vld [vmem:[%s15234_s23 + $0x38] sm:$0xf] }
  0x51   : > { %v13868_v33 = vcombine.low %v4185_v19, %v4188_v26  ;;  %v5220_v37 = vrot.slane %v5218_v23, 4  ;;  %v2968_v38 = vsel %vm15281_vm5, %v2963_v25, %v2967_v7  ;;  %v5223_v40 = vrot.slane %v5221_v32, 5  ;;  %v14148_v25 = vld [vmem:[%s15234_s23 + $0x3c] sm:$0x1] }
  0x52   : > { %v5227_v42 = vshll.u32 %v14018_v43, 16  ;;  %v5231_v44 = vshrl.u32 %v14018_v43, 16  ;;  %v13711_v49 = vcombine.low %v2958_v15, %v2968_v38  ;;  %v4181_v50 = vsel %vm15227_vm2, %v4179_v36, %v4180_v22  ;;  %v566_v36 = vld [vmem:[%s15234_s23 + $0x3c] sm:$0x1] }
  0x53   : > { %v5237_v51 = vshll.u32 %v15484_v31, 16  ;;  %v5241_v52 = vshrl.u32 %v15484_v31, 16  ;;  %3831 = vrot.lane.b32.xlu1 %v13712_v56, %s15169_s28  ;;  %v13867_v54 = vcombine.low %v4178_v34, %v4181_v50  ;;  %v5224_v12 = vor.u32 %v5223_v40, %v5220_v37  ;;  %v565_v34 = vld [vmem:[%s15234_s23 + $0x38] sm:$0xf] }
  0x54   : > { %v5229_v39 = vrot.slane %v5227_v42, 5  ;;  %v5233_v55 = vrot.slane %v5231_v44, 4  ;;  %3829 = vrot.lane.b32.xlu0 %v13711_v49, %s15169_s28  ;;  %v5199_v60 = vrot.slane %v5197_v29, 4  ;;  %v5203_v24 = vshll.u32 %v14015_v5, 16  ;;  %v14149_v42 = vld [vmem:[%s15234_s23 + $0x40] sm:$0xe] }
  0x55   : > { %v15499_v57 = vrot.slane %v5237_v51, 5  ;;  %v5207_v63 = vshrl.u32 %v14015_v5, 16  ;;  %v5225_v1 = vrot.slane %v5224_v12, 4  ;;  %v5213_v4 = vshll.u32 %v14016_v47, 16  ;;  %v14150_v51 = vld [vmem:[%s15234_s23 + $0x44] sm:$0xf] }
  0x56   : > { %v5234_v2 = vor.u32 %v5233_v55, %v5229_v39  ;;  %v744_v7 = vrot.slane %v742_v46, 4  ;;  %v5200_v9 = vor.u32 %v5199_v60, %v15346_v27  ;;  %v5205_v45 = vrot.slane %v5203_v24, 5  ;;  %v14988_v27 = vld [vmem:[%s15234_s23 + $0x34] sm:$0xff]   ;;  %v15535_v55 = vld [vmem:[%s15234_s23 + $0x48] sm:$0xf] }
  0x57   : > { %v5209_v10 = vrot.slane %v5207_v63, 4  ;;  %v748_v14 = vshll.u32 %v562_v16, 16  ;;  %4516 = vrot.lane.b32.xlu1 %v13868_v33, %s15166_s25  ;;  %v5230_v29 = vsel %vm15281_vm5, %v5225_v1, %v5229_v39  ;;  %v5215_v17 = vrot.slane %v5213_v4, 5  ;;  %v1733_v4 = vld [vmem:[%s15234_s23 + $0x38] sm:$0xf] }
  0x58   : > { %v5235_v15 = vrot.slane %v5234_v2, 4  ;;  %v745_v19 = vor.u32 %v744_v7, %v15402_v28  ;;  %4514 = vrot.lane.b32.xlu0 %v13867_v54, %s15166_s25  ;;  %v5201_v8 = vrot.slane %v5200_v9, 4  ;;  %v753_v20 = vshrl.u32 %v563_v6, 16  ;;  %v1732_v2 = vld [vmem:[%s15234_s23 + $0x34] sm:$0xf] }
  0x59   : > { %v5210_v46 = vor.u32 %v5209_v10, %v5205_v45  ;;  %v750_v30 = vrot.slane %v748_v14, 5  ;;  %v756_v23 = vshll.u32 %v563_v6, 16  ;;  %v762_v56 = vshll.u32 %v564_v11, 16 }
  0x5a   : > { %v5240_v22 = vsel %vm15281_vm5, %v5235_v15, %v15499_v57  ;;  %v746_v43 = vrot.slane %v745_v19, 4  ;;  %v5206_v26 = vsel %vm15281_vm5, %v5201_v8, %v5205_v45  ;;  %v755_v33 = vrot.slane %v753_v20, 4  ;;  %v1730_v19 = vld [vmem:[%s15234_s23 + $0x2c] sm:$0x1]  ;;  %v1731_v20 = vld [vmem:[%s15234_s23 + $0x30] sm:$0xe] }
  0x5b   : > { %v14108_v28 = vcombine.low %v5230_v29, %v5240_v22  ;;  %v5211_v32 = vrot.slane %v5210_v46, 4  ;;  %4914 = vrot.lane.b32.xlu1 %v14987_v62, %s15170_s29  ;;  %v758_v5 = vrot.slane %v756_v23, 5  ;;  %v764_v38 = vrot.slane %v762_v56, 5  ;;  %v13626_v56 = vld [vmem:[%s15234_s23 + $0x44] sm:$0xf] }
  0x5c   : > { %v751_v37 = vsel %vm15281_vm5, %v746_v43, %v750_v30  ;;  %v766_v40 = vshrl.u32 %v564_v11, 16  ;;  %4912 = vrot.lane.b32.xlu0 %v14988_v27, %s15170_s29  ;;  %v6424_v47 = vrot.slane %v6422_v59, 4  ;;  %v6425_v49 = vrot.slane %v14147_v21, 5 }
  0x5d   : > { %v5216_v44 = vsel %vm15281_vm5, %v5211_v32, %v5215_v17  ;;  %v6428_v50 = vrot.slane %v14148_v25, 5  ;;  %v759_v54 = vor.u32 %v758_v5, %v755_v33  ;;  %v772_v39 = vshll.u32 %v565_v34, 16 }
  0x5e   : > { %v14107_v16 = vcombine.low %v5206_v26, %v5216_v44  ;;  %v768_v12 = vrot.slane %v766_v40, 4  ;;  %v6426_v60 = vsel %vm15227_vm2, %v6424_v47, %v6425_v49  ;;  %v6427_v24 = vrot.slane %v6425_v49, 4  ;;  %v13627_v40 = vld [vmem:[%s15234_s23 + $0x48] sm:$0xf] }
  0x5f   : > { %v776_v63 = vshrl.u32 %v565_v34, 16  ;;  %v782_v1 = vshll.u32 %v566_v36, 16  ;;  %6079 = vrot.lane.b32.xlu1 %v14108_v28, %s15171_s30  ;;  %v760_v59 = vrot.slane %v759_v54, 4  ;;  %v774_v7 = vrot.slane %v772_v39, 5 }
  0x60   : > { %v769_v6 = vor.u32 %v768_v12, %v764_v38  ;;  %v14239_v9 = vrot.slane %v14149_v42, 9  ;;  %6077 = vrot.lane.b32.xlu0 %v14107_v16, %s15171_s30  ;;  %v6429_v45 = vsel %vm15227_vm2, %v6427_v24, %v6428_v50  ;;  %v6432_v14 = vrot.slane %v14150_v51, 5  ;;  %v13628_v42 = vld [vmem:[%s15234_s23 + $0x4c] sm:$0x1]  ;;  %v13624_v51 = vld [vmem:[%s15234_s23 + $0x3c] sm:$0x1] }
  0x61   : > { %v778_v10 = vrot.slane %v776_v63, 4  ;;  %v784_v11 = vrot.slane %v782_v1, 5  ;;  %v765_v62 = vsel %vm15281_vm5, %v760_v59, %v764_v38  ;;  %v14263_v29 = vcombine.low %v6426_v60, %v6429_v45  ;;  %v13625_v16 = vld [vmem:[%s15234_s23 + $0x40] sm:$0xf]  ;;  %v13758_v24 = vld [vmem:[%s15234_s23 + $0x44] sm:$0xf] }
  0x62   : > { %v770_v15 = vrot.slane %v769_v6, 4  ;;  %v6435_v17 = vrot.slane %v15535_v55, 5  ;;  %v13413_v27 = vcombine.low %v751_v37, %v765_v62  ;;  %v6433_v46 = vsel %vm15227_vm2, %v14239_v9, %v6432_v14  ;;  %v14990_v59 = vld [vmem:[%s15234_s23 + $0x38] ss:$8 sps:$4 sm:$0xff]  }
  0x63   : > { %v779_v8 = vor.u32 %v778_v10, %v774_v7  ;;  %v6434_v30 = vrot.slane %v6432_v14, 4  ;;  %v1946_v22 = vrot.slane %v1732_v2, 5  ;;  %v1949_v43 = vrot.slane %v1733_v4, 5  ;;  %v13760_v10 = vld [vmem:[%s15234_s23 + $0x4c] sm:$0x1] }
  0x64   : > { %v775_v21 = vsel %vm15281_vm5, %v770_v15, %v774_v7  ;;  %v1952_v23 = vrot.slane %v1734_v35, 5  ;;  %1582 = vrot.lane.b32.xlu1 %v13413_v27, %s15168_s27  ;;  %6762 = vrot.lane.b32.xlu0 %v14263_v29, %s15172_s6  ;;  %v1941_v26 = vrot.slane %v1939_v3, 4  ;;  %v1942_v32 = vrot.slane %v1730_v19, 5  ;;  %v13759_v35 = vld [vmem:[%s15234_s23 + $0x48] sm:$0xf] }
  0x65   : > { %v780_v25 = vrot.slane %v779_v8, 4  ;;  %v6436_v28 = vsel %vm15227_vm2, %v6434_v30, %v6435_v17  ;;  %v1948_v34 = vrot.slane %v1946_v22, 4  ;;  %v1951_v36 = vrot.slane %v1949_v43, 4  ;;  %v13756_v15 = vld [vmem:[%s15234_s23 + $0x3c] sm:$0x1] }
  0x66   : > { %v14264_v33 = vcombine.low %v6433_v46, %v6436_v28  ;;  %v13448_v37 = vrot.slane %v1731_v20, 9  ;;  %v1943_v38 = vsel %vm15227_vm2, %v1941_v26, %v1942_v32  ;;  %v3013_v44 = vshll.u32 %v13626_v56, 16  ;;  %v13757_v8 = vld [vmem:[%s15234_s23 + $0x40] sm:$0xe]  ;;  %v14989_v46 = vld [vmem:[%s15234_s23 + $0x44] sm:$0xff]  }
  0x67   : > { %v785_v5 = vsel %vm15281_vm5, %v780_v25, %v784_v11  ;;  %v3017_v47 = vshrl.u32 %v13626_v56, 16  ;;  %v1950_v3 = vsel %vm15227_vm2, %v1948_v34, %v1949_v43  ;;  %v1953_v49 = vsel %vm15227_vm2, %v1951_v36, %v1952_v23  ;;  %v14022_v43 = vld [vmem:[%s15234_s23 + $0x54] sm:$0xf]  ;;  %v14023_v34 = vld [vmem:[%s15234_s23 + $0x58] sm:$0xf] }
  0x68   : > { %v13414_v48 = vcombine.low %v775_v21, %v785_v5  ;;  %v1947_v50 = vsel %vm15227_vm2, %v13448_v37, %v1946_v22  ;;  %6764 = vrot.lane.b32.xlu0 %v14264_v33, %s15172_s6  ;;  %v13474_v54 = vcombine.low %v1950_v3, %v1953_v49  ;;  %v3015_v39 = vrot.slane %v3013_v44, 5  ;;  %v14024_v36 = vld [vmem:[%s15234_s23 + $0x5c] sm:$0x1] }
  0x69   : > { %v13473_v12 = vcombine.low %v1943_v38, %v1947_v50  ;;  %v3019_v60 = vrot.slane %v3017_v47, 4  ;;  %v3023_v63 = vshll.u32 %v13627_v40, 16  ;;  %v3027_v1 = vshrl.u32 %v13627_v40, 16 }
  0x6a   : > { %1584 = vrot.lane.b32.xlu1 %v13414_v48, %s15168_s27  ;;  %v3033_v2 = vshll.u32 %v13628_v42, 16  ;;  %v2995_v4 = vrot.slane %v2993_v41, 4  ;;  %v2999_v7 = vshll.u32 %v13624_v51, 16  ;;  %v3004_v9 = vshrl.u32 %v13625_v16, 16  ;;  %v14020_v42 = vld [vmem:[%s15234_s23 + $0x4c] sm:$0x1] }
  0x6b   : > { %v3020_v6 = vor.u32 %v3019_v60, %v3015_v39  ;;  %v3007_v45 = vshll.u32 %v13625_v16, 16  ;;  %v3025_v11 = vrot.slane %v3023_v63, 5  ;;  %v3029_v14 = vrot.slane %v3027_v1, 4  ;;  %v14021_v51 = vld [vmem:[%s15234_s23 + $0x50] sm:$0xf] }
  0x6c   : > { %v3035_v62 = vrot.slane %v3033_v2, 5  ;;  %v2996_v29 = vor.u32 %v2995_v4, %v15455_v53  ;;  %2270 = vrot.lane.b32.xlu0 %v13473_v12, %s15167_s26  ;;  %v3001_v41 = vrot.slane %v2999_v7, 5  ;;  %v3006_v19 = vrot.slane %v3004_v9, 4  ;;  %v14156_v9 = vld [vmem:[%s15234_s23 + $0x5c] sm:$0x1] }
  0x6d   : > { %v3021_v18 = vrot.slane %v3020_v6, 4  ;;  %v3009_v27 = vrot.slane %v3007_v45, 5  ;;  %v3030_v30 = vor.u32 %v3029_v14, %v3025_v11  ;;  %v4194_v21 = vrot.slane %v13758_v24, 5  ;;  %v14154_v24 = vld [vmem:[%s15234_s23 + $0x54] sm:$0xf] }
  0x6e   : > { %2272 = vrot.lane.b32.xlu1 %v13474_v54, %s15167_s26  ;;  %v2997_v20 = vrot.slane %v2996_v29, 4  ;;  %v4197_v22 = vrot.slane %v13759_v35, 5  ;;  %v4200_v56 = vrot.slane %v13760_v10, 5  ;;  %v4189_v25 = vrot.slane %v4187_v13, 4 }
  0x6f   : > { %v3026_v53 = vsel %vm15281_vm5, %v3021_v18, %v3025_v11  ;;  %v3010_v23 = vor.u32 %v3009_v27, %v3006_v19  ;;  %v3031_v28 = vrot.slane %v3030_v30, 4  ;;  %v4196_v32 = vrot.slane %v4194_v21, 4  ;;  %v14153_v19 = vld [vmem:[%s15234_s23 + $0x50] sm:$0xe]  ;;  %v14991_v30 = vld [vmem:[%s15234_s23 + $0x54] sm:$0xff]  }
  0x70   : > { %v3002_v26 = vsel %vm15281_vm5, %v2997_v20, %v3001_v41  ;;  %v4199_v33 = vrot.slane %v4197_v22, 4  ;;  %2668 = vrot.lane.b32.xlu0 %v14990_v59, %s15165_s24  ;;  %v4190_v5 = vrot.slane %v13756_v15, 5  ;;  %v13844_v38 = vrot.slane %v13757_v8, 9  ;;  %v14992_v20 = vld [vmem:[%s15234_s23 + $0x48] ss:$8 sps:$4 sm:$0xff]  }
  0x71   : > { %v3011_v37 = vrot.slane %v3010_v23, 4  ;;  %v5261_v40 = vshll.u32 %v14022_v43, 16  ;;  %v3036_v61 = vsel %vm15281_vm5, %v3031_v28, %v3035_v62  ;;  %v4198_v13 = vsel %vm15227_vm2, %v4196_v32, %v4197_v22  ;;  %v14152_v62 = vld [vmem:[%s15234_s23 + $0x4c] sm:$0x1] }
  0x72   : > { %2670 = vrot.lane.b32.xlu1 %v14989_v46, %s15165_s24  ;;  %v4201_v44 = vsel %vm15227_vm2, %v4199_v33, %v4200_v56  ;;  %v5265_v47 = vshrl.u32 %v14022_v43, 16  ;;  %v13714_v48 = vcombine.low %v3026_v53, %v3036_v61  ;;  %v4191_v50 = vsel %vm15227_vm2, %v4189_v25, %v4190_v5  ;;  %v569_v46 = vld [vmem:[%s15234_s23 + $0x48] sm:$0xf]  ;;  %v570_v28 = vld [vmem:[%s15234_s23 + $0x4c] sm:$0x1] }
  0x73   : > { %v3016_v3 = vsel %vm15281_vm5, %v3011_v37, %v3015_v39  ;;  %v13870_v49 = vcombine.low %v4198_v13, %v4201_v44  ;;  %v4195_v54 = vsel %vm15227_vm2, %v13844_v38, %v4194_v21  ;;  %v15617_v12 = vrot.slane %v5261_v40, 5  ;;  %v14155_v39 = vld [vmem:[%s15234_s23 + $0x58] sm:$0xf]  ;;  %v15650_v38 = vld [vmem:[%s15234_s23 + $0x54] sm:$0xf] }
  0x74   : > { %v13713_v16 = vcombine.low %v3002_v26, %v3016_v3  ;;  %v5267_v60 = vrot.slane %v5265_v47, 4  ;;  %v13869_v63 = vcombine.low %v4191_v50, %v4195_v54  ;;  %v5271_v1 = vshll.u32 %v14023_v34, 16  ;;  %v567_v40 = vld [vmem:[%s15234_s23 + $0x40] sm:$0xf]  ;;  %v568_v47 = vld [vmem:[%s15234_s23 + $0x44] sm:$0xf] }
  0x75   : > { %v5275_v2 = vshrl.u32 %v14023_v34, 16  ;;  %v5281_v4 = vshll.u32 %v14024_v36, 16  ;;  %v5243_v59 = vrot.slane %v5241_v52, 4  ;;  %v5247_v6 = vshll.u32 %v14020_v42, 16  ;;  %v571_v34 = vld [vmem:[%s15234_s23 + $0x50] sm:$0xf] }
  0x76   : > { %3835 = vrot.lane.b32.xlu1 %v13714_v48, %s15169_s28  ;;  %3833 = vrot.lane.b32.xlu0 %v13713_v16, %s15169_s28  ;;  %v5268_v35 = vor.u32 %v5267_v60, %v15617_v12  ;;  %v5252_v7 = vshrl.u32 %v14021_v51, 16  ;;  %v5273_v45 = vrot.slane %v5271_v1, 5  ;;  %v5255_v14 = vshll.u32 %v14021_v51, 16  ;;  %v15666_v51 = vld [vmem:[%s15234_s23 + $0x48] sm:$0xf] }
  0x77   : > { %v5277_v10 = vrot.slane %v5275_v2, 4  ;;  %v5283_v11 = vrot.slane %v5281_v4, 5  ;;  %v5244_v15 = vor.u32 %v5243_v59, %v15499_v57  ;;  %v5249_v18 = vrot.slane %v5247_v6, 5 }
  0x78   : > { %v5269_v29 = vrot.slane %v5268_v35, 4  ;;  %v5254_v41 = vrot.slane %v5252_v7, 4  ;;  %v5257_v31 = vrot.slane %v5255_v14, 5  ;;  %v6442_v52 = vrot.slane %v14154_v24, 5 }
  0x79   : > { %v5278_v27 = vor.u32 %v5277_v10, %v5273_v45  ;;  %v6445_v8 = vrot.slane %v14155_v39, 5  ;;  %v5245_v57 = vrot.slane %v5244_v15, 4  ;;  %v6448_v22 = vrot.slane %v14156_v9, 5  ;;  %v1739_v39 = vld [vmem:[%s15234_s23 + $0x50] sm:$0xe] }
  0x7a   : > { %4520 = vrot.lane.b32.xlu1 %v13870_v49, %s15166_s25  ;;  %4518 = vrot.lane.b32.xlu0 %v13869_v63, %s15166_s25  ;;  %v5274_v21 = vsel %vm15281_vm5, %v5269_v29, %v5273_v45  ;;  %v6437_v43 = vrot.slane %v6435_v17, 4  ;;  %v5258_v23 = vor.u32 %v5257_v31, %v5254_v41  ;;  %v6444_v56 = vrot.slane %v6442_v52, 4  ;;  %v1738_v63 = vld [vmem:[%s15234_s23 + $0x4c] sm:$0x1]  ;;  %v15675_v9 = vld [vmem:[%s15234_s23 + $0x54] sm:$0xf] }
  0x7b   : > { %v5279_v53 = vrot.slane %v5278_v27, 4  ;;  %v6447_v25 = vrot.slane %v6445_v8, 4  ;;  %v5250_v26 = vsel %vm15281_vm5, %v5245_v57, %v5249_v18  ;;  %v6438_v32 = vrot.slane %v14152_v62, 5  ;;  %v1735_v62 = vld [vmem:[%s15234_s23 + $0x40] sm:$0xe] }
  0x7c   : > { %v14240_v33 = vrot.slane %v14153_v19, 9  ;;  %v806_v36 = vshll.u32 %v569_v46, 16  ;;  %v5259_v55 = vrot.slane %v5258_v23, 4  ;;  %v6446_v17 = vsel %vm15227_vm2, %v6444_v56, %v6445_v8  ;;  %v1736_v19 = vld [vmem:[%s15234_s23 + $0x44] sm:$0xf] }
  0x7d   : > { %v5284_v37 = vsel %vm15281_vm5, %v5279_v53, %v5283_v11  ;;  %v6449_v5 = vsel %vm15227_vm2, %v6447_v25, %v6448_v22  ;;  %v6439_v13 = vsel %vm15227_vm2, %v6437_v43, %v6438_v32  ;;  %v810_v49 = vshrl.u32 %v569_v46, 16  ;;  %v13631_v46 = vld [vmem:[%s15234_s23 + $0x58] sm:$0xf]  ;;  %v13632_v32 = vld [vmem:[%s15234_s23 + $0x5c] sm:$0x1] }
  0x7e   : > { %4918 = vrot.lane.b32.xlu1 %v14991_v30, %s15170_s29  ;;  %4916 = vrot.lane.b32.xlu0 %v14992_v20, %s15170_s29  ;;  %v14110_v42 = vcombine.low %v5274_v21, %v5284_v37  ;;  %v14266_v61 = vcombine.low %v6446_v17, %v6449_v5  ;;  %v15657_v44 = vrot.slane %v806_v36, 5  ;;  %v5264_v48 = vsel %vm15281_vm5, %v5259_v55, %v15617_v12  ;;  %v13633_v37 = vld [vmem:[%s15234_s23 + $0x60] sm:$0xf]  ;;  %v15701_v55 = vld [vmem:[%s15234_s23 + $0x64] sm:$0xf] }
  0x7f   : > { %v6443_v3 = vsel %vm15227_vm2, %v14240_v33, %v6442_v52  ;;  %v816_v50 = vshll.u32 %v570_v28, 16  ;;  %v14109_v16 = vcombine.low %v5250_v26, %v5264_v48  ;;  %v821_v60 = vshrl.u32 %v571_v34, 16 }
  0x80   : > { %v14265_v54 = vcombine.low %v6439_v13, %v6443_v3  ;;  %v824_v24 = vshll.u32 %v571_v34, 16  ;;  %v812_v1 = vrot.slane %v810_v49, 4  ;;  %v830_v4 = vshll.u32 %v15650_v38, 16  ;;  %v13629_v13 = vld [vmem:[%s15234_s23 + $0x50] sm:$0xf] }
  0x81   : > { %v818_v2 = vrot.slane %v816_v50, 5  ;;  %v834_v12 = vshrl.u32 %v15650_v38, 16  ;;  %v823_v35 = vrot.slane %v821_v60, 4  ;;  %v787_v6 = vshrl.u32 %v567_v40, 16  ;;  %v13630_v60 = vld [vmem:[%s15234_s23 + $0x54] sm:$0xf] }
  0x82   : > { %6083 = vrot.lane.b32.xlu1 %v14110_v42, %s15171_s30  ;;  %6081 = vrot.lane.b32.xlu0 %v14109_v16, %s15171_s30  ;;  %v826_v59 = vrot.slane %v824_v24, 5  ;;  %v790_v7 = vshll.u32 %v567_v40, 16  ;;  %v813_v45 = vor.u32 %v812_v1, %v15657_v44  ;;  %v15678_v10 = vrot.slane %v830_v4, 5  ;;  %v15718_v24 = vld [vmem:[%s15234_s23 + $0x58] sm:$0xf] }
  0x83   : > { %v796_v11 = vshll.u32 %v568_v47, 16  ;;  %v800_v14 = vshrl.u32 %v568_v47, 16  ;;  %v789_v15 = vrot.slane %v787_v6, 4  ;;  %v1959_v41 = vrot.slane %v15666_v51, 5 }
  0x84   : > { %v827_v29 = vor.u32 %v826_v59, %v823_v35  ;;  %v792_v18 = vrot.slane %v790_v7, 5  ;;  %v814_v27 = vrot.slane %v813_v45, 4  ;;  %v1962_v8 = vrot.slane %v1738_v63, 5  ;;  %v13764_v35 = vld [vmem:[%s15234_s23 + $0x5c] sm:$0x1] }
  0x85   : > { %v798_v31 = vrot.slane %v796_v11, 5  ;;  %v802_v52 = vrot.slane %v800_v14, 4  ;;  %v1961_v21 = vrot.slane %v1959_v41, 4  ;;  %v13450_v57 = vrot.slane %v1739_v39, 9  ;;  %v13765_v14 = vld [vmem:[%s15234_s23 + $0x60] sm:$0xe] }
  0x86   : > { %6768 = vrot.lane.b32.xlu1 %v14266_v61, %s15172_s6  ;;  %6766 = vrot.lane.b32.xlu0 %v14265_v54, %s15172_s6  ;;  %v828_v30 = vrot.slane %v827_v29, 4  ;;  %v793_v20 = vor.u32 %v792_v18, %v789_v15  ;;  %v819_v22 = vsel %vm15281_vm5, %v814_v27, %v818_v2  ;;  %v1966_v53 = vrot.slane %v15675_v9, 5  ;;  %v15720_v63 = vpop.permute.xlu1 %2662  ;;  %v14993_v2 = vld [vmem:[%s15234_s23 + $0x58] ss:$8 sps:$4 sm:$0xff]   ;;  %v13637_v9 = vld [vmem:[%s15234_s23 + $0x70] sm:$0xf] }
  0x87   : > { %v803_v43 = vor.u32 %v802_v52, %v798_v31  ;;  %v13449_v23 = vrot.slane %v1735_v62, 9  ;;  %v1963_v28 = vsel %vm15227_vm2, %v1961_v21, %v1962_v8  ;;  %v1956_v26 = vrot.slane %v1736_v19, 5  ;;  %v15725_v59 = vpop.permute.xlu0 %2660  ;;  %v14994_v19 = vld [vmem:[%s15234_s23 + $0x50] sm:$0xff]  }
  0x88   : > { %v833_v56 = vsel %vm15281_vm5, %v828_v30, %v15678_v10  ;;  %v794_v25 = vrot.slane %v793_v20, 4  ;;  %v1967_v36 = vsel %vm15227_vm2, %v13450_v57, %v1966_v53  ;;  %v3057_v17 = vshll.u32 %v13631_v46, 16 }
  0x89   : > { %v13416_v33 = vcombine.low %v819_v22, %v833_v56  ;;  %v804_v34 = vrot.slane %v803_v43, 4  ;;  %v13476_v40 = vcombine.low %v1963_v28, %v1967_v36  ;;  %v1957_v42 = vsel %vm15227_vm2, %v13449_v23, %v1956_v26  ;;  %v13762_v22 = vld [vmem:[%s15234_s23 + $0x54] sm:$0xf] }
  0x8a   : > { %v799_v5 = vsel %vm15281_vm5, %v794_v25, %v798_v31  ;;  %v1958_v61 = vrot.slane %v1956_v26, 4  ;;  %v15712_v48 = vrot.slane %v3057_v17, 5  ;;  %v3061_v3 = vshrl.u32 %v13631_v46, 16  ;;  %v13761_v46 = vld [vmem:[%s15234_s23 + $0x50] sm:$0xe] }
  0x8b   : > { %1588 = vrot.lane.b32.xlu1 %v13416_v33, %s15168_s27  ;;  %v809_v47 = vsel %vm15281_vm5, %v804_v34, %v15657_v44  ;;  %v3067_v49 = vshll.u32 %v13632_v32, 16  ;;  %v3072_v16 = vshrl.u32 %v13633_v37, 16  ;;  %v3075_v54 = vshll.u32 %v13633_v37, 16  ;;  %v14027_v26 = vld [vmem:[%s15234_s23 + $0x68] sm:$0xf] }
  0x8c   : > { %v13415_v50 = vcombine.low %v799_v5, %v809_v47  ;;  %v1960_v51 = vsel %vm15227_vm2, %v1958_v61, %v1959_v41  ;;  %v3063_v44 = vrot.slane %v3061_v3, 4  ;;  %v3081_v39 = vshll.u32 %v15701_v55, 16  ;;  %v15735_v41 = vld [vmem:[%s15234_s23 + $0x64] sm:$0xf]  ;;  %v14028_v17 = vld [vmem:[%s15234_s23 + $0x6c] sm:$0x1] }
  0x8d   : > { %v13475_v1 = vcombine.low %v1957_v42, %v1960_v51  ;;  %v3069_v4 = vrot.slane %v3067_v49, 5  ;;  %v3074_v6 = vrot.slane %v3072_v16, 4  ;;  %v3077_v7 = vrot.slane %v3075_v54, 5 }
  0x8e   : > { %1586 = vrot.lane.b32.xlu0 %v13415_v50, %s15168_s27  ;;  %v3085_v45 = vshrl.u32 %v15701_v55, 16  ;;  %v3038_v11 = vshrl.u32 %v13629_v13, 16  ;;  %v3064_v62 = vor.u32 %v3063_v44, %v15712_v48  ;;  %v15732_v29 = vrot.slane %v3081_v39, 5  ;;  %v15749_v37 = vpop.permute.xlu0 %4510  ;;  %v14025_v39 = vld [vmem:[%s15234_s23 + $0x60] sm:$0xf] }
  0x8f   : > { %2276 = vrot.lane.b32.xlu1 %v13476_v40, %s15167_s26  ;;  %v3041_v15 = vshll.u32 %v13629_v13, 16  ;;  %v3047_v18 = vshll.u32 %v13630_v60, 16  ;;  %v3078_v27 = vor.u32 %v3077_v7, %v3074_v6  ;;  %v3051_v52 = vshrl.u32 %v13630_v60, 16  ;;  %v15742_v28 = vpop.permute.xlu1 %2262  ;;  %v14029_v13 = vld [vmem:[%s15234_s23 + $0x70] sm:$0xf]  ;;  %v15001_v6 = vld [vmem:[%s15234_s23 + $0x14] sm:$0xff]  }
  0x90   : > { %v3040_v31 = vrot.slane %v3038_v11, 4  ;;  %v4207_v8 = vrot.slane %v15718_v24, 5  ;;  %v3065_v30 = vrot.slane %v3064_v62, 4  ;;  %v4210_v57 = vrot.slane %v13764_v35, 5  ;;  %v15768_v24 = vld [vmem:[%s15234_s23 + $0x74] sm:$0xf] }
  0x91   : > { %v3043_v20 = vrot.slane %v3041_v15, 5  ;;  %v3049_v21 = vrot.slane %v3047_v18, 5  ;;  %v3079_v43 = vrot.slane %v3078_v27, 4  ;;  %v3053_v23 = vrot.slane %v3051_v52, 4  ;;  %v14997_v35 = vld [vmem:[%s15234_s23] sm:$0xff]   ;;  %517 = vst.msk [vmem:[#allocation2 + $0x10] sm:$0xff] %vm20727_vm6, %v15001_v6 }
  0x92   : > { %2274 = vrot.lane.b32.xlu0 %v13475_v1, %s15167_s26  ;;  %v4209_v56 = vrot.slane %v4207_v8, 4  ;;  %v13846_v25 = vrot.slane %v13765_v14, 9  ;;  %v3070_v32 = vsel %vm15281_vm5, %v3065_v30, %v3069_v4  ;;  %v4214_v34 = vrot.slane %v15735_v41, 5  ;;  %v15002_v7 = vld [vmem:[%s15234_s23 + $0x20] sm:$0xff]   ;;  %v14998_v27 = vld [vmem:[%s15234_s23 + $0x8] ss:$8 sps:$4 sm:$0xff]  }
  0x93   : > { %2674 = vrot.lane.b32.xlu1 %v14993_v2, %s15165_s24  ;;  %v3044_v33 = vor.u32 %v3043_v20, %v3040_v31  ;;  %v13845_v36 = vrot.slane %v13761_v46, 9  ;;  %v3084_v5 = vsel %vm15281_vm5, %v3079_v43, %v15732_v29  ;;  %v3054_v40 = vor.u32 %v3053_v23, %v3049_v21  ;;  %v14026_v18 = vld [vmem:[%s15234_s23 + $0x64] sm:$0xf]  ;;  %v14995_v46 = vld [vmem:[%s15234_s23 + $0x68] ss:$8 sps:$4 sm:$0xff]   ;;  %515 = vst.msk [vmem:[#allocation2] sm:$0xff] %vm20727_vm6, %v14997_v35 }
  0x94   : > { %v4211_v42 = vsel %vm15227_vm2, %v4209_v56, %v4210_v57  ;;  %v4204_v61 = vrot.slane %v13762_v22, 5  ;;  %v13716_v47 = vcombine.low %v3070_v32, %v3084_v5  ;;  %v4215_v49 = vsel %vm15227_vm2, %v13846_v25, %v4214_v34  ;;  %v15016_v57 = vld [vmem:[%s15234_s23 + $0x40] sm:$0xff]   ;;  %v15793_v56 = vld [vmem:[%s15234_s23 + $0x68] sm:$0xf]  ;;  %v14160_v25 = vld [vmem:[%s15234_s23 + $0x6c] sm:$0x1] }
  0x95   : > { %v3045_v3 = vrot.slane %v3044_v33, 4  ;;  %v5305_v50 = vshll.u32 %v14027_v26, 16  ;;  %v3055_v51 = vrot.slane %v3054_v40, 4  ;;  %v13872_v16 = vcombine.low %v4211_v42, %v4215_v49  ;;  %v15801_v5 = vld [vmem:[%s15234_s23 + $0x74] sm:$0xf]  ;;  %516 = vst.msk [vmem:[#allocation2 + $0x8] sm:$0xff] %vm20727_vm6, %v14998_v27 }
  0x96   : > { %2672 = vrot.lane.b32.xlu0 %v14994_v19, %s15165_s24  ;;  %v15765_v54 = vsel %vm15227_vm2, %v13845_v36, %v4204_v61  ;;  %v4206_v60 = vrot.slane %v4204_v61, 4  ;;  %v5309_v44 = vshrl.u32 %v14027_v26, 16  ;;  %v5315_v4 = vshll.u32 %v14028_v17, 16  ;;  %v2265_v19 = vpop.permute.xlu1 %2264  ;;  %v14161_v17 = vld [vmem:[%s15234_s23 + $0x70] sm:$0xe]  ;;  %518 = vst.msk [vmem:[#allocation2 + $0x18] sm:$0xff] %vm20727_vm6, %v15002_v7 }
  0x97   : > { %3839 = vrot.lane.b32.xlu1 %v13716_v47, %s15169_s28  ;;  %v3050_v1 = vsel %vm15281_vm5, %v3045_v3, %v3049_v21  ;;  %v15773_v2 = vrot.slane %v5305_v50, 5  ;;  %v3060_v11 = vsel %vm15281_vm5, %v3055_v51, %v15712_v48  ;;  %v5320_v62 = vshrl.u32 %v14029_v13, 16  ;;  %v15010_v48 = vld [vmem:[%s15234_s23 + $0x34] sm:$0xff]   ;;  %v14996_v47 = vld [vmem:[%s15234_s23 + $0x60] sm:$0xff]   ;;  %521 = vst.msk [vmem:[#allocation2 + $0x30] sm:$0xff] %vm20727_vm6, %v15016_v57 }
  0x98   : > { %v4208_v14 = vsel %vm15227_vm2, %v4206_v60, %v4207_v8  ;;  %v5323_v15 = vshll.u32 %v14029_v13, 16  ;;  %v13715_v31 = vcombine.low %v3050_v1, %v3060_v11  ;;  %v5311_v30 = vrot.slane %v5309_v44, 4  ;;  %v14157_v13 = vld [vmem:[%s15234_s23 + $0x60] sm:$0xe]  ;;  %520 = vst.msk [vmem:[#allocation2 + $0x28] sm:$0xff] %vm20727_vm6, %v15010_v48 }
  0x99   : > { %v13871_v52 = vcombine.low %v15765_v54, %v4208_v14  ;;  %v5317_v20 = vrot.slane %v5315_v4, 5  ;;  %v1575_v21 = vpop.permute.xlu0 %1574  ;;  %v5322_v22 = vrot.slane %v5320_v62, 4  ;;  %v5329_v43 = vshll.u32 %v15768_v24, 16  ;;  %v575_v4 = vld [vmem:[%s15234_s23 + $0x60] sm:$0xf] }
  0x9a   : > { %v5325_v8 = vrot.slane %v5323_v15, 5  ;;  %v5333_v23 = vshrl.u32 %v15768_v24, 16  ;;  %3837 = vrot.lane.b32.xlu0 %v13715_v31, %s15169_s28  ;;  %v5312_v26 = vor.u32 %v5311_v30, %v15773_v2  ;;  %v5286_v32 = vshrl.u32 %v14025_v39, 16  ;;  %v15814_v1 = vpop.permute.xlu1 %4512  ;;  %1683 = vst.msk [vmem:[#allocation2] sm:$0xff] %vm20721_vm7, %v1575_v21  ;;  %v576_v11 = vld [vmem:[%s15234_s23 + $0x64] sm:$0xf] }
  0x9b   : > { %4524 = vrot.lane.b32.xlu1 %v13872_v16, %s15166_s25  ;;  %v5289_v33 = vshll.u32 %v14025_v39, 16  ;;  %v5295_v36 = vshll.u32 %v14026_v18, 16  ;;  %v15803_v42 = vrot.slane %v5329_v43, 5  ;;  %v5299_v61 = vshrl.u32 %v14026_v18, 16  ;;  %v14158_v16 = vld [vmem:[%s15234_s23 + $0x64] sm:$0xf] }
  0x9c   : > { %v5326_v40 = vor.u32 %v5325_v8, %v5322_v22  ;;  %v5313_v3 = vrot.slane %v5312_v26, 4  ;;  %v5288_v49 = vrot.slane %v5286_v32, 4  ;;  %v6455_v6 = vrot.slane %v15793_v56, 5  ;;  %2371 = vst.msk [vmem:[#allocation2] sm:$0xff] %vm2370_vm8, %v15742_v28  ;;  %v15843_v57 = vld [vmem:[%s15234_s23 + $0x68] sm:$0xf] }
  0x9d   : > { %v5291_v50 = vrot.slane %v5289_v33, 5  ;;  %v5297_v51 = vrot.slane %v5295_v36, 5  ;;  %v5301_v60 = vrot.slane %v5299_v61, 4  ;;  %v6458_v7 = vrot.slane %v14160_v25, 5  ;;  %v573_v32 = vld [vmem:[%s15234_s23 + $0x58] sm:$0xf] }
  0x9e   : > { %v5327_v54 = vrot.slane %v5326_v40, 4  ;;  %v1577_v44 = vpop.permute.xlu0 %1576  ;;  %4522 = vrot.lane.b32.xlu0 %v13871_v52, %s15166_s25  ;;  %v5318_v39 = vsel %vm15281_vm5, %v5313_v3, %v5317_v20  ;;  %v14242_v15 = vrot.slane %v14161_v17, 9  ;;  %v6462_v18 = vrot.slane %v15801_v5, 5  ;;  %2769 = vst.msk [vmem:[#allocation2] sm:$0xff] %vm20722_vm9, %v15725_v59  ;;  %v15006_v41 = vld [vmem:[%s20716_s1 + $0x8] sm:$0x3f]  }
  0x9f   : > { %4922 = vrot.lane.b32.xlu1 %v14995_v46, %s15170_s29  ;;  %v5292_v35 = vor.u32 %v5291_v50, %v5288_v49  ;;  %1684 = vst.msk [vmem:[#allocation2 + $0x8] sm:$0xff] %vm20721_vm7, %v1577_v44  ;;  %v5302_v62 = vor.u32 %v5301_v60, %v5297_v51  ;;  %v6457_v52 = vrot.slane %v6455_v6, 4  ;;  %v14241_v46 = vrot.slane %v14157_v13, 9  ;;  %v574_v13 = vld [vmem:[%s15234_s23 + $0x5c] sm:$0x1] }
  0xa0   : > { %v5332_v14 = vsel %vm15281_vm5, %v5327_v54, %v15803_v42  ;;  %2372 = vst.msk [vmem:[#allocation2 + $0x8] sm:$0xff] %vm2370_vm8, %v2265_v19  ;;  %v6463_v20 = vsel %vm15227_vm2, %v14242_v15, %v6462_v18  ;;  %v6452_v21 = vrot.slane %v14158_v16, 5  ;;  %v855_v48 = vshrl.u32 %v575_v4, 16  ;;  %v1743_v60 = vld [vmem:[%s15234_s23 + $0x60] sm:$0xe] }
  0xa1   : > { %v14112_v27 = vcombine.low %v5318_v39, %v5332_v14  ;;  %v5293_v31 = vrot.slane %v5292_v35, 4  ;;  %v5303_v30 = vrot.slane %v5302_v62, 4  ;;  %v6459_v19 = vsel %vm15227_vm2, %v6457_v52, %v6458_v7  ;;  %v1744_v7 = vld [vmem:[%s15234_s23 + $0x64] sm:$0xf]  ;;  %2770 = vst.msk [vmem:[#allocation2 + $0x8] sm:$0xff] %vm20722_vm9, %v15720_v63 }
  0xa2   : > { %4920 = vrot.lane.b32.xlu0 %v14996_v47, %s15170_s29  ;;  %v858_v22 = vshll.u32 %v575_v4, 16  ;;  %v864_v8 = vshll.u32 %v576_v11, 16  ;;  %v14268_v56 = vcombine.low %v6459_v19, %v6463_v20  ;;  %v6453_v25 = vsel %vm15227_vm2, %v14241_v46, %v6452_v21  ;;  %v1741_v52 = vld [vmem:[%s15234_s23 + $0x58] sm:$0xf] }
  0xa3   : > { %6087 = vrot.lane.b32.xlu1 %v14112_v27, %s15171_s30  ;;  %v5298_v28 = vsel %vm15281_vm5, %v5293_v31, %v5297_v51  ;;  %v5308_v43 = vsel %vm15281_vm5, %v5303_v30, %v15773_v2  ;;  %v6454_v26 = vrot.slane %v6452_v21, 4  ;;  %v3828_v33 = vpop.permute.xlu1 %3827  ;;  %v857_v17 = vrot.slane %v855_v48, 4  ;;  %v15866_v27 = vld [vmem:[%s15234_s23 + $0x68] sm:$0xf]  ;;  %v1742_v21 = vld [vmem:[%s15234_s23 + $0x5c] sm:$0x1] }
  0xa4   : > { %v14111_v36 = vcombine.low %v5298_v28, %v5308_v43  ;;  %v860_v40 = vrot.slane %v858_v22, 5  ;;  %v866_v61 = vrot.slane %v864_v8, 5  ;;  %v868_v3 = vshrl.u32 %v576_v11, 16  ;;  %3935 = vst.msk [vmem:[#allocation2 + $0x8] sm:$0xff] %vm20748_vm10, %v3828_v33 }
  0xa5   : > { %v6456_v47 = vsel %vm15227_vm2, %v6454_v26, %v6455_v6  ;;  %v874_v2 = vshll.u32 %v15843_v57, 16  ;;  %v878_v49 = vshrl.u32 %v15843_v57, 16  ;;  %v836_v16 = vrot.slane %v834_v12, 4  ;;  %4620 = vst.msk [vmem:[#allocation2 + $0x8] sm:$0xff] %vm20746_vm11, %v15814_v1  ;;  %v1746_v57 = vld [vmem:[%s15234_s23 + $0x6c] sm:$0x1] }
  0xa6   : > { %6085 = vrot.lane.b32.xlu0 %v14111_v36, %s15171_s30  ;;  %v14267_v50 = vcombine.low %v6453_v25, %v6456_v47  ;;  %v861_v51 = vor.u32 %v860_v40, %v857_v17  ;;  %v840_v54 = vshll.u32 %v573_v32, 16  ;;  %v870_v44 = vrot.slane %v868_v3, 4 }
  0xa7   : > { %6772 = vrot.lane.b32.xlu1 %v14268_v56, %s15172_s6  ;;  %v15861_v4 = vrot.slane %v874_v2, 5  ;;  %v844_v39 = vshrl.u32 %v573_v32, 16  ;;  %v850_v35 = vshll.u32 %v574_v13, 16  ;;  %v4911_v11 = vpop.permute.xlu1 %4910  ;;  %v837_v62 = vor.u32 %v836_v16, %v15678_v10  ;;  %v15902_v13 = vld [vmem:[%s15234_s23 + $0x78] sm:$0xf] }
  0xa8   : > { %v3826_v6 = vpop.permute.xlu0 %3825  ;;  %v862_v14 = vrot.slane %v861_v51, 4  ;;  %v842_v15 = vrot.slane %v840_v54, 5  ;;  %v871_v38 = vor.u32 %v870_v44, %v866_v61  ;;  %v13451_v30 = vrot.slane %v1743_v60, 9  ;;  %5018 = vst.msk [vmem:[#allocation2 + $0x8] sm:$0xff] %vm20745_vm12, %v4911_v11  ;;  %v13636_v54 = vld [vmem:[%s15234_s23 + $0x6c] sm:$0x1] }
  0xa9   : > { %v846_v12 = vrot.slane %v844_v39, 4  ;;  %v852_v31 = vrot.slane %v850_v35, 5  ;;  %v838_v46 = vrot.slane %v837_v62, 4  ;;  %3934 = vst.msk [vmem:[#allocation2] sm:$0xff] %vm20748_vm10, %v3826_v6  ;;  %v1976_v20 = vrot.slane %v1744_v7, 5  ;;  %v15021_v7 = vld [vmem:[%s15234_s23 + $0x60] sm:$0xff]  }
  0xaa   : > { %6770 = vrot.lane.b32.xlu0 %v14267_v50, %s15172_s6  ;;  %v867_v10 = vsel %vm15281_vm5, %v862_v14, %v866_v61  ;;  %v872_v48 = vrot.slane %v871_v38, 4  ;;  %v1979_v28 = vrot.slane %v15866_v27, 5  ;;  %v1968_v59 = vrot.slane %v1966_v53, 4  ;;  %4619 = vst.msk [vmem:[#allocation2] sm:$0xff] %vm20746_vm11, %v15749_v37  ;;  %v13638_v61 = vld [vmem:[%s15234_s23 + $0x74] sm:$0xf] }
  0xab   : > { %v847_v63 = vor.u32 %v846_v12, %v842_v15  ;;  %v843_v22 = vsel %vm15281_vm5, %v838_v46, %v842_v15  ;;  %v1977_v8 = vsel %vm15227_vm2, %v13451_v30, %v1976_v20  ;;  %v1978_v43 = vrot.slane %v1976_v20, 4  ;;  %v6076_v25 = vpop.permute.xlu1 %6075  ;;  %v13635_v50 = vld [vmem:[%s15234_s23 + $0x68] sm:$0xf]  ;;  %v13769_v60 = vld [vmem:[%s15234_s23 + $0x70] sm:$0xe]  ;;  %524 = vst.msk [vmem:[#allocation2 + $0x48] sm:$0xff] %vm20727_vm6, %v15021_v7 }
  0xac   : > { %v4909_v19 = vpop.permute.xlu0 %4908  ;;  %v1969_v56 = vrot.slane %v1741_v52, 5  ;;  %v877_v26 = vsel %vm15281_vm5, %v872_v48, %v15861_v4  ;;  %v1972_v33 = vrot.slane %v1742_v21, 5  ;;  %v3106_v51 = vshrl.u32 %v13637_v9, 16  ;;  %6183 = vst.msk [vmem:[#allocation2 + $0x8] sm:$0xff] %vm20744_vm13, %v6076_v25  ;;  %v14999_v11 = vld [vmem:[%s15234_s23 + $0x70] sm:$0xff]   ;;  %v15000_v21 = vld [vmem:[%s15234_s23 + $0x64] sm:$0xff]  }
  0xad   : > { %v848_v32 = vrot.slane %v847_v63, 4  ;;  %v13418_v53 = vcombine.low %v867_v10, %v877_v26  ;;  %v1980_v36 = vsel %vm15227_vm2, %v1978_v43, %v1979_v28  ;;  %5017 = vst.msk [vmem:[#allocation2] sm:$0xff] %vm20745_vm12, %v4909_v19  ;;  %v3109_v16 = vshll.u32 %v13637_v9, 16  ;;  %v13767_v43 = vld [vmem:[%s15234_s23 + $0x68] sm:$0xf] }
  0xae   : > { %v1970_v17 = vsel %vm15227_vm2, %v1968_v59, %v1969_v56  ;;  %v1971_v40 = vrot.slane %v1969_v56, 4  ;;  %v13478_v3 = vcombine.low %v1977_v8, %v1980_v36  ;;  %v3115_v39 = vshll.u32 %v13638_v61, 16  ;;  %v15932_v59 = vld [vmem:[%s15234_s23 + $0x78] sm:$0xf]  ;;  %v14034_v7 = vld [vmem:[%s15234_s23 + $0x84] sm:$0xf] }
  0xaf   : > { %v853_v47 = vsel %vm15281_vm5, %v848_v32, %v852_v31  ;;  %1592 = vrot.lane.b32.xlu1 %v13418_v53, %s15168_s27  ;;  %v3119_v35 = vshrl.u32 %v13638_v61, 16  ;;  %v3125_v6 = vshll.u32 %v15902_v13, 16  ;;  %v3108_v14 = vrot.slane %v3106_v51, 4  ;;  %v13770_v31 = vld [vmem:[%s15234_s23 + $0x74] sm:$0xf] }
  0xb0   : > { %v6074_v2 = vpop.permute.xlu0 %6073  ;;  %v13417_v1 = vcombine.low %v843_v22, %v853_v47  ;;  %v1973_v37 = vsel %vm15227_vm2, %v1971_v40, %v1972_v33  ;;  %v3111_v62 = vrot.slane %v3109_v16, 5  ;;  %v3129_v15 = vshrl.u32 %v15902_v13, 16  ;;  %v15022_v56 = vld [vmem:[%s15234_s23 + $0x54] sm:$0xff]  }
  0xb1   : > { %v13477_v44 = vcombine.low %v1970_v17, %v1973_v37  ;;  %6182 = vst.msk [vmem:[#allocation2] sm:$0xff] %vm20744_vm13, %v6074_v2  ;;  %v3087_v38 = vrot.slane %v3085_v45, 4  ;;  %v3117_v52 = vrot.slane %v3115_v39, 5  ;;  %v3121_v10 = vrot.slane %v3119_v35, 4  ;;  %v14033_v39 = vld [vmem:[%s15234_s23 + $0x80] sm:$0xf] }
  0xb2   : > { %1590 = vrot.lane.b32.xlu0 %v13417_v1, %s15168_s27  ;;  %v15924_v46 = vrot.slane %v3125_v6, 5  ;;  %v3091_v30 = vshll.u32 %v13635_v50, 16  ;;  %v3112_v55 = vor.u32 %v3111_v62, %v3108_v14  ;;  %v3095_v48 = vshrl.u32 %v13635_v50, 16  ;;  %523 = vst.msk [vmem:[#allocation2 + $0x40] sm:$0xff] %vm20727_vm6, %v15022_v56  ;;  %v15009_v35 = vld [vmem:[%s15234_s23 + $0x28] ss:$8 sps:$4 sm:$0xff]  }
  0xb3   : > { %v1579_v12 = vpop.permute.xlu1 %1578  ;;  %2280 = vrot.lane.b32.xlu1 %v13478_v3, %s15167_s26  ;;  %v3088_v45 = vor.u32 %v3087_v38, %v15732_v29  ;;  %v3101_v63 = vshll.u32 %v13636_v54, 16  ;;  %v3122_v19 = vor.u32 %v3121_v10, %v3117_v52  ;;  %v13847_v8 = vrot.slane %v13769_v60, 9  ;;  %v13768_v29 = vld [vmem:[%s15234_s23 + $0x6c] sm:$0x1]  ;;  %v14031_v10 = vld [vmem:[%s15234_s23 + $0x78] sm:$0xf] }
  0xb4   : > { %1685 = vst.msk [vmem:[#allocation2 + $0x10] sm:$0xff] %vm20721_vm7, %v1579_v12  ;;  %v6759_v20 = vpop.permute.xlu0 %6758  ;;  %v3093_v22 = vrot.slane %v3091_v30, 5  ;;  %v3113_v25 = vrot.slane %v3112_v55, 4  ;;  %v3097_v32 = vrot.slane %v3095_v48, 4  ;;  %v4224_v53 = vrot.slane %v13770_v31, 5 }
  0xb5   : > { %v3089_v26 = vrot.slane %v3088_v45, 4  ;;  %v3103_v33 = vrot.slane %v3101_v63, 5  ;;  %6867 = vst.msk [vmem:[#allocation2] sm:$0xff] %vm20743_vm14, %v6759_v20  ;;  %v3123_v9 = vrot.slane %v3122_v19, 4  ;;  %v4227_v36 = vrot.slane %v15932_v59, 5  ;;  %v15004_v19 = vld [vmem:[%s15234_s23 + $0x80] sm:$0xff]  }
  0xb6   : > { %2278 = vrot.lane.b32.xlu0 %v13477_v44, %s15167_s26  ;;  %v4216_v17 = vrot.slane %v4214_v34, 4  ;;  %v3118_v61 = vsel %vm15281_vm5, %v3113_v25, %v3117_v52  ;;  %v3098_v3 = vor.u32 %v3097_v32, %v3093_v22  ;;  %v4217_v2 = vrot.slane %v13767_v43, 5  ;;  %v15976_v52 = vld [vmem:[%s15234_s23 + $0x88] sm:$0xf]  ;;  %519 = vst.msk [vmem:[#allocation2 + $0x20] sm:$0xff] %vm20727_vm6, %v15009_v35 }
  0xb7   : > { %2678 = vrot.lane.b32.xlu1 %v14999_v11, %s15165_s24  ;;  %v3094_v47 = vsel %vm15281_vm5, %v3089_v26, %v3093_v22  ;;  %v3128_v34 = vsel %vm15281_vm5, %v3123_v9, %v15924_v46  ;;  %v4225_v50 = vsel %vm15227_vm2, %v13847_v8, %v4224_v53  ;;  %v4226_v1 = vrot.slane %v4224_v53, 4  ;;  %v14032_v48 = vld [vmem:[%s15234_s23 + $0x7c] sm:$0x1]  ;;  %v14165_v63 = vld [vmem:[%s15234_s23 + $0x80] sm:$0xe] }
  0xb8   : > { %v6761_v40 = vpop.permute.xlu0 %6760  ;;  %v4220_v37 = vrot.slane %v13768_v29, 5  ;;  %v13718_v16 = vcombine.low %v3118_v61, %v3128_v34  ;;  %v3099_v54 = vrot.slane %v3098_v3, 4  ;;  %v15960_v60 = vsel %vm15227_vm2, %v4216_v17, %v4217_v2  ;;  %v14166_v25 = vld [vmem:[%s15234_s23 + $0x84] sm:$0xf]  ;;  %v15995_v9 = vld [vmem:[%s15234_s23 + $0x88] sm:$0xf] }
  0xb9   : > { %6868 = vst.msk [vmem:[#allocation2 + $0x8] sm:$0xff] %vm20743_vm14, %v6761_v40  ;;  %v1581_v51 = vpop.permute.xlu1 %1580  ;;  %v4219_v44 = vrot.slane %v4217_v2, 4  ;;  %v4228_v6 = vsel %vm15227_vm2, %v4226_v1, %v4227_v36  ;;  %v15173_v12 = vmov 65535   ;;  %v5354_v8 = vshrl.u32 %v14033_v39, 16  ;;  %v14164_v1 = vld [vmem:[%s15234_s23 + $0x7c] sm:$0x1] }
  0xba   : > { %2676 = vrot.lane.b32.xlu0 %v15000_v21, %s15165_s24  ;;  %1686 = vst.msk [vmem:[#allocation2 + $0x18] sm:$0xff] %vm20721_vm7, %v1581_v51  ;;  %v3104_v11 = vsel %vm15281_vm5, %v3099_v54, %v3103_v33  ;;  %v13874_v14 = vcombine.low %v4225_v50, %v4228_v6  ;;  %v7072_v31 = vsel %vm7070_vm15, 4294967295, %v15173_v12  ;;  %v5357_v43 = vshll.u32 %v14033_v39, 16  ;;  %v14163_v50 = vld [vmem:[%s15234_s23 + $0x78] sm:$0xf] }
  0xbb   : > { %3843 = vrot.lane.b32.xlu1 %v13718_v16, %s15169_s28  ;;  %v4221_v62 = vsel %vm15227_vm2, %v4219_v44, %v4220_v37  ;;  %v13717_v30 = vcombine.low %v3094_v47, %v3104_v11  ;;  %v7073_v55 = vsel %vm7071_vm0, %v7072_v31, 0  ;;  %v5363_v56 = vshll.u32 %v14034_v7, 16  ;;  %v15005_v44 = vld [vmem:[%s15234_s23 + $0x74] sm:$0xff]  }
  0xbc   : > { %v13873_v20 = vcombine.low %v15960_v60, %v4221_v62  ;;  %v6903_v45 = vld [vmem:[#allocation2] sm:$0xff]  ;;  %v7075_v22 = vand.u32 %v15006_v41, %v7073_v55  ;;  %v5367_v26 = vshrl.u32 %v14034_v7, 16  ;;  %v5373_v32 = vshll.u32 %v15976_v52, 16  ;;  %v580_v60 = vld [vmem:[%s15234_s23 + $0x74] sm:$0xf] }
  0xbd   : > { %v2267_v38 = vpop.permute.xlu0 %2266  ;;  %v2269_v21 = vpop.permute.xlu1 %2268  ;;  %14879 = vmatprep.mubr.msk.bf16.mxu0 %vm20747_vm1, %v6903_v45  ;;  %v5377_v33 = vshrl.u32 %v15976_v52, 16  ;;  %v5335_v29 = vrot.slane %v5333_v23, 4  ;;  %v5356_v53 = vrot.slane %v5354_v8, 4  ;;  %v5359_v17 = vrot.slane %v5357_v43, 5  ;;  %v14039_v59 = vld [vmem:[%s15234_s23 + $0x98] sm:$0xf] }
  0xbe   : > { %2373 = vst.msk [vmem:[#allocation2 + $0x10] sm:$0xff] %vm2370_vm8, %v2267_v38  ;;  %2374 = vst.msk [vmem:[#allocation2 + $0x18] sm:$0xff] %vm2370_vm8, %v2269_v21  ;;  %3841 = vrot.lane.b32.xlu0 %v13717_v30, %s15169_s28  ;;  %14877 = vmatprep.subr.bf16.mxu0 %v7075_v22  ;;  %v5365_v40 = vrot.slane %v5363_v56, 5  ;;  %v5339_v61 = vshll.u32 %v14031_v10, 16  ;;  %v5369_v3 = vrot.slane %v5367_v26, 4  ;;  %v15998_v2 = vrot.slane %v5373_v32, 5 }
  0xbf   : > { %4528 = vrot.lane.b32.xlu1 %v13874_v14, %s15166_s25  ;;  %14878 = vmatpush3.bf16.msra.mxu0 %v7075_v22  ;;  %v5336_v24 = vor.u32 %v5335_v29, %v15803_v42  ;;  %v5343_v23 = vshrl.u32 %v14031_v10, 16  ;;  %v5360_v37 = vor.u32 %v5359_v17, %v5356_v53  ;;  %v5349_v16 = vshll.u32 %v14032_v48, 16  ;;  %v582_v26 = vld [vmem:[%s15234_s23 + $0x7c] sm:$0x1]  ;;  %v14169_v52 = vld [vmem:[%s15234_s23 + $0x90] sm:$0xe] }
  0xc0   : > { %v6904_v34 = vld [vmem:[#allocation2 + $0x8] sm:$0xff]  ;;  %v5341_v51 = vrot.slane %v5339_v61, 5  ;;  %v14243_v54 = vrot.slane %v14165_v63, 9  ;;  %v5370_v39 = vor.u32 %v5369_v3, %v5365_v40  ;;  %v6472_v6 = vrot.slane %v14166_v25, 5  ;;  %v581_v63 = vld [vmem:[%s15234_s23 + $0x78] sm:$0xf] }
  0xc1   : > { %v2665_v47 = vpop.permute.xlu0 %2664  ;;  %v2667_v41 = vpop.permute.xlu1 %2666  ;;  %v5337_v35 = vrot.slane %v5336_v24, 4  ;;  %v5345_v42 = vrot.slane %v5343_v23, 4  ;;  %v5361_v7 = vrot.slane %v5360_v37, 4  ;;  %v5351_v11 = vrot.slane %v5349_v16, 5  ;;  %v579_v61 = vld [vmem:[%s15234_s23 + $0x70] sm:$0xf] }
  0xc2   : > { %2771 = vst.msk [vmem:[#allocation2 + $0x10] sm:$0xff] %vm20722_vm9, %v2665_v47  ;;  %2772 = vst.msk [vmem:[#allocation2 + $0x18] sm:$0xff] %vm20722_vm9, %v2667_v41  ;;  %4526 = vrot.lane.b32.xlu0 %v13873_v20, %s15166_s25  ;;  %14880 = vmatmul.mubr.msk.bf16.vlgmr.msra.gmra.mrb[0].mxu0 %vm20747_vm1, %v6904_v34  ;;  %v6475_v14 = vrot.slane %v15995_v9, 5  ;;  %v6464_v62 = vrot.slane %v6462_v18, 4  ;;  %v5371_v38 = vrot.slane %v5370_v39, 4  ;;  %v6473_v10 = vsel %vm15227_vm2, %v14243_v54, %v6472_v6 }
  0xc3   : > { %4926 = vrot.lane.b32.xlu1 %v15004_v19, %s15170_s29  ;;  %v5342_v12 = vsel %vm15281_vm5, %v5337_v35, %v5341_v51  ;;  %v5346_v31 = vor.u32 %v5345_v42, %v5341_v51  ;;  %v5366_v20 = vsel %vm15281_vm5, %v5361_v7, %v5365_v40  ;;  %v6474_v21 = vrot.slane %v6472_v6, 4  ;;  %v578_v40 = vld [vmem:[%s15234_s23 + $0x6c] sm:$0x1]  ;;  %v1748_v16 = vld [vmem:[%s15234_s23 + $0x74] sm:$0xf] }
  0xc4   : > { %v6465_v55 = vrot.slane %v14163_v50, 5  ;;  %v6468_v45 = vrot.slane %v14164_v1, 5  ;;  %v5376_v18 = vsel %vm15281_vm5, %v5371_v38, %v15998_v2  ;;  %v898_v19 = vshll.u32 %v580_v60, 16  ;;  %v1749_v54 = vld [vmem:[%s15234_s23 + $0x78] sm:$0xf] }
  0xc5   : > { %v3832_v30 = vpop.permute.xlu1 %3831  ;;  %v5347_v48 = vrot.slane %v5346_v31, 4  ;;  %v902_v22 = vshrl.u32 %v580_v60, 16  ;;  %v14114_v8 = vcombine.low %v5366_v20, %v5376_v18  ;;  %v6476_v43 = vsel %vm15227_vm2, %v6474_v21, %v6475_v14  ;;  %v1750_v42 = vld [vmem:[%s15234_s23 + $0x7c] sm:$0x1] }
  0xc6   : > { %3937 = vst.msk [vmem:[#allocation2 + $0x18] sm:$0xff] %vm20748_vm10, %v3832_v30  ;;  %v3830_v5 = vpop.permute.xlu0 %3829  ;;  %4924 = vrot.lane.b32.xlu0 %v15005_v44, %s15170_s29  ;;  %v6466_v56 = vsel %vm15227_vm2, %v6464_v62, %v6465_v55  ;;  %v6467_v25 = vrot.slane %v6465_v55, 4  ;;  %v14270_v29 = vcombine.low %v6473_v10, %v6476_v43  ;;  %v16035_v53 = vrot.slane %v898_v19, 5  ;;  %v1747_v30 = vld [vmem:[%s15234_s23 + $0x70] sm:$0xe] }
  0xc7   : > { %3936 = vst.msk [vmem:[#allocation2 + $0x10] sm:$0xff] %vm20748_vm10, %v3830_v5  ;;  %v5352_v32 = vsel %vm15281_vm5, %v5347_v48, %v5351_v11  ;;  %v904_v17 = vrot.slane %v902_v22, 4  ;;  %6091 = vrot.lane.b32.xlu1 %v14114_v8, %s15171_s30  ;;  %v908_v23 = vshll.u32 %v581_v63, 16  ;;  %v912_v41 = vshrl.u32 %v581_v63, 16  ;;  %v13642_v5 = vld [vmem:[%s15234_s23 + $0x84] sm:$0xf] }
  0xc8   : > { %v14113_v3 = vcombine.low %v5342_v12, %v5352_v32  ;;  %v6469_v24 = vsel %vm15227_vm2, %v6467_v25, %v6468_v45  ;;  %v918_v37 = vshll.u32 %v582_v26, 16  ;;  %v880_v51 = vrot.slane %v878_v49, 4 }
  0xc9   : > { %v4517_v47 = vpop.permute.xlu1 %4516  ;;  %v14269_v50 = vcombine.low %v6466_v56, %v6469_v24  ;;  %v905_v1 = vor.u32 %v904_v17, %v16035_v53  ;;  %v910_v60 = vrot.slane %v908_v23, 5  ;;  %v914_v44 = vrot.slane %v912_v41, 4  ;;  %v13644_v17 = vld [vmem:[%s15234_s23 + $0x8c] sm:$0x1]  ;;  %v13640_v23 = vld [vmem:[%s15234_s23 + $0x7c] sm:$0x1] }
  0xca   : > { %4622 = vst.msk [vmem:[#allocation2 + $0x18] sm:$0xff] %vm20746_vm11, %v4517_v47  ;;  %v4515_v34 = vpop.permute.xlu0 %4514  ;;  %6089 = vrot.lane.b32.xlu0 %v14113_v3, %s15171_s30  ;;  %v884_v39 = vshll.u32 %v578_v40, 16  ;;  %v889_v35 = vshrl.u32 %v579_v61, 16  ;;  %v920_v7 = vrot.slane %v918_v37, 5  ;;  %v881_v11 = vor.u32 %v880_v51, %v15861_v4  ;;  %v13641_v41 = vld [vmem:[%s15234_s23 + $0x80] sm:$0xf] }
  0xcb   : > { %4621 = vst.msk [vmem:[#allocation2 + $0x10] sm:$0xff] %vm20746_vm11, %v4515_v34  ;;  %v906_v6 = vrot.slane %v905_v1, 4  ;;  %v892_v62 = vshll.u32 %v579_v61, 16  ;;  %6776 = vrot.lane.b32.xlu1 %v14270_v29, %s15172_s6  ;;  %v915_v38 = vor.u32 %v914_v44, %v910_v60  ;;  %v1986_v10 = vrot.slane %v1748_v16, 5  ;;  %v15027_v34 = vld [vmem:[%s15234_s23 + $0x74] sm:$0xff]  }
  0xcc   : > { %v886_v12 = vrot.slane %v884_v39, 5  ;;  %v891_v31 = vrot.slane %v889_v35, 4  ;;  %v882_v55 = vrot.slane %v881_v11, 4  ;;  %v1989_v4 = vrot.slane %v1749_v54, 5  ;;  %v16089_v39 = vld [vmem:[%s15234_s23 + $0x84] sm:$0xf] }
  0xcd   : > { %v4915_v49 = vpop.permute.xlu1 %4914  ;;  %v911_v21 = vsel %vm15281_vm5, %v906_v6, %v910_v60  ;;  %v894_v45 = vrot.slane %v892_v62, 5  ;;  %v916_v18 = vrot.slane %v915_v38, 4  ;;  %v1988_v48 = vrot.slane %v1986_v10, 4  ;;  %526 = vst.msk [vmem:[#allocation2 + $0x58] sm:$0xff] %vm20727_vm6, %v15027_v34 }
  0xce   : > { %5020 = vst.msk [vmem:[#allocation2 + $0x18] sm:$0xff] %vm20745_vm12, %v4915_v49  ;;  %v4913_v20 = vpop.permute.xlu0 %4912  ;;  %6774 = vrot.lane.b32.xlu0 %v14269_v50, %s15172_s6  ;;  %v1992_v63 = vrot.slane %v1750_v42, 5  ;;  %v1981_v19 = vrot.slane %v1979_v28, 4  ;;  %v887_v22 = vsel %vm15281_vm5, %v882_v55, %v886_v12  ;;  %v1991_v43 = vrot.slane %v1989_v4, 4  ;;  %v13643_v28 = vld [vmem:[%s15234_s23 + $0x88] sm:$0xf] }
  0xcf   : > { %5019 = vst.msk [vmem:[#allocation2 + $0x10] sm:$0xff] %vm20745_vm12, %v4913_v20  ;;  %v895_v8 = vor.u32 %v894_v45, %v891_v31  ;;  %v1982_v56 = vrot.slane %v1746_v57, 5  ;;  %v921_v26 = vsel %vm15281_vm5, %v916_v18, %v920_v7  ;;  %v1990_v32 = vsel %vm15227_vm2, %v1988_v48, %v1989_v4  ;;  %v13775_v12 = vld [vmem:[%s15234_s23 + $0x88] sm:$0xf] }
  0xd0   : > { %v13452_v29 = vrot.slane %v1747_v30, 9  ;;  %v3149_v40 = vshll.u32 %v13642_v5, 16  ;;  %v13420_v61 = vcombine.low %v911_v21, %v921_v26  ;;  %v1993_v3 = vsel %vm15227_vm2, %v1991_v43, %v1992_v63  ;;  %v13776_v30 = vld [vmem:[%s15234_s23 + $0x8c] sm:$0x1]  ;;  %v15007_v20 = vld [vmem:[%s15234_s23 + $0x84] sm:$0xff]  }
  0xd1   : > { %v6080_v25 = vpop.permute.xlu1 %6079  ;;  %v896_v47 = vrot.slane %v895_v8, 4  ;;  %v1983_v24 = vsel %vm15227_vm2, %v1981_v19, %v1982_v56  ;;  %v13480_v50 = vcombine.low %v1990_v32, %v1993_v3  ;;  %v3153_v51 = vshrl.u32 %v13642_v5, 16  ;;  %v13772_v5 = vld [vmem:[%s15234_s23 + $0x7c] sm:$0x1]  ;;  %v14038_v32 = vld [vmem:[%s15234_s23 + $0x94] sm:$0xf] }
  0xd2   : > { %6185 = vst.msk [vmem:[#allocation2 + $0x18] sm:$0xff] %vm20744_vm13, %v6080_v25  ;;  %v6078_v27 = vpop.permute.xlu0 %6077  ;;  %v1987_v1 = vsel %vm15227_vm2, %v13452_v29, %v1986_v10  ;;  %v16082_v37 = vrot.slane %v3149_v40, 5  ;;  %1596 = vrot.lane.b32.xlu1 %v13420_v61, %s15168_s27  ;;  %v3159_v60 = vshll.u32 %v13643_v28, 16  ;;  %v3163_v44 = vshrl.u32 %v13643_v28, 16  ;;  %v15008_v29 = vld [vmem:[%s15234_s23 + $0x78] ss:$8 sps:$4 sm:$0xff]  }
  0xd3   : > { %6184 = vst.msk [vmem:[#allocation2 + $0x10] sm:$0xff] %vm20744_vm13, %v6078_v27  ;;  %v901_v16 = vsel %vm15281_vm5, %v896_v47, %v16035_v53  ;;  %v13479_v54 = vcombine.low %v1983_v24, %v1987_v1  ;;  %v3155_v42 = vrot.slane %v3153_v51, 4  ;;  %v3169_v6 = vshll.u32 %v13644_v17, 16  ;;  %v14040_v24 = vld [vmem:[%s15234_s23 + $0x9c] sm:$0x1] }
  0xd4   : > { %v13419_v35 = vcombine.low %v887_v22, %v901_v16  ;;  %v3131_v7 = vrot.slane %v3129_v15, 4  ;;  %v3161_v57 = vrot.slane %v3159_v60, 5  ;;  %v3165_v53 = vrot.slane %v3163_v44, 4  ;;  %v13773_v22 = vld [vmem:[%s15234_s23 + $0x80] sm:$0xe] }
  0xd5   : > { %v3135_v49 = vshll.u32 %v13640_v23, 16  ;;  %v3140_v38 = vshrl.u32 %v13641_v41, 16  ;;  %v3156_v31 = vor.u32 %v3155_v42, %v16082_v37  ;;  %v3171_v13 = vrot.slane %v3169_v6, 5  ;;  %v14036_v23 = vld [vmem:[%s15234_s23 + $0x8c] sm:$0x1] }
  0xd6   : > { %v1583_v11 = vpop.permute.xlu1 %1582  ;;  %v6763_v62 = vpop.permute.xlu0 %6762  ;;  %1594 = vrot.lane.b32.xlu0 %v13419_v35, %s15168_s27  ;;  %v3132_v15 = vor.u32 %v3131_v7, %v15924_v46  ;;  %v3143_v10 = vshll.u32 %v13641_v41, 16  ;;  %2284 = vrot.lane.b32.xlu1 %v13480_v50, %s15167_s26  ;;  %v3166_v21 = vor.u32 %v3165_v53, %v3161_v57  ;;  %v4234_v4 = vrot.slane %v16089_v39, 5  ;;  %v16135_v6 = vld [vmem:[%s15234_s23 + $0x94] sm:$0xf]  ;;  %v14171_v53 = vld [vmem:[%s15234_s23 + $0x98] sm:$0xf] }
  0xd7   : > { %1687 = vst.msk [vmem:[#allocation2 + $0x20] sm:$0xff] %vm20721_vm7, %v1583_v11  ;;  %v3137_v55 = vrot.slane %v3135_v49, 5  ;;  %v3142_v45 = vrot.slane %v3140_v38, 4  ;;  %v3157_v18 = vrot.slane %v3156_v31, 4  ;;  %v4237_v19 = vrot.slane %v13775_v12, 5 }
  0xd8   : > { %6869 = vst.msk [vmem:[#allocation2 + $0x10] sm:$0xff] %vm20743_vm14, %v6763_v62  ;;  %v3133_v48 = vrot.slane %v3132_v15, 4  ;;  %v3145_v63 = vrot.slane %v3143_v10, 5  ;;  %v3167_v8 = vrot.slane %v3166_v21, 4  ;;  %v4236_v43 = vrot.slane %v4234_v4, 4 }
  0xd9   : > { %v4240_v56 = vrot.slane %v13776_v30, 5  ;;  %v4229_v25 = vrot.slane %v4227_v36, 4  ;;  %v3162_v27 = vsel %vm15281_vm5, %v3157_v18, %v3161_v57  ;;  %v4239_v40 = vrot.slane %v4237_v19, 4  ;;  %v15015_v49 = vld [vmem:[%s15234_s23 + $0x48] ss:$8 sps:$4 sm:$0xff]  }
  0xda   : > { %v6765_v46 = vpop.permute.xlu0 %6764  ;;  %2282 = vrot.lane.b32.xlu0 %v13479_v54, %s15167_s26  ;;  %v3138_v28 = vsel %vm15281_vm5, %v3133_v48, %v3137_v55  ;;  %v3146_v17 = vor.u32 %v3145_v63, %v3142_v45  ;;  %2682 = vrot.lane.b32.xlu1 %v15007_v20, %s15165_s24  ;;  %v3172_v36 = vsel %vm15281_vm5, %v3167_v8, %v3171_v13  ;;  %v4230_v47 = vrot.slane %v13772_v5, 5  ;;  %v14037_v54 = vld [vmem:[%s15234_s23 + $0x90] sm:$0xf]  ;;  %v14172_v15 = vld [vmem:[%s15234_s23 + $0x9c] sm:$0x1] }
  0xdb   : > { %6870 = vst.msk [vmem:[#allocation2 + $0x18] sm:$0xff] %vm20743_vm14, %v6765_v46  ;;  %v4238_v61 = vsel %vm15227_vm2, %v4236_v43, %v4237_v19  ;;  %v13848_v3 = vrot.slane %v13773_v22, 9  ;;  %v13720_v41 = vcombine.low %v3162_v27, %v3172_v36  ;;  %v4241_v50 = vsel %vm15227_vm2, %v4239_v40, %v4240_v56  ;;  %v14168_v63 = vld [vmem:[%s15234_s23 + $0x8c] sm:$0x1]  ;;  %v15011_v8 = vld [vmem:[%s15234_s23 + $0x94] sm:$0xff]  }
  0xdc   : > { %v1585_v26 = vpop.permute.xlu1 %1584  ;;  %v3147_v34 = vrot.slane %v3146_v17, 4  ;;  %v5397_v16 = vshll.u32 %v14038_v32, 16  ;;  %v13876_v60 = vcombine.low %v4238_v61, %v4241_v50  ;;  %v4231_v44 = vsel %vm15227_vm2, %v4229_v25, %v4230_v47  ;;  %522 = vst.msk [vmem:[#allocation2 + $0x38] sm:$0xff] %vm20727_vm6, %v15015_v49 }
  0xdd   : > { %1688 = vst.msk [vmem:[#allocation2 + $0x28] sm:$0xff] %vm20721_vm7, %v1585_v26  ;;  %v4235_v39 = vsel %vm15227_vm2, %v13848_v3, %v4234_v4  ;;  %v5401_v42 = vshrl.u32 %v14038_v32, 16  ;;  %v5407_v57 = vshll.u32 %v14039_v59, 16  ;;  %v5411_v31 = vshrl.u32 %v14039_v59, 16  ;;  %v15012_v3 = vld [vmem:[%s15234_s23 + $0x88] ss:$8 sps:$4 sm:$0xff]  }
  0xde   : > { %v2271_v1 = vpop.permute.xlu0 %2270  ;;  %2680 = vrot.lane.b32.xlu0 %v15008_v29, %s15165_s24  ;;  %v3152_v7 = vsel %vm15281_vm5, %v3147_v34, %v16082_v37  ;;  %v13875_v11 = vcombine.low %v4231_v44, %v4235_v39  ;;  %v16142_v62 = vrot.slane %v5397_v16, 5  ;;  %3847 = vrot.lane.b32.xlu1 %v13720_v41, %s15169_s28  ;;  %v5417_v13 = vshll.u32 %v14040_v24, 16 }
  0xdf   : > { %v6905_v51 = vld [vmem:[#allocation2 + $0x10] sm:$0xff]  ;;  %2375 = vst.msk [vmem:[#allocation2 + $0x20] sm:$0xff] %vm2370_vm8, %v2271_v1  ;;  %v13719_v38 = vcombine.low %v3138_v28, %v3152_v7  ;;  %v5403_v12 = vrot.slane %v5401_v42, 4  ;;  %v5409_v10 = vrot.slane %v5407_v57, 5  ;;  %v5379_v37 = vrot.slane %v5377_v33, 4 }
  0xe0   : > { %v2273_v35 = vpop.permute.xlu1 %2272  ;;  %14883 = vmatprep.mubr.msk.bf16.mxu0 %vm20747_vm1, %v6905_v51  ;;  %v5383_v30 = vshll.u32 %v14036_v23, 16  ;;  %v5388_v20 = vshrl.u32 %v14037_v54, 16  ;;  %v5413_v4 = vrot.slane %v5411_v31, 4  ;;  %v5419_v5 = vrot.slane %v5417_v13, 5  ;;  %v585_v28 = vld [vmem:[%s15234_s23 + $0x88] sm:$0xf] }
  0xe1   : > { %2376 = vst.msk [vmem:[#allocation2 + $0x28] sm:$0xff] %vm2370_vm8, %v2273_v35  ;;  %v5404_v45 = vor.u32 %v5403_v12, %v16142_v62  ;;  %v5391_v18 = vshll.u32 %v14037_v54, 16  ;;  %v5380_v33 = vor.u32 %v5379_v37, %v15998_v2  ;;  %v6482_v46 = vrot.slane %v16135_v6, 5  ;;  %v586_v1 = vld [vmem:[%s15234_s23 + $0x8c] sm:$0x1] }
  0xe2   : > { %v2669_v21 = vpop.permute.xlu0 %2668  ;;  %v6906_v55 = vld [vmem:[#allocation2 + $0x18] sm:$0xff]  ;;  %3845 = vrot.lane.b32.xlu0 %v13719_v38, %s15169_s28  ;;  %v5385_v19 = vrot.slane %v5383_v30, 5  ;;  %v5390_v22 = vrot.slane %v5388_v20, 4  ;;  %4532 = vrot.lane.b32.xlu1 %v13876_v60, %s15166_s25  ;;  %v5414_v56 = vor.u32 %v5413_v4, %v5409_v10  ;;  %v6485_v26 = vrot.slane %v14171_v53, 5  ;;  %v587_v51 = vld [vmem:[%s15234_s23 + $0x90] sm:$0xf] }
  0xe3   : > { %2773 = vst.msk [vmem:[#allocation2 + $0x20] sm:$0xff] %vm20722_vm9, %v2669_v21  ;;  %14884 = vmatmul.mubr.msk.bf16.gmra.mrb[4].mxu0 %vm20747_vm1, %v6906_v55  ;;  %v5405_v43 = vrot.slane %v5404_v45, 4  ;;  %v5393_v25 = vrot.slane %v5391_v18, 5  ;;  %v5381_v32 = vrot.slane %v5380_v33, 4  ;;  %v6484_v29 = vrot.slane %v6482_v46, 4 }
  0xe4   : > { %v2671_v48 = vpop.permute.xlu1 %2670  ;;  %v6488_v27 = vrot.slane %v14172_v15, 5  ;;  %v6477_v2 = vrot.slane %v6475_v14, 4  ;;  %v5415_v40 = vrot.slane %v5414_v56, 4  ;;  %v6487_v36 = vrot.slane %v6485_v26, 4  ;;  %v588_v35 = vld [vmem:[%s15234_s23 + $0x94] sm:$0xf] }
  0xe5   : > { %2774 = vst.msk [vmem:[#allocation2 + $0x28] sm:$0xff] %vm20722_vm9, %v2671_v48  ;;  %v5410_v17 = vsel %vm15281_vm5, %v5405_v43, %v5409_v10  ;;  %v5394_v59 = vor.u32 %v5393_v25, %v5390_v22  ;;  %v5386_v24 = vsel %vm15281_vm5, %v5381_v32, %v5385_v19  ;;  %v6486_v9 = vsel %vm15227_vm2, %v6484_v29, %v6485_v26  ;;  %v583_v42 = vld [vmem:[%s15234_s23 + $0x80] sm:$0xf]  ;;  %v584_v15 = vld [vmem:[%s15234_s23 + $0x84] sm:$0xf] }
  0xe6   : > { %4530 = vrot.lane.b32.xlu0 %v13875_v11, %s15166_s25  ;;  %v6478_v14 = vrot.slane %v14168_v63, 5  ;;  %v14244_v23 = vrot.slane %v14169_v52, 9  ;;  %4930 = vrot.lane.b32.xlu1 %v15011_v8, %s15170_s29  ;;  %v5420_v41 = vsel %vm15281_vm5, %v5415_v40, %v5419_v5  ;;  %v6489_v50 = vsel %vm15227_vm2, %v6487_v36, %v6488_v27  ;;  %v16199_v20 = vld [vmem:[%s15234_s23 + $0x88] sm:$0xf]  ;;  %v1754_v5 = vld [vmem:[%s15234_s23 + $0x8c] sm:$0x1] }
  0xe7   : > { %v5395_v34 = vrot.slane %v5394_v59, 4  ;;  %v942_v16 = vshll.u32 %v585_v28, 16  ;;  %v14116_v54 = vcombine.low %v5410_v17, %v5420_v41  ;;  %v14272_v60 = vcombine.low %v6486_v9, %v6489_v50  ;;  %v1755_v33 = vld [vmem:[%s15234_s23 + $0x90] sm:$0xe]  ;;  %v16206_v25 = vld [vmem:[%s15234_s23 + $0x94] sm:$0xf] }
  0xe8   : > { %v3836_v61 = vpop.permute.xlu1 %3835  ;;  %v3834_v47 = vpop.permute.xlu0 %3833  ;;  %v6479_v44 = vsel %vm15227_vm2, %v6477_v2, %v6478_v14  ;;  %v6483_v39 = vsel %vm15227_vm2, %v14244_v23, %v6482_v46  ;;  %v946_v57 = vshrl.u32 %v585_v28, 16  ;;  %v952_v12 = vshll.u32 %v586_v1, 16  ;;  %v1751_v2 = vld [vmem:[%s15234_s23 + $0x80] sm:$0xe]  ;;  %v1752_v36 = vld [vmem:[%s15234_s23 + $0x84] sm:$0xf] }
  0xe9   : > { %3939 = vst.msk [vmem:[#allocation2 + $0x28] sm:$0xff] %vm20748_vm10, %v3836_v61  ;;  %3938 = vst.msk [vmem:[#allocation2 + $0x20] sm:$0xff] %vm20748_vm10, %v3834_v47  ;;  %v5400_v6 = vsel %vm15281_vm5, %v5395_v34, %v16142_v62  ;;  %v14271_v7 = vcombine.low %v6479_v44, %v6483_v39  ;;  %v16191_v11 = vrot.slane %v942_v16, 5  ;;  %v957_v31 = vshrl.u32 %v587_v51, 16  ;;  %v13647_v23 = vld [vmem:[%s15234_s23 + $0x98] sm:$0xf] }
  0xea   : > { %4928 = vrot.lane.b32.xlu0 %v15012_v3, %s15170_s29  ;;  %v14115_v38 = vcombine.low %v5386_v24, %v5400_v6  ;;  %v960_v13 = vshll.u32 %v587_v51, 16  ;;  %6095 = vrot.lane.b32.xlu1 %v14116_v54, %s15171_s30  ;;  %v948_v62 = vrot.slane %v946_v57, 4  ;;  %v966_v10 = vshll.u32 %v588_v35, 16  ;;  %v13648_v51 = vld [vmem:[%s15234_s23 + $0x9c] sm:$0x1] }
  0xeb   : > { %v970_v37 = vshrl.u32 %v588_v35, 16  ;;  %v923_v30 = vshrl.u32 %v583_v42, 16  ;;  %v954_v21 = vrot.slane %v952_v12, 5  ;;  %v959_v55 = vrot.slane %v957_v31, 4  ;;  %v13649_v39 = vld [vmem:[%s15234_s23 + $0xa0] sm:$0xf] }
  0xec   : > { %v4521_v53 = vpop.permute.xlu1 %4520  ;;  %v4519_v49 = vpop.permute.xlu0 %4518  ;;  %v962_v45 = vrot.slane %v960_v13, 5  ;;  %v926_v4 = vshll.u32 %v583_v42, 16  ;;  %v949_v18 = vor.u32 %v948_v62, %v16191_v11  ;;  %v968_v48 = vrot.slane %v966_v10, 5  ;;  %v16230_v35 = vld [vmem:[%s15234_s23 + $0xa4] sm:$0xf] }
  0xed   : > { %4624 = vst.msk [vmem:[#allocation2 + $0x28] sm:$0xff] %vm20746_vm11, %v4521_v53  ;;  %4623 = vst.msk [vmem:[#allocation2 + $0x20] sm:$0xff] %vm20746_vm11, %v4519_v49  ;;  %v972_v63 = vrot.slane %v970_v37, 4  ;;  %v925_v52 = vrot.slane %v923_v30, 4  ;;  %v932_v43 = vshll.u32 %v584_v15, 16  ;;  %v936_v56 = vshrl.u32 %v584_v15, 16 }
  0xee   : > { %6093 = vrot.lane.b32.xlu0 %v14115_v38, %s15171_s30  ;;  %v963_v46 = vor.u32 %v962_v45, %v959_v55  ;;  %v928_v8 = vrot.slane %v926_v4, 5  ;;  %6780 = vrot.lane.b32.xlu1 %v14272_v60, %s15172_s6  ;;  %v950_v26 = vrot.slane %v949_v18, 4  ;;  %v1999_v29 = vrot.slane %v16199_v20, 5  ;;  %v13645_v53 = vld [vmem:[%s15234_s23 + $0x90] sm:$0xf] }
  0xef   : > { %v973_v32 = vor.u32 %v972_v63, %v968_v48  ;;  %v2002_v27 = vrot.slane %v1754_v5, 5  ;;  %v934_v40 = vrot.slane %v932_v43, 5  ;;  %v938_v59 = vrot.slane %v936_v56, 4  ;;  %v13646_v13 = vld [vmem:[%s15234_s23 + $0x94] sm:$0xf] }
  0xf0   : > { %v4919_v19 = vpop.permute.xlu1 %4918  ;;  %v4917_v22 = vpop.permute.xlu0 %4916  ;;  %v964_v28 = vrot.slane %v963_v46, 4  ;;  %v929_v17 = vor.u32 %v928_v8, %v925_v52  ;;  %v955_v61 = vsel %vm15281_vm5, %v950_v26, %v954_v21  ;;  %v2001_v3 = vrot.slane %v1999_v29, 4  ;;  %v15034_v21 = vld [vmem:[%s15234_s23 + $0x80] sm:$0xff]  }
  0xf1   : > { %5022 = vst.msk [vmem:[#allocation2 + $0x28] sm:$0xff] %vm20745_vm12, %v4919_v19  ;;  %5021 = vst.msk [vmem:[#allocation2 + $0x20] sm:$0xff] %vm20745_vm12, %v4917_v22  ;;  %v16216_v47 = vrot.slane %v973_v32, 4  ;;  %v13454_v24 = vrot.slane %v1755_v33, 9  ;;  %v939_v50 = vor.u32 %v938_v59, %v934_v40  ;;  %v2006_v1 = vrot.slane %v16206_v25, 5 }
  0xf2   : > { %6778 = vrot.lane.b32.xlu0 %v14271_v7, %s15172_s6  ;;  %v969_v41 = vsel %vm15281_vm5, %v964_v28, %v968_v48  ;;  %v930_v34 = vrot.slane %v929_v17, 4  ;;  %v2003_v54 = vsel %vm15227_vm2, %v2001_v3, %v2002_v27  ;;  %v13453_v60 = vrot.slane %v1751_v2, 9  ;;  %v15013_v4 = vld [vmem:[%s15234_s23 + $0x98] ss:$8 sps:$4 sm:$0xff]   ;;  %527 = vst.msk [vmem:[#allocation2 + $0x60] sm:$0xff] %vm20727_vm6, %v15034_v21 }
  0xf3   : > { %v13422_v16 = vcombine.low %v955_v61, %v969_v41  ;;  %v1996_v44 = vrot.slane %v1752_v36, 5  ;;  %v940_v6 = vrot.slane %v939_v50, 4  ;;  %v2007_v7 = vsel %vm15227_vm2, %v13454_v24, %v2006_v1  ;;  %v16255_v48 = vld [vmem:[%s15234_s23 + $0x98] sm:$0xf]  ;;  %v13781_v22 = vld [vmem:[%s15234_s23 + $0xa0] sm:$0xe] }
  0xf4   : > { %v6084_v9 = vpop.permute.xlu1 %6083  ;;  %v6082_v14 = vpop.permute.xlu0 %6081  ;;  %v935_v42 = vsel %vm15281_vm5, %v930_v34, %v934_v40  ;;  %v3193_v57 = vshll.u32 %v13647_v23, 16  ;;  %v13482_v49 = vcombine.low %v2003_v54, %v2007_v7  ;;  %v3197_v31 = vshrl.u32 %v13647_v23, 16  ;;  %v16266_v26 = vld [vmem:[%s15234_s23 + $0xa4] sm:$0xf]  ;;  %v13777_v28 = vld [vmem:[%s15234_s23 + $0x90] sm:$0xe] }
  0xf5   : > { %6187 = vst.msk [vmem:[#allocation2 + $0x28] sm:$0xff] %vm20744_vm13, %v6084_v9  ;;  %6186 = vst.msk [vmem:[#allocation2 + $0x20] sm:$0xff] %vm20744_vm13, %v6082_v14  ;;  %1600 = vrot.lane.b32.xlu1 %v13422_v16, %s15168_s27  ;;  %v1997_v38 = vsel %vm15227_vm2, %v13453_v60, %v1996_v44  ;;  %v1998_v12 = vrot.slane %v1996_v44, 4  ;;  %v945_v10 = vsel %vm15281_vm5, %v940_v6, %v16191_v11  ;;  %v3203_v30 = vshll.u32 %v13648_v51, 16  ;;  %v13780_v11 = vld [vmem:[%s15234_s23 + $0x9c] sm:$0x1] }
  0xf6   : > { %v16246_v37 = vrot.slane %v3193_v57, 5  ;;  %v3208_v20 = vshrl.u32 %v13649_v39, 16  ;;  %v13421_v55 = vcombine.low %v935_v42, %v945_v10  ;;  %v3199_v5 = vrot.slane %v3197_v31, 4  ;;  %v13778_v3 = vld [vmem:[%s15234_s23 + $0x94] sm:$0xf] }
  0xf7   : > { %v2000_v45 = vsel %vm15227_vm2, %v1998_v12, %v1999_v29  ;;  %v3211_v18 = vshll.u32 %v13649_v39, 16  ;;  %v3205_v52 = vrot.slane %v3203_v30, 5  ;;  %v3217_v19 = vshll.u32 %v16230_v35, 16  ;;  %v14043_v41 = vld [vmem:[%s15234_s23 + $0xa8] sm:$0xf]  ;;  %v15014_v34 = vld [vmem:[%s15234_s23 + $0x90] sm:$0xff]  }
  0xf8   : > { %v6769_v15 = vpop.permute.xlu1 %6768  ;;  %v6767_v62 = vpop.permute.xlu0 %6766  ;;  %v13481_v63 = vcombine.low %v1997_v38, %v2000_v45  ;;  %v3210_v33 = vrot.slane %v3208_v20, 4  ;;  %1598 = vrot.lane.b32.xlu0 %v13421_v55, %s15168_s27  ;;  %v3200_v46 = vor.u32 %v3199_v5, %v16246_v37  ;;  %v3221_v43 = vshrl.u32 %v16230_v35, 16  ;;  %v14045_v38 = vld [vmem:[%s15234_s23 + $0xb0] sm:$0xf]  ;;  %v14041_v55 = vld [vmem:[%s15234_s23 + $0xa0] sm:$0xf] }
  0xf9   : > { %6872 = vst.msk [vmem:[#allocation2 + $0x28] sm:$0xff] %vm20743_vm14, %v6769_v15  ;;  %6871 = vst.msk [vmem:[#allocation2 + $0x20] sm:$0xff] %vm20743_vm14, %v6767_v62  ;;  %2288 = vrot.lane.b32.xlu1 %v13482_v49, %s15167_s26  ;;  %v3213_v8 = vrot.slane %v3211_v18, 5  ;;  %v3174_v56 = vshrl.u32 %v13645_v53, 16  ;;  %v16268_v32 = vrot.slane %v3217_v19, 5  ;;  %v3177_v29 = vshll.u32 %v13645_v53, 16 }
  0xfa   : > { %v3183_v27 = vshll.u32 %v13646_v13, 16  ;;  %v3187_v2 = vshrl.u32 %v13646_v13, 16  ;;  %v3201_v40 = vrot.slane %v3200_v46, 4  ;;  %v4247_v61 = vrot.slane %v16255_v48, 5  ;;  %v14044_v49 = vld [vmem:[%s15234_s23 + $0xac] sm:$0x1] }
  0xfb   : > { %v3214_v59 = vor.u32 %v3213_v8, %v3210_v33  ;;  %v3176_v36 = vrot.slane %v3174_v56, 4  ;;  %v3179_v24 = vrot.slane %v3177_v29, 5  ;;  %v4250_v23 = vrot.slane %v13780_v11, 5  ;;  %v16292_v15 = vld [vmem:[%s15234_s23 + $0xb4] sm:$0xf] }
  0xfc   : > { %v3185_v9 = vrot.slane %v3183_v27, 5  ;;  %v3189_v14 = vrot.slane %v3187_v2, 4  ;;  %2286 = vrot.lane.b32.xlu0 %v13481_v63, %s15167_s26  ;;  %v3206_v50 = vsel %vm15281_vm5, %v3201_v40, %v3205_v52  ;;  %v4249_v16 = vrot.slane %v4247_v61, 4  ;;  %v14042_v11 = vld [vmem:[%s15234_s23 + $0xa4] sm:$0xf] }
  0xfd   : > { %v1589_v17 = vpop.permute.xlu1 %1588  ;;  %2686 = vrot.lane.b32.xlu1 %v15013_v4, %s15165_s24  ;;  %v3215_v51 = vrot.slane %v3214_v59, 4  ;;  %v13850_v54 = vrot.slane %v13781_v22, 9  ;;  %v3180_v42 = vor.u32 %v3179_v24, %v3176_v36  ;;  %v4254_v7 = vrot.slane %v16266_v26, 5  ;;  %v16317_v27 = vld [vmem:[%s15234_s23 + $0xa8] sm:$0xf] }
  0xfe   : > { %1690 = vst.msk [vmem:[#allocation2 + $0x38] sm:$0xff] %vm20721_vm7, %v1589_v17  ;;  %v3190_v6 = vor.u32 %v3189_v14, %v3185_v9  ;;  %v13849_v57 = vrot.slane %v13777_v28, 9  ;;  %v4251_v31 = vsel %vm15227_vm2, %v4249_v16, %v4250_v23  ;;  %v4244_v13 = vrot.slane %v13778_v3, 5  ;;  %v15017_v28 = vld [vmem:[%s15234_s23 + $0xa8] ss:$8 sps:$4 sm:$0xff]  }
  0xff   : > { %v3220_v12 = vsel %vm15281_vm5, %v3215_v51, %v16268_v32  ;;  %v5441_v62 = vshll.u32 %v14043_v41, 16  ;;  %v3181_v30 = vrot.slane %v3180_v42, 4  ;;  %v4255_v21 = vsel %vm15227_vm2, %v13850_v54, %v4254_v7  ;;  %v14176_v59 = vld [vmem:[%s15234_s23 + $0xac] sm:$0x1]  ;;  %v14177_v14 = vld [vmem:[%s15234_s23 + $0xb0] sm:$0xe] }
 0x100   : > { %v1587_v60 = vpop.permute.xlu0 %1586  ;;  %v6907_v44 = vld [vmem:[#allocation2 + $0x20] sm:$0xff]  ;;  %v6908_v39 = vld [vmem:[#allocation2 + $0x28] sm:$0xff]  ;;  %v13722_v10 = vcombine.low %v3206_v50, %v3220_v12  ;;  %v3191_v20 = vrot.slane %v3190_v6, 4  ;;  %2684 = vrot.lane.b32.xlu0 %v15014_v34, %s15165_s24  ;;  %v13878_v45 = vcombine.low %v4251_v31, %v4255_v21  ;;  %v4245_v4 = vsel %vm15227_vm2, %v13849_v57, %v4244_v13  ;;  %v16331_v51 = vld [vmem:[%s15234_s23 + $0xb4] sm:$0xf] }
 0x101   : > { %1689 = vst.msk [vmem:[#allocation2 + $0x30] sm:$0xff] %vm20721_vm7, %v1587_v60  ;;  %v2277_v53 = vpop.permute.xlu1 %2276  ;;  %14887 = vmatprep.mubr.msk.bf16.mxu0 %vm20747_vm1, %v6907_v44  ;;  %v4246_v5 = vrot.slane %v4244_v13, 4  ;;  %v16303_v48 = vrot.slane %v5441_v62, 5  ;;  %v3186_v63 = vsel %vm15281_vm5, %v3181_v30, %v3185_v9  ;;  %v5445_v33 = vshrl.u32 %v14043_v41, 16  ;;  %v15018_v54 = vld [vmem:[%s15234_s23 + $0xa0] sm:$0xff]  }
 0x102   : > { %2378 = vst.msk [vmem:[#allocation2 + $0x38] sm:$0xff] %vm2370_vm8, %v2277_v53  ;;  %14888 = vmatmul.mubr.msk.bf16.gmra.mrb[8].mxu0 %vm20747_vm1, %v6908_v39  ;;  %3851 = vrot.lane.b32.xlu1 %v13722_v10, %s15169_s28  ;;  %v3196_v52 = vsel %vm15281_vm5, %v3191_v20, %v16246_v37  ;;  %v5451_v19 = vshll.u32 %v14044_v49, 16  ;;  %v5456_v56 = vshrl.u32 %v14045_v38, 16  ;;  %v5459_v29 = vshll.u32 %v14045_v38, 16  ;;  %v14173_v6 = vld [vmem:[%s15234_s23 + $0xa0] sm:$0xe] }
 0x103   : > { %v13721_v46 = vcombine.low %v3186_v63, %v3196_v52  ;;  %v4248_v8 = vsel %vm15227_vm2, %v4246_v5, %v4247_v61  ;;  %v5447_v37 = vrot.slane %v5445_v33, 4  ;;  %v5465_v40 = vshll.u32 %v16292_v15, 16  ;;  %v14174_v12 = vld [vmem:[%s15234_s23 + $0xa4] sm:$0xf]  ;;  %v591_v30 = vld [vmem:[%s15234_s23 + $0xa0] sm:$0xf] }
 0x104   : > { %v2275_v18 = vpop.permute.xlu0 %2274  ;;  %v13877_v2 = vcombine.low %v4245_v4, %v4248_v8  ;;  %v5453_v17 = vrot.slane %v5451_v19, 5  ;;  %v5458_v36 = vrot.slane %v5456_v56, 4  ;;  %v5461_v61 = vrot.slane %v5459_v29, 5  ;;  %v592_v33 = vld [vmem:[%s15234_s23 + $0xa4] sm:$0xf] }
 0x105   : > { %2377 = vst.msk [vmem:[#allocation2 + $0x30] sm:$0xff] %vm2370_vm8, %v2275_v18  ;;  %v2675_v22 = vpop.permute.xlu1 %2674  ;;  %3849 = vrot.lane.b32.xlu0 %v13721_v46, %s15169_s28  ;;  %v5469_v3 = vshrl.u32 %v16292_v15, 16  ;;  %v5422_v24 = vshrl.u32 %v14041_v55, 16  ;;  %v5448_v23 = vor.u32 %v5447_v37, %v16303_v48  ;;  %v16327_v41 = vrot.slane %v5465_v40, 5  ;;  %v16357_v8 = vld [vmem:[%s15234_s23 + $0xa8] sm:$0xf] }
 0x106   : > { %2776 = vst.msk [vmem:[#allocation2 + $0x38] sm:$0xff] %vm20722_vm9, %v2675_v22  ;;  %4536 = vrot.lane.b32.xlu1 %v13878_v45, %s15166_s25  ;;  %v5425_v34 = vshll.u32 %v14041_v55, 16  ;;  %v5431_v50 = vshll.u32 %v14042_v11, 16  ;;  %v5462_v60 = vor.u32 %v5461_v61, %v5458_v36  ;;  %v5435_v39 = vshrl.u32 %v14042_v11, 16  ;;  %v589_v36 = vld [vmem:[%s15234_s23 + $0x98] sm:$0xf] }
 0x107   : > { %v5424_v44 = vrot.slane %v5422_v24, 4  ;;  %v6495_v42 = vrot.slane %v16317_v27, 5  ;;  %v5449_v57 = vrot.slane %v5448_v23, 4  ;;  %v6498_v38 = vrot.slane %v14176_v59, 5 }
 0x108   : > { %v2673_v9 = vpop.permute.xlu0 %2672  ;;  %v5427_v53 = vrot.slane %v5425_v34, 5  ;;  %v5433_v49 = vrot.slane %v5431_v50, 5  ;;  %v5463_v31 = vrot.slane %v5462_v60, 4  ;;  %v5437_v13 = vrot.slane %v5435_v39, 4  ;;  %v590_v50 = vld [vmem:[%s15234_s23 + $0x9c] sm:$0x1] }
 0x109   : > { %2775 = vst.msk [vmem:[#allocation2 + $0x30] sm:$0xff] %vm20722_vm9, %v2673_v9  ;;  %v3840_v16 = vpop.permute.xlu1 %3839  ;;  %4534 = vrot.lane.b32.xlu0 %v13877_v2, %s15166_s25  ;;  %v6497_v62 = vrot.slane %v6495_v42, 4  ;;  %v14246_v10 = vrot.slane %v14177_v14, 9  ;;  %v5454_v20 = vsel %vm15281_vm5, %v5449_v57, %v5453_v17  ;;  %v6502_v55 = vrot.slane %v16331_v51, 5 }
 0x10a   : > { %3941 = vst.msk [vmem:[#allocation2 + $0x38] sm:$0xff] %vm20748_vm10, %v3840_v16  ;;  %4934 = vrot.lane.b32.xlu1 %v15017_v28, %s15170_s29  ;;  %v5428_v21 = vor.u32 %v5427_v53, %v5424_v44  ;;  %v14245_v45 = vrot.slane %v14173_v6, 9  ;;  %v5468_v18 = vsel %vm15281_vm5, %v5463_v31, %v16327_v41  ;;  %v5438_v11 = vor.u32 %v5437_v13, %v5433_v49  ;;  %v1759_v16 = vld [vmem:[%s15234_s23 + $0xa0] sm:$0xe]  ;;  %v1760_v6 = vld [vmem:[%s15234_s23 + $0xa4] sm:$0xf] }
 0x10b   : > { %v6499_v63 = vsel %vm15227_vm2, %v6497_v62, %v6498_v38  ;;  %v6492_v52 = vrot.slane %v14174_v12, 5  ;;  %v14118_v19 = vcombine.low %v5454_v20, %v5468_v18  ;;  %v6503_v46 = vsel %vm15227_vm2, %v14246_v10, %v6502_v55  ;;  %v1757_v38 = vld [vmem:[%s15234_s23 + $0x98] sm:$0xf]  ;;  %v1758_v12 = vld [vmem:[%s15234_s23 + $0x9c] sm:$0x1] }
 0x10c   : > { %v3838_v4 = vpop.permute.xlu0 %3837  ;;  %v5429_v22 = vrot.slane %v5428_v21, 4  ;;  %v991_v56 = vshrl.u32 %v591_v30, 16  ;;  %v5439_v29 = vrot.slane %v5438_v11, 4  ;;  %v14274_v27 = vcombine.low %v6499_v63, %v6503_v46  ;;  %v13653_v21 = vld [vmem:[%s15234_s23 + $0xb0] sm:$0xf] }
 0x10d   : > { %v4525_v5 = vpop.permute.xlu1 %4524  ;;  %3940 = vst.msk [vmem:[#allocation2 + $0x30] sm:$0xff] %vm20748_vm10, %v3838_v4  ;;  %4932 = vrot.lane.b32.xlu0 %v15018_v54, %s15170_s29  ;;  %v6493_v2 = vsel %vm15227_vm2, %v14245_v45, %v6492_v52  ;;  %v6494_v28 = vrot.slane %v6492_v52, 4  ;;  %v994_v40 = vshll.u32 %v591_v30, 16  ;;  %v1000_v59 = vshll.u32 %v592_v33, 16 }
 0x10e   : > { %4626 = vst.msk [vmem:[#allocation2 + $0x38] sm:$0xff] %vm20746_vm11, %v4525_v5  ;;  %6099 = vrot.lane.b32.xlu1 %v14118_v19, %s15171_s30  ;;  %v5434_v37 = vsel %vm15281_vm5, %v5429_v22, %v5433_v49  ;;  %v993_v17 = vrot.slane %v991_v56, 4  ;;  %v5444_v9 = vsel %vm15281_vm5, %v5439_v29, %v16303_v48  ;;  %v1004_v23 = vshrl.u32 %v592_v33, 16  ;;  %v16378_v48 = vld [vmem:[%s15234_s23 + $0xa8] sm:$0xf] }
 0x10f   : > { %v6496_v14 = vsel %vm15227_vm2, %v6494_v28, %v6495_v42  ;;  %v1010_v34 = vshll.u32 %v16357_v8, 16  ;;  %v14117_v54 = vcombine.low %v5434_v37, %v5444_v9  ;;  %v996_v44 = vrot.slane %v994_v40, 5  ;;  %v13654_v28 = vld [vmem:[%s15234_s23 + $0xb4] sm:$0xf]  ;;  %v16411_v40 = vld [vmem:[%s15234_s23 + $0xb8] sm:$0xf] }
 0x110   : > { %v4523_v61 = vpop.permute.xlu0 %4522  ;;  %v14273_v60 = vcombine.low %v6493_v2, %v6496_v14  ;;  %v1002_v39 = vrot.slane %v1000_v59, 5  ;;  %v1006_v42 = vrot.slane %v1004_v23, 4  ;;  %v1014_v53 = vshrl.u32 %v16357_v8, 16  ;;  %v13651_v23 = vld [vmem:[%s15234_s23 + $0xa8] sm:$0xf] }
 0x111   : > { %v4923_v24 = vpop.permute.xlu1 %4922  ;;  %4625 = vst.msk [vmem:[#allocation2 + $0x30] sm:$0xff] %vm20746_vm11, %v4523_v61  ;;  %v16380_v57 = vrot.slane %v1010_v34, 5  ;;  %v976_v49 = vshll.u32 %v589_v36, 16  ;;  %6097 = vrot.lane.b32.xlu0 %v14117_v54, %s15171_s30  ;;  %v997_v31 = vor.u32 %v996_v44, %v993_v17  ;;  %v980_v13 = vshrl.u32 %v589_v36, 16  ;;  %v15039_v34 = vld [vmem:[%s15234_s23 + $0xa0] sm:$0xff]  }
 0x112   : > { %5024 = vst.msk [vmem:[#allocation2 + $0x38] sm:$0xff] %vm20745_vm12, %v4923_v24  ;;  %6784 = vrot.lane.b32.xlu1 %v14274_v27, %s15172_s6  ;;  %v986_v62 = vshll.u32 %v590_v50, 16  ;;  %v13455_v10 = vrot.slane %v1759_v16, 9  ;;  %v1007_v45 = vor.u32 %v1006_v42, %v1002_v39  ;;  %v2016_v5 = vrot.slane %v1760_v6, 5  ;;  %v13652_v44 = vld [vmem:[%s15234_s23 + $0xac] sm:$0x1] }
 0x113   : > { %v978_v4 = vrot.slane %v976_v49, 5  ;;  %v2019_v18 = vrot.slane %v16378_v48, 5  ;;  %v998_v11 = vrot.slane %v997_v31, 4  ;;  %v982_v63 = vrot.slane %v980_v13, 4  ;;  %530 = vst.msk [vmem:[#allocation2 + $0x78] sm:$0xff] %vm20727_vm6, %v15039_v34  ;;  %v15040_v31 = vld [vmem:[%s15234_s23 + $0x94] sm:$0xff]  }
 0x114   : > { %v4921_v30 = vpop.permute.xlu0 %4920  ;;  %v988_v52 = vrot.slane %v986_v62, 5  ;;  %v2008_v33 = vrot.slane %v2006_v1, 4  ;;  %v1008_v19 = vrot.slane %v1007_v45, 4  ;;  %v2017_v46 = vsel %vm15227_vm2, %v13455_v10, %v2016_v5  ;;  %v15019_v45 = vld [vmem:[%s15234_s23 + $0xb0] sm:$0xff]   ;;  %529 = vst.msk [vmem:[#allocation2 + $0x70] sm:$0xff] %vm20727_vm6, %v15040_v31 }
 0x115   : > { %v6088_v20 = vpop.permute.xlu1 %6087  ;;  %5023 = vst.msk [vmem:[#allocation2 + $0x30] sm:$0xff] %vm20745_vm12, %v4921_v30  ;;  %v979_v22 = vsel %vm15281_vm5, %v16216_v47, %v978_v4  ;;  %v2018_v56 = vrot.slane %v2016_v5, 4  ;;  %6782 = vrot.lane.b32.xlu0 %v14273_v60, %s15172_s6  ;;  %v1003_v29 = vsel %vm15281_vm5, %v998_v11, %v1002_v39  ;;  %v983_v27 = vor.u32 %v982_v63, %v978_v4  ;;  %v16437_v63 = vld [vmem:[%s15234_s23 + $0xb8] sm:$0xf] }
 0x116   : > { %6189 = vst.msk [vmem:[#allocation2 + $0x38] sm:$0xff] %vm20744_vm13, %v6088_v20  ;;  %v2009_v2 = vrot.slane %v1757_v38, 5  ;;  %v2012_v25 = vrot.slane %v1758_v12, 5  ;;  %v1013_v47 = vsel %vm15281_vm5, %v1008_v19, %v16380_v57  ;;  %v3242_v59 = vshrl.u32 %v13653_v21, 16  ;;  %v13785_v12 = vld [vmem:[%s15234_s23 + $0xb0] sm:$0xe] }
 0x117   : > { %v2020_v17 = vsel %vm15227_vm2, %v2018_v56, %v2019_v18  ;;  %v3245_v36 = vshll.u32 %v13653_v21, 16  ;;  %v13424_v61 = vcombine.low %v1003_v29, %v1013_v47  ;;  %v984_v24 = vrot.slane %v983_v27, 4  ;;  %v13786_v20 = vld [vmem:[%s15234_s23 + $0xb4] sm:$0xf]  ;;  %v13784_v56 = vld [vmem:[%s15234_s23 + $0xac] sm:$0x1] }
 0x118   : > { %v6086_v1 = vpop.permute.xlu0 %6085  ;;  %v13484_v9 = vcombine.low %v2017_v46, %v2020_v17  ;;  %v2010_v14 = vsel %vm15227_vm2, %v2008_v33, %v2009_v2  ;;  %v2011_v50 = vrot.slane %v2009_v2, 4  ;;  %v3244_v16 = vrot.slane %v3242_v59, 4  ;;  %v14049_v2 = vld [vmem:[%s15234_s23 + $0xc0] sm:$0xf]  ;;  %v15028_v47 = vld [vmem:[%s15234_s23 + $0x68] ss:$8 sps:$4 sm:$0xff]  }
 0x119   : > { %v6773_v37 = vpop.permute.xlu1 %6772  ;;  %6188 = vst.msk [vmem:[#allocation2 + $0x30] sm:$0xff] %vm20744_vm13, %v6086_v1  ;;  %v3247_v54 = vrot.slane %v3245_v36, 5  ;;  %v3251_v60 = vshll.u32 %v13654_v28, 16  ;;  %1604 = vrot.lane.b32.xlu1 %v13424_v61, %s15168_s27  ;;  %v989_v39 = vsel %vm15281_vm5, %v984_v24, %v988_v52  ;;  %v3255_v6 = vshrl.u32 %v13654_v28, 16  ;;  %v13783_v52 = vld [vmem:[%s15234_s23 + $0xa8] sm:$0xf] }
 0x11a   : > { %6874 = vst.msk [vmem:[#allocation2 + $0x38] sm:$0xff] %vm20743_vm14, %v6773_v37  ;;  %v3261_v42 = vshll.u32 %v16411_v40, 16  ;;  %v3265_v49 = vshrl.u32 %v16411_v40, 16  ;;  %v13423_v13 = vcombine.low %v979_v22, %v989_v39  ;;  %v2013_v62 = vsel %vm15227_vm2, %v2011_v50, %v2012_v25  ;;  %v15020_v17 = vld [vmem:[%s15234_s23 + $0xa4] sm:$0xff]  }
 0x11b   : > { %v3248_v10 = vor.u32 %v3247_v54, %v3244_v16  ;;  %v3253_v30 = vrot.slane %v3251_v60, 5  ;;  %v13483_v21 = vcombine.low %v2010_v14, %v2013_v62  ;;  %v3257_v4 = vrot.slane %v3255_v6, 4  ;;  %v16456_v14 = vld [vmem:[%s15234_s23 + $0xc8] sm:$0xf]  ;;  %525 = vst.msk [vmem:[#allocation2 + $0x50] sm:$0xff] %vm20727_vm6, %v15028_v47 }
 0x11c   : > { %v6771_v38 = vpop.permute.xlu0 %6770  ;;  %v16432_v5 = vrot.slane %v3261_v42, 5  ;;  %v3223_v11 = vrot.slane %v3221_v43, 4  ;;  %1602 = vrot.lane.b32.xlu0 %v13423_v13, %s15168_s27  ;;  %v3227_v19 = vshll.u32 %v13651_v23, 16  ;;  %v3231_v22 = vshrl.u32 %v13651_v23, 16 }
 0x11d   : > { %6873 = vst.msk [vmem:[#allocation2 + $0x30] sm:$0xff] %vm20743_vm14, %v6771_v38  ;;  %v3249_v33 = vrot.slane %v3248_v10, 4  ;;  %v3237_v46 = vshll.u32 %v13652_v44, 16  ;;  %2292 = vrot.lane.b32.xlu1 %v13484_v9, %s15167_s26  ;;  %v3258_v29 = vor.u32 %v3257_v4, %v3253_v30  ;;  %v13851_v43 = vrot.slane %v13785_v12, 9  ;;  %v14050_v9 = vld [vmem:[%s15234_s23 + $0xc4] sm:$0xf] }
 0x11e   : > { %v3224_v35 = vor.u32 %v3223_v11, %v16268_v32  ;;  %v4264_v27 = vrot.slane %v13786_v20, 5  ;;  %v3229_v1 = vrot.slane %v3227_v19, 5  ;;  %v3233_v28 = vrot.slane %v3231_v22, 4 }
 0x11f   : > { %v3254_v25 = vsel %vm15281_vm5, %v3249_v33, %v3253_v30  ;;  %v3239_v37 = vrot.slane %v3237_v46, 5  ;;  %v3259_v59 = vrot.slane %v3258_v29, 4  ;;  %v4267_v34 = vrot.slane %v16437_v63, 5  ;;  %v14048_v33 = vld [vmem:[%s15234_s23 + $0xbc] sm:$0x1] }
 0x120   : > { %v3225_v36 = vrot.slane %v3224_v35, 4  ;;  %v16452_v61 = vsel %vm15227_vm2, %v13851_v43, %v4264_v27  ;;  %v4266_v24 = vrot.slane %v4264_v27, 4  ;;  %2290 = vrot.lane.b32.xlu0 %v13483_v21, %s15167_s26  ;;  %v3234_v23 = vor.u32 %v3233_v28, %v3229_v1  ;;  %v14047_v21 = vld [vmem:[%s15234_s23 + $0xb8] sm:$0xf]  ;;  %v14181_v35 = vld [vmem:[%s15234_s23 + $0xc0] sm:$0xe] }
 0x121   : > { %v1593_v32 = vpop.permute.xlu1 %1592  ;;  %v4256_v50 = vrot.slane %v4254_v7, 4  ;;  %v4257_v16 = vrot.slane %v13783_v52, 5  ;;  %v6910_v54 = vld [vmem:[#allocation2 + $0x38] sm:$0xff]  ;;  %2690 = vrot.lane.b32.xlu1 %v15019_v45, %s15165_s24  ;;  %v3264_v60 = vsel %vm15281_vm5, %v3259_v59, %v16432_v5  ;;  %v4260_v39 = vrot.slane %v13784_v56, 5  ;;  %v14182_v43 = vld [vmem:[%s15234_s23 + $0xc4] sm:$0xf] }
 0x122   : > { %1692 = vst.msk [vmem:[#allocation2 + $0x48] sm:$0xff] %vm20721_vm7, %v1593_v32  ;;  %v3230_v44 = vsel %vm15281_vm5, %v3225_v36, %v3229_v1  ;;  %v5490_v7 = vshrl.u32 %v14049_v2, 16  ;;  %v13724_v42 = vcombine.low %v3254_v25, %v3264_v60  ;;  %v3235_v38 = vrot.slane %v3234_v23, 4  ;;  %v16499_v36 = vld [vmem:[%s15234_s23 + $0xc8] sm:$0xf] }
 0x123   : > { %v4268_v12 = vsel %vm15227_vm2, %v4266_v24, %v4267_v34  ;;  %v4258_v31 = vsel %vm15227_vm2, %v4256_v50, %v4257_v16  ;;  %v4259_v62 = vrot.slane %v4257_v16, 4  ;;  %v5493_v20 = vshll.u32 %v14049_v2, 16  ;;  %v14179_v23 = vld [vmem:[%s15234_s23 + $0xb8] sm:$0xf]  ;;  %v15023_v50 = vld [vmem:[%s15234_s23 + $0xc0] sm:$0xff]  }
 0x124   : > { %v1591_v6 = vpop.permute.xlu0 %1590  ;;  %v6909_v26 = vld [vmem:[#allocation2 + $0x30] sm:$0xff]  ;;  %v13880_v13 = vcombine.low %v16452_v61, %v4268_v12  ;;  %v5492_v30 = vrot.slane %v5490_v7, 4  ;;  %2688 = vrot.lane.b32.xlu0 %v15020_v17, %s15165_s24  ;;  %v3240_v45 = vsel %vm15281_vm5, %v3235_v38, %v3239_v37  ;;  %v5499_v4 = vshll.u32 %v14050_v9, 16 }
 0x125   : > { %1691 = vst.msk [vmem:[#allocation2 + $0x40] sm:$0xff] %vm20721_vm7, %v1591_v6  ;;  %14891 = vmatprep.mubr.msk.bf16.mxu0 %vm20747_vm1, %v6909_v26  ;;  %v2281_v10 = vpop.permute.xlu1 %2280  ;;  %v5503_v11 = vshrl.u32 %v14050_v9, 16  ;;  %v5509_v52 = vshll.u32 %v16456_v14, 16  ;;  %3855 = vrot.lane.b32.xlu1 %v13724_v42, %s15169_s28  ;;  %v13723_v19 = vcombine.low %v3230_v44, %v3240_v45  ;;  %v4261_v22 = vsel %vm15227_vm2, %v4259_v62, %v4260_v39  ;;  %v14180_v44 = vld [vmem:[%s15234_s23 + $0xbc] sm:$0x1]  ;;  %v15024_v62 = vld [vmem:[%s15234_s23 + $0xb4] sm:$0xff]  }
 0x126   : > { %14892 = vmatmul.mubr.msk.bf16.gmra.mrb[12].mxu0 %vm20747_vm1, %v6910_v54  ;;  %2380 = vst.msk [vmem:[#allocation2 + $0x48] sm:$0xff] %vm2370_vm8, %v2281_v10  ;;  %v5495_v56 = vrot.slane %v5493_v20, 5  ;;  %v5513_v29 = vshrl.u32 %v16456_v14, 16  ;;  %v13879_v27 = vcombine.low %v4258_v31, %v4261_v22  ;;  %v5501_v2 = vrot.slane %v5499_v4, 5  ;;  %v597_v45 = vld [vmem:[%s15234_s23 + $0xb8] sm:$0xf] }
 0x127   : > { %v5505_v25 = vrot.slane %v5503_v11, 4  ;;  %v16494_v1 = vrot.slane %v5509_v52, 5  ;;  %v5471_v37 = vrot.slane %v5469_v3, 4  ;;  %v5475_v47 = vshll.u32 %v14047_v21, 16  ;;  %v14188_v14 = vld [vmem:[%s15234_s23 + $0xdc] sm:$0x1] }
 0x128   : > { %v2279_v46 = vpop.permute.xlu0 %2278  ;;  %v5496_v28 = vor.u32 %v5495_v56, %v5492_v30  ;;  %v5479_v17 = vshrl.u32 %v14047_v21, 16  ;;  %3853 = vrot.lane.b32.xlu0 %v13723_v19, %s15169_s28  ;;  %v5485_v24 = vshll.u32 %v14048_v33, 16  ;;  %v14247_v32 = vrot.slane %v14181_v35, 9  ;;  %v594_v35 = vld [vmem:[%s15234_s23 + $0xac] sm:$0x1] }
 0x129   : > { %2379 = vst.msk [vmem:[#allocation2 + $0x40] sm:$0xff] %vm2370_vm8, %v2279_v46  ;;  %v2679_v59 = vpop.permute.xlu1 %2678  ;;  %v5506_v61 = vor.u32 %v5505_v25, %v5501_v2  ;;  %v6512_v9 = vrot.slane %v14182_v43, 5  ;;  %4540 = vrot.lane.b32.xlu1 %v13880_v13, %s15166_s25  ;;  %v5472_v3 = vor.u32 %v5471_v37, %v16327_v41  ;;  %v5477_v16 = vrot.slane %v5475_v47, 5  ;;  %v596_v13 = vld [vmem:[%s15234_s23 + $0xb4] sm:$0xf] }
 0x12a   : > { %2778 = vst.msk [vmem:[#allocation2 + $0x48] sm:$0xff] %vm20722_vm9, %v2679_v59  ;;  %v5497_v15 = vrot.slane %v5496_v28, 4  ;;  %v5481_v54 = vrot.slane %v5479_v17, 4  ;;  %v5487_v6 = vrot.slane %v5485_v24, 5  ;;  %v6515_v12 = vrot.slane %v16499_v36, 5 }
 0x12b   : > { %v5507_v39 = vrot.slane %v5506_v61, 4  ;;  %v16511_v26 = vsel %vm15227_vm2, %v14247_v32, %v6512_v9  ;;  %v6514_v7 = vrot.slane %v6512_v9, 4  ;;  %v5473_v38 = vrot.slane %v5472_v3, 4  ;;  %v595_v28 = vld [vmem:[%s15234_s23 + $0xb0] sm:$0xf] }
 0x12c   : > { %v2677_v60 = vpop.permute.xlu0 %2676  ;;  %v5502_v42 = vsel %vm15281_vm5, %v5497_v15, %v5501_v2  ;;  %v5482_v41 = vor.u32 %v5481_v54, %v5477_v16  ;;  %4538 = vrot.lane.b32.xlu0 %v13879_v27, %s15166_s25  ;;  %v6504_v30 = vrot.slane %v6502_v55, 4  ;;  %v6505_v20 = vrot.slane %v14179_v23, 5  ;;  %v598_v55 = vld [vmem:[%s15234_s23 + $0xbc] sm:$0x1]  ;;  %v16549_v24 = vld [vmem:[%s15234_s23 + $0xb4] sm:$0xf] }
 0x12d   : > { %2777 = vst.msk [vmem:[#allocation2 + $0x40] sm:$0xff] %vm20722_vm9, %v2677_v60  ;;  %v3844_v31 = vpop.permute.xlu1 %3843  ;;  %v5512_v10 = vsel %vm15281_vm5, %v5507_v39, %v16494_v1  ;;  %v6508_v21 = vrot.slane %v14180_v44, 5  ;;  %4938 = vrot.lane.b32.xlu1 %v15023_v50, %s15170_s29  ;;  %v5478_v11 = vsel %vm15281_vm5, %v5473_v38, %v5477_v16  ;;  %v6516_v51 = vsel %vm15227_vm2, %v6514_v7, %v6515_v12  ;;  %v1765_v15 = vld [vmem:[%s15234_s23 + $0xb8] sm:$0xf]  ;;  %v1766_v39 = vld [vmem:[%s15234_s23 + $0xbc] sm:$0x1] }
 0x12e   : > { %3943 = vst.msk [vmem:[#allocation2 + $0x48] sm:$0xff] %vm20748_vm10, %v3844_v31  ;;  %v14120_v4 = vcombine.low %v5502_v42, %v5512_v10  ;;  %v5483_v52 = vrot.slane %v5482_v41, 4  ;;  %v14276_v33 = vcombine.low %v16511_v26, %v6516_v51  ;;  %v6506_v19 = vsel %vm15227_vm2, %v6504_v30, %v6505_v20  ;;  %v1762_v38 = vld [vmem:[%s15234_s23 + $0xac] sm:$0x1] }
 0x12f   : > { %v6507_v22 = vrot.slane %v6505_v20, 4  ;;  %v1034_v56 = vshll.u32 %v596_v13, 16  ;;  %v1038_v27 = vshrl.u32 %v596_v13, 16  ;;  %v1044_v2 = vshll.u32 %v597_v45, 16 }
 0x130   : > { %v3842_v46 = vpop.permute.xlu0 %3841  ;;  %v5488_v43 = vsel %vm15281_vm5, %v5483_v52, %v5487_v6  ;;  %v1048_v25 = vshrl.u32 %v597_v45, 16  ;;  %4936 = vrot.lane.b32.xlu0 %v15024_v62, %s15170_s29  ;;  %v1054_v61 = vshll.u32 %v598_v55, 16  ;;  %v1016_v16 = vrot.slane %v1014_v53, 4  ;;  %v1763_v62 = vld [vmem:[%s15234_s23 + $0xb0] sm:$0xe] }
 0x131   : > { %3942 = vst.msk [vmem:[#allocation2 + $0x40] sm:$0xff] %vm20748_vm10, %v3842_v46  ;;  %v4529_v37 = vpop.permute.xlu1 %4528  ;;  %v14119_v47 = vcombine.low %v5478_v11, %v5488_v43  ;;  %v6509_v17 = vsel %vm15227_vm2, %v6507_v22, %v6508_v21  ;;  %v16545_v59 = vrot.slane %v1034_v56, 5  ;;  %6103 = vrot.lane.b32.xlu1 %v14120_v4, %s15171_s30  ;;  %v1040_v9 = vrot.slane %v1038_v27, 4  ;;  %v13658_v45 = vld [vmem:[%s15234_s23 + $0xc4] sm:$0xf]  ;;  %v15045_v27 = vld [vmem:[%s15234_s23 + $0xb4] sm:$0xff]  }
 0x132   : > { %4628 = vst.msk [vmem:[#allocation2 + $0x48] sm:$0xff] %vm20746_vm11, %v4529_v37  ;;  %v14275_v32 = vcombine.low %v6506_v19, %v6509_v17  ;;  %v1046_v23 = vrot.slane %v1044_v2, 5  ;;  %v1050_v50 = vrot.slane %v1048_v25, 4  ;;  %v1056_v3 = vrot.slane %v1054_v61, 5  ;;  %v13659_v46 = vld [vmem:[%s15234_s23 + $0xc8] sm:$0xf] }
 0x133   : > { %v1020_v54 = vshll.u32 %v594_v35, 16  ;;  %v1025_v60 = vshrl.u32 %v595_v28, 16  ;;  %v1041_v6 = vor.u32 %v1040_v9, %v16545_v59  ;;  %v1028_v7 = vshll.u32 %v595_v28, 16  ;;  %v13660_v43 = vld [vmem:[%s15234_s23 + $0xcc] sm:$0x1]  ;;  %532 = vst.msk [vmem:[#allocation2 + $0x88] sm:$0xff] %vm20727_vm6, %v15045_v27 }
 0x134   : > { %v4527_v44 = vpop.permute.xlu0 %4526  ;;  %v1051_v26 = vor.u32 %v1050_v50, %v1046_v23  ;;  %v2026_v42 = vrot.slane %v16549_v24, 5  ;;  %6101 = vrot.lane.b32.xlu0 %v14119_v47, %s15171_s30  ;;  %v1017_v8 = vor.u32 %v1016_v16, %v16380_v57  ;;  %v2029_v13 = vrot.slane %v1765_v15, 5  ;;  %v13656_v9 = vld [vmem:[%s15234_s23 + $0xbc] sm:$0x1] }
 0x135   : > { %4627 = vst.msk [vmem:[#allocation2 + $0x40] sm:$0xff] %vm20746_vm11, %v4527_v44  ;;  %v4927_v41 = vpop.permute.xlu1 %4926  ;;  %v1022_v53 = vrot.slane %v1020_v54, 5  ;;  %v1027_v31 = vrot.slane %v1025_v60, 4  ;;  %6788 = vrot.lane.b32.xlu1 %v14276_v33, %s15172_s6  ;;  %v1042_v10 = vrot.slane %v1041_v6, 4  ;;  %v1030_v20 = vrot.slane %v1028_v7, 5 }
 0x136   : > { %5026 = vst.msk [vmem:[#allocation2 + $0x48] sm:$0xff] %vm20745_vm12, %v4927_v41  ;;  %v1052_v30 = vrot.slane %v1051_v26, 4  ;;  %v2028_v21 = vrot.slane %v2026_v42, 4  ;;  %v1018_v4 = vrot.slane %v1017_v8, 4  ;;  %v2031_v11 = vrot.slane %v2029_v13, 4 }
 0x137   : > { %v2032_v52 = vrot.slane %v1766_v39, 5  ;;  %v2021_v57 = vrot.slane %v2019_v18, 4  ;;  %v1047_v55 = vsel %vm15281_vm5, %v1042_v10, %v1046_v23  ;;  %v1031_v19 = vor.u32 %v1030_v20, %v1027_v31  ;;  %v13657_v54 = vld [vmem:[%s15234_s23 + $0xc0] sm:$0xf]  ;;  %v16598_v60 = vld [vmem:[%s15234_s23 + $0xc4] sm:$0xf] }
 0x138   : > { %v4925_v51 = vpop.permute.xlu0 %4924  ;;  %v1057_v33 = vsel %vm15281_vm5, %v1052_v30, %v1056_v3  ;;  %v2030_v22 = vsel %vm15227_vm2, %v2028_v21, %v2029_v13  ;;  %6786 = vrot.lane.b32.xlu0 %v14275_v32, %s15172_s6  ;;  %v1023_v48 = vsel %vm15281_vm5, %v1018_v4, %v1022_v53  ;;  %v2022_v35 = vrot.slane %v1762_v38, 5  ;;  %v13792_v53 = vld [vmem:[%s15234_s23 + $0xcc] sm:$0x1]  ;;  %v15025_v31 = vld [vmem:[%s15234_s23 + $0xc4] sm:$0xff]  }
 0x139   : > { %5025 = vst.msk [vmem:[#allocation2 + $0x40] sm:$0xff] %vm20745_vm12, %v4925_v51  ;;  %v13426_v56 = vcombine.low %v1047_v55, %v1057_v33  ;;  %v2033_v18 = vsel %vm15227_vm2, %v2031_v11, %v2032_v52  ;;  %v1032_v2 = vrot.slane %v1031_v19, 4  ;;  %v13456_v28 = vrot.slane %v1763_v62, 9  ;;  %v6092_v37 = vpop.permute.xlu1 %6091  ;;  %v13789_v11 = vld [vmem:[%s15234_s23 + $0xc0] sm:$0xe] }
 0x13a   : > { %v13486_v25 = vcombine.low %v2030_v22, %v2033_v18  ;;  %v3285_v47 = vshll.u32 %v13658_v45, 16  ;;  %v2023_v17 = vsel %vm15227_vm2, %v2021_v57, %v2022_v35  ;;  %6191 = vst.msk [vmem:[#allocation2 + $0x48] sm:$0xff] %vm20744_vm13, %v6092_v37  ;;  %v3289_v61 = vshrl.u32 %v13658_v45, 16  ;;  %v15026_v52 = vld [vmem:[%s15234_s23 + $0xb8] ss:$8 sps:$4 sm:$0xff]  }
 0x13b   : > { %1608 = vrot.lane.b32.xlu1 %v13426_v56, %s15168_s27  ;;  %v3295_v24 = vshll.u32 %v13659_v46, 16  ;;  %v3299_v32 = vshrl.u32 %v13659_v46, 16  ;;  %v1037_v23 = vsel %vm15281_vm5, %v1032_v2, %v16545_v59  ;;  %v2027_v50 = vsel %vm15227_vm2, %v13456_v28, %v2026_v42  ;;  %v13791_v59 = vld [vmem:[%s15234_s23 + $0xc8] sm:$0xf]  ;;  %v14054_v19 = vld [vmem:[%s15234_s23 + $0xd4] sm:$0xf] }
 0x13c   : > { %v6090_v15 = vpop.permute.xlu0 %6089  ;;  %v16594_v3 = vrot.slane %v3285_v47, 5  ;;  %v3305_v16 = vshll.u32 %v13660_v43, 16  ;;  %v13425_v44 = vcombine.low %v1023_v48, %v1037_v23  ;;  %v13485_v39 = vcombine.low %v2023_v17, %v2027_v50  ;;  %v14055_v22 = vld [vmem:[%s15234_s23 + $0xd8] sm:$0xf]  ;;  %v15033_v46 = vld [vmem:[%s15234_s23 + $0x88] ss:$8 sps:$4 sm:$0xff]  }
 0x13d   : > { %6190 = vst.msk [vmem:[#allocation2 + $0x40] sm:$0xff] %vm20744_vm13, %v6090_v15  ;;  %v3291_v6 = vrot.slane %v3289_v61, 4  ;;  %v3297_v26 = vrot.slane %v3295_v24, 5  ;;  %v3301_v7 = vrot.slane %v3299_v32, 4  ;;  %v3267_v42 = vrot.slane %v3265_v49, 4  ;;  %v6777_v8 = vpop.permute.xlu1 %6776 }
 0x13e   : > { %v3307_v38 = vrot.slane %v3305_v16, 5  ;;  %v3271_v41 = vshll.u32 %v13656_v9, 16  ;;  %1606 = vrot.lane.b32.xlu0 %v13425_v44, %s15168_s27  ;;  %v3276_v62 = vshrl.u32 %v13657_v54, 16  ;;  %v3279_v10 = vshll.u32 %v13657_v54, 16  ;;  %6876 = vst.msk [vmem:[#allocation2 + $0x48] sm:$0xff] %vm20743_vm14, %v6777_v8 }
 0x13f   : > { %2296 = vrot.lane.b32.xlu1 %v13486_v25, %s15167_s26  ;;  %v3292_v13 = vor.u32 %v3291_v6, %v16594_v3  ;;  %v4274_v40 = vrot.slane %v16598_v60, 5  ;;  %v13788_v49 = vld [vmem:[%s15234_s23 + $0xbc] sm:$0x1]  ;;  %v3302_v30 = vor.u32 %v3301_v7, %v3297_v26  ;;  %v3268_v20 = vor.u32 %v3267_v42, %v16432_v5  ;;  %528 = vst.msk [vmem:[#allocation2 + $0x68] sm:$0xff] %vm20727_vm6, %v15033_v46  ;;  %v14053_v54 = vld [vmem:[%s15234_s23 + $0xd0] sm:$0xf] }
 0x140   : > { %v3273_v21 = vrot.slane %v3271_v41, 5  ;;  %v6775_v45 = vpop.permute.xlu0 %6774  ;;  %v4277_v4 = vrot.slane %v13791_v59, 5  ;;  %v3278_v51 = vrot.slane %v3276_v62, 4  ;;  %v3281_v55 = vrot.slane %v3279_v10, 5  ;;  %v14056_v17 = vld [vmem:[%s15234_s23 + $0xdc] sm:$0x1] }
 0x141   : > { %v3293_v57 = vrot.slane %v3292_v13, 4  ;;  %6875 = vst.msk [vmem:[#allocation2 + $0x40] sm:$0xff] %vm20743_vm14, %v6775_v45  ;;  %v4276_v33 = vrot.slane %v4274_v40, 4  ;;  %v3303_v56 = vrot.slane %v3302_v30, 4  ;;  %v3269_v48 = vrot.slane %v3268_v20, 4  ;;  %v15029_v45 = vld [vmem:[%s15234_s23 + $0xd4] sm:$0xff]  }
 0x142   : > { %v4279_v18 = vrot.slane %v4277_v4, 4  ;;  %v4280_v35 = vrot.slane %v13792_v53, 5  ;;  %2294 = vrot.lane.b32.xlu0 %v13485_v39, %s15167_s26  ;;  %v3282_v43 = vor.u32 %v3281_v55, %v3278_v51  ;;  %v4269_v2 = vrot.slane %v4267_v34, 4  ;;  %v14052_v34 = vld [vmem:[%s15234_s23 + $0xcc] sm:$0x1] }
 0x143   : > { %2694 = vrot.lane.b32.xlu1 %v15025_v31, %s15165_s24  ;;  %v3298_v5 = vsel %vm15281_vm5, %v3293_v57, %v3297_v26  ;;  %v4278_v27 = vsel %vm15227_vm2, %v4276_v33, %v4277_v4  ;;  %v3308_v25 = vsel %vm15281_vm5, %v3303_v56, %v3307_v38  ;;  %v3274_v28 = vsel %vm15281_vm5, %v3269_v48, %v3273_v21  ;;  %v16648_v59 = vld [vmem:[%s15234_s23 + $0xd4] sm:$0xf]  ;;  %v14187_v31 = vld [vmem:[%s15234_s23 + $0xd8] sm:$0xf] }
 0x144   : > { %v4281_v37 = vsel %vm15227_vm2, %v4279_v18, %v4280_v35  ;;  %v4270_v47 = vrot.slane %v13788_v49, 5  ;;  %v13726_v61 = vcombine.low %v3298_v5, %v3308_v25  ;;  %v3283_v24 = vrot.slane %v3282_v43, 4  ;;  %v1597_v63 = vpop.permute.xlu1 %1596  ;;  %v14185_v35 = vld [vmem:[%s15234_s23 + $0xd0] sm:$0xe] }
 0x145   : > { %v13882_v32 = vcombine.low %v4278_v27, %v4281_v37  ;;  %v13852_v9 = vrot.slane %v13789_v11, 9  ;;  %1694 = vst.msk [vmem:[#allocation2 + $0x58] sm:$0xff] %vm20721_vm7, %v1597_v63  ;;  %v5533_v50 = vshll.u32 %v14054_v19, 16  ;;  %v5537_v15 = vshrl.u32 %v14054_v19, 16  ;;  %v6912_v26 = vld [vmem:[#allocation2 + $0x48] sm:$0xff] }
 0x146   : > { %v4271_v23 = vsel %vm15227_vm2, %v4269_v2, %v4270_v47  ;;  %v5543_v16 = vshll.u32 %v14055_v22, 16  ;;  %2692 = vrot.lane.b32.xlu0 %v15026_v52, %s15165_s24  ;;  %v3288_v60 = vsel %vm15281_vm5, %v3283_v24, %v16594_v3  ;;  %v5547_v39 = vshrl.u32 %v14055_v22, 16  ;;  %v14184_v22 = vld [vmem:[%s15234_s23 + $0xcc] sm:$0x1]  ;;  %v15030_v5 = vld [vmem:[%s15234_s23 + $0xc8] ss:$8 sps:$4 sm:$0xff]  }
 0x147   : > { %3859 = vrot.lane.b32.xlu1 %v13726_v61, %s15169_s28  ;;  %v4275_v44 = vsel %vm15227_vm2, %v13852_v9, %v4274_v40  ;;  %v5553_v6 = vshll.u32 %v14056_v17, 16  ;;  %v13725_v7 = vcombine.low %v3274_v28, %v3288_v60  ;;  %v16650_v8 = vrot.slane %v5533_v50, 5  ;;  %v601_v28 = vld [vmem:[%s15234_s23 + $0xc8] sm:$0xf]  ;;  %v602_v24 = vld [vmem:[%s15234_s23 + $0xcc] sm:$0x1] }
 0x148   : > { %v13881_v38 = vcombine.low %v4271_v23, %v4275_v44  ;;  %v1595_v42 = vpop.permute.xlu0 %1594  ;;  %v6911_v41 = vld [vmem:[#allocation2 + $0x40] sm:$0xff]  ;;  %v5539_v53 = vrot.slane %v5537_v15, 4  ;;  %v2285_v3 = vpop.permute.xlu1 %2284  ;;  %v5545_v13 = vrot.slane %v5543_v16, 5  ;;  %v5549_v62 = vrot.slane %v5547_v39, 4  ;;  %v16694_v15 = vld [vmem:[%s15234_s23 + $0xd4] sm:$0xf] }
 0x149   : > { %1693 = vst.msk [vmem:[#allocation2 + $0x50] sm:$0xff] %vm20721_vm7, %v1595_v42  ;;  %14895 = vmatprep.mubr.msk.bf16.mxu0 %vm20747_vm1, %v6911_v41  ;;  %v5555_v10 = vrot.slane %v5553_v6, 5  ;;  %v5515_v40 = vrot.slane %v5513_v29, 4  ;;  %v5519_v30 = vshll.u32 %v14052_v34, 16  ;;  %v5524_v20 = vshrl.u32 %v14053_v54, 16 }
 0x14a   : > { %2382 = vst.msk [vmem:[#allocation2 + $0x58] sm:$0xff] %vm2370_vm8, %v2285_v3  ;;  %v5540_v49 = vor.u32 %v5539_v53, %v16650_v8  ;;  %v5527_v21 = vshll.u32 %v14053_v54, 16  ;;  %14896 = vmatmul.mubr.msk.bf16.gmra.mrb[16].mxu0 %vm20747_vm1, %v6912_v26  ;;  %3857 = vrot.lane.b32.xlu0 %v13725_v7, %s15169_s28  ;;  %v5550_v4 = vor.u32 %v5549_v62, %v5545_v13  ;;  %v6522_v29 = vrot.slane %v16648_v59, 5  ;;  %v599_v26 = vld [vmem:[%s15234_s23 + $0xc0] sm:$0xf] }
 0x14b   : > { %4544 = vrot.lane.b32.xlu1 %v13882_v32, %s15166_s25  ;;  %v5516_v11 = vor.u32 %v5515_v40, %v16494_v1  ;;  %v6525_v52 = vrot.slane %v14187_v31, 5  ;;  %v5521_v55 = vrot.slane %v5519_v30, 5  ;;  %v5526_v33 = vrot.slane %v5524_v20, 4  ;;  %v603_v32 = vld [vmem:[%s15234_s23 + $0xd0] sm:$0xf] }
 0x14c   : > { %v2283_v57 = vpop.permute.xlu0 %2282  ;;  %v5541_v51 = vrot.slane %v5540_v49, 4  ;;  %v5529_v19 = vrot.slane %v5527_v21, 5  ;;  %v5551_v46 = vrot.slane %v5550_v4, 4  ;;  %v2683_v48 = vpop.permute.xlu1 %2682  ;;  %v6524_v18 = vrot.slane %v6522_v29, 4  ;;  %v600_v59 = vld [vmem:[%s15234_s23 + $0xc4] sm:$0xf] }
 0x14d   : > { %2381 = vst.msk [vmem:[#allocation2 + $0x50] sm:$0xff] %vm2370_vm8, %v2283_v57  ;;  %v5517_v56 = vrot.slane %v5516_v11, 4  ;;  %v6527_v1 = vrot.slane %v6525_v52, 4  ;;  %v6528_v2 = vrot.slane %v14188_v14, 5  ;;  %v6517_v25 = vrot.slane %v6515_v12, 4 }
 0x14e   : > { %v5546_v43 = vsel %vm15281_vm5, %v5541_v51, %v5545_v13  ;;  %v5530_v27 = vor.u32 %v5529_v19, %v5526_v33  ;;  %2780 = vst.msk [vmem:[#allocation2 + $0x58] sm:$0xff] %vm20722_vm9, %v2683_v48  ;;  %4542 = vrot.lane.b32.xlu0 %v13881_v38, %s15166_s25  ;;  %v5556_v37 = vsel %vm15281_vm5, %v5551_v46, %v5555_v10  ;;  %v6518_v61 = vrot.slane %v14184_v22, 5  ;;  %v1770_v53 = vld [vmem:[%s15234_s23 + $0xcc] sm:$0x1]  ;;  %v1771_v40 = vld [vmem:[%s15234_s23 + $0xd0] sm:$0xe] }
 0x14f   : > { %4942 = vrot.lane.b32.xlu1 %v15029_v45, %s15170_s29  ;;  %v5522_v47 = vsel %vm15281_vm5, %v5517_v56, %v5521_v55  ;;  %v6526_v17 = vsel %vm15227_vm2, %v6524_v18, %v6525_v52  ;;  %v14122_v36 = vcombine.low %v5546_v43, %v5556_v37  ;;  %v6529_v63 = vsel %vm15227_vm2, %v6527_v1, %v6528_v2  ;;  %v16718_v4 = vld [vmem:[%s15234_s23 + $0xd4] sm:$0xf]  ;;  %v1767_v11 = vld [vmem:[%s15234_s23 + $0xc0] sm:$0xe]  ;;  %v1768_v51 = vld [vmem:[%s15234_s23 + $0xc4] sm:$0xf] }
 0x150   : > { %v5531_v12 = vrot.slane %v5530_v27, 4  ;;  %v2681_v9 = vpop.permute.xlu0 %2680  ;;  %v14248_v34 = vrot.slane %v14185_v35, 9  ;;  %v16691_v23 = vsel %vm15227_vm2, %v6517_v25, %v6518_v61  ;;  %v3848_v50 = vpop.permute.xlu1 %3847  ;;  %v1078_v16 = vshll.u32 %v601_v28, 16  ;;  %v13663_v35 = vld [vmem:[%s15234_s23 + $0xd8] sm:$0xf] }
 0x151   : > { %2779 = vst.msk [vmem:[#allocation2 + $0x50] sm:$0xff] %vm20722_vm9, %v2681_v9  ;;  %v1082_v54 = vshrl.u32 %v601_v28, 16  ;;  %v1088_v39 = vshll.u32 %v602_v24, 16  ;;  %v1093_v6 = vshrl.u32 %v603_v32, 16  ;;  %v14278_v38 = vcombine.low %v6526_v17, %v6529_v63 }
 0x152   : > { %v5536_v60 = vsel %vm15281_vm5, %v5531_v12, %v16650_v8  ;;  %v6523_v44 = vsel %vm15227_vm2, %v14248_v34, %v6522_v29  ;;  %3945 = vst.msk [vmem:[#allocation2 + $0x58] sm:$0xff] %vm20748_vm10, %v3848_v50  ;;  %4940 = vrot.lane.b32.xlu0 %v15030_v5, %s15170_s29  ;;  %v16706_v42 = vrot.slane %v1078_v16, 5  ;;  %v16709_v8 = vld [vmem:[%s15234_s23 + $0xc8] sm:$0xf]  ;;  %v1096_v62 = vshll.u32 %v603_v32, 16 }
 0x153   : > { %6107 = vrot.lane.b32.xlu1 %v14122_v36, %s15171_s30  ;;  %v14121_v7 = vcombine.low %v5522_v47, %v5536_v60  ;;  %v1084_v41 = vrot.slane %v1082_v54, 4  ;;  %v14277_v31 = vcombine.low %v16691_v23, %v6523_v44  ;;  %v1095_v13 = vrot.slane %v1093_v6, 4  ;;  %v13664_v23 = vld [vmem:[%s15234_s23 + $0xdc] sm:$0x1]  ;;  %v13665_v50 = vld [vmem:[%s15234_s23 + $0xe0] sm:$0xf] }
 0x154   : > { %v3846_v3 = vpop.permute.xlu0 %3845  ;;  %v1102_v10 = vshll.u32 %v16694_v15, 16  ;;  %v1090_v30 = vrot.slane %v1088_v39, 5  ;;  %v1059_v20 = vshrl.u32 %v599_v26, 16  ;;  %v1062_v21 = vshll.u32 %v599_v26, 16  ;;  %v4533_v45 = vpop.permute.xlu1 %4532  ;;  %v16752_v26 = vld [vmem:[%s15234_s23 + $0xe4] sm:$0xf] }
 0x155   : > { %3944 = vst.msk [vmem:[#allocation2 + $0x50] sm:$0xff] %vm20748_vm10, %v3846_v3  ;;  %v1085_v49 = vor.u32 %v1084_v41, %v16706_v42  ;;  %v1098_v14 = vrot.slane %v1096_v62, 5  ;;  %v1068_v52 = vshll.u32 %v600_v59, 16  ;;  %v1072_v57 = vshrl.u32 %v600_v59, 16  ;;  %v13661_v59 = vld [vmem:[%s15234_s23 + $0xd0] sm:$0xf] }
 0x156   : > { %v16721_v29 = vrot.slane %v1102_v10, 5  ;;  %4630 = vst.msk [vmem:[#allocation2 + $0x58] sm:$0xff] %vm20746_vm11, %v4533_v45  ;;  %6105 = vrot.lane.b32.xlu0 %v14121_v7, %s15171_s30  ;;  %v1061_v33 = vrot.slane %v1059_v20, 4  ;;  %v1064_v19 = vrot.slane %v1062_v21, 5  ;;  %v2039_v22 = vrot.slane %v16709_v8, 5 }
 0x157   : > { %6792 = vrot.lane.b32.xlu1 %v14278_v38, %s15172_s6  ;;  %v1086_v55 = vrot.slane %v1085_v49, 4  ;;  %v1099_v46 = vor.u32 %v1098_v14, %v1095_v13  ;;  %v1070_v56 = vrot.slane %v1068_v52, 5  ;;  %v1074_v48 = vrot.slane %v1072_v57, 4 }
 0x158   : > { %v4531_v18 = vpop.permute.xlu0 %4530  ;;  %v2042_v1 = vrot.slane %v1770_v53, 5  ;;  %v1065_v43 = vor.u32 %v1064_v19, %v1061_v33  ;;  %v2041_v27 = vrot.slane %v2039_v22, 4  ;;  %v13458_v2 = vrot.slane %v1771_v40, 9  ;;  %v4931_v25 = vpop.permute.xlu1 %4930  ;;  %v13662_v53 = vld [vmem:[%s15234_s23 + $0xd4] sm:$0xf] }
 0x159   : > { %v1091_v5 = vsel %vm15281_vm5, %v1086_v55, %v1090_v30  ;;  %4629 = vst.msk [vmem:[#allocation2 + $0x50] sm:$0xff] %vm20746_vm11, %v4531_v18  ;;  %v1100_v28 = vrot.slane %v1099_v46, 4  ;;  %v1075_v37 = vor.u32 %v1074_v48, %v1070_v56  ;;  %v2046_v47 = vrot.slane %v16718_v4, 5  ;;  %v13796_v40 = vld [vmem:[%s15234_s23 + $0xdc] sm:$0x1] }
 0x15a   : > { %v13457_v17 = vrot.slane %v1767_v11, 9  ;;  %5028 = vst.msk [vmem:[#allocation2 + $0x58] sm:$0xff] %vm20745_vm12, %v4931_v25  ;;  %6790 = vrot.lane.b32.xlu0 %v14277_v31, %s15172_s6  ;;  %v1066_v61 = vrot.slane %v1065_v43, 4  ;;  %v2043_v24 = vsel %vm15227_vm2, %v2041_v27, %v2042_v1  ;;  %v2036_v32 = vrot.slane %v1768_v51, 5  ;;  %v16763_v31 = vld [vmem:[%s15234_s23 + $0xd8] sm:$0xf] }
 0x15b   : > { %v3329_v36 = vshll.u32 %v13663_v35, 16  ;;  %v1105_v12 = vsel %vm15281_vm5, %v1100_v28, %v16721_v29  ;;  %v1076_v9 = vrot.slane %v1075_v37, 4  ;;  %v2047_v63 = vsel %vm15227_vm2, %v13458_v2, %v2046_v47  ;;  %v15031_v11 = vld [vmem:[%s15234_s23 + $0xd8] ss:$8 sps:$4 sm:$0xff]   ;;  %v16777_v33 = vld [vmem:[%s15234_s23 + $0xe4] sm:$0xf] }
 0x15c   : > { %v4929_v34 = vpop.permute.xlu0 %4928  ;;  %v3333_v16 = vshrl.u32 %v13663_v35, 16  ;;  %v13428_v54 = vcombine.low %v1091_v5, %v1105_v12  ;;  %v1071_v60 = vsel %vm15281_vm5, %v1066_v61, %v1070_v56  ;;  %v13488_v44 = vcombine.low %v2043_v24, %v2047_v63  ;;  %v6096_v6 = vpop.permute.xlu1 %6095  ;;  %v13797_v55 = vld [vmem:[%s15234_s23 + $0xe0] sm:$0xe]  ;;  %v13793_v19 = vld [vmem:[%s15234_s23 + $0xd0] sm:$0xe] }
 0x15d   : > { %v2037_v39 = vsel %vm15227_vm2, %v13457_v17, %v2036_v32  ;;  %5027 = vst.msk [vmem:[#allocation2 + $0x50] sm:$0xff] %vm20745_vm12, %v4929_v34  ;;  %v1081_v7 = vsel %vm15281_vm5, %v1076_v9, %v16706_v42  ;;  %v2038_v38 = vrot.slane %v2036_v32, 4  ;;  %v16759_v41 = vrot.slane %v3329_v36, 5  ;;  %v13794_v18 = vld [vmem:[%s15234_s23 + $0xd4] sm:$0xf]  ;;  %v15052_v27 = vld [vmem:[%s15234_s23 + $0xc0] sm:$0xff]  }
 0x15e   : > { %6193 = vst.msk [vmem:[#allocation2 + $0x58] sm:$0xff] %vm20744_vm13, %v6096_v6  ;;  %v3335_v8 = vrot.slane %v3333_v16, 4  ;;  %1612 = vrot.lane.b32.xlu1 %v13428_v54, %s15168_s27  ;;  %v13427_v3 = vcombine.low %v1071_v60, %v1081_v7  ;;  %v3339_v13 = vshll.u32 %v13664_v23, 16  ;;  %v3344_v62 = vshrl.u32 %v13665_v50, 16  ;;  %v15032_v2 = vld [vmem:[%s15234_s23 + $0xd0] sm:$0xff]  }
 0x15f   : > { %v3347_v10 = vshll.u32 %v13665_v50, 16  ;;  %v1106_v42 = vshrl.u32 %v16694_v15, 16  ;;  %v2040_v49 = vsel %vm15227_vm2, %v2038_v38, %v2039_v22  ;;  %v3353_v21 = vshll.u32 %v16752_v26, 16  ;;  %v14059_v9 = vld [vmem:[%s15234_s23 + $0xe8] sm:$0xf]  ;;  %533 = vst.msk [vmem:[#allocation2 + $0x90] sm:$0xff] %vm20727_vm6, %v15052_v27 }
 0x160   : > { %v6094_v30 = vpop.permute.xlu0 %6093  ;;  %v3336_v20 = vor.u32 %v3335_v8, %v16759_v41  ;;  %1610 = vrot.lane.b32.xlu0 %v13427_v3, %s15168_s27  ;;  %v13487_v45 = vcombine.low %v2037_v39, %v2040_v49  ;;  %v3341_v14 = vrot.slane %v3339_v13, 5  ;;  %v3346_v52 = vrot.slane %v3344_v62, 4  ;;  %v6781_v51 = vpop.permute.xlu1 %6780  ;;  %v14060_v6 = vld [vmem:[%s15234_s23 + $0xec] sm:$0x1]  ;;  %v14061_v8 = vld [vmem:[%s15234_s23 + $0xf0] sm:$0xf] }
 0x161   : > { %6192 = vst.msk [vmem:[#allocation2 + $0x50] sm:$0xff] %vm20744_vm13, %v6094_v30  ;;  %v3349_v57 = vrot.slane %v3347_v10, 5  ;;  %v16780_v46 = vrot.slane %v3353_v21, 5  ;;  %v3310_v56 = vshrl.u32 %v13661_v59, 16  ;;  %v3313_v48 = vshll.u32 %v13661_v59, 16 }
 0x162   : > { %v3337_v22 = vrot.slane %v3336_v20, 4  ;;  %6878 = vst.msk [vmem:[#allocation2 + $0x58] sm:$0xff] %vm20743_vm14, %v6781_v51  ;;  %2300 = vrot.lane.b32.xlu1 %v13488_v44, %s15167_s26  ;;  %v3319_v35 = vshll.u32 %v13662_v53, 16  ;;  %v3323_v5 = vshrl.u32 %v13662_v53, 16  ;;  %v4287_v43 = vrot.slane %v16763_v31, 5 }
 0x163   : > { %v3350_v1 = vor.u32 %v3349_v57, %v3346_v52  ;;  %v3312_v28 = vrot.slane %v3310_v56, 4  ;;  %v3315_v37 = vrot.slane %v3313_v48, 5  ;;  %v4290_v61 = vrot.slane %v13796_v40, 5  ;;  %v16812_v10 = vld [vmem:[%s15234_s23 + $0xf4] sm:$0xf] }
 0x164   : > { %v3342_v25 = vsel %vm15281_vm5, %v3337_v22, %v3341_v14  ;;  %v6779_v17 = vpop.permute.xlu0 %6778  ;;  %2298 = vrot.lane.b32.xlu0 %v13487_v45, %s15167_s26  ;;  %v3321_v32 = vrot.slane %v3319_v35, 5  ;;  %v3325_v36 = vrot.slane %v3323_v5, 4  ;;  %v4289_v12 = vrot.slane %v4287_v43, 4  ;;  %v14057_v21 = vld [vmem:[%s15234_s23 + $0xe0] sm:$0xf] }
 0x165   : > { %v3351_v24 = vrot.slane %v3350_v1, 4  ;;  %6877 = vst.msk [vmem:[#allocation2 + $0x50] sm:$0xff] %vm20743_vm14, %v6779_v17  ;;  %v3316_v63 = vor.u32 %v3315_v37, %v3312_v28  ;;  %v13854_v34 = vrot.slane %v13797_v55, 9  ;;  %v4294_v23 = vrot.slane %v16777_v33, 5  ;;  %v14058_v55 = vld [vmem:[%s15234_s23 + $0xe4] sm:$0xf] }
 0x166   : > { %v13853_v50 = vrot.slane %v13793_v19, 9  ;;  %2698 = vrot.lane.b32.xlu1 %v15031_v11, %s15165_s24  ;;  %v3326_v54 = vor.u32 %v3325_v36, %v3321_v32  ;;  %v4291_v60 = vsel %vm15227_vm2, %v4289_v12, %v4290_v61  ;;  %v4284_v44 = vrot.slane %v13794_v18, 5  ;;  %v16830_v1 = vld [vmem:[%s15234_s23 + $0xe8] sm:$0xf] }
 0x167   : > { %v3356_v16 = vsel %vm15281_vm5, %v3351_v24, %v16780_v46  ;;  %v1601_v39 = vpop.permute.xlu1 %1600  ;;  %v3317_v7 = vrot.slane %v3316_v63, 4  ;;  %v4295_v38 = vsel %vm15227_vm2, %v13854_v34, %v4294_v23  ;;  %v5577_v53 = vshll.u32 %v14059_v9, 16  ;;  %v15035_v35 = vld [vmem:[%s15234_s23 + $0xe8] ss:$8 sps:$4 sm:$0xff]   ;;  %v16844_v34 = vld [vmem:[%s15234_s23 + $0xf4] sm:$0xf] }
 0x168   : > { %v13728_v59 = vcombine.low %v3342_v25, %v3356_v16  ;;  %1696 = vst.msk [vmem:[#allocation2 + $0x68] sm:$0xff] %vm20721_vm7, %v1601_v39  ;;  %2696 = vrot.lane.b32.xlu0 %v15032_v2, %s15165_s24  ;;  %v3327_v31 = vrot.slane %v3326_v54, 4  ;;  %v13884_v3 = vcombine.low %v4291_v60, %v4295_v38  ;;  %v4285_v13 = vsel %vm15227_vm2, %v13853_v50, %v4284_v44  ;;  %v14192_v25 = vld [vmem:[%s15234_s23 + $0xec] sm:$0x1]  ;;  %v14193_v24 = vld [vmem:[%s15234_s23 + $0xf0] sm:$0xe] }
 0x169   : > { %v4286_v62 = vrot.slane %v4284_v44, 4  ;;  %v3322_v40 = vsel %vm15281_vm5, %v3317_v7, %v3321_v32  ;;  %v16816_v49 = vrot.slane %v5577_v53, 5  ;;  %v5581_v30 = vshrl.u32 %v14059_v9, 16  ;;  %v6914_v19 = vld [vmem:[#allocation2 + $0x58] sm:$0xff]  ;;  %v14189_v39 = vld [vmem:[%s15234_s23 + $0xe0] sm:$0xe] }
 0x16a   : > { %v5587_v20 = vshll.u32 %v14060_v6, 16  ;;  %3863 = vrot.lane.b32.xlu1 %v13728_v59, %s15169_s28  ;;  %v3332_v45 = vsel %vm15281_vm5, %v3327_v31, %v16759_v41  ;;  %v1599_v14 = vpop.permute.xlu0 %1598  ;;  %v5592_v57 = vshrl.u32 %v14061_v8, 16  ;;  %v5595_v51 = vshll.u32 %v14061_v8, 16  ;;  %v14190_v8 = vld [vmem:[%s15234_s23 + $0xe4] sm:$0xf] }
 0x16b   : > { %v4288_v11 = vsel %vm15227_vm2, %v4286_v62, %v4287_v43  ;;  %v2289_v52 = vpop.permute.xlu1 %2288  ;;  %v3357_v22 = vshrl.u32 %v16752_v26, 16  ;;  %v13727_v56 = vcombine.low %v3322_v40, %v3332_v45  ;;  %1695 = vst.msk [vmem:[#allocation2 + $0x60] sm:$0xff] %vm20721_vm7, %v1599_v14  ;;  %v5583_v18 = vrot.slane %v5581_v30, 4  ;;  %v15036_v53 = vld [vmem:[%s15234_s23 + $0xe0] sm:$0xff]  }
 0x16c   : > { %v13883_v48 = vcombine.low %v4285_v13, %v4288_v11  ;;  %2384 = vst.msk [vmem:[#allocation2 + $0x68] sm:$0xff] %vm2370_vm8, %v2289_v52  ;;  %v6913_v41 = vld [vmem:[#allocation2 + $0x50] sm:$0xff]  ;;  %v5589_v5 = vrot.slane %v5587_v20, 5  ;;  %v5594_v43 = vrot.slane %v5592_v57, 4  ;;  %v5597_v27 = vrot.slane %v5595_v51, 5 }
 0x16d   : > { %14899 = vmatprep.mubr.msk.bf16.mxu0 %vm20747_vm1, %v6913_v41  ;;  %v5601_v2 = vshll.u32 %v16812_v10, 16  ;;  %3861 = vrot.lane.b32.xlu0 %v13727_v56, %s15169_s28  ;;  %v5584_v28 = vor.u32 %v5583_v18, %v16816_v49  ;;  %v5558_v37 = vshrl.u32 %v14057_v21, 16  ;;  %v5561_v17 = vshll.u32 %v14057_v21, 16  ;;  %v607_v40 = vld [vmem:[%s15234_s23 + $0xe0] sm:$0xf] }
 0x16e   : > { %v5567_v61 = vshll.u32 %v14058_v55, 16  ;;  %14900 = vmatmul.mubr.msk.bf16.gmra.mrb[20].mxu0 %vm20747_vm1, %v6914_v19  ;;  %4548 = vrot.lane.b32.xlu1 %v13884_v3, %s15166_s25  ;;  %v2287_v32 = vpop.permute.xlu0 %2286  ;;  %v5598_v36 = vor.u32 %v5597_v27, %v5594_v43  ;;  %v5571_v9 = vshrl.u32 %v14058_v55, 16  ;;  %v6535_v50 = vrot.slane %v16830_v1, 5  ;;  %v608_v14 = vld [vmem:[%s15234_s23 + $0xe4] sm:$0xf] }
 0x16f   : > { %v16841_v12 = vrot.slane %v5601_v2, 5  ;;  %v2687_v63 = vpop.permute.xlu1 %2686  ;;  %2383 = vst.msk [vmem:[#allocation2 + $0x60] sm:$0xff] %vm2370_vm8, %v2287_v32  ;;  %v5585_v16 = vrot.slane %v5584_v28, 4  ;;  %v5560_v54 = vrot.slane %v5558_v37, 4  ;;  %v5563_v60 = vrot.slane %v5561_v17, 5 }
 0x170   : > { %v5569_v44 = vrot.slane %v5567_v61, 5  ;;  %2782 = vst.msk [vmem:[#allocation2 + $0x68] sm:$0xff] %vm20722_vm9, %v2687_v63  ;;  %v5599_v6 = vrot.slane %v5598_v36, 4  ;;  %v5573_v59 = vrot.slane %v5571_v9, 4  ;;  %v6537_v7 = vrot.slane %v6535_v50, 4 }
 0x171   : > { %v6538_v38 = vrot.slane %v14192_v25, 5  ;;  %4546 = vrot.lane.b32.xlu0 %v13883_v48, %s15166_s25  ;;  %v5590_v31 = vsel %vm15281_vm5, %v5585_v16, %v5589_v5  ;;  %v5564_v3 = vor.u32 %v5563_v60, %v5560_v54  ;;  %v14250_v13 = vrot.slane %v14193_v24, 9  ;;  %v16865_v52 = vld [vmem:[%s15234_s23 + $0xe8] sm:$0xf]  ;;  %v605_v61 = vld [vmem:[%s15234_s23 + $0xd8] sm:$0xf] }
 0x172   : > { %v6542_v62 = vrot.slane %v16844_v34, 5  ;;  %4946 = vrot.lane.b32.xlu1 %v15035_v35, %s15170_s29  ;;  %v5604_v30 = vsel %vm15281_vm5, %v5599_v6, %v16841_v12  ;;  %v5574_v20 = vor.u32 %v5573_v59, %v5569_v44  ;;  %v2685_v21 = vpop.permute.xlu0 %2684  ;;  %v14249_v11 = vrot.slane %v14189_v39, 9  ;;  %v606_v63 = vld [vmem:[%s15234_s23 + $0xdc] sm:$0x1]  ;;  %v1775_v54 = vld [vmem:[%s15234_s23 + $0xe0] sm:$0xe] }
 0x173   : > { %v6539_v45 = vsel %vm15227_vm2, %v6537_v7, %v6538_v38  ;;  %v14124_v57 = vcombine.low %v5590_v31, %v5604_v30  ;;  %v5565_v51 = vrot.slane %v5564_v3, 4  ;;  %2781 = vst.msk [vmem:[#allocation2 + $0x60] sm:$0xff] %vm20722_vm9, %v2685_v21  ;;  %v6532_v19 = vrot.slane %v14190_v8, 5  ;;  %v1776_v6 = vld [vmem:[%s15234_s23 + $0xe4] sm:$0xf] }
 0x174   : > { %v6543_v55 = vsel %vm15227_vm2, %v14250_v13, %v6542_v62  ;;  %v3852_v56 = vpop.permute.xlu1 %3851  ;;  %v5575_v48 = vrot.slane %v5574_v20, 4  ;;  %v1127_v18 = vshrl.u32 %v607_v40, 16  ;;  %v1130_v1 = vshll.u32 %v607_v40, 16  ;;  %v16898_v8 = vld [vmem:[%s15234_s23 + $0xe8] sm:$0xf] }
 0x175   : > { %v14280_v41 = vcombine.low %v6539_v45, %v6543_v55  ;;  %3947 = vst.msk [vmem:[#allocation2 + $0x68] sm:$0xff] %vm20748_vm10, %v3852_v56  ;;  %4944 = vrot.lane.b32.xlu0 %v15036_v53, %s15170_s29  ;;  %v5570_v35 = vsel %vm15281_vm5, %v5565_v51, %v5569_v44  ;;  %v6533_v5 = vsel %vm15227_vm2, %v14249_v11, %v6532_v19  ;;  %v6534_v43 = vrot.slane %v6532_v19, 4  ;;  %v1773_v30 = vld [vmem:[%s15234_s23 + $0xd8] sm:$0xf]  ;;  %v13669_v19 = vld [vmem:[%s15234_s23 + $0xf0] sm:$0xf] }
 0x176   : > { %v1136_v27 = vshll.u32 %v608_v14, 16  ;;  %6111 = vrot.lane.b32.xlu1 %v14124_v57, %s15171_s30  ;;  %v5580_v2 = vsel %vm15281_vm5, %v5575_v48, %v16816_v49  ;;  %v1129_v28 = vrot.slane %v1127_v18, 4  ;;  %v1132_v37 = vrot.slane %v1130_v1, 5  ;;  %v13670_v18 = vld [vmem:[%s15234_s23 + $0xf4] sm:$0xf] }
 0x177   : > { %v3850_v25 = vpop.permute.xlu0 %3849  ;;  %v1140_v17 = vshrl.u32 %v608_v14, 16  ;;  %v14123_v24 = vcombine.low %v5570_v35, %v5580_v2  ;;  %v6536_v32 = vsel %vm15227_vm2, %v6534_v43, %v6535_v50  ;;  %v1146_v9 = vshll.u32 %v16865_v52, 16  ;;  %v16915_v1 = vld [vmem:[%s15234_s23 + $0xf8] sm:$0xf]  ;;  %v611_v34 = vld [vmem:[%s15234_s23 + $0xf0] sm:$0xf] }
 0x178   : > { %3946 = vst.msk [vmem:[#allocation2 + $0x60] sm:$0xff] %vm20748_vm10, %v3850_v25  ;;  %v1138_v36 = vrot.slane %v1136_v27, 5  ;;  %v4537_v16 = vpop.permute.xlu1 %4536  ;;  %v5605_v49 = vshrl.u32 %v16812_v10, 16  ;;  %v14279_v60 = vcombine.low %v6533_v5, %v6536_v32  ;;  %v1133_v44 = vor.u32 %v1132_v37, %v1129_v28 }
 0x179   : > { %v1142_v39 = vrot.slane %v1140_v17, 4  ;;  %4632 = vst.msk [vmem:[#allocation2 + $0x68] sm:$0xff] %vm20746_vm11, %v4537_v16  ;;  %6109 = vrot.lane.b32.xlu0 %v14123_v24, %s15171_s30  ;;  %v16893_v50 = vrot.slane %v1146_v9, 5  ;;  %v1108_v59 = vrot.slane %v1106_v42, 4  ;;  %v1112_v7 = vshll.u32 %v605_v61, 16 }
 0x17a   : > { %v1116_v38 = vshrl.u32 %v605_v61, 16  ;;  %6796 = vrot.lane.b32.xlu1 %v14280_v41, %s15172_s6  ;;  %v1134_v53 = vrot.slane %v1133_v44, 4  ;;  %v1122_v3 = vshll.u32 %v606_v63, 16  ;;  %v13459_v40 = vrot.slane %v1775_v54, 9  ;;  %v1774_v42 = vld [vmem:[%s15234_s23 + $0xdc] sm:$0x1] }
 0x17b   : > { %v1143_v31 = vor.u32 %v1142_v39, %v1138_v36  ;;  %v4535_v13 = vpop.permute.xlu0 %4534  ;;  %v1109_v20 = vor.u32 %v1108_v59, %v16721_v29  ;;  %v1114_v21 = vrot.slane %v1112_v7, 5  ;;  %v2056_v15 = vrot.slane %v1776_v6, 5  ;;  %v13668_v9 = vld [vmem:[%s15234_s23 + $0xec] sm:$0x1]  ;;  %v15046_v63 = vld [vmem:[%s15234_s23 + $0xa8] ss:$8 sps:$4 sm:$0xff]  }
 0x17c   : > { %v1118_v45 = vrot.slane %v1116_v38, 4  ;;  %4631 = vst.msk [vmem:[#allocation2 + $0x60] sm:$0xff] %vm20746_vm11, %v4535_v13  ;;  %v4935_v11 = vpop.permute.xlu1 %4934  ;;  %v1139_v14 = vsel %vm15281_vm5, %v1134_v53, %v1138_v36  ;;  %v1124_v51 = vrot.slane %v1122_v3, 5  ;;  %v2059_v55 = vrot.slane %v16898_v8, 5  ;;  %v13801_v39 = vld [vmem:[%s15234_s23 + $0xf0] sm:$0xe] }
 0x17d   : > { %v1144_v57 = vrot.slane %v1143_v31, 4  ;;  %5030 = vst.msk [vmem:[#allocation2 + $0x68] sm:$0xff] %vm20745_vm12, %v4935_v11  ;;  %6794 = vrot.lane.b32.xlu0 %v14279_v60, %s15172_s6  ;;  %v1110_v29 = vrot.slane %v1109_v20, 4  ;;  %v2057_v48 = vsel %vm15227_vm2, %v13459_v40, %v2056_v15  ;;  %v2058_v41 = vrot.slane %v2056_v15, 4  ;;  %v13802_v6 = vld [vmem:[%s15234_s23 + $0xf4] sm:$0xf] }
 0x17e   : > { %v1119_v56 = vor.u32 %v1118_v45, %v1114_v21  ;;  %v2048_v5 = vrot.slane %v2046_v47, 4  ;;  %v2049_v43 = vrot.slane %v1773_v30, 5  ;;  %v2052_v27 = vrot.slane %v1774_v42, 5  ;;  %v13667_v47 = vld [vmem:[%s15234_s23 + $0xe8] sm:$0xf]  ;;  %531 = vst.msk [vmem:[#allocation2 + $0x80] sm:$0xff] %vm20727_vm6, %v15046_v63 }
 0x17f   : > { %v1149_v35 = vsel %vm15281_vm5, %v1144_v57, %v16893_v50  ;;  %v4933_v2 = vpop.permute.xlu0 %4932  ;;  %v1115_v28 = vsel %vm15281_vm5, %v1110_v29, %v1114_v21  ;;  %v2060_v17 = vsel %vm15227_vm2, %v2058_v41, %v2059_v55  ;;  %v3378_v36 = vshrl.u32 %v13669_v19, 16  ;;  %v15037_v11 = vld [vmem:[%s15234_s23 + $0xf0] sm:$0xff]   ;;  %v16955_v29 = vld [vmem:[%s15234_s23 + $0xf8] sm:$0xf]  ;;  %v13675_v8 = vld [vmem:[%s15234_s23 + $0x108] sm:$0xf] }
 0x180   : > { %v13430_v25 = vcombine.low %v1139_v14, %v1149_v35  ;;  %v1120_v37 = vrot.slane %v1119_v56, 4  ;;  %5029 = vst.msk [vmem:[#allocation2 + $0x60] sm:$0xff] %vm20745_vm12, %v4933_v2  ;;  %v6100_v4 = vpop.permute.xlu1 %6099  ;;  %v13490_v61 = vcombine.low %v2057_v48, %v2060_v17  ;;  %v2050_v24 = vsel %vm15227_vm2, %v2048_v5, %v2049_v43  ;;  %v13800_v2 = vld [vmem:[%s15234_s23 + $0xec] sm:$0x1] }
 0x181   : > { %v2051_v32 = vrot.slane %v2049_v43, 4  ;;  %6195 = vst.msk [vmem:[#allocation2 + $0x68] sm:$0xff] %vm20744_vm13, %v6100_v4  ;;  %v3381_v54 = vshll.u32 %v13669_v19, 16  ;;  %v3387_v60 = vshll.u32 %v13670_v18, 16  ;;  %v3391_v44 = vshrl.u32 %v13670_v18, 16 }
 0x182   : > { %1616 = vrot.lane.b32.xlu1 %v13430_v25, %s15168_s27  ;;  %v1125_v16 = vsel %vm15281_vm5, %v1120_v37, %v1124_v51  ;;  %v3380_v38 = vrot.slane %v3378_v36, 4  ;;  %v3397_v53 = vshll.u32 %v16915_v1, 16  ;;  %v1150_v31 = vshrl.u32 %v16865_v52, 16  ;;  %v15038_v25 = vld [vmem:[%s15234_s23 + $0xe4] sm:$0xff]   ;;  %v14065_v4 = vld [vmem:[%s15234_s23 + $0x100] sm:$0xf] }
 0x183   : > { %v13429_v59 = vcombine.low %v1115_v28, %v1125_v16  ;;  %v2053_v7 = vsel %vm15227_vm2, %v2051_v32, %v2052_v27  ;;  %v6098_v3 = vpop.permute.xlu0 %6097  ;;  %v3383_v13 = vrot.slane %v3381_v54, 5  ;;  %v3389_v40 = vrot.slane %v3387_v60, 5  ;;  %v14066_v36 = vld [vmem:[%s15234_s23 + $0x104] sm:$0xf]  ;;  %v16983_v60 = vld [vmem:[%s15234_s23 + $0x108] sm:$0xf] }
 0x184   : > { %v3393_v30 = vrot.slane %v3391_v44, 4  ;;  %v6785_v20 = vpop.permute.xlu1 %6784  ;;  %v13489_v21 = vcombine.low %v2050_v24, %v2053_v7  ;;  %6194 = vst.msk [vmem:[#allocation2 + $0x60] sm:$0xff] %vm20744_vm13, %v6098_v3  ;;  %v16947_v45 = vrot.slane %v3397_v53, 5  ;;  %v3359_v15 = vrot.slane %v3357_v22, 4  ;;  %v13799_v22 = vld [vmem:[%s15234_s23 + $0xe8] sm:$0xf] }
 0x185   : > { %1614 = vrot.lane.b32.xlu0 %v13429_v59, %s15168_s27  ;;  %v3363_v42 = vshll.u32 %v13667_v47, 16  ;;  %6880 = vst.msk [vmem:[#allocation2 + $0x68] sm:$0xff] %vm20743_vm14, %v6785_v20  ;;  %v3384_v14 = vor.u32 %v3383_v13, %v3380_v38  ;;  %v3367_v51 = vshrl.u32 %v13667_v47, 16  ;;  %v3373_v19 = vshll.u32 %v13668_v9, 16  ;;  %v14063_v59 = vld [vmem:[%s15234_s23 + $0xf8] sm:$0xf] }
 0x186   : > { %2304 = vrot.lane.b32.xlu1 %v13490_v61, %s15167_s26  ;;  %v3394_v57 = vor.u32 %v3393_v30, %v3389_v40  ;;  %v3360_v56 = vor.u32 %v3359_v15, %v16780_v46  ;;  %v13855_v41 = vrot.slane %v13801_v39, 9  ;;  %v4304_v26 = vrot.slane %v13802_v6, 5  ;;  %v14064_v13 = vld [vmem:[%s15234_s23 + $0xfc] sm:$0x1] }
 0x187   : > { %v3365_v48 = vrot.slane %v3363_v42, 5  ;;  %v3385_v18 = vrot.slane %v3384_v14, 4  ;;  %v3369_v5 = vrot.slane %v3367_v51, 4  ;;  %v3375_v43 = vrot.slane %v3373_v19, 5  ;;  %v6783_v27 = vpop.permute.xlu0 %6782  ;;  %v14197_v42 = vld [vmem:[%s15234_s23 + $0x100] sm:$0xe] }
 0x188   : > { %v3395_v35 = vrot.slane %v3394_v57, 4  ;;  %v3361_v28 = vrot.slane %v3360_v56, 4  ;;  %6879 = vst.msk [vmem:[#allocation2 + $0x60] sm:$0xff] %vm20743_vm14, %v6783_v27  ;;  %v4305_v46 = vsel %vm15227_vm2, %v13855_v41, %v4304_v26  ;;  %v4306_v37 = vrot.slane %v4304_v26, 4  ;;  %v14198_v41 = vld [vmem:[%s15234_s23 + $0x104] sm:$0xf] }
 0x189   : > { %2302 = vrot.lane.b32.xlu0 %v13489_v21, %s15167_s26  ;;  %v4307_v17 = vrot.slane %v16955_v29, 5  ;;  %v3390_v47 = vsel %vm15281_vm5, %v3385_v18, %v3389_v40  ;;  %v3370_v24 = vor.u32 %v3369_v5, %v3365_v48  ;;  %v4296_v32 = vrot.slane %v4294_v23, 4  ;;  %v15057_v40 = vld [vmem:[%s15234_s23 + $0xe0] sm:$0xff]  }
 0x18a   : > { %2702 = vrot.lane.b32.xlu1 %v15037_v11, %s15165_s24  ;;  %v3400_v61 = vsel %vm15281_vm5, %v3395_v35, %v16947_v45  ;;  %v3366_v63 = vsel %vm15281_vm5, %v3361_v28, %v3365_v48  ;;  %v4297_v54 = vrot.slane %v13799_v22, 5  ;;  %v4300_v6 = vrot.slane %v13800_v2, 5  ;;  %v15058_v11 = vld [vmem:[%s15234_s23 + $0xd4] sm:$0xff]   ;;  %536 = vst.msk [vmem:[#allocation2 + $0xa8] sm:$0xff] %vm20727_vm6, %v15057_v40 }
 0x18b   : > { %v13730_v9 = vcombine.low %v3390_v47, %v3400_v61  ;;  %v4308_v16 = vsel %vm15227_vm2, %v4306_v37, %v4307_v17  ;;  %v3371_v44 = vrot.slane %v3370_v24, 4  ;;  %v1605_v33 = vpop.permute.xlu1 %1604  ;;  %v5626_v23 = vshrl.u32 %v14065_v4, 16  ;;  %535 = vst.msk [vmem:[#allocation2 + $0xa0] sm:$0xff] %vm20727_vm6, %v15058_v11  ;;  %v15041_v37 = vld [vmem:[%s15234_s23 + $0x100] sm:$0xff]  }
 0x18c   : > { %v13886_v39 = vcombine.low %v4305_v46, %v4308_v16  ;;  %v4298_v7 = vsel %vm15227_vm2, %v4296_v32, %v4297_v54  ;;  %v4299_v38 = vrot.slane %v4297_v54, 4  ;;  %1698 = vst.msk [vmem:[#allocation2 + $0x78] sm:$0xff] %vm20721_vm7, %v1605_v33  ;;  %v5629_v53 = vshll.u32 %v14065_v4, 16  ;;  %v6916_v48 = vld [vmem:[#allocation2 + $0x68] sm:$0xff]  ;;  %v14195_v32 = vld [vmem:[%s15234_s23 + $0xf8] sm:$0xf] }
 0x18d   : > { %2700 = vrot.lane.b32.xlu0 %v15038_v25, %s15165_s24  ;;  %v5635_v3 = vshll.u32 %v14066_v36, 16  ;;  %v3376_v30 = vsel %vm15281_vm5, %v3371_v44, %v3375_v43  ;;  %v5628_v20 = vrot.slane %v5626_v23, 4  ;;  %v5639_v21 = vshrl.u32 %v14066_v36, 16  ;;  %v17013_v46 = vld [vmem:[%s15234_s23 + $0x108] sm:$0xf] }
 0x18e   : > { %3867 = vrot.lane.b32.xlu1 %v13730_v9, %s15169_s28  ;;  %v5645_v15 = vshll.u32 %v16983_v60, 16  ;;  %v13729_v14 = vcombine.low %v3366_v63, %v3376_v30  ;;  %v4301_v57 = vsel %vm15227_vm2, %v4299_v38, %v4300_v6  ;;  %v1603_v51 = vpop.permute.xlu0 %1602  ;;  %v5631_v19 = vrot.slane %v5629_v53, 5  ;;  %v14196_v16 = vld [vmem:[%s15234_s23 + $0xfc] sm:$0x1]  ;;  %v612_v23 = vld [vmem:[%s15234_s23 + $0xf4] sm:$0xf] }
 0x18f   : > { %v5637_v56 = vrot.slane %v5635_v3, 5  ;;  %v3401_v26 = vshrl.u32 %v16915_v1, 16  ;;  %v13885_v22 = vcombine.low %v4298_v7, %v4301_v57  ;;  %1697 = vst.msk [vmem:[#allocation2 + $0x70] sm:$0xff] %vm20721_vm7, %v1603_v51  ;;  %v2293_v18 = vpop.permute.xlu1 %2292  ;;  %v6915_v35 = vld [vmem:[#allocation2 + $0x60] sm:$0xff]  ;;  %v5641_v5 = vrot.slane %v5639_v21, 4 }
 0x190   : > { %v17004_v43 = vrot.slane %v5645_v15, 5  ;;  %2386 = vst.msk [vmem:[#allocation2 + $0x78] sm:$0xff] %vm2370_vm8, %v2293_v18  ;;  %14903 = vmatprep.mubr.msk.bf16.mxu0 %vm20747_vm1, %v6915_v35  ;;  %v5632_v27 = vor.u32 %v5631_v19, %v5628_v20  ;;  %v5607_v2 = vrot.slane %v5605_v49, 4  ;;  %v5611_v25 = vshll.u32 %v14063_v59, 16  ;;  %v613_v3 = vld [vmem:[%s15234_s23 + $0xf8] sm:$0xf] }
 0x191   : > { %3865 = vrot.lane.b32.xlu0 %v13729_v14, %s15169_s28  ;;  %v5615_v28 = vshrl.u32 %v14063_v59, 16  ;;  %v5642_v4 = vor.u32 %v5641_v5, %v5637_v56  ;;  %v5621_v47 = vshll.u32 %v14064_v13, 16  ;;  %14904 = vmatmul.mubr.msk.bf16.gmra.mrb[24].mxu0 %vm20747_vm1, %v6916_v48  ;;  %v14251_v61 = vrot.slane %v14197_v42, 9  ;;  %v15042_v59 = vld [vmem:[%s15234_s23 + $0xf4] sm:$0xff]   ;;  %v614_v15 = vld [vmem:[%s15234_s23 + $0xfc] sm:$0x1] }
 0x192   : > { %4552 = vrot.lane.b32.xlu1 %v13886_v39, %s15166_s25  ;;  %v6552_v24 = vrot.slane %v14198_v41, 5  ;;  %v2291_v36 = vpop.permute.xlu0 %2290  ;;  %v5633_v10 = vrot.slane %v5632_v27, 4  ;;  %v5608_v49 = vor.u32 %v5607_v2, %v16841_v12  ;;  %v5613_v9 = vrot.slane %v5611_v25, 5 }
 0x193   : > { %v5617_v63 = vrot.slane %v5615_v28, 4  ;;  %2385 = vst.msk [vmem:[#allocation2 + $0x70] sm:$0xff] %vm2370_vm8, %v2291_v36  ;;  %v5643_v54 = vrot.slane %v5642_v4, 4  ;;  %v5623_v44 = vrot.slane %v5621_v47, 5  ;;  %v2691_v39 = vpop.permute.xlu1 %2690  ;;  %v6555_v53 = vrot.slane %v17013_v46, 5 }
 0x194   : > { %v17024_v6 = vsel %vm15227_vm2, %v14251_v61, %v6552_v24  ;;  %v6554_v33 = vrot.slane %v6552_v24, 4  ;;  %v5638_v12 = vsel %vm15281_vm5, %v5633_v10, %v5637_v56  ;;  %v5609_v7 = vrot.slane %v5608_v49, 4  ;;  %2784 = vst.msk [vmem:[#allocation2 + $0x78] sm:$0xff] %vm20722_vm9, %v2691_v39  ;;  %v610_v56 = vld [vmem:[%s15234_s23 + $0xec] sm:$0x1] }
 0x195   : > { %4550 = vrot.lane.b32.xlu0 %v13885_v22, %s15166_s25  ;;  %v5618_v38 = vor.u32 %v5617_v63, %v5613_v9  ;;  %v17034_v13 = vpop.f32.mrb[0].mxu0  ;;  %v5648_v40 = vsel %vm15281_vm5, %v5643_v54, %v17004_v43  ;;  %v6544_v30 = vrot.slane %v6542_v62, 4  ;;  %v6545_v20 = vrot.slane %v14195_v32, 5  ;;  %v1781_v63 = vld [vmem:[%s15234_s23 + $0xf8] sm:$0xf] }
 0x196   : > { %4950 = vrot.lane.b32.xlu1 %v15041_v37, %s15170_s29  ;;  %v6548_v21 = vrot.slane %v14196_v16, 5  ;;  %v17043_v42 = vpop.f32.mrb[1].mxu0  ;;  %v14126_v11 = vcombine.low %v5638_v12, %v5648_v40  ;;  %v5614_v14 = vsel %vm15281_vm5, %v5609_v7, %v5613_v9  ;;  %v2689_v51 = vpop.permute.xlu0 %2688  ;;  %v6556_v19 = vsel %vm15227_vm2, %v6554_v33, %v6555_v53  ;;  %v17066_v37 = vld [vmem:[%s15234_s23 + $0xf4] sm:$0xf]  ;;  %v1782_v12 = vld [vmem:[%s15234_s23 + $0xfc] sm:$0x1] }
 0x197   : > { %v5619_v57 = vrot.slane %v5618_v38, 4  ;;  %v17053_v62 = vpop.f32.mrb[2].mxu0  ;;  %2783 = vst.msk [vmem:[#allocation2 + $0x70] sm:$0xff] %vm20722_vm9, %v2689_v51  ;;  %v14282_v48 = vcombine.low %v17024_v6, %v6556_v19  ;;  %v6546_v41 = vsel %vm15227_vm2, %v6544_v30, %v6545_v20  ;;  %v6547_v22 = vrot.slane %v6545_v20, 4  ;;  %v3856_v18 = vpop.permute.xlu1 %3855  ;;  %v1778_v40 = vld [vmem:[%s15234_s23 + $0xec] sm:$0x1] }
 0x198   : > { %v1170_v35 = vshll.u32 %v612_v23, 16  ;;  %v17059_v5 = vpop.f32.mrb[3].mxu0  ;;  %3949 = vst.msk [vmem:[#allocation2 + $0x78] sm:$0xff] %vm20748_vm10, %v3856_v18  ;;  %v1174_v2 = vshrl.u32 %v612_v23, 16  ;;  %v1180_v25 = vshll.u32 %v613_v3, 16  ;;  %v1184_v28 = vshrl.u32 %v613_v3, 16 }
 0x199   : > { %4948 = vrot.lane.b32.xlu0 %v15042_v59, %s15170_s29  ;;  %v5624_v27 = vsel %vm15281_vm5, %v5619_v57, %v5623_v44  ;;  %v6549_v47 = vsel %vm15227_vm2, %v6547_v22, %v6548_v21  ;;  %v1190_v24 = vshll.u32 %v614_v15, 16  ;;  %v1152_v54 = vrot.slane %v1150_v31, 4 }
 0x19a   : > { %6115 = vrot.lane.b32.xlu1 %v14126_v11, %s15171_s30  ;;  %v14125_v4 = vcombine.low %v5614_v14, %v5624_v27  ;;  %v17071_v61 = vrot.slane %v1170_v35, 5  ;;  %v14281_v32 = vcombine.low %v6546_v41, %v6549_v47  ;;  %v3854_v36 = vpop.permute.xlu0 %3853  ;;  %v1176_v10 = vrot.slane %v1174_v2, 4  ;;  %v1779_v14 = vld [vmem:[%s15234_s23 + $0xf0] sm:$0xe] }
 0x19b   : > { %v1182_v49 = vrot.slane %v1180_v25, 5  ;;  %v1186_v9 = vrot.slane %v1184_v28, 4  ;;  %3948 = vst.msk [vmem:[#allocation2 + $0x70] sm:$0xff] %vm20748_vm10, %v3854_v36  ;;  %v1192_v16 = vrot.slane %v1190_v24, 5  ;;  %v1156_v44 = vshll.u32 %v610_v56, 16  ;;  %v4541_v6 = vpop.permute.xlu1 %4540 }
 0x19c   : > { %v1161_v39 = vshrl.u32 %v611_v34, 16  ;;  %v1177_v33 = vor.u32 %v1176_v10, %v17071_v61  ;;  %v1164_v59 = vshll.u32 %v611_v34, 16  ;;  %4634 = vst.msk [vmem:[#allocation2 + $0x78] sm:$0xff] %vm20746_vm11, %v4541_v6  ;;  %v2066_v7 = vrot.slane %v17066_v37, 5  ;;  %v13674_v34 = vld [vmem:[%s15234_s23 + $0x104] sm:$0xf] }
 0x19d   : > { %6113 = vrot.lane.b32.xlu0 %v14125_v4, %s15171_s30  ;;  %v1187_v23 = vor.u32 %v1186_v9, %v1182_v49  ;;  %v1153_v52 = vor.u32 %v1152_v54, %v16893_v50  ;;  %v1158_v31 = vrot.slane %v1156_v44, 5  ;;  %v2069_v3 = vrot.slane %v1781_v63, 5  ;;  %v13676_v25 = vld [vmem:[%s15234_s23 + $0x10c] sm:$0x1]  ;;  %v13672_v28 = vld [vmem:[%s15234_s23 + $0xfc] sm:$0x1] }
 0x19e   : > { %6800 = vrot.lane.b32.xlu1 %v14282_v48, %s15172_s6  ;;  %v1163_v38 = vrot.slane %v1161_v39, 4  ;;  %v1178_v30 = vrot.slane %v1177_v33, 4  ;;  %v1166_v21 = vrot.slane %v1164_v59, 5  ;;  %v4539_v15 = vpop.permute.xlu0 %4538  ;;  %v2068_v11 = vrot.slane %v2066_v7, 4  ;;  %v13673_v36 = vld [vmem:[%s15234_s23 + $0x100] sm:$0xf] }
 0x19f   : > { %v1188_v20 = vrot.slane %v1187_v23, 4  ;;  %v1154_v57 = vrot.slane %v1153_v52, 4  ;;  %4633 = vst.msk [vmem:[#allocation2 + $0x70] sm:$0xff] %vm20746_vm11, %v4539_v15  ;;  %v2071_v51 = vrot.slane %v2069_v3, 4  ;;  %v2072_v19 = vrot.slane %v1782_v12, 5  ;;  %v4939_v56 = vpop.permute.xlu1 %4938 }
 0x1a0   : > { %v2061_v50 = vrot.slane %v2059_v55, 4  ;;  %v1183_v48 = vsel %vm15281_vm5, %v1178_v30, %v1182_v49  ;;  %v1167_v22 = vor.u32 %v1166_v21, %v1163_v38  ;;  %v2070_v18 = vsel %vm15227_vm2, %v2068_v11, %v2069_v3  ;;  %5032 = vst.msk [vmem:[#allocation2 + $0x78] sm:$0xff] %vm20745_vm12, %v4939_v56  ;;  %v17109_v10 = vld [vmem:[%s20717_s2] ss:$0 sm:$0xff]  ;;  %v15051_v23 = vld [vmem:[%s15234_s23 + $0xc8] ss:$8 sps:$4 sm:$0xff]  }
 0x1a1   : > { %6798 = vrot.lane.b32.xlu0 %v14281_v32, %s15172_s6  ;;  %v1193_v41 = vsel %vm15281_vm5, %v1188_v20, %v1192_v16  ;;  %v1159_v55 = vsel %vm15281_vm5, %v1154_v57, %v1158_v31  ;;  %v2073_v27 = vsel %vm15227_vm2, %v2071_v51, %v2072_v19  ;;  %v2062_v2 = vrot.slane %v1778_v40, 5  ;;  %534 = vst.msk [vmem:[#allocation2 + $0x98] sm:$0xff] %vm20727_vm6, %v15051_v23  ;;  %v13806_v51 = vld [vmem:[%s15234_s23 + $0x104] sm:$0xf] }
 0x1a2   : > { %v13432_v35 = vcombine.low %v1183_v48, %v1193_v41  ;;  %v1168_v37 = vrot.slane %v1167_v22, 4  ;;  %v13492_v4 = vcombine.low %v2070_v18, %v2073_v27  ;;  %v13460_v47 = vrot.slane %v1779_v14, 9  ;;  %v4937_v24 = vpop.permute.xlu0 %4936  ;;  %v13807_v48 = vld [vmem:[%s15234_s23 + $0x108] sm:$0xf] }
 0x1a3   : > { %v3421_v32 = vshll.u32 %v13674_v34, 16  ;;  %v2063_v49 = vsel %vm15227_vm2, %v2061_v50, %v2062_v2  ;;  %5031 = vst.msk [vmem:[#allocation2 + $0x70] sm:$0xff] %vm20745_vm12, %v4937_v24  ;;  %v6104_v9 = vpop.permute.xlu1 %6103  ;;  %v3425_v63 = vshrl.u32 %v13674_v34, 16  ;;  %v3431_v16 = vshll.u32 %v13675_v8, 16  ;;  %v13808_v2 = vld [vmem:[%s15234_s23 + $0x10c] sm:$0x1] }
 0x1a4   : > { %1620 = vrot.lane.b32.xlu1 %v13432_v35, %s15168_s27  ;;  %v3435_v54 = vshrl.u32 %v13675_v8, 16  ;;  %v1173_v44 = vsel %vm15281_vm5, %v1168_v37, %v17071_v61  ;;  %v2067_v39 = vsel %vm15227_vm2, %v13460_v47, %v2066_v7  ;;  %6197 = vst.msk [vmem:[#allocation2 + $0x78] sm:$0xff] %vm20744_vm13, %v6104_v9  ;;  %v3441_v33 = vshll.u32 %v13676_v25, 16  ;;  %v15043_v7 = vld [vmem:[%s15234_s23 + $0x104] sm:$0xff]   ;;  %v15044_v8 = vld [vmem:[%s15234_s23 + $0xf8] ss:$8 sps:$4 sm:$0xff]  }
 0x1a5   : > { %v17121_v6 = vrot.slane %v3421_v32, 5  ;;  %v13431_v59 = vcombine.low %v1159_v55, %v1173_v44  ;;  %v13491_v12 = vcombine.low %v2063_v49, %v2067_v39  ;;  %v3427_v52 = vrot.slane %v3425_v63, 4  ;;  %v13804_v47 = vld [vmem:[%s15234_s23 + $0xfc] sm:$0x1]  ;;  %v13805_v24 = vld [vmem:[%s15234_s23 + $0x100] sm:$0xe] }
 0x1a6   : > { %v3433_v31 = vrot.slane %v3431_v16, 5  ;;  %v6102_v38 = vpop.permute.xlu0 %6101  ;;  %v3437_v3 = vrot.slane %v3435_v54, 4  ;;  %v3443_v40 = vrot.slane %v3441_v33, 5  ;;  %v3403_v61 = vrot.slane %v3401_v26, 4 }
 0x1a7   : > { %v3407_v30 = vshll.u32 %v13672_v28, 16  ;;  %1618 = vrot.lane.b32.xlu0 %v13431_v59, %s15168_s27  ;;  %6196 = vst.msk [vmem:[#allocation2 + $0x70] sm:$0xff] %vm20744_vm13, %v6102_v38  ;;  %v3428_v20 = vor.u32 %v3427_v52, %v17121_v6  ;;  %v3412_v21 = vshrl.u32 %v13673_v36, 16  ;;  %v3415_v15 = vshll.u32 %v13673_v36, 16  ;;  %v6789_v11 = vpop.permute.xlu1 %6788 }
 0x1a8   : > { %2308 = vrot.lane.b32.xlu1 %v13492_v4, %s15167_s26  ;;  %v7120_v1 = vadd.f32 %v17034_v13, %v17109_v10  ;;  %v3438_v26 = vor.u32 %v3437_v3, %v3433_v31  ;;  %v3404_v14 = vor.u32 %v3403_v61, %v16947_v45  ;;  %6882 = vst.msk [vmem:[#allocation2 + $0x78] sm:$0xff] %vm20743_vm14, %v6789_v11  ;;  %v20772_v13 = vmov 0 }
 0x1a9   : > { %v3409_v57 = vrot.slane %v3407_v30, 5  ;;  %v3429_v19 = vrot.slane %v3428_v20, 4  ;;  %v3414_v50 = vrot.slane %v3412_v21, 4  ;;  %v3417_v56 = vrot.slane %v3415_v15, 5 }
 0x1aa   : > { %v7400_v34 = vmax.f32 %v7120_v1, 0.0  ;;  %v3439_v41 = vrot.slane %v3438_v26, 4  ;;  %v3405_v22 = vrot.slane %v3404_v14, 4  ;;  %v6787_v18 = vpop.permute.xlu0 %6786  ;;  %v20773_v13 = vsel %vm17138_vm4, 4294967295, %v20772_v13 }
 0x1ab   : > { %20774 = vst [vmem:[#allocation5_spill] sm:$0xff] %v20773_v13  ;;  %vm7870_vm15 = vcmask 125952   ;;  %v7112_v45 = vadd.f32 %v17109_v10, %v17043_v42  ;;  %2306 = vrot.lane.b32.xlu0 %v13491_v12, %s15167_s26  ;;  %v3434_v35 = vsel %vm15281_vm5, %v3429_v19, %v3433_v31  ;;  %v3418_v55 = vor.u32 %v3417_v56, %v3414_v50  ;;  %6881 = vst.msk [vmem:[#allocation2 + $0x70] sm:$0xff] %vm20743_vm14, %v6787_v18 }
 0x1ac   : > { %2706 = vrot.lane.b32.xlu1 %v15043_v7, %s15165_s24  ;;  %v14767_v27 = vpack.c.bf16 %v7400_v34, %v7400_v34  ;;  %v4314_v25 = vrot.slane %v13806_v51, 5  ;;  %v3444_v28 = vsel %vm15281_vm5, %v3439_v41, %v3443_v40  ;;  %v3410_v42 = vsel %vm15281_vm5, %v3405_v22, %v3409_v57  ;;  %v14070_v7 = vld [vmem:[%s15234_s23 + $0x114] sm:$0xf]  ;;  %v14072_v51 = vld [vmem:[%s15234_s23 + $0x11c] sm:$0x1] }
 0x1ad   : > { %v7398_v37 = vmax.f32 %v7112_v45, 0.0  ;;  %v4317_v4 = vrot.slane %v13807_v48, 5  ;;  %v1609_v32 = vpop.permute.xlu1 %1608  ;;  %v13732_v36 = vcombine.low %v3434_v35, %v3444_v28  ;;  %v3419_v49 = vrot.slane %v3418_v55, 4  ;;  %v15047_v57 = vld [vmem:[%s15234_s23 + $0x114] sm:$0xff]   ;;  %v14068_v41 = vld [vmem:[%s15234_s23 + $0x10c] sm:$0x1] }
 0x1ae   : > { %v7800_v9 = vsel %vm17138_vm4, %v14767_v27, 0  ;;  %v4316_v63 = vrot.slane %v4314_v25, 4  ;;  %1700 = vst.msk [vmem:[#allocation2 + $0x88] sm:$0xff] %vm20721_vm7, %v1609_v32  ;;  %v4320_v44 = vrot.slane %v13808_v2, 5  ;;  %v4309_v39 = vrot.slane %v4307_v17, 4 }
 0x1af   : > { %7873 = vst.msk [vmem:[#allocation3 + $0x8] sm:$0xf] %vm7870_vm15, %v7800_v9  ;;  %v14765_v16 = vpack.c.bf16 %v7398_v37, %v7398_v37  ;;  %v4319_v54 = vrot.slane %v4317_v4, 4  ;;  %2704 = vrot.lane.b32.xlu0 %v15044_v8, %s15165_s24  ;;  %v3424_v33 = vsel %vm15281_vm5, %v3419_v49, %v17121_v6  ;;  %v4310_v59 = vrot.slane %v13804_v47, 5  ;;  %v6918_v15 = vld [vmem:[#allocation2 + $0x78] sm:$0xff] }
 0x1b0   : > { %3871 = vrot.lane.b32.xlu1 %v13732_v36, %s15169_s28  ;;  %v4318_v23 = vsel %vm15227_vm2, %v4316_v63, %v4317_v4  ;;  %v13856_v12 = vrot.slane %v13805_v24, 9  ;;  %v13731_v52 = vcombine.low %v3410_v42, %v3424_v33  ;;  %v7123_v31 = vadd.f32 %v17053_v62, %v17109_v10  ;;  %v1607_v38 = vpop.permute.xlu0 %1606  ;;  %v14071_v62 = vld [vmem:[%s15234_s23 + $0x118] sm:$0xf]  ;;  %v15048_v45 = vld [vmem:[%s15234_s23 + $0x108] ss:$8 sps:$4 sm:$0xff]  }
 0x1b1   : > { %v7798_v29 = vsel %vm17138_vm4, %v14765_v16, 0  ;;  %v4321_v17 = vsel %vm15227_vm2, %v4319_v54, %v4320_v44  ;;  %v2297_v3 = vpop.permute.xlu1 %2296  ;;  %v4311_v40 = vsel %vm15227_vm2, %v4309_v39, %v4310_v59  ;;  %v7758_v30 = vlaneseq  ;;  %1699 = vst.msk [vmem:[#allocation2 + $0x80] sm:$0xff] %vm20721_vm7, %v1607_v38  ;;  %v17213_v28 = vld [vmem:[%s15234_s23 + $0x114] sm:$0xf]  ;;  %v14203_v47 = vld [vmem:[%s15234_s23 + $0x118] sm:$0xf] }
 0x1b2   : > { %7871 = vst.msk [vmem:[#allocation3] sm:$0xf] %vm7870_vm15, %v7798_v29  ;;  %v13888_v6 = vcombine.low %v4318_v23, %v4321_v17  ;;  %v4315_v61 = vsel %vm15227_vm2, %v13856_v12, %v4314_v25  ;;  %v7401_v20 = vmax.f32 %v7123_v31, 0.0  ;;  %v6917_v21 = vld [vmem:[#allocation2 + $0x70] sm:$0xff]  ;;  %v5649_v11 = vshrl.u32 %v16983_v60, 16 }
 0x1b3   : > { %2388 = vst.msk [vmem:[#allocation2 + $0x88] sm:$0xff] %vm2370_vm8, %v2297_v3  ;;  %3869 = vrot.lane.b32.xlu0 %v13731_v52, %s15169_s28  ;;  %v13887_v1 = vcombine.low %v4311_v40, %v4315_v61  ;;  %v17188_v26 = vshrl.u32 %v7758_v30, 7  ;;  %v7115_v14 = vadd.f32 %v17109_v10, %v17059_v5  ;;  %14907 = vmatprep.mubr.msk.bf16.mxu0 %vm20747_vm1, %v6917_v21  ;;  %v5669_v60 = vshll.u32 %v14070_v7, 16  ;;  %v14069_v5 = vld [vmem:[%s15234_s23 + $0x110] sm:$0xf] }
 0x1b4   : > { %4556 = vrot.lane.b32.xlu1 %v13888_v6, %s15166_s25  ;;  %v14768_v50 = vpack.c.bf16 %v7401_v20, %v7401_v20  ;;  %v2295_v56 = vpop.permute.xlu0 %2294  ;;  %v5673_v34 = vshrl.u32 %v14070_v7, 16  ;;  %v5679_v48 = vshll.u32 %v14071_v62, 16  ;;  %14908 = vmatmul.mubr.msk.bf16.gmra.mrb[28].mxu0 %vm20747_vm1, %v6918_v15  ;;  %v5683_v25 = vshrl.u32 %v14071_v62, 16  ;;  %v14204_v16 = vld [vmem:[%s15234_s23 + $0x11c] sm:$0x1]  ;;  %v15064_v15 = vld [vmem:[%s15234_s23 + $0xf4] sm:$0xff]  }
 0x1b5   : > { %v2695_v22 = vpop.permute.xlu1 %2694  ;;  %vm7762_vm0 = vcmp.ge.s32.totalorder %v17188_v26, 1  ;;  %v7399_v18 = vmax.f32 %v7115_v14, 0.0  ;;  %2387 = vst.msk [vmem:[#allocation2 + $0x80] sm:$0xff] %vm2370_vm8, %v2295_v56  ;;  %v17210_v55 = vrot.slane %v5669_v60, 5  ;;  %v5689_v49 = vshll.u32 %v14072_v51, 16 }
 0x1b6   : > { %v17194_v19 = vpop.f32.mrb[4].mxu0  ;;  %2786 = vst.msk [vmem:[#allocation2 + $0x88] sm:$0xff] %vm20722_vm9, %v2695_v22  ;;  %vm17206_vm3 = vmpackc.low %vm7762_vm0, %vm7762_vm0  ;;  %v5675_v27 = vrot.slane %v5673_v34, 4  ;;  %v5681_v2 = vrot.slane %v5679_v48, 5  ;;  %v5685_v36 = vrot.slane %v5683_v25, 4  ;;  %v5651_v9 = vrot.slane %v5649_v11, 4 }
 0x1b7   : > { %v17204_v8 = vpop.f32.mrb[5].mxu0  ;;  %4554 = vrot.lane.b32.xlu0 %v13887_v1, %s15166_s25  ;;  %v7801_v37 = vsel %vm17206_vm3, %v14768_v50, 0  ;;  %v14766_v4 = vpack.c.bf16 %v7399_v18, %v7399_v18  ;;  %v5655_v39 = vshll.u32 %v14068_v41, 16  ;;  %v5660_v33 = vshrl.u32 %v14069_v5, 16  ;;  %v14200_v59 = vld [vmem:[%s15234_s23 + $0x10c] sm:$0x1] }
 0x1b8   : > { %v17215_v42 = vpop.f32.mrb[6].mxu0  ;;  %4954 = vrot.lane.b32.xlu1 %v15047_v57, %s15170_s29  ;;  %7874 = vst.msk [vmem:[#allocation3 + $0xc] sm:$0xf] %vm7870_vm15, %v7801_v37  ;;  %v5676_v32 = vor.u32 %v5675_v27, %v17210_v55  ;;  %v2693_v63 = vpop.permute.xlu0 %2692  ;;  %v5663_v23 = vshll.u32 %v14069_v5, 16  ;;  %v5686_v52 = vor.u32 %v5685_v36, %v5681_v2  ;;  %v5691_v29 = vrot.slane %v5689_v49, 5 }
 0x1b9   : > { %v17222_v24 = vpop.f32.mrb[7].mxu0  ;;  %v3860_v54 = vpop.permute.xlu1 %3859  ;;  %v7799_v44 = vsel %vm17138_vm4, %v14766_v4, 0  ;;  %2785 = vst.msk [vmem:[#allocation2 + $0x80] sm:$0xff] %vm20722_vm9, %v2693_v63  ;;  %v5652_v17 = vor.u32 %v5651_v9, %v17004_v43  ;;  %v5657_v31 = vrot.slane %v5655_v39, 5  ;;  %v5662_v38 = vrot.slane %v5660_v33, 4 }
 0x1ba   : > { %3951 = vst.msk [vmem:[#allocation2 + $0x88] sm:$0xff] %vm20748_vm10, %v3860_v54  ;;  %v5677_v12 = vrot.slane %v5676_v32, 4  ;;  %v5665_v3 = vrot.slane %v5663_v23, 5  ;;  %v6562_v6 = vrot.slane %v17213_v28, 5  ;;  %v5687_v61 = vrot.slane %v5686_v52, 4 }
 0x1bb   : > { %7872 = vst.msk [vmem:[#allocation3 + $0x4] sm:$0xf] %vm7870_vm15, %v7799_v44  ;;  %4952 = vrot.lane.b32.xlu0 %v15048_v45, %s15170_s29  ;;  %v5653_v30 = vrot.slane %v5652_v17, 4  ;;  %v6565_v7 = vrot.slane %v14203_v47, 5  ;;  %v14201_v62 = vld [vmem:[%s15234_s23 + $0x110] sm:$0xe] }
 0x1bc   : > { %v5682_v40 = vsel %vm15281_vm5, %v5677_v12, %v5681_v2  ;;  %v3858_v20 = vpop.permute.xlu0 %3857  ;;  %v5666_v43 = vor.u32 %v5665_v3, %v5662_v38  ;;  %v6564_v11 = vrot.slane %v6562_v6, 4  ;;  %v6568_v1 = vrot.slane %v14204_v16, 5  ;;  %v617_v57 = vld [vmem:[%s15234_s23 + $0x108] sm:$0xf]  ;;  %v618_v34 = vld [vmem:[%s15234_s23 + $0x10c] sm:$0x1] }
 0x1bd   : > { %v4545_v21 = vpop.permute.xlu1 %4544  ;;  %v6557_v14 = vrot.slane %v6555_v53, 4  ;;  %3950 = vst.msk [vmem:[#allocation2 + $0x80] sm:$0xff] %vm20748_vm10, %v3858_v20  ;;  %v5692_v51 = vsel %vm15281_vm5, %v5687_v61, %v5691_v29  ;;  %v5658_v50 = vsel %vm15281_vm5, %v5653_v30, %v5657_v31  ;;  %v6567_v56 = vrot.slane %v6565_v7, 4  ;;  %v619_v45 = vld [vmem:[%s15234_s23 + $0x110] sm:$0xf] }
 0x1be   : > { %4636 = vst.msk [vmem:[#allocation2 + $0x88] sm:$0xff] %vm20746_vm11, %v4545_v21  ;;  %v6558_v60 = vrot.slane %v14200_v59, 5  ;;  %v14128_v46 = vcombine.low %v5682_v40, %v5692_v51  ;;  %v5667_v53 = vrot.slane %v5666_v43, 4  ;;  %v6566_v48 = vsel %vm15227_vm2, %v6564_v11, %v6565_v7  ;;  %v17259_v5 = vld [vmem:[%s15234_s23 + $0x114] sm:$0xf] }
 0x1bf   : > { %538 = vst.msk [vmem:[#allocation2 + $0xb8] sm:$0xff] %vm20727_vm6, %v15064_v15  ;;  %v14252_v41 = vrot.slane %v14201_v62, 9  ;;  %v6569_v22 = vsel %vm15227_vm2, %v6567_v56, %v6568_v1  ;;  %v1214_v27 = vshll.u32 %v617_v57, 16  ;;  %v1218_v2 = vshrl.u32 %v617_v57, 16  ;;  %v615_v36 = vld [vmem:[%s15234_s23 + $0x100] sm:$0xf] }
 0x1c0   : > { %v6559_v18 = vsel %vm15227_vm2, %v6557_v14, %v6558_v60  ;;  %v4543_v25 = vpop.permute.xlu0 %4542  ;;  %6119 = vrot.lane.b32.xlu1 %v14128_v46, %s15171_s30  ;;  %v5672_v37 = vsel %vm15281_vm5, %v5667_v53, %v17210_v55  ;;  %v14284_v4 = vcombine.low %v6566_v48, %v6569_v22  ;;  %v1224_v32 = vshll.u32 %v618_v34, 16  ;;  %v616_v49 = vld [vmem:[%s15234_s23 + $0x104] sm:$0xf]  ;;  %v17274_v55 = vld [vmem:[%s15234_s23 + $0x108] sm:$0xf] }
 0x1c1   : > { %v4943_v28 = vpop.permute.xlu1 %4942  ;;  %v6563_v47 = vsel %vm15227_vm2, %v14252_v41, %v6562_v6  ;;  %4635 = vst.msk [vmem:[#allocation2 + $0x80] sm:$0xff] %vm20746_vm11, %v4543_v25  ;;  %v14127_v9 = vcombine.low %v5658_v50, %v5672_v37  ;;  %v17271_v16 = vrot.slane %v1214_v27, 5  ;;  %v1220_v54 = vrot.slane %v1218_v2, 4  ;;  %v1786_v44 = vld [vmem:[%s15234_s23 + $0x10c] sm:$0x1] }
 0x1c2   : > { %5034 = vst.msk [vmem:[#allocation2 + $0x88] sm:$0xff] %vm20745_vm12, %v4943_v28  ;;  %v14283_v63 = vcombine.low %v6559_v18, %v6563_v47  ;;  %v1226_v39 = vrot.slane %v1224_v32, 5  ;;  %v1229_v33 = vshrl.u32 %v619_v45, 16  ;;  %v1232_v23 = vshll.u32 %v619_v45, 16  ;;  %v1787_v12 = vld [vmem:[%s15234_s23 + $0x110] sm:$0xe] }
 0x1c3   : > { %v1238_v59 = vshll.u32 %v17259_v5, 16  ;;  %6117 = vrot.lane.b32.xlu0 %v14127_v9, %s15171_s30  ;;  %v1221_v52 = vor.u32 %v1220_v54, %v17271_v16  ;;  %v1242_v29 = vshrl.u32 %v17259_v5, 16  ;;  %v1195_v17 = vshrl.u32 %v615_v36, 16  ;;  %v17283_v38 = vld [vmem:[%s15234_s23 + $0x114] sm:$0xf] }
 0x1c4   : > { %v1198_v31 = vshll.u32 %v615_v36, 16  ;;  %v1783_v3 = vld [vmem:[%s15234_s23 + $0x100] sm:$0xe]  ;;  %v4941_v6 = vpop.permute.xlu0 %4940  ;;  %6804 = vrot.lane.b32.xlu1 %v14284_v4, %s15172_s6  ;;  %v1231_v61 = vrot.slane %v1229_v33, 4  ;;  %v1234_v30 = vrot.slane %v1232_v23, 5  ;;  %v1204_v62 = vshll.u32 %v616_v49, 16 }
 0x1c5   : > { %v6108_v40 = vpop.permute.xlu1 %6107  ;;  %v17287_v7 = vrot.slane %v1238_v59, 5  ;;  %v1784_v20 = vld [vmem:[%s15234_s23 + $0x104] sm:$0xf]  ;;  %5033 = vst.msk [vmem:[#allocation2 + $0x80] sm:$0xff] %vm20745_vm12, %v4941_v6  ;;  %v13679_v21 = vld [vmem:[%s15234_s23 + $0x118] sm:$0xf] }
 0x1c6   : > { %6199 = vst.msk [vmem:[#allocation2 + $0x88] sm:$0xff] %vm20744_vm13, %v6108_v40  ;;  %v1222_v15 = vrot.slane %v1221_v52, 4  ;;  %v1197_v43 = vrot.slane %v1195_v17, 4  ;;  %v1200_v11 = vrot.slane %v1198_v31, 5  ;;  %v1208_v1 = vshrl.u32 %v616_v49, 16 }
 0x1c7   : > { %v1235_v14 = vor.u32 %v1234_v30, %v1231_v61  ;;  %v1206_v57 = vrot.slane %v1204_v62, 5  ;;  %v2079_v51 = vrot.slane %v17274_v55, 5  ;;  %v2082_v50 = vrot.slane %v1786_v44, 5  ;;  %6802 = vrot.lane.b32.xlu0 %v14283_v63, %s15172_s6  ;;  %v13680_v32 = vld [vmem:[%s15234_s23 + $0x11c] sm:$0x1] }
 0x1c8   : > { %v1227_v56 = vsel %vm15281_vm5, %v1222_v15, %v1226_v39  ;;  %v1201_v60 = vor.u32 %v1200_v11, %v1197_v43  ;;  %v1210_v34 = vrot.slane %v1208_v1, 4  ;;  %v13462_v46 = vrot.slane %v1787_v12, 9  ;;  %v6106_v53 = vpop.permute.xlu0 %6105  ;;  %v13681_v36 = vld [vmem:[%s15234_s23 + $0x120] sm:$0xf]  ;;  %v17314_v44 = vld [vmem:[%s15234_s23 + $0x124] sm:$0xf] }
 0x1c9   : > { %v6793_v48 = vpop.permute.xlu1 %6792  ;;  %v1236_v41 = vrot.slane %v1235_v14, 4  ;;  %v2081_v22 = vrot.slane %v2079_v51, 4  ;;  %v2086_v18 = vrot.slane %v17283_v38, 5  ;;  %v13461_v45 = vrot.slane %v1783_v3, 9  ;;  %6198 = vst.msk [vmem:[#allocation2 + $0x80] sm:$0xff] %vm20744_vm13, %v6106_v53 }
 0x1ca   : > { %6884 = vst.msk [vmem:[#allocation2 + $0x88] sm:$0xff] %vm20743_vm14, %v6793_v48  ;;  %v1202_v27 = vrot.slane %v1201_v60, 4  ;;  %v1211_v2 = vor.u32 %v1210_v34, %v1206_v57  ;;  %v2076_v25 = vrot.slane %v1784_v20, 5  ;;  %v3465_v28 = vshll.u32 %v13679_v21, 16  ;;  %v13677_v6 = vld [vmem:[%s15234_s23 + $0x110] sm:$0xf] }
 0x1cb   : > { %v1241_v37 = vsel %vm15281_vm5, %v1236_v41, %v17287_v7  ;;  %v2083_v4 = vsel %vm15227_vm2, %v2081_v22, %v2082_v50  ;;  %v2087_v47 = vsel %vm15227_vm2, %v13462_v46, %v2086_v18  ;;  %v3469_v49 = vshrl.u32 %v13679_v21, 16  ;;  %v13678_v20 = vld [vmem:[%s15234_s23 + $0x114] sm:$0xf]  ;;  %v15049_v15 = vld [vmem:[%s15234_s23 + $0x118] ss:$8 sps:$4 sm:$0xff]  }
 0x1cc   : > { %v13434_v9 = vcombine.low %v1227_v56, %v1241_v37  ;;  %v1207_v63 = vsel %vm15281_vm5, %v1202_v27, %v1206_v57  ;;  %v1212_v54 = vrot.slane %v1211_v2, 4  ;;  %v13494_v55 = vcombine.low %v2083_v4, %v2087_v47  ;;  %v6791_v39 = vpop.permute.xlu0 %6790  ;;  %v13812_v41 = vld [vmem:[%s15234_s23 + $0x11c] sm:$0x1]  ;;  %v15050_v27 = vld [vmem:[%s15234_s23 + $0x110] sm:$0xff]   ;;  %v13813_v4 = vld [vmem:[%s15234_s23 + $0x120] sm:$0xe] }
 0x1cd   : > { %v2077_v33 = vsel %vm15227_vm2, %v13461_v45, %v2076_v25  ;;  %v2078_v23 = vrot.slane %v2076_v25, 4  ;;  %v17318_v59 = vrot.slane %v3465_v28, 5  ;;  %v3471_v12 = vrot.slane %v3469_v49, 4  ;;  %6883 = vst.msk [vmem:[#allocation2 + $0x80] sm:$0xff] %vm20743_vm14, %v6791_v39  ;;  %v1789_v5 = vld [vmem:[%s15234_s23 + $0x118] sm:$0xf] }
 0x1ce   : > { %1624 = vrot.lane.b32.xlu1 %v13434_v9, %s15168_s27  ;;  %v1217_v52 = vsel %vm15281_vm5, %v1212_v54, %v17271_v16  ;;  %v3475_v17 = vshll.u32 %v13680_v32, 16  ;;  %v3480_v31 = vshrl.u32 %v13681_v36, 16  ;;  %v3483_v3 = vshll.u32 %v13681_v36, 16  ;;  %v17333_v16 = vld [vmem:[%s15234_s23 + $0x118] sm:$0xf] }
 0x1cf   : > { %v13433_v40 = vcombine.low %v1207_v63, %v1217_v52  ;;  %v2080_v61 = vsel %vm15227_vm2, %v2078_v23, %v2079_v51  ;;  %v3472_v30 = vor.u32 %v3471_v12, %v17318_v59  ;;  %v3489_v62 = vshll.u32 %v17314_v44, 16 }
 0x1d0   : > { %v13493_v21 = vcombine.low %v2077_v33, %v2080_v61  ;;  %v3477_v43 = vrot.slane %v3475_v17, 5  ;;  %v3482_v11 = vrot.slane %v3480_v31, 4  ;;  %v3485_v1 = vrot.slane %v3483_v3, 5  ;;  %v1613_v14 = vpop.permute.xlu1 %1612 }
 0x1d1   : > { %1622 = vrot.lane.b32.xlu0 %v13433_v40, %s15168_s27  ;;  %v3473_v57 = vrot.slane %v3472_v30, 4  ;;  %v17336_v50 = vrot.slane %v3489_v62, 5  ;;  %v3493_v51 = vshrl.u32 %v17314_v44, 16  ;;  %v3446_v56 = vshrl.u32 %v13677_v6, 16  ;;  %1702 = vst.msk [vmem:[#allocation2 + $0x98] sm:$0xff] %vm20721_vm7, %v1613_v14  ;;  %v6920_v47 = vld [vmem:[#allocation2 + $0x88] sm:$0xff] }
 0x1d2   : > { %2312 = vrot.lane.b32.xlu1 %v13494_v55, %s15167_s26  ;;  %v3486_v34 = vor.u32 %v3485_v1, %v3482_v11  ;;  %v3449_v46 = vshll.u32 %v13677_v6, 16  ;;  %v3455_v53 = vshll.u32 %v13678_v20, 16  ;;  %v3459_v48 = vshrl.u32 %v13678_v20, 16  ;;  %v1611_v22 = vpop.permute.xlu0 %1610  ;;  %v13809_v6 = vld [vmem:[%s15234_s23 + $0x110] sm:$0xe] }
 0x1d3   : > { %v3478_v2 = vsel %vm15281_vm5, %v3473_v57, %v3477_v43  ;;  %v3448_v25 = vrot.slane %v3446_v56, 4  ;;  %v7136_v28 = vadd.f32 %v17194_v19, %v17109_v10  ;;  %v7128_v37 = vadd.f32 %v17109_v10, %v17204_v8  ;;  %1701 = vst.msk [vmem:[#allocation2 + $0x90] sm:$0xff] %vm20721_vm7, %v1611_v22  ;;  %v17361_v8 = vld [vmem:[%s15234_s23 + $0x124] sm:$0xf]  ;;  %v14076_v57 = vld [vmem:[%s15234_s23 + $0x12c] sm:$0x1] }
 0x1d4   : > { %v3487_v36 = vrot.slane %v3486_v34, 4  ;;  %v3451_v49 = vrot.slane %v3449_v46, 5  ;;  %v3457_v9 = vrot.slane %v3455_v53, 5  ;;  %v3461_v63 = vrot.slane %v3459_v48, 4  ;;  %v2301_v54 = vpop.permute.xlu1 %2300  ;;  %v6919_v55 = vld [vmem:[#allocation2 + $0x80] sm:$0xff] }
 0x1d5   : > { %v17340_v60 = vpop.f32.mrb[8].mxu0  ;;  %2310 = vrot.lane.b32.xlu0 %v13493_v21, %s15167_s26  ;;  %v7404_v19 = vmax.f32 %v7136_v28, 0.0  ;;  %v7402_v33 = vmax.f32 %v7128_v37, 0.0  ;;  %v4327_v23 = vrot.slane %v17333_v16, 5  ;;  %2390 = vst.msk [vmem:[#allocation2 + $0x98] sm:$0xff] %vm2370_vm8, %v2301_v54  ;;  %14911 = vmatprep.mubr.msk.bf16.mxu0 %vm20747_vm1, %v6919_v55  ;;  %vm15175_vm0 = vmmov 1  }
 0x1d6   : > { %v17344_v45 = vpop.f32.mrb[9].mxu0  ;;  %2710 = vrot.lane.b32.xlu1 %v15049_v15, %s15165_s24  ;;  %v3492_v12 = vsel %vm15281_vm5, %v3487_v36, %v17336_v50  ;;  %v3452_v52 = vor.u32 %v3451_v49, %v3448_v25  ;;  %v3462_v17 = vor.u32 %v3461_v63, %v3457_v9  ;;  %vm17370_vm7 = vmpackc.low %vm15175_vm0, %vm15175_vm0  ;;  %v4330_v3 = vrot.slane %v13812_v41, 5  ;;  %v2299_v40 = vpop.permute.xlu0 %2298  ;;  %14912 = vmatmul.mubr.msk.bf16.gmra.mrb[32].mxu0 %vm20747_vm1, %v6920_v47  ;;  %v13810_v21 = vld [vmem:[%s15234_s23 + $0x114] sm:$0xf]  ;;  %v14075_v15 = vld [vmem:[%s15234_s23 + $0x128] sm:$0xf] }
 0x1d7   : > { %v17355_v32 = vpop.f32.mrb[10].mxu0  ;;  %v13734_v61 = vcombine.low %v3478_v2, %v3492_v12  ;;  %v14771_v30 = vpack.c.bf16 %v7404_v19, %v7404_v19  ;;  %v14769_v62 = vpack.c.bf16 %v7402_v33, %v7402_v33  ;;  %v4329_v20 = vrot.slane %v4327_v23, 4  ;;  %2389 = vst.msk [vmem:[#allocation2 + $0x90] sm:$0xff] %vm2370_vm8, %v2299_v40  ;;  %v17391_v41 = vld [vmem:[%s15234_s23 + $0x130] sm:$0xf] }
 0x1d8   : > { %v17357_v39 = vpop.f32.mrb[11].mxu0  ;;  %v3453_v43 = vrot.slane %v3452_v52, 4  ;;  %v3463_v11 = vrot.slane %v3462_v17, 4  ;;  %v13858_v1 = vrot.slane %v13813_v4, 9  ;;  %v4334_v14 = vrot.slane %v17361_v8, 5  ;;  %v2699_v56 = vpop.permute.xlu1 %2698 }
 0x1d9   : > { %2708 = vrot.lane.b32.xlu0 %v15050_v27, %s15165_s24  ;;  %v7804_v34 = vsel %vm17206_vm3, %v14771_v30, 0  ;;  %v7802_v46 = vsel %vm17370_vm7, %v14769_v62, 0  ;;  %v4331_v53 = vsel %vm15227_vm2, %v4329_v20, %v4330_v3  ;;  %v13857_v48 = vrot.slane %v13809_v6, 9  ;;  %2788 = vst.msk [vmem:[#allocation2 + $0x98] sm:$0xff] %vm20722_vm9, %v2699_v56  ;;  %v17411_v36 = vld [vmem:[%s15234_s23 + $0x134] sm:$0xf] }
 0x1da   : > { %3875 = vrot.lane.b32.xlu1 %v13734_v61, %s15169_s28  ;;  %v3458_v22 = vsel %vm15281_vm5, %v3453_v43, %v3457_v9  ;;  %v3468_v27 = vsel %vm15281_vm5, %v3463_v11, %v17318_v59  ;;  %7877 = vst.msk [vmem:[#allocation3 + $0x18] sm:$0xf] %vm7870_vm15, %v7804_v34  ;;  %7875 = vst.msk [vmem:[#allocation3 + $0x10] sm:$0xf] %vm7870_vm15, %v7802_v46  ;;  %v4335_v2 = vsel %vm15227_vm2, %v13858_v1, %v4334_v14  ;;  %v2697_v28 = vpop.permute.xlu0 %2696  ;;  %v15065_v49 = vld [vmem:[%s15234_s23 + $0xe8] ss:$8 sps:$4 sm:$0xff]  }
 0x1db   : > { %v4324_v25 = vrot.slane %v13810_v21, 5  ;;  %v13733_v37 = vcombine.low %v3458_v22, %v3468_v27  ;;  %v13890_v4 = vcombine.low %v4331_v53, %v4335_v2  ;;  %v7139_v47 = vadd.f32 %v17215_v42, %v17109_v10  ;;  %2787 = vst.msk [vmem:[#allocation2 + $0x90] sm:$0xff] %vm20722_vm9, %v2697_v28  ;;  %v15053_v55 = vld [vmem:[%s15234_s23 + $0x128] ss:$8 sps:$4 sm:$0xff]   ;;  %v14073_v52 = vld [vmem:[%s15234_s23 + $0x120] sm:$0xf] }
 0x1dc   : > { %v7131_v59 = vadd.f32 %v17109_v10, %v17222_v24  ;;  %v7761_v54 = vadd.s32 16, %v17188_v26  ;;  %v5713_v19 = vshll.u32 %v14075_v15, 16  ;;  %v3864_v33 = vpop.permute.xlu1 %3863  ;;  %v5717_v10 = vshrl.u32 %v14075_v15, 16  ;;  %537 = vst.msk [vmem:[#allocation2 + $0xb0] sm:$0xff] %vm20727_vm6, %v15065_v49  ;;  %v14074_v40 = vld [vmem:[%s15234_s23 + $0x124] sm:$0xf] }
 0x1dd   : > { %v4325_v9 = vsel %vm15227_vm2, %v13857_v48, %v4324_v25  ;;  %v4326_v63 = vrot.slane %v4324_v25, 4  ;;  %3873 = vrot.lane.b32.xlu0 %v13733_v37, %s15169_s28  ;;  %v7405_v42 = vmax.f32 %v7139_v47, 0.0  ;;  %v5723_v24 = vshll.u32 %v14076_v57, 16  ;;  %3953 = vst.msk [vmem:[#allocation2 + $0x98] sm:$0xff] %vm20748_vm10, %v3864_v33  ;;  %v17437_v15 = vld [vmem:[%s15234_s23 + $0x128] sm:$0xf] }
 0x1de   : > { %v7403_v12 = vmax.f32 %v7131_v59, 0.0  ;;  %4560 = vrot.lane.b32.xlu1 %v13890_v4, %s15166_s25  ;;  %vm7773_vm0 = vcmp.le.s32.totalorder %v7761_v54, 16  ;;  %v17428_v3 = vrot.slane %v5713_v19, 5  ;;  %v5728_v6 = vshrl.u32 %v17391_v41, 16  ;;  %v14208_v16 = vld [vmem:[%s15234_s23 + $0x12c] sm:$0x1] }
 0x1df   : > { %v4328_v17 = vsel %vm15227_vm2, %v4326_v63, %v4327_v23  ;;  %v14772_v30 = vpack.c.bf16 %v7405_v42, %v7405_v42  ;;  %vm17432_vm9 = vmpackc.low %vm7773_vm0, %vm7773_vm0  ;;  %v5719_v21 = vrot.slane %v5717_v10, 4  ;;  %v3862_v23 = vpop.permute.xlu0 %3861  ;;  %v17440_v43 = vrot.slane %v5723_v24, 5  ;;  %v15054_v48 = vld [vmem:[%s15234_s23 + $0x120] sm:$0xff]   ;;  %v14209_v27 = vld [vmem:[%s15234_s23 + $0x130] sm:$0xe] }
 0x1e0   : > { %v13889_v61 = vcombine.low %v4325_v9, %v4328_v17  ;;  %v14770_v62 = vpack.c.bf16 %v7403_v12, %v7403_v12  ;;  %v5730_v11 = vrot.slane %v5728_v6, 4  ;;  %v5731_v1 = vshll.u32 %v17391_v41, 16  ;;  %3952 = vst.msk [vmem:[#allocation2 + $0x90] sm:$0xff] %vm20748_vm10, %v3862_v23  ;;  %v4549_v56 = vpop.permute.xlu1 %4548  ;;  %v17457_v2 = vld [vmem:[%s15234_s23 + $0x134] sm:$0xf]  ;;  %v15071_v24 = vld [vmem:[%s15234_s23 + $0x100] sm:$0xff]  }
 0x1e1   : > { %v5737_v57 = vshll.u32 %v17411_v36, 16  ;;  %v17445_v34 = vld [vmem:[#allocation3 + $0x18] sm:$0xe]  ;;  %v7805_v46 = vsel %vm17370_vm7, %v14772_v30, 0  ;;  %v5720_v41 = vor.u32 %v5719_v21, %v17428_v3  ;;  %v5741_v22 = vshrl.u32 %v17411_v36, 16  ;;  %4638 = vst.msk [vmem:[#allocation2 + $0x98] sm:$0xff] %vm20746_vm11, %v4549_v56 }
 0x1e2   : > { %4558 = vrot.lane.b32.xlu0 %v13889_v61, %s15166_s25  ;;  %v7803_v53 = vsel %vm17432_vm9, %v14770_v62, 0  ;;  %v14568_v25 = vrot.slane %v17445_v34, 9  ;;  %7878 = vst.msk [vmem:[#allocation3 + $0x1c] sm:$0xf] %vm7870_vm15, %v7805_v46  ;;  %4958 = vrot.lane.b32.xlu1 %v15053_v55, %s15170_s29  ;;  %v5733_v28 = vrot.slane %v5731_v1, 5  ;;  %v5694_v4 = vshrl.u32 %v14073_v52, 16 }
 0x1e3   : > { %7876 = vst.msk [vmem:[#allocation3 + $0x14] sm:$0xf] %vm7870_vm15, %v7803_v53  ;;  %v17464_v37 = vrot.slane %v5737_v57, 5  ;;  %v14205_v47 = vld [vmem:[%s15234_s23 + $0x120] sm:$0xe]  ;;  %v5721_v49 = vrot.slane %v5720_v41, 4  ;;  %v4547_v19 = vpop.permute.xlu0 %4546 }
 0x1e4   : > { %v14206_v59 = vld [vmem:[%s15234_s23 + $0x124] sm:$0xf]  ;;  %v5697_v9 = vshll.u32 %v14073_v52, 16  ;;  %v5703_v63 = vshll.u32 %v14074_v40, 16  ;;  %v5707_v54 = vshrl.u32 %v14074_v40, 16  ;;  %v5734_v33 = vor.u32 %v5733_v28, %v5730_v11  ;;  %4637 = vst.msk [vmem:[#allocation2 + $0x90] sm:$0xff] %vm20746_vm11, %v4547_v19  ;;  %v4947_v55 = vpop.permute.xlu1 %4946 }
 0x1e5   : > { %v5696_v42 = vrot.slane %v5694_v4, 4  ;;  %v6575_v12 = vrot.slane %v17437_v15, 5  ;;  %v6578_v10 = vrot.slane %v14208_v16, 5  ;;  %v5726_v17 = vsel %vm15281_vm5, %v5721_v49, %v17440_v43  ;;  %v623_v40 = vld [vmem:[%s15234_s23 + $0x120] sm:$0xf]  ;;  %5036 = vst.msk [vmem:[#allocation2 + $0x98] sm:$0xff] %vm20745_vm12, %v4947_v55 }
 0x1e6   : > { %4956 = vrot.lane.b32.xlu0 %v15054_v48, %s15170_s29  ;;  %v5699_v52 = vrot.slane %v5697_v9, 5  ;;  %v5705_v6 = vrot.slane %v5703_v63, 5  ;;  %v5709_v61 = vrot.slane %v5707_v54, 4  ;;  %v5735_v30 = vrot.slane %v5734_v33, 4  ;;  %539 = vst.msk [vmem:[#allocation2 + $0xc0] sm:$0xff] %vm20727_vm6, %v15071_v24 }
 0x1e7   : > { %v6577_v62 = vrot.slane %v6575_v12, 4  ;;  %v14254_v21 = vrot.slane %v14209_v27, 9  ;;  %v6582_v15 = vrot.slane %v17457_v2, 5  ;;  %v14253_v11 = vrot.slane %v14205_v47, 9  ;;  %v4945_v43 = vpop.permute.xlu0 %4944  ;;  %v624_v53 = vld [vmem:[%s15234_s23 + $0x124] sm:$0xf] }
 0x1e8   : > { %v5700_v16 = vor.u32 %v5699_v52, %v5696_v42  ;;  %v5710_v23 = vor.u32 %v5709_v61, %v5705_v6  ;;  %v6572_v1 = vrot.slane %v14206_v59, 5  ;;  %v5740_v57 = vsel %vm15281_vm5, %v5735_v30, %v17464_v37  ;;  %5035 = vst.msk [vmem:[#allocation2 + $0x90] sm:$0xff] %vm20745_vm12, %v4945_v43  ;;  %v6112_v41 = vpop.permute.xlu1 %6111  ;;  %v17493_v49 = vld [vmem:[%s15234_s23 + $0x128] sm:$0xf]  ;;  %v621_v24 = vld [vmem:[%s15234_s23 + $0x118] sm:$0xf] }
 0x1e9   : > { %v6579_v56 = vsel %vm15227_vm2, %v6577_v62, %v6578_v10  ;;  %v6583_v46 = vsel %vm15227_vm2, %v14254_v21, %v6582_v15  ;;  %v1263_v48 = vshrl.u32 %v623_v40, 16  ;;  %v17490_v27 = vld [vmem:[#allocation3 + $0x1c] sm:$0xf]  ;;  %v14130_v28 = vcombine.low %v5726_v17, %v5740_v57  ;;  %6201 = vst.msk [vmem:[#allocation2 + $0x98] sm:$0xff] %vm20744_vm13, %v6112_v41 }
 0x1ea   : > { %v5701_v4 = vrot.slane %v5700_v16, 4  ;;  %v5711_v47 = vrot.slane %v5710_v23, 4  ;;  %v14286_v59 = vcombine.low %v6579_v56, %v6583_v46  ;;  %v10819_v9 = vrot.slane %v17490_v27, 5  ;;  %v1792_v56 = vld [vmem:[%s15234_s23 + $0x124] sm:$0xf] }
 0x1eb   : > { %v6573_v63 = vsel %vm15227_vm2, %v14253_v11, %v6572_v1  ;;  %v6574_v54 = vrot.slane %v6572_v1, 4  ;;  %v1265_v19 = vrot.slane %v1263_v48, 4  ;;  %6123 = vrot.lane.b32.xlu1 %v14130_v28, %s15171_s30  ;;  %v1266_v10 = vshll.u32 %v623_v40, 16  ;;  %v6110_v17 = vpop.permute.xlu0 %6109  ;;  %v1791_v11 = vld [vmem:[%s15234_s23 + $0x120] sm:$0xe] }
 0x1ec   : > { %v5706_v33 = vsel %vm15281_vm5, %v5701_v4, %v5705_v6  ;;  %v5716_v42 = vsel %vm15281_vm5, %v5711_v47, %v17428_v3  ;;  %v1272_v55 = vshll.u32 %v624_v53, 16  ;;  %v17508_v52 = vrot.slane %v10819_v9, 4  ;;  %v622_v6 = vld [vmem:[%s15234_s23 + $0x11c] sm:$0x1]  ;;  %6200 = vst.msk [vmem:[#allocation2 + $0x90] sm:$0xff] %vm20744_vm13, %v6110_v17  ;;  %v6797_v21 = vpop.permute.xlu1 %6796 }
 0x1ed   : > { %v14129_v61 = vcombine.low %v5706_v33, %v5716_v42  ;;  %v6576_v30 = vsel %vm15227_vm2, %v6574_v54, %v6575_v12  ;;  %v1276_v62 = vshrl.u32 %v624_v53, 16  ;;  %v1268_v16 = vrot.slane %v1266_v10, 5  ;;  %6886 = vst.msk [vmem:[#allocation2 + $0x98] sm:$0xff] %vm20743_vm14, %v6797_v21  ;;  %v17526_v28 = vld [vmem:[%s15234_s23 + $0x128] sm:$0xf] }
 0x1ee   : > { %v14285_v3 = vcombine.low %v6573_v63, %v6576_v30  ;;  %v1274_v40 = vrot.slane %v1272_v55, 5  ;;  %v1282_v23 = vshll.u32 %v17493_v49, 16  ;;  %v1244_v43 = vrot.slane %v1242_v29, 4  ;;  %20781 = vst [vmem:[#allocation6_spill] sm:$0xff] %v17526_v28  ;;  %v1790_v10 = vld [vmem:[%s15234_s23 + $0x11c] sm:$0x1] }
 0x1ef   : > { %6121 = vrot.lane.b32.xlu0 %v14129_v61, %s15171_s30  ;;  %v1278_v1 = vrot.slane %v1276_v62, 4  ;;  %v1248_v57 = vshll.u32 %v621_v24, 16  ;;  %6808 = vrot.lane.b32.xlu1 %v14286_v59, %s15172_s6  ;;  %v1269_v46 = vor.u32 %v1268_v16, %v1265_v19  ;;  %v1252_v48 = vshrl.u32 %v621_v24, 16  ;;  %v6795_v4 = vpop.permute.xlu0 %6794  ;;  %v13685_v21 = vld [vmem:[%s15234_s23 + $0x130] sm:$0xf] }
 0x1f0   : > { %v17523_v53 = vrot.slane %v1282_v23, 5  ;;  %v1258_v41 = vshll.u32 %v622_v6, 16  ;;  %v1245_v63 = vor.u32 %v1244_v43, %v17287_v7  ;;  %v13463_v33 = vrot.slane %v1791_v11, 9  ;;  %6885 = vst.msk [vmem:[#allocation2 + $0x90] sm:$0xff] %vm20743_vm14, %v6795_v4 }
 0x1f1   : > { %v1279_v47 = vor.u32 %v1278_v1, %v1274_v40  ;;  %v1250_v54 = vrot.slane %v1248_v57, 5  ;;  %v1270_v29 = vrot.slane %v1269_v46, 4  ;;  %v1254_v59 = vrot.slane %v1252_v48, 4  ;;  %v17561_v48 = vld [vmem:[%s15234_s23 + $0x138] sm:$0xf] }
 0x1f2   : > { %v1260_v19 = vrot.slane %v1258_v41, 5  ;;  %v2096_v42 = vrot.slane %v1792_v56, 5  ;;  %v1246_v24 = vrot.slane %v1245_v63, 4  ;;  %v20725_v17 = vrot.slane %v17526_v28, 5  ;;  %v17556_v56 = vld [vmem:[%s20717_s2] ss:$0 sm:$0xff] }
 0x1f3   : > { %6806 = vrot.lane.b32.xlu0 %v14285_v3, %s15172_s6  ;;  %v1280_v55 = vrot.slane %v1279_v47, 4  ;;  %v2088_v7 = vrot.slane %v2086_v18, 4  ;;  %v1275_v61 = vsel %vm15281_vm5, %v1270_v29, %v1274_v40  ;;  %v1255_v30 = vor.u32 %v1254_v59, %v1250_v54  ;;  %v15070_v3 = vld [vmem:[%s15234_s23 + $0x108] ss:$8 sps:$4 sm:$0xff]   ;;  %v13686_v40 = vld [vmem:[%s15234_s23 + $0x134] sm:$0xf] }
 0x1f4   : > { %v2097_v62 = vsel %vm15227_vm2, %v13463_v33, %v2096_v42  ;;  %v2098_v6 = vrot.slane %v2096_v42, 4  ;;  %v1617_v16 = vpop.permute.xlu1 %1616  ;;  %v1251_v38 = vsel %vm15281_vm5, %v1246_v24, %v1250_v54  ;;  %v2089_v18 = vrot.slane %v1789_v5, 5  ;;  %20783 = vst [vmem:[#allocation7_spill] sm:$0xff] %v17561_v48  ;;  %540 = vst.msk [vmem:[#allocation2 + $0xc8] sm:$0xff] %vm20727_vm6, %v15070_v3  ;;  %v13683_v54 = vld [vmem:[%s15234_s23 + $0x128] sm:$0xf] }
 0x1f5   : > { %v1285_v23 = vsel %vm15281_vm5, %v1280_v55, %v17523_v53  ;;  %v2092_v11 = vrot.slane %v1790_v10, 5  ;;  %vm20782_vm0 = vcmask 48152   ;;  %v1256_v43 = vrot.slane %v1255_v30, 4  ;;  %v6922_v5 = vld [vmem:[#allocation2 + $0x98] sm:$0xff]  ;;  %v13684_v55 = vld [vmem:[%s15234_s23 + $0x12c] sm:$0x1] }
 0x1f6   : > { %1704 = vst.msk [vmem:[#allocation2 + $0xa8] sm:$0xff] %vm20782_vm0, %v1617_v16  ;;  %v13436_v1 = vcombine.low %v1275_v61, %v1285_v23  ;;  %v2100_v57 = vsel %vm15227_vm2, %v2098_v6, %v20725_v17  ;;  %v7152_v46 = vadd.f32 %v17556_v56, %v17340_v60  ;;  %v2090_v4 = vsel %vm15227_vm2, %v2088_v7, %v2089_v18 }
 0x1f7   : > { %v13496_v41 = vcombine.low %v2097_v62, %v2100_v57  ;;  %v2091_v47 = vrot.slane %v2089_v18, 4  ;;  %v3514_v63 = vshrl.u32 %v13685_v21, 16  ;;  %v1615_v33 = vpop.permute.xlu0 %1614  ;;  %v1261_v60 = vsel %vm15281_vm5, %v1256_v43, %v1260_v19  ;;  %v6921_v7 = vld [vmem:[#allocation2 + $0x90] sm:$0xff] }
 0x1f8   : > { %1628 = vrot.lane.b32.xlu1 %v13436_v1, %s15168_s27  ;;  %v7408_v59 = vmax.f32 %v7152_v46, 0.0  ;;  %v3517_v42 = vshll.u32 %v13685_v21, 16  ;;  %v3523_v10 = vshll.u32 %v13686_v40, 16  ;;  %1703 = vst.msk [vmem:[#allocation2 + $0xa0] sm:$0xff] %vm20782_vm0, %v1615_v33  ;;  %v2305_v24 = vpop.permute.xlu1 %2304  ;;  %v13435_v30 = vcombine.low %v1251_v38, %v1261_v60  ;;  %14915 = vmatprep.mubr.msk.bf16.mxu0 %vm20747_vm1, %v6921_v7  ;;  %v15074_v1 = vld [vmem:[%s15234_s23 + $0x120] sm:$0xff]  }
 0x1f9   : > { %v17567_v29 = vpop.f32.mrb[12].mxu0  ;;  %v2093_v62 = vsel %vm15227_vm2, %v2091_v47, %v2092_v11  ;;  %v3516_v6 = vrot.slane %v3514_v63, 4  ;;  %v3527_v16 = vshrl.u32 %v13686_v40, 16  ;;  %2392 = vst.msk [vmem:[#allocation2 + $0xa8] sm:$0xff] %vm2370_vm8, %v2305_v24  ;;  %14916 = vmatmul.mubr.msk.bf16.gmra.mrb[36].mxu0 %vm20747_vm1, %v6922_v5  ;;  %v15075_v11 = vld [vmem:[%s15234_s23 + $0x114] sm:$0xff]   ;;  %v3533_v43 = vshll.u32 %v17561_v48, 16 }
 0x1fa   : > { %v17574_v61 = vpop.f32.mrb[13].mxu0  ;;  %v13495_v21 = vcombine.low %v2090_v4, %v2093_v62  ;;  %v14775_v3 = vpack.c.bf16 %v7408_v59, %v7408_v59  ;;  %v3519_v23 = vrot.slane %v3517_v42, 5  ;;  %v3525_v18 = vrot.slane %v3523_v10, 5  ;;  %1626 = vrot.lane.b32.xlu0 %v13435_v30, %s15168_s27  ;;  %v15055_v47 = vld [vmem:[%s15234_s23 + $0x130] sm:$0xff]   ;;  %542 = vst.msk [vmem:[#allocation2 + $0xd8] sm:$0xff] %vm20727_vm6, %v15074_v1  ;;  %541 = vst.msk [vmem:[#allocation2 + $0xd0] sm:$0xff] %vm20727_vm6, %v15075_v11 }
 0x1fb   : > { %v17580_v19 = vpop.f32.mrb[14].mxu0  ;;  %v3529_v40 = vrot.slane %v3527_v16, 4  ;;  %v3495_v46 = vrot.slane %v3493_v51, 4  ;;  %v2303_v4 = vpop.permute.xlu0 %2302  ;;  %v3499_v5 = vshll.u32 %v13683_v54, 16  ;;  %v3503_v60 = vshrl.u32 %v13683_v54, 16  ;;  %v15056_v16 = vld [vmem:[%s15234_s23 + $0x124] sm:$0xff]  }
 0x1fc   : > { %v17583_v38 = vpop.f32.mrb[15].mxu0  ;;  %2316 = vrot.lane.b32.xlu1 %v13496_v41, %s15167_s26  ;;  %v7808_v63 = vsel %vm17370_vm7, %v14775_v3, 0  ;;  %v3520_v33 = vor.u32 %v3519_v23, %v3516_v6  ;;  %v17597_v59 = vld [vmem:[%s15234_s23 + $0x130] sm:$0xe]  ;;  %2391 = vst.msk [vmem:[#allocation2 + $0xa0] sm:$0xff] %vm2370_vm8, %v2303_v4  ;;  %v2703_v42 = vpop.permute.xlu1 %2702  ;;  %v17603_v51 = vrot.slane %v3533_v43, 5  ;;  %v7144_v30 = vadd.f32 %v17556_v56, %v17344_v45 }
 0x1fd   : > { %7881 = vst.msk [vmem:[#allocation3 + $0x28] sm:$0xf] %vm7870_vm15, %v7808_v63  ;;  %v3530_v44 = vor.u32 %v3529_v40, %v3525_v18  ;;  %v3496_v41 = vor.u32 %v3495_v46, %v17336_v50  ;;  %v3509_v54 = vshll.u32 %v13684_v55, 16  ;;  %vm20785_vm0 = vcmask 97352   ;;  %v13818_v62 = vld [vmem:[%s15234_s23 + $0x134] sm:$0xf] }
 0x1fe   : > { %20784 = vst [vmem:[#allocation8_spill] sm:$0xff] %v17603_v51  ;;  %2790 = vst.msk [vmem:[#allocation2 + $0xa8] sm:$0xff] %vm20785_vm0, %v2703_v42  ;;  %v3521_v10 = vrot.slane %v3520_v33, 4  ;;  %v3501_v24 = vrot.slane %v3499_v5, 5  ;;  %v3505_v7 = vrot.slane %v3503_v60, 4  ;;  %2314 = vrot.lane.b32.xlu0 %v13495_v21, %s15167_s26  ;;  %v7155_v50 = vadd.f32 %v17556_v56, %v17355_v32 }
 0x1ff   : > { %v17611_v6 = vld [vmem:[%s15234_s23 + $0x138] sm:$0xf]  ;;  %v3531_v3 = vrot.slane %v3530_v44, 4  ;;  %v3497_v23 = vrot.slane %v3496_v41, 4  ;;  %v3511_v1 = vrot.slane %v3509_v54, 5  ;;  %v2701_v11 = vpop.permute.xlu0 %2700  ;;  %v7406_v43 = vmax.f32 %v7144_v30, 0.0 }
 0x200   : > { %20786 = vst [vmem:[#allocation9_spill] sm:$0xff] %v17611_v6  ;;  %v13815_v55 = vld [vmem:[%s15234_s23 + $0x128] sm:$0xf]  ;;  %2714 = vrot.lane.b32.xlu1 %v15055_v47, %s15165_s24  ;;  %v3526_v45 = vsel %vm15281_vm5, %v3521_v10, %v3525_v18  ;;  %v3506_v40 = vor.u32 %v3505_v7, %v3501_v24  ;;  %v7147_v21 = vadd.f32 %v17556_v56, %v17357_v39  ;;  %2789 = vst.msk [vmem:[#allocation2 + $0xa0] sm:$0xff] %vm20785_vm0, %v2701_v11  ;;  %v3868_v46 = vpop.permute.xlu1 %3867  ;;  %v13816_v60 = vld [vmem:[%s15234_s23 + $0x12c] sm:$0x1] }
 0x201   : > { %v3536_v32 = vsel %vm15281_vm5, %v3531_v3, %v17603_v51  ;;  %v3502_v4 = vsel %vm15281_vm5, %v3497_v23, %v3501_v24  ;;  %v7409_v47 = vmax.f32 %v7155_v50, 0.0  ;;  %v13859_v63 = vrot.slane %v17597_v59, 9  ;;  %3955 = vst.msk [vmem:[#allocation2 + $0xa8] sm:$0xff] %vm20748_vm10, %v3868_v46  ;;  %v14081_v42 = vld [vmem:[%s15234_s23 + $0x140] sm:$0xf] }
 0x202   : > { %v13736_v18 = vcombine.low %v3526_v45, %v3536_v32  ;;  %v3507_v33 = vrot.slane %v3506_v40, 4  ;;  %v14773_v5 = vpack.c.bf16 %v7406_v43, %v7406_v43  ;;  %v7407_v39 = vmax.f32 %v7147_v21, 0.0  ;;  %2712 = vrot.lane.b32.xlu0 %v15056_v16, %s15165_s24  ;;  %v17653_v11 = vld [vmem:[%s15234_s23 + $0x148] sm:$0xf] }
 0x203   : > { %v14776_v44 = vpack.c.bf16 %v7409_v47, %v7409_v47  ;;  %v4344_v41 = vrot.slane %v13818_v62, 5  ;;  %v20723_v54 = vrot.slane %v17611_v6, 5  ;;  %v4336_v10 = vrot.slane %v4334_v14, 4  ;;  %v3866_v59 = vpop.permute.xlu0 %3865  ;;  %v14082_v62 = vld [vmem:[%s15234_s23 + $0x144] sm:$0xf]  ;;  %20787 = vst [vmem:[#allocation10_spill] sm:$0xff] %v17653_v11 }
 0x204   : > { %v17637_v24 = vld [vmem:[#allocation3 + $0x28] sm:$0xf]  ;;  %3879 = vrot.lane.b32.xlu1 %v13736_v18, %s15169_s28  ;;  %v3512_v7 = vsel %vm15281_vm5, %v3507_v33, %v3511_v1  ;;  %v7806_v30 = vsel %vm17432_vm9, %v14773_v5, 0  ;;  %v14774_v16 = vpack.c.bf16 %v7407_v39, %v7407_v39  ;;  %v4337_v3 = vrot.slane %v13815_v55, 5  ;;  %3954 = vst.msk [vmem:[#allocation2 + $0xa0] sm:$0xff] %vm20748_vm10, %v3866_v59  ;;  %v4553_v23 = vpop.permute.xlu1 %4552 }
 0x205   : > { %v20726_v8 = vrot.slane %v17637_v24, 5  ;;  %v13735_v14 = vcombine.low %v3502_v4, %v3512_v7  ;;  %7879 = vst.msk [vmem:[#allocation3 + $0x20] sm:$0xf] %vm7870_vm15, %v7806_v30  ;;  %v7809_v50 = vsel %vm17432_vm9, %v14776_v44, 0  ;;  %v4345_v1 = vsel %vm15227_vm2, %v13859_v63, %v4344_v41  ;;  %v14079_v39 = vld [vmem:[%s15234_s23 + $0x138] sm:$0xf] }
 0x206   : > { %4640 = vst.msk [vmem:[#allocation2 + $0xa8] sm:$0xff] %vm20746_vm11, %v4553_v23  ;;  %v7807_v55 = vsel %vm17206_vm3, %v14774_v16, 0  ;;  %v4346_v45 = vrot.slane %v4344_v41, 4  ;;  %v4338_v40 = vsel %vm15227_vm2, %v4336_v10, %v4337_v3  ;;  %v4339_v43 = vrot.slane %v4337_v3, 4  ;;  %v14080_v59 = vld [vmem:[%s15234_s23 + $0x13c] sm:$0x1] }
 0x207   : > { %7882 = vst.msk [vmem:[#allocation3 + $0x2c] sm:$0xf] %vm7870_vm15, %v7809_v50  ;;  %v17663_v21 = vrot.slane %v20726_v8, 4  ;;  %3877 = vrot.lane.b32.xlu0 %v13735_v14, %s15169_s28  ;;  %7880 = vst.msk [vmem:[#allocation3 + $0x24] sm:$0xf] %vm7870_vm15, %v7807_v55  ;;  %v4340_v46 = vrot.slane %v13816_v60, 5  ;;  %v4551_v47 = vpop.permute.xlu0 %4550 }
 0x208   : > { %v5762_v32 = vshrl.u32 %v14081_v42, 16  ;;  %v5765_v4 = vshll.u32 %v14081_v42, 16  ;;  %v4348_v63 = vsel %vm15227_vm2, %v4346_v45, %v20723_v54  ;;  %v5771_v18 = vshll.u32 %v14082_v62, 16  ;;  %4639 = vst.msk [vmem:[#allocation2 + $0xa0] sm:$0xff] %vm20746_vm11, %v4551_v47  ;;  %v4951_v44 = vpop.permute.xlu1 %4950  ;;  %v14213_v7 = vld [vmem:[%s15234_s23 + $0x140] sm:$0xe] }
 0x209   : > { %v5775_v33 = vshrl.u32 %v14082_v62, 16  ;;  %v5781_v5 = vshll.u32 %v17653_v11, 16  ;;  %v13892_v60 = vcombine.low %v4345_v1, %v4348_v63  ;;  %v4341_v42 = vsel %vm15227_vm2, %v4339_v43, %v4340_v46  ;;  %5038 = vst.msk [vmem:[#allocation2 + $0xa8] sm:$0xff] %vm20745_vm12, %v4951_v44  ;;  %v14214_v23 = vld [vmem:[%s15234_s23 + $0x144] sm:$0xf] }
 0x20a   : > { %v5764_v41 = vrot.slane %v5762_v32, 4  ;;  %v5767_v10 = vrot.slane %v5765_v4, 5  ;;  %v13891_v30 = vcombine.low %v4338_v40, %v4341_v42  ;;  %v5773_v16 = vrot.slane %v5771_v18, 5  ;;  %v15059_v14 = vld [vmem:[%s15234_s23 + $0x140] sm:$0xff]   ;;  %v17688_v43 = vld [vmem:[%s15234_s23 + $0x148] sm:$0xf] }
 0x20b   : > { %v5777_v3 = vrot.slane %v5775_v33, 4  ;;  %v17679_v62 = vrot.slane %v5781_v5, 5  ;;  %4564 = vrot.lane.b32.xlu1 %v13892_v60, %s15166_s25  ;;  %v5743_v55 = vrot.slane %v5741_v22, 4  ;;  %v5747_v45 = vshll.u32 %v14079_v39, 16  ;;  %20789 = vst [vmem:[#allocation12_spill] sm:$0xff] %v17688_v43  ;;  %v4949_v46 = vpop.permute.xlu0 %4948  ;;  %v15060_v32 = vld [vmem:[%s15234_s23 + $0x134] sm:$0xff]  }
 0x20c   : > { %v5768_v50 = vor.u32 %v5767_v10, %v5764_v41  ;;  %v17690_v40 = vld [vmem:[#allocation3 + $0x20] sm:$0x1]  ;;  %4562 = vrot.lane.b32.xlu0 %v13891_v30, %s15166_s25  ;;  %v5751_v47 = vshrl.u32 %v14079_v39, 16  ;;  %v5757_v63 = vshll.u32 %v14080_v59, 16  ;;  %v14255_v18 = vrot.slane %v14213_v7, 9  ;;  %5037 = vst.msk [vmem:[#allocation2 + $0xa0] sm:$0xff] %vm20745_vm12, %v4949_v46  ;;  %v6116_v33 = vpop.permute.xlu1 %6115 }
 0x20d   : > { %20788 = vst [vmem:[#allocation11_spill] sm:$0xff] %v17679_v62  ;;  %v5778_v4 = vor.u32 %v5777_v3, %v5773_v16  ;;  %v5744_v44 = vor.u32 %v5743_v55, %v17464_v37  ;;  %v5749_v60 = vrot.slane %v5747_v45, 5  ;;  %v14211_v42 = vld [vmem:[%s15234_s23 + $0x138] sm:$0xf]  ;;  %v14212_v41 = vld [vmem:[%s15234_s23 + $0x13c] sm:$0x1] }
 0x20e   : > { %v17696_v22 = vld [vmem:[#allocation3 + $0x2c] sm:$0x1]  ;;  %v5769_v5 = vrot.slane %v5768_v50, 4  ;;  %v8633_v10 = vld [vmem:[#allocation3] sm:$0xe]  ;;  %6203 = vst.msk [vmem:[#allocation2 + $0xa8] sm:$0xff] %vm20744_vm13, %v6116_v33 }
 0x20f   : > { %v17703_v59 = vld [vmem:[#allocation3 + $0x24] sm:$0xe]  ;;  %v5779_v7 = vrot.slane %v5778_v4, 4  ;;  %v5753_v30 = vrot.slane %v5751_v47, 4  ;;  %v5759_v3 = vrot.slane %v5757_v63, 5  ;;  %4962 = vrot.lane.b32.xlu1 %v15059_v14, %s15170_s29  ;;  %v5745_v50 = vrot.slane %v5744_v44, 4  ;;  %v6114_v1 = vpop.permute.xlu0 %6113 }
 0x210   : > { %v5774_v37 = vsel %vm15281_vm5, %v5769_v5, %v5773_v16  ;;  %v6592_v55 = vrot.slane %v14214_v23, 5  ;;  %v8634_v45 = vld [vmem:[#allocation3 + $0x4] sm:$0xf]  ;;  %4960 = vrot.lane.b32.xlu0 %v15060_v32, %s15170_s29  ;;  %v20724_v47 = vrot.slane %v17688_v43, 5  ;;  %v6584_v63 = vrot.slane %v6582_v15, 4  ;;  %6202 = vst.msk [vmem:[#allocation2 + $0xa0] sm:$0xff] %vm20744_vm13, %v6114_v1  ;;  %v6801_v16 = vpop.permute.xlu1 %6800 }
 0x211   : > { %v5784_v33 = vsel %vm15281_vm5, %v5779_v7, %v17679_v62  ;;  %v5754_v4 = vor.u32 %v5753_v30, %v5749_v60  ;;  %v8635_v14 = vld [vmem:[#allocation3 + $0x8] sm:$0x1]  ;;  %v8088_v54 = vld [vmem:[#allocation3] sm:$0xf]  ;;  %v5750_v5 = vsel %vm15281_vm5, %v5745_v50, %v5749_v60  ;;  %6888 = vst.msk [vmem:[#allocation2 + $0xa8] sm:$0xff] %vm20743_vm14, %v6801_v16  ;;  %v6585_v30 = vrot.slane %v14211_v42, 5 }
 0x212   : > { %v14132_v23 = vcombine.low %v5774_v37, %v5784_v33  ;;  %v6593_v32 = vsel %vm15227_vm2, %v14255_v18, %v6592_v55  ;;  %v6594_v44 = vrot.slane %v6592_v55, 4  ;;  %v6588_v57 = vrot.slane %v14212_v41, 5  ;;  %v8089_v60 = vld [vmem:[#allocation3 + $0x4] sm:$0xf] }
 0x213   : > { %v5755_v7 = vrot.slane %v5754_v4, 4  ;;  %v14440_v2 = vrot.slane %v8633_v10, 9  ;;  %v8731_v1 = vrot.slane %v8634_v45, 5  ;;  %v8734_v37 = vrot.slane %v8635_v14, 5  ;;  %v6799_v33 = vpop.permute.xlu0 %6798  ;;  %v8090_v10 = vld [vmem:[#allocation3 + $0x8] sm:$0x1] }
 0x214   : > { %6127 = vrot.lane.b32.xlu1 %v14132_v23, %s15171_s30  ;;  %v6596_v15 = vsel %vm15227_vm2, %v6594_v44, %v20724_v47  ;;  %v8137_v50 = vshrl.u32 %v8088_v54, 16  ;;  %v6586_v42 = vsel %vm15227_vm2, %v6584_v63, %v6585_v30  ;;  %v6587_v41 = vrot.slane %v6585_v30, 4  ;;  %v9132_v4 = vld [vmem:[#allocation3 + $0xc] sm:$0xf]  ;;  %6887 = vst.msk [vmem:[#allocation2 + $0xa0] sm:$0xff] %vm20743_vm14, %v6799_v33 }
 0x215   : > { %v5760_v18 = vsel %vm15281_vm5, %v5755_v7, %v5759_v3  ;;  %v14288_v55 = vcombine.low %v6593_v32, %v6596_v15  ;;  %v8732_v45 = vsel %vm15227_vm2, %v14440_v2, %v8731_v1  ;;  %v8733_v14 = vrot.slane %v8731_v1, 4  ;;  %v9133_v7 = vld [vmem:[#allocation3 + $0x10] sm:$0xf]  ;;  %v9134_v2 = vld [vmem:[#allocation3 + $0x14] sm:$0x1] }
 0x216   : > { %v14131_v16 = vcombine.low %v5750_v5, %v5760_v18  ;;  %v8139_v23 = vrot.slane %v8137_v50, 4  ;;  %v6589_v44 = vsel %vm15227_vm2, %v6587_v41, %v6588_v57  ;;  %v8140_v47 = vshll.u32 %v8088_v54, 16  ;;  %v1621_v15 = vpop.permute.xlu1 %1620  ;;  %v9677_v50 = vld [vmem:[#allocation3 + $0xc] sm:$0xe]  ;;  %v9678_v18 = vld [vmem:[#allocation3 + $0x10] sm:$0xf] }
 0x217   : > { %v8146_v3 = vshll.u32 %v8089_v60, 16  ;;  %v8150_v32 = vshrl.u32 %v8089_v60, 16  ;;  %v14287_v63 = vcombine.low %v6586_v42, %v6589_v44  ;;  %v8735_v5 = vsel %vm15227_vm2, %v8733_v14, %v8734_v37  ;;  %v15088_v42 = vld [vmem:[#allocation3 + $0xc] sm:$0xff]   ;;  %v9679_v14 = vld [vmem:[#allocation3 + $0x14] sm:$0x1] }
 0x218   : > { %6125 = vrot.lane.b32.xlu0 %v14131_v16, %s15171_s30  ;;  %6812 = vrot.lane.b32.xlu1 %v14288_v55, %s15172_s6  ;;  %v8156_v30 = vshll.u32 %v8090_v10, 16  ;;  %v9181_v1 = vshrl.u32 %v9132_v4, 16  ;;  %vm20790_vm0 = vcmask 48152   ;;  %v14456_v57 = vcombine.low %v8732_v45, %v8735_v5  ;;  %v15083_v55 = vld [vmem:[#allocation3] sm:$0xff]   ;;  %v6924_v36 = vld [vmem:[#allocation2 + $0xa8] sm:$0xff] }
 0x219   : > { %1706 = vst.msk [vmem:[#allocation2 + $0xb8] sm:$0xff] %vm20790_vm0, %v1621_v15  ;;  %v8142_v54 = vrot.slane %v8140_v47, 5  ;;  %v8148_v33 = vrot.slane %v8146_v3, 5  ;;  %v8152_v60 = vrot.slane %v8150_v32, 4  ;;  %v9184_v16 = vshll.u32 %v9132_v4, 16  ;;  %v1619_v46 = vpop.permute.xlu0 %1618  ;;  %v15093_v15 = vld [vmem:[#allocation3 + $0x18] sm:$0xff]  }
 0x21a   : > { %v8158_v41 = vrot.slane %v8156_v30, 5  ;;  %v9183_v17 = vrot.slane %v9181_v1, 4  ;;  %v9190_v12 = vshll.u32 %v9133_v7, 16  ;;  %v9194_v37 = vshrl.u32 %v9133_v7, 16  ;;  %v2309_v8 = vpop.permute.xlu1 %2308  ;;  %1705 = vst.msk [vmem:[#allocation2 + $0xb0] sm:$0xff] %vm20790_vm0, %v1619_v46  ;;  %v15094_v32 = vld [vmem:[#allocation3 + $0x24] sm:$0xff]  }
 0x21b   : > { %v8143_v44 = vor.u32 %v8142_v54, %v8139_v23  ;;  %v8153_v39 = vor.u32 %v8152_v60, %v8148_v33  ;;  %v9200_v10 = vshll.u32 %v9134_v2, 16  ;;  %v9186_v47 = vrot.slane %v9184_v16, 5  ;;  %2394 = vst.msk [vmem:[#allocation2 + $0xb8] sm:$0xff] %vm2370_vm8, %v2309_v8  ;;  %v6923_v23 = vld [vmem:[#allocation2 + $0xa0] sm:$0xff]  ;;  %v8091_v1 = vld [vmem:[#allocation3 + $0xc] sm:$0xf] }
 0x21c   : > { %6810 = vrot.lane.b32.xlu0 %v14287_v63, %s15172_s6  ;;  %8889 = vrot.lane.b32.xlu1 %v14456_v57, %s15176_s15  ;;  %v9192_v45 = vrot.slane %v9190_v12, 5  ;;  %v14504_v4 = vrot.slane %v9677_v50, 9  ;;  %v9775_v3 = vrot.slane %v9678_v18, 5  ;;  %v9196_v30 = vrot.slane %v9194_v37, 4  ;;  %v8092_v54 = vld [vmem:[#allocation3 + $0x10] sm:$0xf] }
 0x21d   : > { %v8144_v7 = vrot.slane %v8143_v44, 4  ;;  %v8154_v5 = vrot.slane %v8153_v39, 4  ;;  %v9202_v2 = vrot.slane %v9200_v10, 5  ;;  %14919 = vmatprep.mubr.msk.bf16.mxu0 %vm20747_vm1, %v6923_v23  ;;  %v9187_v63 = vor.u32 %v9186_v47, %v9183_v17  ;;  %v17751_v8 = vpop.f32.mrb[16].mxu0  ;;  %v2307_v17 = vpop.permute.xlu0 %2306  ;;  %v10176_v10 = vld [vmem:[#allocation3 + $0x18] sm:$0xf] }
 0x21e   : > { %v17748_v57 = vsel %vm15227_vm2, %v14504_v4, %v9775_v3  ;;  %v9777_v12 = vrot.slane %v9775_v3, 4  ;;  %v9778_v50 = vrot.slane %v9679_v14, 5  ;;  %14920 = vmatmul.mubr.msk.bf16.gmra.mrb[40].mxu0 %vm20747_vm1, %v6924_v36  ;;  %v9197_v60 = vor.u32 %v9196_v30, %v9192_v45  ;;  %v2707_v18 = vpop.permute.xlu1 %2706  ;;  %2393 = vst.msk [vmem:[#allocation2 + $0xb0] sm:$0xff] %vm2370_vm8, %v2307_v17  ;;  %v17791_v4 = vld [vmem:[#allocation3 + $0x1c] sm:$0xf] }
 0x21f   : > { %v8149_v39 = vsel %vm15281_vm5, %v8144_v7, %v8148_v33  ;;  %v8159_v46 = vsel %vm15281_vm5, %v8154_v5, %v8158_v41  ;;  %vm8071_vm0 = vcmask 130048   ;;  %v9188_v44 = vrot.slane %v9187_v63, 4  ;;  %v17769_v33 = vpop.f32.mrb[17].mxu0  ;;  %v15061_v63 = vld [vmem:[#allocation3 + $0xc] sm:$0xff]  }
 0x220   : > { %v14424_v16 = vcombine.low %v8149_v39, %v8159_v46  ;;  %v17759_v37 = vsel %vm15227_vm2, %v9777_v12, %v9778_v50  ;;  %v10820_v36 = vsel %vm15227_vm2, %v14568_v25, %v10819_v9  ;;  %vm20791_vm6 = vcmask 97352   ;;  %8072 = vst.msk [vmem:[#allocation4] sm:$0xff] %vm8071_vm0, %v15083_v55  ;;  %8073 = vst.msk [vmem:[#allocation4 + $0x10] sm:$0xff] %vm8071_vm0, %v15088_v42  ;;  %v8093_v55 = vld [vmem:[#allocation3 + $0x14] sm:$0x1]  ;;  %v17784_v42 = vpop.f32.mrb[18].mxu0 }
 0x221   : > { %2792 = vst.msk [vmem:[#allocation2 + $0xb8] sm:$0xff] %vm20791_vm6, %v2707_v18  ;;  %v9198_v27 = vrot.slane %v9197_v60, 4  ;;  %v14520_v34 = vcombine.low %v17748_v57, %v17759_v37  ;;  %v20792_v25 = vrot.slane %v17690_v40, 5  ;;  %v7168_v41 = vadd.f32 %v17556_v56, %v17567_v29  ;;  %v2705_v7 = vpop.permute.xlu0 %2704  ;;  %v10178_v50 = vld [vmem:[#allocation3 + $0x20] sm:$0x1] }
 0x222   : > { %8074 = vst.msk [vmem:[#allocation4 + $0x20] sm:$0xff] %vm8071_vm0, %v15093_v15  ;;  %8075 = vst.msk [vmem:[#allocation4 + $0x30] sm:$0xff] %vm8071_vm0, %v15094_v32  ;;  %8568 = vrot.lane.b32.xlu0 %v14424_v16, %s15177_s16  ;;  %v9193_v14 = vsel %vm15281_vm5, %v9188_v44, %v9192_v45  ;;  %v7160_v40 = vadd.f32 %v17556_v56, %v17574_v61  ;;  %v8161_v47 = vshrl.u32 %v8091_v1, 16  ;;  %v8164_v23 = vshll.u32 %v8091_v1, 16  ;;  %v3872_v5 = vpop.permute.xlu1 %3871 }
 0x223   : > { %v10823_v9 = vsel %vm15227_vm2, %v17508_v52, %v20792_v25  ;;  %v17793_v52 = vpop.f32.mrb[19].mxu0  ;;  %v9203_v29 = vsel %vm15281_vm5, %v9198_v27, %v9202_v2  ;;  %v7412_v3 = vmax.f32 %v7168_v41, 0.0  ;;  %v8170_v32 = vshll.u32 %v8092_v54, 16  ;;  %2791 = vst.msk [vmem:[#allocation2 + $0xb0] sm:$0xff] %vm20791_vm6, %v2705_v7 }
 0x224   : > { %v14584_v15 = vcombine.low %v10820_v36, %v10823_v9  ;;  %v14488_v30 = vcombine.low %v9193_v14, %v9203_v29  ;;  %v7410_v45 = vmax.f32 %v7160_v40, 0.0  ;;  %v8163_v12 = vrot.slane %v8161_v47, 4  ;;  %3957 = vst.msk [vmem:[#allocation2 + $0xb8] sm:$0xff] %vm20748_vm10, %v3872_v5  ;;  %v8637_v47 = vld [vmem:[#allocation3 + $0x10] sm:$0xf] }
 0x225   : > { %v8174_v61 = vshrl.u32 %v8092_v54, 16  ;;  %v14779_v39 = vpack.c.bf16 %v7412_v3, %v7412_v3  ;;  %v8166_v46 = vrot.slane %v8164_v23, 5  ;;  %v8172_v2 = vrot.slane %v8170_v32, 5  ;;  %v17802_v54 = vld [vmem:[#allocation3 + $0xc] sm:$0xe]  ;;  %v3870_v9 = vpop.permute.xlu0 %3869 }
 0x226   : > { %10993 = vst.msk [vmem:[#allocation4 + $0x8] sm:$0xff] %vm8071_vm0, %v14584_v15  ;;  %v8180_v60 = vshll.u32 %v8093_v55, 16  ;;  %9612 = vrot.lane.b32.xlu1 %v14488_v30, %s15178_s17  ;;  %9067 = vrot.lane.b32.xlu0 %v15061_v63, %s15179_s20  ;;  %v14777_v1 = vpack.c.bf16 %v7410_v45, %v7410_v45  ;;  %v10225_v18 = vshrl.u32 %v10176_v10, 16  ;;  %v10228_v16 = vshll.u32 %v10176_v10, 16  ;;  %v4557_v41 = vpop.permute.xlu1 %4556  ;;  %v15062_v55 = vld [vmem:[#allocation3 + $0x18] sm:$0xff]  }
 0x227   : > { %v8176_v17 = vrot.slane %v8174_v61, 4  ;;  %v7812_v44 = vsel %vm17432_vm9, %v14779_v39, 0  ;;  %v8167_v36 = vor.u32 %v8166_v46, %v8163_v12  ;;  %v10234_v25 = vshll.u32 %v17791_v4, 16  ;;  %v17810_v29 = vld [vmem:[#allocation3 + $0x14] sm:$0x1]  ;;  %3956 = vst.msk [vmem:[#allocation2 + $0xb0] sm:$0xff] %vm20748_vm10, %v3870_v9 }
 0x228   : > { %v8182_v27 = vrot.slane %v8180_v60, 5  ;;  %7885 = vst.msk [vmem:[#allocation3 + $0x38] sm:$0xf] %vm7870_vm15, %v7812_v44  ;;  %v7810_v14 = vsel %vm17206_vm3, %v14777_v1, 0  ;;  %v10227_v40 = vrot.slane %v10225_v18, 4  ;;  %v10230_v10 = vrot.slane %v10228_v16, 5 }
 0x229   : > { %v8177_v15 = vor.u32 %v8176_v17, %v8172_v2  ;;  %4642 = vst.msk [vmem:[#allocation2 + $0xb8] sm:$0xff] %vm20746_vm11, %v4557_v41  ;;  %v8168_v3 = vrot.slane %v8167_v36, 4  ;;  %v10236_v23 = vrot.slane %v10234_v25, 5  ;;  %v10238_v32 = vshrl.u32 %v17791_v4, 16  ;;  %v9680_v5 = vld [vmem:[#allocation3 + $0x18] sm:$0xe]  ;;  %v4555_v57 = vpop.permute.xlu0 %4554 }
 0x22a   : > { %7883 = vst.msk [vmem:[#allocation3 + $0x30] sm:$0xf] %vm7870_vm15, %v7810_v14  ;;  %v10244_v7 = vshll.u32 %v10178_v50, 16  ;;  %10111 = vrot.lane.b32.xlu1 %v15062_v55, %s15180_s21  ;;  %9933 = vrot.lane.b32.xlu0 %v14520_v34, %s15181_s22  ;;  %v10231_v63 = vor.u32 %v10230_v10, %v10227_v40  ;;  %v7171_v45 = vadd.f32 %v17556_v56, %v17580_v19  ;;  %v9681_v4 = vld [vmem:[#allocation3 + $0x1c] sm:$0xf]  ;;  %v14441_v60 = vrot.slane %v17802_v54, 9  ;;  %v4955_v37 = vpop.permute.xlu1 %4954 }
 0x22b   : > { %v8178_v30 = vrot.slane %v8177_v15, 4  ;;  %v7163_v12 = vadd.f32 %v17556_v56, %v17583_v38  ;;  %v8173_v50 = vsel %vm15281_vm5, %v8168_v3, %v8172_v2  ;;  %v10240_v39 = vrot.slane %v10238_v32, 4  ;;  %v9682_v1 = vld [vmem:[#allocation3 + $0x20] sm:$0x1]  ;;  %4641 = vst.msk [vmem:[#allocation2 + $0xb0] sm:$0xff] %vm20746_vm11, %v4555_v57 }
 0x22c   : > { %v10246_v46 = vrot.slane %v10244_v7, 5  ;;  %v10232_v34 = vrot.slane %v10231_v63, 4  ;;  %v7413_v17 = vmax.f32 %v7171_v45, 0.0  ;;  %5040 = vst.msk [vmem:[#allocation2 + $0xb8] sm:$0xff] %vm20745_vm12, %v4955_v37  ;;  %v8738_v16 = vrot.slane %v8637_v47, 5  ;;  %v15063_v45 = vld [vmem:[#allocation3 + $0x18] sm:$0xff]  }
 0x22d   : > { %v11010_v61 = vld [vmem:[#allocation4 + $0x8] sm:$0xff]  ;;  %v8183_v19 = vsel %vm15281_vm5, %v8178_v30, %v8182_v27  ;;  %v7411_v38 = vmax.f32 %v7163_v12, 0.0  ;;  %v10241_v18 = vor.u32 %v10240_v39, %v10236_v23  ;;  %v8741_v54 = vrot.slane %v17810_v29, 5  ;;  %v9135_v44 = vld [vmem:[#allocation3 + $0x18] sm:$0xf]  ;;  %v4953_v29 = vpop.permute.xlu0 %4952 }
 0x22e   : > { %14610 = vmatprep.mubr.msk.bf16.mxu1 %vm8071_vm0, %v11010_v61  ;;  %v14425_v2 = vcombine.low %v8173_v50, %v8183_v19  ;;  %v10237_v36 = vsel %vm15281_vm5, %v10232_v34, %v10236_v23  ;;  %v14780_v25 = vpack.c.bf16 %v7413_v17, %v7413_v17  ;;  %v14505_v41 = vrot.slane %v9680_v5, 9  ;;  %v9136_v27 = vld [vmem:[#allocation3 + $0x1c] sm:$0xf]  ;;  %v9137_v55 = vld [vmem:[#allocation3 + $0x20] sm:$0x1]  ;;  %5039 = vst.msk [vmem:[#allocation2 + $0xb0] sm:$0xff] %vm20745_vm12, %v4953_v29 }
 0x22f   : > { %v14778_v9 = vpack.c.bf16 %v7411_v38, %v7411_v38  ;;  %v17836_v14 = vld [vmem:[#allocation3 + $0x38] sm:$0x1]  ;;  %v10242_v15 = vrot.slane %v10241_v18, 4  ;;  %v8739_v40 = vsel %vm15227_vm2, %v14441_v60, %v8738_v16  ;;  %v8740_v10 = vrot.slane %v8738_v16, 4  ;;  %v10179_v61 = vld [vmem:[#allocation3 + $0x24] sm:$0xf] }
 0x230   : > { %8570 = vrot.lane.b32.xlu1 %v14425_v2, %s15177_s16  ;;  %v9782_v47 = vrot.slane %v9681_v4, 5  ;;  %v7813_v23 = vsel %vm17206_vm3, %v14780_v25, 0  ;;  %v9785_v5 = vrot.slane %v9682_v1, 5  ;;  %v9205_v1 = vshrl.u32 %v9135_v44, 16  ;;  %v10180_v34 = vld [vmem:[#allocation3 + $0x28] sm:$0xf] }
 0x231   : > { %v17842_v32 = vld [vmem:[#allocation3 + $0x30] sm:$0xe]  ;;  %v7811_v7 = vsel %vm17370_vm7, %v14778_v9, 0  ;;  %v10247_v63 = vsel %vm15281_vm5, %v10242_v15, %v10246_v46  ;;  %7886 = vst.msk [vmem:[#allocation3 + $0x3c] sm:$0xf] %vm7870_vm15, %v7813_v23  ;;  %v8742_v12 = vsel %vm15227_vm2, %v8740_v10, %v8741_v54  ;;  %v9208_v57 = vshll.u32 %v9135_v44, 16 }
 0x232   : > { %7884 = vst.msk [vmem:[#allocation3 + $0x34] sm:$0xf] %vm7870_vm15, %v7811_v7  ;;  %v9783_v4 = vsel %vm15227_vm2, %v14505_v41, %v9782_v47  ;;  %v14552_v50 = vcombine.low %v10237_v36, %v10247_v63  ;;  %v14457_v39 = vcombine.low %v8739_v40, %v8742_v12  ;;  %v9784_v60 = vrot.slane %v9782_v47, 4  ;;  %v10181_v2 = vld [vmem:[#allocation3 + $0x2c] sm:$0x1]  ;;  %v6120_v44 = vpop.permute.xlu1 %6119 }
 0x233   : > { %v9214_v46 = vshll.u32 %v9136_v27, 16  ;;  %v9218_v37 = vshrl.u32 %v9136_v27, 16  ;;  %v9224_v19 = vshll.u32 %v9137_v55, 16  ;;  %v9207_v38 = vrot.slane %v9205_v1, 4  ;;  %v8639_v41 = vld [vmem:[#allocation3 + $0x18] sm:$0xe] }
 0x234   : > { %9069 = vrot.lane.b32.xlu1 %v15063_v45, %s15179_s20  ;;  %10656 = vrot.lane.b32.xlu0 %v14552_v50, %s15182_s7  ;;  %v9786_v17 = vsel %vm15227_vm2, %v9784_v60, %v9785_v5  ;;  %v10249_v18 = vshrl.u32 %v10179_v61, 16  ;;  %v10252_v16 = vshll.u32 %v10179_v61, 16  ;;  %v9210_v36 = vrot.slane %v9208_v57, 5  ;;  %6205 = vst.msk [vmem:[#allocation2 + $0xb8] sm:$0xff] %vm20744_vm13, %v6120_v44  ;;  %v8640_v7 = vld [vmem:[#allocation3 + $0x1c] sm:$0xf] }
 0x235   : > { %v14521_v54 = vcombine.low %v9783_v4, %v9786_v17  ;;  %v9216_v25 = vrot.slane %v9214_v46, 5  ;;  %v9220_v9 = vrot.slane %v9218_v37, 4  ;;  %v9226_v15 = vrot.slane %v9224_v19, 5  ;;  %v8641_v5 = vld [vmem:[#allocation3 + $0x20] sm:$0x1]  ;;  %v6118_v1 = vpop.permute.xlu0 %6117 }
 0x236   : > { %v10251_v27 = vrot.slane %v10249_v18, 4  ;;  %v10254_v55 = vrot.slane %v10252_v16, 5  ;;  %v10258_v40 = vshll.u32 %v10180_v34, 16  ;;  %v9211_v10 = vor.u32 %v9210_v36, %v9207_v38  ;;  %v8094_v50 = vld [vmem:[#allocation3 + $0x18] sm:$0xf]  ;;  %6204 = vst.msk [vmem:[#allocation2 + $0xb0] sm:$0xff] %vm20744_vm13, %v6118_v1  ;;  %v6805_v17 = vpop.permute.xlu1 %6804 }
 0x237   : > { %v9221_v47 = vor.u32 %v9220_v9, %v9216_v25  ;;  %v10262_v29 = vshrl.u32 %v10180_v34, 16  ;;  %v10268_v23 = vshll.u32 %v10181_v2, 16  ;;  %v14442_v61 = vrot.slane %v8639_v41, 9  ;;  %v8095_v60 = vld [vmem:[#allocation3 + $0x1c] sm:$0xf]  ;;  %6890 = vst.msk [vmem:[#allocation2 + $0xb8] sm:$0xff] %vm20743_vm14, %v6805_v17 }
 0x238   : > { %9935 = vrot.lane.b32.xlu1 %v14521_v54, %s15181_s22  ;;  %v17864_v63 = vld [vmem:[#allocation3 + $0x3c] sm:$0xe]  ;;  %8891 = vrot.lane.b32.xlu0 %v14457_v39, %s15176_s15  ;;  %v10255_v12 = vor.u32 %v10254_v55, %v10251_v27  ;;  %v10260_v4 = vrot.slane %v10258_v40, 5  ;;  %v17871_v57 = vadd.f32 %v17556_v56, %v17751_v8  ;;  %v9212_v19 = vrot.slane %v9211_v10, 4  ;;  %v8096_v16 = vld [vmem:[#allocation3 + $0x20] sm:$0x1] }
 0x239   : > { %v17866_v45 = vld [vmem:[#allocation3 + $0x34] sm:$0xf]  ;;  %v9222_v34 = vrot.slane %v9221_v47, 4  ;;  %v10264_v38 = vrot.slane %v10262_v29, 4  ;;  %v10270_v2 = vrot.slane %v10268_v23, 5  ;;  %v8745_v18 = vrot.slane %v8640_v7, 5  ;;  %v6803_v40 = vpop.permute.xlu0 %6802 }
 0x23a   : > { %v20730_v37 = vrot.slane %v17866_v45, 5  ;;  %v10256_v39 = vrot.slane %v10255_v12, 4  ;;  %v9217_v8 = vsel %vm15281_vm5, %v9212_v19, %v9216_v25  ;;  %v8748_v36 = vrot.slane %v8641_v5, 5  ;;  %v9138_v9 = vld [vmem:[#allocation3 + $0x24] sm:$0xf]  ;;  %6889 = vst.msk [vmem:[#allocation2 + $0xb0] sm:$0xff] %vm20743_vm14, %v6803_v40 }
 0x23b   : > { %v9227_v54 = vsel %vm15281_vm5, %v9222_v34, %v9226_v15  ;;  %v10265_v27 = vor.u32 %v10264_v38, %v10260_v4  ;;  %v17889_v55 = vsel %vm15227_vm2, %v14442_v61, %v8745_v18  ;;  %v8747_v10 = vrot.slane %v8745_v18, 4  ;;  %v9139_v25 = vld [vmem:[#allocation3 + $0x28] sm:$0xf]  ;;  %v9140_v17 = vld [vmem:[#allocation3 + $0x2c] sm:$0x1] }
 0x23c   : > { %v17879_v56 = vrot.slane %v20730_v37, 4  ;;  %v14489_v41 = vcombine.low %v9217_v8, %v9227_v54  ;;  %v10261_v44 = vsel %vm15281_vm5, %v10256_v39, %v10260_v4  ;;  %v8185_v47 = vshrl.u32 %v8094_v50, 16  ;;  %v9684_v1 = vld [vmem:[#allocation3 + $0x28] sm:$0xf]  ;;  %v15098_v39 = vld [vmem:[#allocation3 + $0x30] sm:$0xff]  }
 0x23d   : > { %v8188_v29 = vshll.u32 %v8094_v50, 16  ;;  %v8194_v23 = vshll.u32 %v8095_v60, 16  ;;  %v10266_v15 = vrot.slane %v10265_v27, 4  ;;  %v8198_v7 = vshrl.u32 %v8095_v60, 16  ;;  %v15066_v38 = vld [vmem:[#allocation3 + $0x24] sm:$0xff]   ;;  %8076 = vst.msk [vmem:[#allocation4 + $0x40] sm:$0xff] %vm8071_vm0, %v15098_v39 }
 0x23e   : > { %9614 = vrot.lane.b32.xlu0 %v14489_v41, %s15178_s17  ;;  %v8204_v5 = vshll.u32 %v8096_v16, 16  ;;  %v9229_v12 = vshrl.u32 %v9138_v9, 16  ;;  %v8749_v4 = vsel %vm15227_vm2, %v8747_v10, %v8748_v36  ;;  %v8187_v61 = vrot.slane %v8185_v47, 4  ;;  %v9683_v60 = vld [vmem:[#allocation3 + $0x24] sm:$0xe] }
 0x23f   : > { %v8190_v19 = vrot.slane %v8188_v29, 5  ;;  %v8196_v34 = vrot.slane %v8194_v23, 5  ;;  %v10271_v50 = vsel %vm15281_vm5, %v10266_v15, %v10270_v2  ;;  %v14458_v18 = vcombine.low %v17889_v55, %v8749_v4  ;;  %v9685_v46 = vld [vmem:[#allocation3 + $0x2c] sm:$0x1]  ;;  %v8097_v2 = vld [vmem:[#allocation3 + $0x24] sm:$0xf] }
 0x240   : > { %v8200_v8 = vrot.slane %v8198_v7, 4  ;;  %v8206_v54 = vrot.slane %v8204_v5, 5  ;;  %v14553_v16 = vcombine.low %v10261_v44, %v10271_v50  ;;  %v9231_v27 = vrot.slane %v9229_v12, 4  ;;  %v8098_v23 = vld [vmem:[#allocation3 + $0x28] sm:$0xf]  ;;  %v1625_v15 = vpop.permute.xlu1 %1624  ;;  %v6926_v12 = vld [vmem:[#allocation2 + $0xb8] sm:$0xff] }
 0x241   : > { %v8191_v41 = vor.u32 %v8190_v19, %v8187_v61  ;;  %v9232_v40 = vshll.u32 %v9138_v9, 16  ;;  %v9238_v10 = vshll.u32 %v9139_v25, 16  ;;  %v9242_v47 = vshrl.u32 %v9139_v25, 16  ;;  %v17900_v55 = vpop.f32.mrb[20].mxu0  ;;  %v6925_v39 = vld [vmem:[#allocation2 + $0xb0] sm:$0xff] }
 0x242   : > { %10113 = vrot.lane.b32.xlu0 %v15066_v38, %s15180_s21  ;;  %v8201_v36 = vor.u32 %v8200_v8, %v8196_v34  ;;  %v9248_v29 = vshll.u32 %v9140_v17, 16  ;;  %10658 = vrot.lane.b32.xlu1 %v14553_v16, %s15182_s7  ;;  %v14506_v5 = vrot.slane %v9683_v60, 9  ;;  %v9789_v9 = vrot.slane %v9684_v1, 5  ;;  %v17904_v4 = vpop.f32.mrb[21].mxu0  ;;  %v8099_v16 = vld [vmem:[#allocation3 + $0x2c] sm:$0x1] }
 0x243   : > { %v8192_v44 = vrot.slane %v8191_v41, 4  ;;  %v9234_v7 = vrot.slane %v9232_v40, 5  ;;  %vm20793_vm6 = vcmask 48152   ;;  %v9240_v19 = vrot.slane %v9238_v10, 5  ;;  %v17906_v50 = vpop.f32.mrb[22].mxu0  ;;  %v1623_v40 = vpop.permute.xlu0 %1622  ;;  %14923 = vmatprep.mubr.msk.bf16.mxu0 %vm20747_vm1, %v6925_v39 }
 0x244   : > { %1708 = vst.msk [vmem:[#allocation2 + $0xc8] sm:$0xff] %vm20793_vm6, %v1625_v15  ;;  %v8202_v61 = vrot.slane %v8201_v36, 4  ;;  %v9244_v25 = vrot.slane %v9242_v47, 4  ;;  %v9250_v17 = vrot.slane %v9248_v29, 5  ;;  %v17912_v60 = vsel %vm15227_vm2, %v14506_v5, %v9789_v9  ;;  %v10182_v41 = vld [vmem:[#allocation3 + $0x30] sm:$0xf]  ;;  %14924 = vmatmul.mubr.msk.bf16.gmra.mrb[44].mxu0 %vm20747_vm1, %v6926_v12 }
 0x245   : > { %v8197_v38 = vsel %vm15281_vm5, %v8192_v44, %v8196_v34  ;;  %v9235_v8 = vor.u32 %v9234_v7, %v9231_v27  ;;  %v9791_v1 = vrot.slane %v9789_v9, 4  ;;  %v17915_v36 = vpop.f32.mrb[23].mxu0  ;;  %v9792_v29 = vrot.slane %v9685_v46, 5  ;;  %v10183_v34 = vld [vmem:[#allocation3 + $0x34] sm:$0xf]  ;;  %1707 = vst.msk [vmem:[#allocation2 + $0xc0] sm:$0xff] %vm20793_vm6, %v1623_v40  ;;  %v2313_v27 = vpop.permute.xlu1 %2312 }
 0x246   : > { %v8207_v10 = vsel %vm15281_vm5, %v8202_v61, %v8206_v54  ;;  %v9245_v47 = vor.u32 %v9244_v25, %v9240_v19  ;;  %v8209_v15 = vshrl.u32 %v8097_v2, 16  ;;  %8893 = vrot.lane.b32.xlu1 %v14458_v18, %s15176_s15  ;;  %v8212_v5 = vshll.u32 %v8097_v2, 16  ;;  %2396 = vst.msk [vmem:[#allocation2 + $0xc8] sm:$0xff] %vm2370_vm8, %v2313_v27  ;;  %v10184_v25 = vld [vmem:[#allocation3 + $0x38] sm:$0x1] }
 0x247   : > { %v14426_v44 = vcombine.low %v8197_v38, %v8207_v10  ;;  %v9236_v7 = vrot.slane %v9235_v8, 4  ;;  %v8218_v9 = vshll.u32 %v8098_v23, 16  ;;  %v9793_v54 = vsel %vm15227_vm2, %v9791_v1, %v9792_v29  ;;  %v2311_v2 = vpop.permute.xlu0 %2310  ;;  %v15067_v10 = vld [vmem:[#allocation3 + $0x24] sm:$0xff]   ;;  %v8647_v43 = vld [vmem:[#allocation3 + $0x38] sm:$0x1] }
 0x248   : > { %v9246_v39 = vrot.slane %v9245_v47, 4  ;;  %v8211_v46 = vrot.slane %v8209_v15, 4  ;;  %v8222_v61 = vshrl.u32 %v8098_v23, 16  ;;  %v14522_v18 = vcombine.low %v17912_v60, %v9793_v54  ;;  %2395 = vst.msk [vmem:[#allocation2 + $0xc0] sm:$0xff] %vm2370_vm8, %v2311_v2  ;;  %v17939_v2 = vld [vmem:[%s20717_s2] ss:$0 sm:$0xff] }
 0x249   : > { %8572 = vrot.lane.b32.xlu0 %v14426_v44, %s15177_s16  ;;  %v9241_v12 = vsel %vm15281_vm5, %v9236_v7, %v9240_v19  ;;  %v8214_v38 = vrot.slane %v8212_v5, 5  ;;  %v8220_v8 = vrot.slane %v8218_v9, 5  ;;  %v8228_v27 = vshll.u32 %v8099_v16, 16  ;;  %v2711_v23 = vpop.permute.xlu1 %2710  ;;  %v8642_v9 = vld [vmem:[#allocation3 + $0x24] sm:$0xe] }
 0x24a   : > { %v9251_v40 = vsel %vm15281_vm5, %v9246_v39, %v9250_v17  ;;  %v8224_v47 = vrot.slane %v8222_v61, 4  ;;  %v10273_v1 = vshrl.u32 %v10182_v41, 16  ;;  %v10276_v44 = vshll.u32 %v10182_v41, 16  ;;  %v8643_v61 = vld [vmem:[#allocation3 + $0x28] sm:$0xf] }
 0x24b   : > { %v14490_v29 = vcombine.low %v9241_v12, %v9251_v40  ;;  %v8215_v15 = vor.u32 %v8214_v38, %v8211_v46  ;;  %v10282_v3 = vshll.u32 %v10183_v34, 16  ;;  %vm20794_vm6 = vcmask 97352   ;;  %v2709_v12 = vpop.permute.xlu0 %2708  ;;  %v8644_v40 = vld [vmem:[#allocation3 + $0x2c] sm:$0x1] }
 0x24c   : > { %2794 = vst.msk [vmem:[#allocation2 + $0xc8] sm:$0xff] %vm20794_vm6, %v2711_v23  ;;  %v8225_v19 = vor.u32 %v8224_v47, %v8220_v8  ;;  %v8230_v60 = vrot.slane %v8228_v27, 5  ;;  %v10275_v7 = vrot.slane %v10273_v1, 4  ;;  %v10286_v5 = vshrl.u32 %v10183_v34, 16  ;;  %2793 = vst.msk [vmem:[#allocation2 + $0xc0] sm:$0xff] %vm20794_vm6, %v2709_v12 }
 0x24d   : > { %9616 = vrot.lane.b32.xlu1 %v14490_v29, %s15178_s17  ;;  %9071 = vrot.lane.b32.xlu0 %v15067_v10, %s15179_s20  ;;  %v8216_v17 = vrot.slane %v8215_v15, 4  ;;  %v10278_v16 = vrot.slane %v10276_v44, 5  ;;  %v10284_v39 = vrot.slane %v10282_v3, 5  ;;  %v10292_v54 = vshll.u32 %v10184_v25, 16  ;;  %v3876_v10 = vpop.permute.xlu1 %3875  ;;  %v15068_v3 = vld [vmem:[#allocation3 + $0x30] sm:$0xff]  }
 0x24e   : > { %v8226_v46 = vrot.slane %v8225_v19, 4  ;;  %v10288_v41 = vrot.slane %v10286_v5, 4  ;;  %v7416_v38 = vmax.f32 %v17871_v57, 0.0  ;;  %v7176_v34 = vadd.f32 %v17939_v2, %v17769_v33  ;;  %3959 = vst.msk [vmem:[#allocation2 + $0xc8] sm:$0xff] %vm20748_vm10, %v3876_v10  ;;  %v9686_v15 = vld [vmem:[#allocation3 + $0x30] sm:$0xe] }
 0x24f   : > { %v8221_v25 = vsel %vm15281_vm5, %v8216_v17, %v8220_v8  ;;  %v10279_v47 = vor.u32 %v10278_v16, %v10275_v7  ;;  %v10294_v27 = vrot.slane %v10292_v54, 5  ;;  %v7187_v57 = vadd.f32 %v17939_v2, %v17784_v42  ;;  %v9687_v5 = vld [vmem:[#allocation3 + $0x34] sm:$0xf]  ;;  %v9688_v17 = vld [vmem:[#allocation3 + $0x38] sm:$0x1]  ;;  %v3874_v16 = vpop.permute.xlu0 %3873 }
 0x250   : > { %v8231_v1 = vsel %vm15281_vm5, %v8226_v46, %v8230_v60  ;;  %v10289_v23 = vor.u32 %v10288_v41, %v10284_v39  ;;  %v14783_v33 = vpack.c.bf16 %v7416_v38, %v7416_v38  ;;  %v7414_v29 = vmax.f32 %v7176_v34, 0.0  ;;  %v9141_v42 = vld [vmem:[#allocation3 + $0x30] sm:$0xf]  ;;  %v9142_v41 = vld [vmem:[#allocation3 + $0x34] sm:$0xf]  ;;  %3958 = vst.msk [vmem:[#allocation2 + $0xc0] sm:$0xff] %vm20748_vm10, %v3874_v16 }
 0x251   : > { %10115 = vrot.lane.b32.xlu1 %v15068_v3, %s15180_s21  ;;  %9937 = vrot.lane.b32.xlu0 %v14522_v18, %s15181_s22  ;;  %v14427_v44 = vcombine.low %v8221_v25, %v8231_v1  ;;  %v10280_v8 = vrot.slane %v10279_v47, 4  ;;  %v7417_v19 = vmax.f32 %v7187_v57, 0.0  ;;  %v14443_v7 = vrot.slane %v8642_v9, 9  ;;  %v4561_v38 = vpop.permute.xlu1 %4560 }
 0x252   : > { %v10290_v54 = vrot.slane %v10289_v23, 4  ;;  %v7816_v60 = vsel %vm17206_vm3, %v14783_v33, 0  ;;  %v14781_v12 = vpack.c.bf16 %v7414_v29, %v7414_v29  ;;  %v8752_v46 = vrot.slane %v8643_v61, 5  ;;  %4644 = vst.msk [vmem:[#allocation2 + $0xc8] sm:$0xff] %vm20746_vm11, %v4561_v38  ;;  %v15069_v33 = vld [vmem:[#allocation3 + $0x30] sm:$0xff]  }
 0x253   : > { %v10285_v18 = vsel %vm15281_vm5, %v10280_v8, %v10284_v39  ;;  %7889 = vst.msk [vmem:[#allocation3 + $0x48] sm:$0xf] %vm7870_vm15, %v7816_v60  ;;  %v14784_v9 = vpack.c.bf16 %v7417_v19, %v7417_v19  ;;  %v8755_v34 = vrot.slane %v8644_v40, 5  ;;  %v7179_v10 = vadd.f32 %v17939_v2, %v17793_v52  ;;  %v9143_v39 = vld [vmem:[#allocation3 + $0x38] sm:$0x1] }
 0x254   : > { %v10295_v3 = vsel %vm15281_vm5, %v10290_v54, %v10294_v27  ;;  %v7814_v61 = vsel %vm17370_vm7, %v14781_v12, 0  ;;  %v8753_v25 = vsel %vm15227_vm2, %v14443_v7, %v8752_v46  ;;  %v8754_v47 = vrot.slane %v8752_v46, 4  ;;  %v4559_v23 = vpop.permute.xlu0 %4558  ;;  %v8100_v27 = vld [vmem:[#allocation3 + $0x30] sm:$0xf] }
 0x255   : > { %8574 = vrot.lane.b32.xlu1 %v14427_v44, %s15177_s16  ;;  %v14554_v57 = vcombine.low %v10285_v18, %v10295_v3  ;;  %7887 = vst.msk [vmem:[#allocation3 + $0x40] sm:$0xf] %vm7870_vm15, %v7814_v61  ;;  %v7817_v52 = vsel %vm17370_vm7, %v14784_v9, 0  ;;  %v7415_v40 = vmax.f32 %v7179_v10, 0.0  ;;  %v14507_v1 = vrot.slane %v9686_v15, 9  ;;  %v4959_v44 = vpop.permute.xlu1 %4958 }
 0x256   : > { %7890 = vst.msk [vmem:[#allocation3 + $0x4c] sm:$0xf] %vm7870_vm15, %v7817_v52  ;;  %v8756_v29 = vsel %vm15227_vm2, %v8754_v47, %v8755_v34  ;;  %v9796_v8 = vrot.slane %v9687_v5, 5  ;;  %v9799_v19 = vrot.slane %v9688_v17, 5  ;;  %v9253_v7 = vshrl.u32 %v9141_v42, 16 }
 0x257   : > { %4643 = vst.msk [vmem:[#allocation2 + $0xc0] sm:$0xff] %vm20746_vm11, %v4559_v23  ;;  %10660 = vrot.lane.b32.xlu0 %v14554_v57, %s15182_s7  ;;  %v14459_v16 = vcombine.low %v8753_v25, %v8756_v29  ;;  %v14782_v54 = vpack.c.bf16 %v7415_v40, %v7415_v40  ;;  %v9256_v60 = vshll.u32 %v9141_v42, 16  ;;  %v9262_v15 = vshll.u32 %v9142_v41, 16  ;;  %v8101_v5 = vld [vmem:[#allocation3 + $0x34] sm:$0xf] }
 0x258   : > { %5042 = vst.msk [vmem:[#allocation2 + $0xc8] sm:$0xff] %vm20745_vm12, %v4959_v44  ;;  %v9797_v12 = vsel %vm15227_vm2, %v14507_v1, %v9796_v8  ;;  %v9798_v46 = vrot.slane %v9796_v8, 4  ;;  %v9255_v38 = vrot.slane %v9253_v7, 4  ;;  %v9266_v18 = vshrl.u32 %v9142_v41, 16  ;;  %v8102_v3 = vld [vmem:[#allocation3 + $0x38] sm:$0x1]  ;;  %v4957_v42 = vpop.permute.xlu0 %4956 }
 0x259   : > { %9073 = vrot.lane.b32.xlu1 %v15069_v33, %s15179_s20  ;;  %v7815_v17 = vsel %vm17432_vm9, %v14782_v54, 0  ;;  %v9258_v9 = vrot.slane %v9256_v60, 5  ;;  %v9264_v34 = vrot.slane %v9262_v15, 5  ;;  %v9272_v10 = vshll.u32 %v9143_v39, 16  ;;  %5041 = vst.msk [vmem:[#allocation2 + $0xc0] sm:$0xff] %vm20745_vm12, %v4957_v42 }
 0x25a   : > { %v17983_v61 = vld [vmem:[#allocation3 + $0x48] sm:$0xe]  ;;  %7888 = vst.msk [vmem:[#allocation3 + $0x44] sm:$0xf] %vm7870_vm15, %v7815_v17  ;;  %v9800_v25 = vsel %vm15227_vm2, %v9798_v46, %v9799_v19  ;;  %v9268_v47 = vrot.slane %v9266_v18, 4  ;;  %v8233_v41 = vshrl.u32 %v8100_v27, 16  ;;  %v17995_v19 = vadd.f32 %v17939_v2, %v17900_v55 }
 0x25b   : > { %v8236_v57 = vshll.u32 %v8100_v27, 16  ;;  %8895 = vrot.lane.b32.xlu0 %v14459_v16, %s15176_s15  ;;  %v14523_v40 = vcombine.low %v9797_v12, %v9800_v25  ;;  %v9259_v39 = vor.u32 %v9258_v9, %v9255_v38  ;;  %v9274_v1 = vrot.slane %v9272_v10, 5  ;;  %v10185_v8 = vld [vmem:[#allocation3 + $0x3c] sm:$0xf] }
 0x25c   : > { %v17991_v23 = vld [vmem:[#allocation3 + $0x40] sm:$0xf]  ;;  %v9269_v33 = vor.u32 %v9268_v47, %v9264_v34  ;;  %v8235_v29 = vrot.slane %v8233_v41, 4  ;;  %v17999_v27 = vadd.f32 %v17939_v2, %v17904_v4  ;;  %v8242_v60 = vshll.u32 %v8101_v5, 16  ;;  %v9689_v42 = vld [vmem:[#allocation3 + $0x3c] sm:$0xe] }
 0x25d   : > { %v20729_v7 = vrot.slane %v17991_v23, 5  ;;  %v18002_v44 = vld [vmem:[#allocation3 + $0x4c] sm:$0xf]  ;;  %9939 = vrot.lane.b32.xlu1 %v14523_v40, %s15181_s22  ;;  %v9260_v16 = vrot.slane %v9259_v39, 4  ;;  %v8238_v54 = vrot.slane %v8236_v57, 5  ;;  %v8246_v46 = vshrl.u32 %v8101_v5, 16  ;;  %v6124_v10 = vpop.permute.xlu1 %6123 }
 0x25e   : > { %v20728_v15 = vrot.slane %v18002_v44, 5  ;;  %v9270_v12 = vrot.slane %v9269_v33, 4  ;;  %v8252_v38 = vshll.u32 %v8102_v3, 16  ;;  %v8244_v17 = vrot.slane %v8242_v60, 5  ;;  %v10186_v9 = vld [vmem:[#allocation3 + $0x40] sm:$0xf] }
 0x25f   : > { %v18008_v55 = vrot.slane %v20729_v7, 4  ;;  %v9265_v4 = vsel %vm15281_vm5, %v9260_v16, %v9264_v34  ;;  %v8239_v18 = vor.u32 %v8238_v54, %v8235_v29  ;;  %v8248_v3 = vrot.slane %v8246_v46, 4  ;;  %6207 = vst.msk [vmem:[#allocation2 + $0xc8] sm:$0xff] %vm20744_vm13, %v6124_v10  ;;  %v9690_v41 = vld [vmem:[#allocation3 + $0x40] sm:$0xf]  ;;  %v15104_v54 = vld [vmem:[#allocation3 + $0x48] sm:$0xff]  }
 0x260   : > { %v18014_v25 = vrot.slane %v20728_v15, 4  ;;  %v9275_v5 = vsel %vm15281_vm5, %v9270_v12, %v9274_v1  ;;  %v8254_v47 = vrot.slane %v8252_v38, 5  ;;  %v10297_v33 = vshrl.u32 %v10185_v8, 16  ;;  %v8645_v29 = vld [vmem:[#allocation3 + $0x30] sm:$0xe]  ;;  %v15100_v10 = vld [vmem:[#allocation3 + $0x3c] sm:$0xff]  }
 0x261   : > { %v18019_v57 = vld [vmem:[#allocation3 + $0x44] sm:$0x1]  ;;  %v14491_v34 = vcombine.low %v9265_v4, %v9275_v5  ;;  %v8240_v40 = vrot.slane %v8239_v18, 4  ;;  %v18023_v16 = vadd.f32 %v17939_v2, %v17906_v50  ;;  %v8249_v60 = vor.u32 %v8248_v3, %v8244_v17  ;;  %v6122_v46 = vpop.permute.xlu0 %6121  ;;  %v15072_v52 = vld [vmem:[#allocation3 + $0x3c] sm:$0xff]   ;;  %v8646_v50 = vld [vmem:[#allocation3 + $0x34] sm:$0xf]  ;;  %v6809_v7 = vpop.permute.xlu1 %6808 }
 0x262   : > { %v10187_v39 = vld [vmem:[#allocation3 + $0x44] sm:$0x1]  ;;  %v10300_v1 = vshll.u32 %v10185_v8, 16  ;;  %v10306_v12 = vshll.u32 %v10186_v9, 16  ;;  %v10299_v18 = vrot.slane %v10297_v33, 4  ;;  %v10310_v5 = vshrl.u32 %v10186_v9, 16 }
 0x263   : > { %v9691_v38 = vld [vmem:[#allocation3 + $0x44] sm:$0x1]  ;;  %9618 = vrot.lane.b32.xlu0 %v14491_v34, %s15178_s17  ;;  %v8245_v4 = vsel %vm15281_vm5, %v8240_v40, %v8244_v17  ;;  %v10316_v15 = vshll.u32 %v10187_v39, 16  ;;  %6206 = vst.msk [vmem:[#allocation2 + $0xc0] sm:$0xff] %vm20744_vm13, %v6122_v46  ;;  %v8250_v3 = vrot.slane %v8249_v60, 4  ;;  %v14508_v37 = vrot.slane %v9689_v42, 9 }
 0x264   : > { %v10302_v8 = vrot.slane %v10300_v1, 5  ;;  %v10308_v30 = vrot.slane %v10306_v12, 5  ;;  %6892 = vst.msk [vmem:[#allocation2 + $0xc8] sm:$0xff] %vm20743_vm14, %v6809_v7  ;;  %v10312_v34 = vrot.slane %v10310_v5, 4  ;;  %v9803_v17 = vrot.slane %v9690_v41, 5  ;;  %v18042_v41 = vpop.f32.mrb[24].mxu0 }
 0x265   : > { %8077 = vst.msk [vmem:[#allocation4 + $0x50] sm:$0xff] %vm8071_vm0, %v15100_v10  ;;  %v10318_v62 = vrot.slane %v10316_v15, 5  ;;  %v9806_v40 = vrot.slane %v9691_v38, 5  ;;  %8078 = vst.msk [vmem:[#allocation4 + $0x60] sm:$0xff] %vm8071_vm0, %v15104_v54  ;;  %v8255_v9 = vsel %vm15281_vm5, %v8250_v3, %v8254_v47  ;;  %v7420_v33 = vmax.f32 %v17995_v19, 0.0  ;;  %v6807_v1 = vpop.permute.xlu0 %6806  ;;  %v18044_v19 = vpop.f32.mrb[25].mxu0 }
 0x266   : > { %v10303_v39 = vor.u32 %v10302_v8, %v10299_v18  ;;  %v14444_v60 = vrot.slane %v8645_v29, 9  ;;  %v14428_v42 = vcombine.low %v8245_v4, %v8255_v9  ;;  %v10313_v7 = vor.u32 %v10312_v34, %v10308_v30  ;;  %6891 = vst.msk [vmem:[#allocation2 + $0xc0] sm:$0xff] %vm20743_vm14, %v6807_v1  ;;  %v9144_v4 = vld [vmem:[#allocation3 + $0x3c] sm:$0xf]  ;;  %v18052_v18 = vpop.f32.mrb[26].mxu0 }
 0x267   : > { %10117 = vrot.lane.b32.xlu0 %v15072_v52, %s15180_s21  ;;  %v18039_v12 = vsel %vm15227_vm2, %v14508_v37, %v9803_v17  ;;  %v9805_v15 = vrot.slane %v9803_v17, 4  ;;  %v14787_v47 = vpack.c.bf16 %v7420_v33, %v7420_v33  ;;  %v8759_v46 = vrot.slane %v8646_v50, 5  ;;  %v9145_v8 = vld [vmem:[#allocation3 + $0x40] sm:$0xf]  ;;  %v18062_v34 = vpop.f32.mrb[27].mxu0 }
 0x268   : > { %v10304_v54 = vrot.slane %v10303_v39, 4  ;;  %v8762_v38 = vrot.slane %v8647_v43, 5  ;;  %v10314_v29 = vrot.slane %v10313_v7, 4  ;;  %v7418_v10 = vmax.f32 %v17999_v27, 0.0  ;;  %v8103_v9 = vld [vmem:[#allocation3 + $0x3c] sm:$0xf] }
 0x269   : > { %v18048_v52 = vsel %vm15227_vm2, %v9805_v15, %v9806_v40  ;;  %v7421_v37 = vmax.f32 %v18023_v16, 0.0  ;;  %v7820_v50 = vsel %vm17370_vm7, %v14787_v47, 0  ;;  %v8760_v3 = vsel %vm15227_vm2, %v14444_v60, %v8759_v46  ;;  %v15073_v39 = vld [vmem:[#allocation3 + $0x3c] sm:$0xff]   ;;  %v9146_v1 = vld [vmem:[#allocation3 + $0x44] sm:$0x1] }
 0x26a   : > { %v10309_v5 = vsel %vm15281_vm5, %v10304_v54, %v10308_v30  ;;  %v14524_v43 = vcombine.low %v18039_v12, %v18048_v52  ;;  %v10319_v27 = vsel %vm15281_vm5, %v10314_v29, %v10318_v62  ;;  %7893 = vst.msk [vmem:[#allocation3 + $0x58] sm:$0xf] %vm7870_vm15, %v7820_v50  ;;  %v8761_v30 = vrot.slane %v8759_v46, 4  ;;  %v1629_v40 = vpop.permute.xlu1 %1628  ;;  %v8104_v47 = vld [vmem:[#allocation3 + $0x40] sm:$0xf] }
 0x26b   : > { %8576 = vrot.lane.b32.xlu0 %v14428_v42, %s15177_s16  ;;  %v14785_v16 = vpack.c.bf16 %v7418_v10, %v7418_v10  ;;  %v14788_v17 = vpack.c.bf16 %v7421_v37, %v7421_v37  ;;  %v14555_v33 = vcombine.low %v10309_v5, %v10319_v27  ;;  %v7195_v60 = vadd.f32 %v17939_v2, %v17915_v36  ;;  %v6928_v46 = vld [vmem:[#allocation2 + $0xc8] sm:$0xff] }
 0x26c   : > { %v9277_v7 = vshrl.u32 %v9144_v4, 16  ;;  %v9280_v12 = vshll.u32 %v9144_v4, 16  ;;  %vm20795_vm6 = vcmask 48152   ;;  %v8763_v62 = vsel %vm15227_vm2, %v8761_v30, %v8762_v38  ;;  %v1627_v38 = vpop.permute.xlu0 %1626  ;;  %v8105_v4 = vld [vmem:[#allocation3 + $0x44] sm:$0x1] }
 0x26d   : > { %1710 = vst.msk [vmem:[#allocation2 + $0xd8] sm:$0xff] %vm20795_vm6, %v1629_v40  ;;  %v7818_v42 = vsel %vm17432_vm9, %v14785_v16, 0  ;;  %v7821_v15 = vsel %vm17432_vm9, %v14788_v17, 0  ;;  %v9286_v54 = vshll.u32 %v9145_v8, 16  ;;  %10662 = vrot.lane.b32.xlu1 %v14555_v33, %s15182_s7  ;;  %v14460_v36 = vcombine.low %v8760_v3, %v8763_v62  ;;  %v6927_v37 = vld [vmem:[#allocation2 + $0xc0] sm:$0xff]  ;;  %1709 = vst.msk [vmem:[#allocation2 + $0xd0] sm:$0xff] %vm20795_vm6, %v1627_v38 }
 0x26e   : > { %7891 = vst.msk [vmem:[#allocation3 + $0x50] sm:$0xf] %vm7870_vm15, %v7818_v42  ;;  %7894 = vst.msk [vmem:[#allocation3 + $0x5c] sm:$0xf] %vm7870_vm15, %v7821_v15  ;;  %v7419_v29 = vmax.f32 %v7195_v60, 0.0  ;;  %v9279_v52 = vrot.slane %v9277_v7, 4  ;;  %v2317_v30 = vpop.permute.xlu1 %2316  ;;  %14927 = vmatprep.mubr.msk.bf16.mxu0 %vm20747_vm1, %v6927_v37 }
 0x26f   : > { %v9282_v10 = vrot.slane %v9280_v12, 5  ;;  %9075 = vrot.lane.b32.xlu0 %v15073_v39, %s15179_s20  ;;  %v18081_v5 = vrot.slane %v9286_v54, 5  ;;  %v9290_v50 = vshrl.u32 %v9145_v8, 16  ;;  %v9296_v27 = vshll.u32 %v9146_v1, 16  ;;  %v9692_v16 = vld [vmem:[#allocation3 + $0x48] sm:$0xe]  ;;  %14928 = vmatmul.mubr.msk.bf16.gmra.mrb[48].mxu0 %vm20747_vm1, %v6928_v46 }
 0x270   : > { %v8257_v3 = vshrl.u32 %v8103_v9, 16  ;;  %v9693_v17 = vld [vmem:[#allocation3 + $0x4c] sm:$0xf]  ;;  %v14786_v40 = vpack.c.bf16 %v7419_v29, %v7419_v29  ;;  %2398 = vst.msk [vmem:[#allocation2 + $0xd8] sm:$0xff] %vm2370_vm8, %v2317_v30  ;;  %v8260_v60 = vshll.u32 %v8103_v9, 16  ;;  %v8266_v7 = vshll.u32 %v8104_v47, 16  ;;  %v2315_v54 = vpop.permute.xlu0 %2314 }
 0x271   : > { %v9283_v33 = vor.u32 %v9282_v10, %v9279_v52  ;;  %v9292_v39 = vrot.slane %v9290_v50, 4  ;;  %v9298_v12 = vrot.slane %v9296_v27, 5  ;;  %v8270_v1 = vshrl.u32 %v8104_v47, 16  ;;  %v18087_v62 = vld [vmem:[#allocation3 + $0x58] sm:$0xf]  ;;  %8897 = vrot.lane.b32.xlu1 %v14460_v36, %s15176_s15  ;;  %2397 = vst.msk [vmem:[#allocation2 + $0xd0] sm:$0xff] %vm2370_vm8, %v2315_v54 }
 0x272   : > { %v8259_v8 = vrot.slane %v8257_v3, 4  ;;  %v7819_v42 = vsel %vm17206_vm3, %v14786_v40, 0  ;;  %v8262_v29 = vrot.slane %v8260_v60, 5  ;;  %v8268_v52 = vrot.slane %v8266_v7, 5  ;;  %v2715_v36 = vpop.permute.xlu1 %2714  ;;  %v10188_v27 = vld [vmem:[#allocation3 + $0x48] sm:$0xf] }
 0x273   : > { %v9284_v15 = vrot.slane %v9283_v33, 4  ;;  %9941 = vrot.lane.b32.xlu0 %v14524_v43, %s15181_s22  ;;  %v20733_v9 = vrot.slane %v18087_v62, 5  ;;  %7892 = vst.msk [vmem:[#allocation3 + $0x54] sm:$0xf] %vm7870_vm15, %v7819_v42  ;;  %v9293_v46 = vor.u32 %v9292_v39, %v18081_v5  ;;  %v8272_v47 = vrot.slane %v8270_v1, 4  ;;  %v15078_v3 = vld [vmem:[%s20718_s3] sm:$0xff]  }
 0x274   : > { %v8276_v10 = vshll.u32 %v8105_v4, 16  ;;  %v8263_v37 = vor.u32 %v8262_v29, %v8259_v8  ;;  %vm20796_vm6 = vcmask 97352   ;;  %v14509_v50 = vrot.slane %v9692_v16, 9  ;;  %v10189_v30 = vld [vmem:[#allocation3 + $0x4c] sm:$0xf]  ;;  %v2713_v1 = vpop.permute.xlu0 %2712 }
 0x275   : > { %v9289_v38 = vsel %vm15281_vm5, %v9284_v15, %v18081_v5  ;;  %2796 = vst.msk [vmem:[#allocation2 + $0xd8] sm:$0xff] %vm20796_vm6, %v2715_v36  ;;  %v9810_v43 = vrot.slane %v9693_v17, 5  ;;  %v18106_v40 = vrot.slane %v20733_v9, 4  ;;  %v18108_v4 = vld [vmem:[#allocation3 + $0x50] sm:$0x1]  ;;  %v9294_v5 = vrot.slane %v9293_v46, 4 }
 0x276   : > { %v18110_v33 = vld [vmem:[#allocation3 + $0x5c] sm:$0x1]  ;;  %v8273_v60 = vor.u32 %v8272_v47, %v8268_v52  ;;  %v18114_v16 = vadd.f32 %v17939_v2, %v18042_v41  ;;  %v8264_v39 = vrot.slane %v8263_v37, 4  ;;  %v8278_v8 = vrot.slane %v8276_v10, 5  ;;  %v9694_v42 = vld [vmem:[#allocation3 + $0x50] sm:$0x1]  ;;  %v3880_v29 = vpop.permute.xlu1 %3879 }
 0x277   : > { %v9299_v15 = vsel %vm15281_vm5, %v9294_v5, %v9298_v12  ;;  %2795 = vst.msk [vmem:[#allocation2 + $0xd0] sm:$0xff] %vm20796_vm6, %v2713_v1  ;;  %v18123_v46 = vsel %vm15227_vm2, %v14509_v50, %v9810_v43  ;;  %v9812_v41 = vrot.slane %v9810_v43, 4  ;;  %v10190_v47 = vld [vmem:[#allocation3 + $0x50] sm:$0x1]  ;;  %v8648_v36 = vld [vmem:[#allocation3 + $0x3c] sm:$0xe] }
 0x278   : > { %v8274_v54 = vrot.slane %v8273_v60, 4  ;;  %v14492_v9 = vcombine.low %v9289_v38, %v9299_v15  ;;  %v8269_v10 = vsel %vm15281_vm5, %v8264_v39, %v8268_v52  ;;  %3961 = vst.msk [vmem:[#allocation2 + $0xd8] sm:$0xff] %vm20748_vm10, %v3880_v29  ;;  %v9813_v37 = vrot.slane %v9694_v42, 5  ;;  %v8649_v7 = vld [vmem:[#allocation3 + $0x40] sm:$0xf]  ;;  %v15079_v38 = vld [vmem:[%s20718_s3 + $0x8] sm:$0xff]  }
 0x279   : > { %v8650_v12 = vld [vmem:[#allocation3 + $0x44] sm:$0x1]  ;;  %v20734_v60 = vmov 0   ;;  %v10321_v50 = vshrl.u32 %v10188_v27, 16  ;;  %v10324_v1 = vshll.u32 %v10188_v27, 16  ;;  %v10330_v43 = vshll.u32 %v10189_v30, 16  ;;  %v3878_v42 = vpop.permute.xlu0 %3877 }
 0x27a   : > { %v8279_v5 = vsel %vm15281_vm5, %v8274_v54, %v8278_v8  ;;  %11168 = vmatprep.subr.bf16.mxu1 %v20734_v60  ;;  %v10192_v15 = vld [vmem:[#allocation3 + $0x58] sm:$0xf]  ;;  %v18134_v52 = vld [vmem:[#allocation3 + $0x54] sm:$0xe]  ;;  %9620 = vrot.lane.b32.xlu1 %v14492_v9, %s15178_s17  ;;  %v18139_v8 = vsel %vm15227_vm2, %v9812_v41, %v9813_v37  ;;  %v10334_v54 = vshrl.u32 %v10189_v30, 16  ;;  %v10340_v29 = vshll.u32 %v10190_v47, 16 }
 0x27b   : > { %v14429_v39 = vcombine.low %v8269_v10, %v8279_v5  ;;  %11169 = vmatpush1.bf16.msra.mxu1 %v15078_v3  ;;  %v10191_v27 = vld [vmem:[#allocation3 + $0x54] sm:$0xf]  ;;  %3960 = vst.msk [vmem:[#allocation2 + $0xd0] sm:$0xff] %vm20748_vm10, %v3878_v42  ;;  %v10323_v11 = vrot.slane %v10321_v50, 4  ;;  %v10326_v6 = vrot.slane %v10324_v1, 5  ;;  %v20797_v9 = vmov 0  }
 0x27c   : > { %11170 = vmatprep.subr.bf16.mxu1 %v20797_v9  ;;  %v15076_v10 = vld [vmem:[#allocation3 + $0x48] sm:$0xff]   ;;  %v10332_v5 = vrot.slane %v10330_v43, 5  ;;  %v10336_v51 = vrot.slane %v10334_v54, 4  ;;  %v10342_v41 = vrot.slane %v10340_v29, 5  ;;  %v14445_v37 = vrot.slane %v8648_v36, 9  ;;  %v15106_v13 = vld [vmem:[#allocation3 + $0x54] sm:$0xff]  }
 0x27d   : > { %v10327_v30 = vor.u32 %v10326_v6, %v10323_v11  ;;  %v8766_v47 = vrot.slane %v8649_v7, 5  ;;  %v8769_v3 = vrot.slane %v8650_v12, 5  ;;  %v10193_v48 = vld [vmem:[#allocation3 + $0x5c] sm:$0x1]  ;;  %v10345_v28 = vshrl.u32 %v10191_v27, 16  ;;  %v4565_v42 = vpop.permute.xlu1 %4564  ;;  %8079 = vst.msk [vmem:[#allocation4 + $0x70] sm:$0xff] %vm8071_vm0, %v15106_v13 }
 0x27e   : > { %10119 = vrot.lane.b32.xlu1 %v15076_v10, %s15180_s21  ;;  %v10337_v17 = vor.u32 %v10336_v51, %v10332_v5  ;;  %v10348_v60 = vshll.u32 %v10191_v27, 16  ;;  %v10354_v50 = vshll.u32 %v10192_v15, 16  ;;  %v10358_v1 = vshrl.u32 %v10192_v15, 16  ;;  %4646 = vst.msk [vmem:[#allocation2 + $0xd8] sm:$0xff] %vm20746_vm11, %v4565_v42  ;;  %v4563_v43 = vpop.permute.xlu0 %4562  ;;  %v15080_v51 = vld [vmem:[%s20718_s3 + $0x10] sm:$0xff]  }
 0x27f   : > { %11171 = vmatpush1.bf16.msra.mxu1 %v15079_v38  ;;  %v10328_v54 = vrot.slane %v10327_v30, 4  ;;  %v18150_v6 = vsel %vm15227_vm2, %v14445_v37, %v8766_v47  ;;  %v8768_v11 = vrot.slane %v8766_v47, 4  ;;  %v10347_v7 = vrot.slane %v10345_v28, 4  ;;  %4645 = vst.msk [vmem:[#allocation2 + $0xd0] sm:$0xff] %vm20746_vm11, %v4563_v43  ;;  %v9147_v29 = vld [vmem:[#allocation3 + $0x48] sm:$0xf] }
 0x280   : > { %11172 = vmatprep.subr.bf16.mxu1 %v20797_v9  ;;  %v10338_v36 = vrot.slane %v10337_v17, 4  ;;  %v10350_v12 = vrot.slane %v10348_v60, 5  ;;  %v10356_v38 = vrot.slane %v10354_v50, 5  ;;  %v10360_v15 = vrot.slane %v10358_v1, 4  ;;  %v9148_v30 = vld [vmem:[#allocation3 + $0x4c] sm:$0xf] }
 0x281   : > { %v10333_v27 = vsel %vm15281_vm5, %v10328_v54, %v10332_v5  ;;  %v8770_v28 = vsel %vm15227_vm2, %v8768_v11, %v8769_v3  ;;  %v10364_v10 = vshll.u32 %v10193_v48, 16  ;;  %v7424_v37 = vmax.f32 %v18114_v16, 0.0  ;;  %v4963_v60 = vpop.permute.xlu1 %4962  ;;  %v9149_v50 = vld [vmem:[#allocation3 + $0x50] sm:$0x1]  ;;  %v15077_v1 = vld [vmem:[#allocation3 + $0x48] sm:$0xff]  }
 0x282   : > { %8578 = vrot.lane.b32.xlu1 %v14429_v39, %s15177_s16  ;;  %v10343_v17 = vsel %vm15281_vm5, %v10338_v36, %v10342_v41  ;;  %v14461_v47 = vcombine.low %v18150_v6, %v8770_v28  ;;  %v10351_v42 = vor.u32 %v10350_v12, %v10347_v7  ;;  %v10361_v13 = vor.u32 %v10360_v15, %v10356_v38  ;;  %v4961_v3 = vpop.permute.xlu0 %4960  ;;  %v8651_v54 = vld [vmem:[#allocation3 + $0x48] sm:$0xe]  ;;  %v15082_v39 = vld [vmem:[%s20718_s3 + $0x18] sm:$0xff]   ;;  %v8652_v36 = vld [vmem:[#allocation3 + $0x4c] sm:$0xf] }
 0x283   : > { %v14556_v5 = vcombine.low %v10333_v27, %v10343_v17  ;;  %5044 = vst.msk [vmem:[#allocation2 + $0xd8] sm:$0xff] %vm20745_vm12, %v4963_v60  ;;  %v10366_v48 = vrot.slane %v10364_v10, 5  ;;  %v14791_v43 = vpack.c.bf16 %v7424_v37, %v7424_v37  ;;  %v9301_v16 = vshrl.u32 %v9147_v29, 16  ;;  %11173 = vmatpush1.bf16.msra.mxu1 %v15080_v51  ;;  %5043 = vst.msk [vmem:[#allocation2 + $0xd0] sm:$0xff] %vm20745_vm12, %v4961_v3  ;;  %v8653_v60 = vld [vmem:[#allocation3 + $0x50] sm:$0x1] }
 0x284   : > { %v10352_v41 = vrot.slane %v10351_v42, 4  ;;  %v10362_v6 = vrot.slane %v10361_v13, 4  ;;  %v9304_v11 = vshll.u32 %v9147_v29, 16  ;;  %v9310_v7 = vshll.u32 %v9148_v30, 16  ;;  %11174 = vmatprep.subr.bf16.mxu1 %v20797_v9 }
 0x285   : > { %10664 = vrot.lane.b32.xlu0 %v14556_v5, %s15182_s7  ;;  %v7824_v12 = vsel %vm17432_vm9, %v14791_v43, 0  ;;  %v9303_v51 = vrot.slane %v9301_v16, 4  ;;  %v9314_v15 = vshrl.u32 %v9148_v30, 16  ;;  %v9320_v27 = vshll.u32 %v9149_v50, 16  ;;  %v9150_v43 = vld [vmem:[#allocation3 + $0x54] sm:$0xf] }
 0x286   : > { %9077 = vrot.lane.b32.xlu1 %v15077_v1, %s15179_s20  ;;  %v10357_v28 = vsel %vm15281_vm5, %v10352_v41, %v10356_v38  ;;  %v10367_v29 = vsel %vm15281_vm5, %v10362_v6, %v10366_v48  ;;  %v6128_v10 = vpop.permute.xlu1 %6127  ;;  %7897 = vst.msk [vmem:[#allocation3 + $0x68] sm:$0xf] %vm7870_vm15, %v7824_v12  ;;  %v9306_v37 = vrot.slane %v9304_v11, 5  ;;  %v9312_v17 = vrot.slane %v9310_v7, 5  ;;  %v15084_v38 = vld [vmem:[%s20718_s3 + $0x20] sm:$0xff]  }
 0x287   : > { %v14557_v42 = vcombine.low %v10357_v28, %v10367_v29  ;;  %6209 = vst.msk [vmem:[#allocation2 + $0xd8] sm:$0xff] %vm20744_vm13, %v6128_v10  ;;  %v9316_v13 = vrot.slane %v9314_v15, 4  ;;  %v9322_v30 = vrot.slane %v9320_v27, 5  ;;  %v7208_v50 = vadd.f32 %v17939_v2, %v18044_v19  ;;  %11175 = vmatpush1.bf16.msra.mxu1 %v15082_v39  ;;  %v9151_v29 = vld [vmem:[#allocation3 + $0x58] sm:$0xf] }
 0x288   : > { %v9307_v1 = vor.u32 %v9306_v37, %v9303_v51  ;;  %v7219_v5 = vadd.f32 %v17939_v2, %v18052_v18  ;;  %v14446_v3 = vrot.slane %v8651_v54, 9  ;;  %v8773_v48 = vrot.slane %v8652_v36, 5  ;;  %11176 = vmatprep.subr.bf16.mxu1 %v20797_v9  ;;  %v8106_v37 = vld [vmem:[#allocation3 + $0x48] sm:$0xf] }
 0x289   : > { %8899 = vrot.lane.b32.xlu0 %v14461_v47, %s15176_s15  ;;  %v9317_v16 = vor.u32 %v9316_v13, %v9312_v17  ;;  %v7422_v41 = vmax.f32 %v7208_v50, 0.0  ;;  %v8776_v6 = vrot.slane %v8653_v60, 5  ;;  %v7211_v19 = vadd.f32 %v17939_v2, %v18062_v34 }
 0x28a   : > { %v20798_v39 = vcombine.low %v18123_v46, %v18139_v8  ;;  %v6126_v11 = vpop.permute.xlu0 %6125  ;;  %v9308_v18 = vrot.slane %v9307_v1, 4  ;;  %v7425_v54 = vmax.f32 %v7219_v5, 0.0  ;;  %v8774_v7 = vsel %vm15227_vm2, %v14446_v3, %v8773_v48  ;;  %v6813_v12 = vpop.permute.xlu1 %6812  ;;  %v15086_v46 = vld [vmem:[%s20718_s3 + $0x28] sm:$0xff]   ;;  %v9152_v5 = vld [vmem:[#allocation3 + $0x5c] sm:$0x1] }
 0x28b   : > { %v8775_v36 = vrot.slane %v8773_v48, 4  ;;  %6208 = vst.msk [vmem:[#allocation2 + $0xd0] sm:$0xff] %vm20744_vm13, %v6126_v11  ;;  %v9318_v47 = vrot.slane %v9317_v16, 4  ;;  %v14789_v51 = vpack.c.bf16 %v7422_v41, %v7422_v41  ;;  %v7423_v2 = vmax.f32 %v7211_v19, 0.0  ;;  %11177 = vmatpush1.bf16.msra.mxu1 %v15084_v38  ;;  %v18205_v8 = vpop.f32.mrb[28].mxu0 }
 0x28c   : > { %9943 = vrot.lane.b32.xlu1 %v20798_v39, %s15181_s22  ;;  %6894 = vst.msk [vmem:[#allocation2 + $0xd8] sm:$0xff] %vm20743_vm14, %v6813_v12  ;;  %v9325_v34 = vshrl.u32 %v9150_v43, 16  ;;  %v9313_v15 = vsel %vm15281_vm5, %v9308_v18, %v9312_v17  ;;  %v14792_v27 = vpack.c.bf16 %v7425_v54, %v7425_v54  ;;  %v9328_v10 = vshll.u32 %v9150_v43, 16  ;;  %11178 = vmatprep.subr.bf16.mxu1 %v20797_v9  ;;  %v18212_v60 = vpop.f32.mrb[29].mxu0  ;;  %v15087_v18 = vld [vmem:[%s20718_s3 + $0x30] sm:$0xff]  }
 0x28d   : > { %v8777_v28 = vsel %vm15227_vm2, %v8775_v36, %v8776_v6  ;;  %v18214_v13 = vld [vmem:[#allocation3 + $0x68] sm:$0x1]  ;;  %v9323_v50 = vsel %vm15281_vm5, %v9318_v47, %v9322_v30  ;;  %v7822_v38 = vsel %vm17206_vm3, %v14789_v51, 0  ;;  %v14790_v1 = vpack.c.bf16 %v7423_v2, %v7423_v2  ;;  %v18220_v3 = vpop.f32.mrb[30].mxu0  ;;  %v8107_v6 = vld [vmem:[#allocation3 + $0x4c] sm:$0xf] }
 0x28e   : > { %v14462_v17 = vcombine.low %v8774_v7, %v8777_v28  ;;  %v14493_v43 = vcombine.low %v9313_v15, %v9323_v50  ;;  %7895 = vst.msk [vmem:[#allocation3 + $0x60] sm:$0xf] %vm7870_vm15, %v7822_v38  ;;  %v7825_v16 = vsel %vm17206_vm3, %v14792_v27, 0  ;;  %v6811_v41 = vpop.permute.xlu0 %6810  ;;  %v9327_v30 = vrot.slane %v9325_v34, 4  ;;  %v18234_v54 = vpop.f32.mrb[31].mxu0  ;;  %v15081_v51 = vld [vmem:[#allocation3 + $0x54] sm:$0xff]  }
 0x28f   : > { %7898 = vst.msk [vmem:[#allocation3 + $0x6c] sm:$0xf] %vm7870_vm15, %v7825_v16  ;;  %v7823_v19 = vsel %vm17370_vm7, %v14790_v1, 0  ;;  %v9330_v39 = vrot.slane %v9328_v10, 5  ;;  %v9338_v11 = vshrl.u32 %v9151_v29, 16  ;;  %11179 = vmatpush1.bf16.msra.mxu1 %v15086_v46  ;;  %v9344_v7 = vshll.u32 %v9152_v5, 16  ;;  %v8890_v28 = vpop.permute.xlu1 %8889 }
 0x290   : > { %10666 = vrot.lane.b32.xlu1 %v14557_v42, %s15182_s7  ;;  %6893 = vst.msk [vmem:[#allocation2 + $0xd0] sm:$0xff] %vm20743_vm14, %v6811_v41  ;;  %v9334_v42 = vshll.u32 %v9151_v29, 16  ;;  %9622 = vrot.lane.b32.xlu0 %v14493_v43, %s15178_s17  ;;  %vm8616_vm6 = vcmask 261248   ;;  %v8108_v36 = vld [vmem:[#allocation3 + $0x50] sm:$0x1]  ;;  %v8281_v12 = vshrl.u32 %v8106_v37, 16 }
 0x291   : > { %7896 = vst.msk [vmem:[#allocation3 + $0x64] sm:$0xf] %vm7870_vm15, %v7823_v19  ;;  %v8284_v47 = vshll.u32 %v8106_v37, 16  ;;  %11180 = vmatprep.subr.bf16.mxu1 %v20797_v9  ;;  %v9331_v2 = vor.u32 %v9330_v39, %v9327_v30  ;;  %v9340_v46 = vrot.slane %v9338_v11, 4  ;;  %v8290_v15 = vshll.u32 %v8107_v6, 16  ;;  %v15089_v41 = vld [vmem:[%s20718_s3 + $0x38] sm:$0xff]  }
 0x292   : > { %v9336_v34 = vrot.slane %v9334_v42, 5  ;;  %v9346_v27 = vrot.slane %v9344_v7, 5  ;;  %v8283_v29 = vrot.slane %v8281_v12, 4  ;;  %v8294_v50 = vshrl.u32 %v8107_v6, 16  ;;  %v9695_v38 = vld [vmem:[#allocation3 + $0x54] sm:$0xe] }
 0x293   : > { %v8286_v10 = vrot.slane %v8284_v47, 5  ;;  %v9332_v1 = vrot.slane %v9331_v2, 4  ;;  %v8292_v43 = vrot.slane %v8290_v15, 5  ;;  %v8300_v16 = vshll.u32 %v8108_v36, 16  ;;  %v9696_v37 = vld [vmem:[#allocation3 + $0x58] sm:$0xf]  ;;  %11181 = vmatpush1.bf16.msra.mxu1 %v15087_v18 }
 0x294   : > { %8901 = vrot.lane.b32.xlu1 %v14462_v17, %s15176_s15  ;;  %v9341_v5 = vor.u32 %v9340_v46, %v9336_v34  ;;  %10121 = vrot.lane.b32.xlu0 %v15081_v51, %s15180_s21  ;;  %v8569_v30 = vpop.permute.xlu0 %8568  ;;  %v8296_v19 = vrot.slane %v8294_v50, 4  ;;  %vm8937_vm14 = vcmask 392448   ;;  %vm9115_vm13 = vcmask 523648   ;;  %v9697_v39 = vld [vmem:[#allocation3 + $0x5c] sm:$0x1] }
 0x295   : > { %v8287_v17 = vor.u32 %v8286_v10, %v8283_v29  ;;  %11182 = vmatprep.subr.bf16.mxu1 %v20797_v9  ;;  %v18245_v6 = vld [vmem:[#allocation3 + $0x60] sm:$0xe]  ;;  %v9337_v42 = vsel %vm15281_vm5, %v9332_v1, %v9336_v34  ;;  %8617 = vst.msk [vmem:[#allocation4] sm:$0xff] %vm8616_vm6, %v8569_v30  ;;  %v8302_v18 = vrot.slane %v8300_v16, 5  ;;  %v6930_v7 = vld [vmem:[#allocation2 + $0xd8] sm:$0xff]  ;;  %vm9660_vm12 = vcmask 654848  }
 0x296   : > { %v9342_v11 = vrot.slane %v9341_v5, 4  ;;  %v8109_v36 = vld [vmem:[#allocation3 + $0x54] sm:$0xf]  ;;  %v18251_v47 = vld [vmem:[#allocation3 + $0x6c] sm:$0xe]  ;;  %v8297_v2 = vor.u32 %v8296_v19, %v8292_v43  ;;  %8938 = vst.msk [vmem:[#allocation4] sm:$0xff] %vm8937_vm14, %v8890_v28 }
 0x297   : > { %v8288_v51 = vrot.slane %v8287_v17, 4  ;;  %v6929_v46 = vld [vmem:[#allocation2 + $0xd0] sm:$0xff]  ;;  %vm9981_vm11 = vcmask 786048   ;;  %v8110_v15 = vld [vmem:[#allocation3 + $0x58] sm:$0xf]  ;;  %v14510_v50 = vrot.slane %v9695_v38, 9  ;;  %11183 = vmatpush1.bf16.msra.mxu1 %v15089_v41 }
 0x298   : > { %v18255_v29 = vld [vmem:[#allocation3 + $0x64] sm:$0xf]  ;;  %v9347_v10 = vsel %vm15281_vm5, %v9342_v11, %v9346_v27  ;;  %14931 = vmatprep.mubr.msk.bf16.mxu0 %vm20747_vm1, %v6929_v46  ;;  %v9817_v1 = vrot.slane %v9696_v37, 5  ;;  %v8298_v30 = vrot.slane %v8297_v2, 4  ;;  %v9613_v17 = vpop.permute.xlu1 %9612  ;;  %v9068_v19 = vpop.permute.xlu0 %9067  ;;  %11184 = vmatprep.subr.bf16.mxu1 %v20797_v9  ;;  %v9820_v41 = vrot.slane %v9697_v39, 5 }
 0x299   : > { %v15091_v5 = vld [vmem:[%s20718_s3 + $0x40] sm:$0xff]   ;;  %v20752_v28 = vrot.slane %v18255_v29, 5  ;;  %v14494_v16 = vcombine.low %v9337_v42, %v9347_v10  ;;  %14932 = vmatmul.mubr.msk.bf16.gmra.mrb[52].mxu0 %vm20747_vm1, %v6930_v7  ;;  %v8293_v27 = vsel %vm15281_vm5, %v8288_v51, %v8292_v43  ;;  %9116 = vst.msk [vmem:[#allocation4] sm:$0xff] %vm9115_vm13, %v9068_v19  ;;  %v8111_v11 = vld [vmem:[#allocation3 + $0x5c] sm:$0x1]  ;;  %vm10159_vm1 = vcmask 917248  }
 0x29a   : > { %v18271_v38 = vsel %vm15227_vm2, %v14510_v50, %v9817_v1  ;;  %v9819_v37 = vrot.slane %v9817_v1, 4  ;;  %v8303_v9 = vsel %vm15281_vm5, %v8298_v30, %v8302_v18  ;;  %9661 = vst.msk [vmem:[#allocation4] sm:$0xff] %vm9660_vm12, %v9613_v17  ;;  %v15090_v43 = vld [vmem:[#allocation3 + $0x60] sm:$0xff]   ;;  %v8305_v7 = vshrl.u32 %v8109_v36, 16  ;;  %v8656_v48 = vld [vmem:[#allocation3 + $0x5c] sm:$0x1] }
 0x29b   : > { %v18275_v42 = vrot.slane %v20752_v28, 4  ;;  %9624 = vrot.lane.b32.xlu1 %v14494_v16, %s15178_s17  ;;  %v14430_v51 = vcombine.low %v8293_v27, %v8303_v9  ;;  %11185 = vmatpush1.bf16.msra.mxu1 %v15091_v5  ;;  %v8308_v39 = vshll.u32 %v8109_v36, 16  ;;  %v8314_v46 = vshll.u32 %v8110_v15, 16  ;;  %v10194_v10 = vld [vmem:[#allocation3 + $0x60] sm:$0xf] }
 0x29c   : > { %v18283_v2 = vsel %vm15227_vm2, %v9819_v37, %v9820_v41  ;;  %v10112_v50 = vpop.permute.xlu1 %10111  ;;  %v9934_v1 = vpop.permute.xlu0 %9933  ;;  %vm10704_vm10 = vcmask 1048448   ;;  %v8307_v18 = vrot.slane %v8305_v7, 4  ;;  %v8318_v30 = vshrl.u32 %v8110_v15, 16  ;;  %v10195_v19 = vld [vmem:[#allocation3 + $0x64] sm:$0xf] }
 0x29d   : > { %v14526_v16 = vcombine.low %v18271_v38, %v18283_v2  ;;  %v8324_v17 = vshll.u32 %v8111_v11, 16  ;;  %v15110_v34 = vld [vmem:[#allocation3 + $0x60] sm:$0xff]   ;;  %8580 = vrot.lane.b32.xlu0 %v14430_v51, %s15177_s16  ;;  %9982 = vst.msk [vmem:[#allocation4] sm:$0xff] %vm9981_vm11, %v9934_v1  ;;  %v8310_v27 = vrot.slane %v8308_v39, 5  ;;  %v8316_v5 = vrot.slane %v8314_v46, 5 }
 0x29e   : > { %v20799_v36 = vrot.slane %v17637_v24, 5  ;;  %v20800_v37 = vrot.slane %v17703_v59, 9  ;;  %v20801_v38 = vrot.slane %v17696_v22, 5  ;;  %v10196_v11 = vld [vmem:[#allocation3 + $0x68] sm:$0x1]  ;;  %10160 = vst.msk [vmem:[#allocation4] sm:$0xff] %vm10159_vm1, %v10112_v50 }
 0x29f   : > { %10123 = vrot.lane.b32.xlu1 %v15090_v43, %s15180_s21  ;;  %v8320_v9 = vrot.slane %v8318_v30, 4  ;;  %v8326_v7 = vrot.slane %v8324_v17, 5  ;;  %v10369_v24 = vshrl.u32 %v10194_v10, 16  ;;  %8080 = vst.msk [vmem:[#allocation4 + $0x80] sm:$0xff] %vm8071_vm0, %v15110_v34  ;;  %v15085_v59 = vld [vmem:[#allocation3 + $0x54] sm:$0xff]   ;;  %v8311_v2 = vor.u32 %v8310_v27, %v8307_v18 }
 0x2a0   : > { %v10827_v41 = vsel %vm15227_vm2, %v20800_v37, %v20799_v36  ;;  %v10830_v15 = vsel %vm15227_vm2, %v17663_v21, %v20801_v38  ;;  %v10372_v39 = vshll.u32 %v10194_v10, 16  ;;  %v10378_v46 = vshll.u32 %v10195_v19, 16  ;;  %v18307_v43 = vld [vmem:[%s20717_s2] ss:$0 sm:$0xff]  ;;  %v9698_v30 = vld [vmem:[#allocation3 + $0x60] sm:$0xe] }
 0x2a1   : > { %v14585_v51 = vcombine.low %v10827_v41, %v10830_v15  ;;  %v10382_v22 = vshrl.u32 %v10195_v19, 16  ;;  %v8321_v1 = vor.u32 %v8320_v9, %v8316_v5  ;;  %v10371_v21 = vrot.slane %v10369_v24, 4  ;;  %v9699_v34 = vld [vmem:[#allocation3 + $0x64] sm:$0xf]  ;;  %9079 = vrot.lane.b32.xlu0 %v15085_v59, %s15179_s20 }
 0x2a2   : > { %v10388_v36 = vshll.u32 %v10196_v11, 16  ;;  %v7232_v50 = vadd.f32 %v18307_v43, %v18205_v8  ;;  %v8571_v10 = vpop.permute.xlu1 %8570  ;;  %v8312_v18 = vrot.slane %v8311_v2, 4  ;;  %v10374_v17 = vrot.slane %v10372_v39, 5  ;;  %v9700_v11 = vld [vmem:[#allocation3 + $0x68] sm:$0x1] }
 0x2a3   : > { %10994 = vst.msk [vmem:[#allocation4 + $0x18] sm:$0xff] %vm8071_vm0, %v14585_v51  ;;  %v10380_v19 = vrot.slane %v10378_v46, 5  ;;  %v10384_v27 = vrot.slane %v10382_v22, 4  ;;  %v8322_v37 = vrot.slane %v8321_v1, 4  ;;  %v7224_v15 = vadd.f32 %v18307_v43, %v18212_v60  ;;  %v8654_v22 = vld [vmem:[#allocation3 + $0x54] sm:$0xe] }
 0x2a4   : > { %8618 = vst.msk [vmem:[#allocation4 + $0x10] sm:$0xff] %vm8616_vm6, %v8571_v10  ;;  %v10390_v41 = vrot.slane %v10388_v36, 5  ;;  %v7428_v38 = vmax.f32 %v7232_v50, 0.0  ;;  %v8317_v8 = vsel %vm15281_vm5, %v8312_v18, %v8316_v5  ;;  %v10375_v9 = vor.u32 %v10374_v17, %v10371_v21  ;;  %v8655_v1 = vld [vmem:[#allocation3 + $0x58] sm:$0xf] }
 0x2a5   : > { %v10385_v51 = vor.u32 %v10384_v27, %v10380_v19  ;;  %v14511_v24 = vrot.slane %v9698_v30, 9  ;;  %v8327_v59 = vsel %vm15281_vm5, %v8322_v37, %v8326_v7  ;;  %v7426_v39 = vmax.f32 %v7224_v15, 0.0  ;;  %9945 = vrot.lane.b32.xlu0 %v14526_v16, %s15181_s22  ;;  %v9153_v18 = vld [vmem:[#allocation3 + $0x60] sm:$0xf] }
 0x2a6   : > { %v14795_v2 = vpack.c.bf16 %v7428_v38, %v7428_v38  ;;  %v9824_v46 = vrot.slane %v9699_v34, 5  ;;  %v14431_v36 = vcombine.low %v8317_v8, %v8327_v59  ;;  %v10376_v50 = vrot.slane %v10375_v9, 4  ;;  %v10657_v12 = vpop.permute.xlu0 %10656  ;;  %v9070_v8 = vpop.permute.xlu1 %9069 }
 0x2a7   : > { %v10386_v60 = vrot.slane %v10385_v51, 4  ;;  %v9827_v10 = vrot.slane %v9700_v11, 5  ;;  %v14793_v21 = vpack.c.bf16 %v7426_v39, %v7426_v39  ;;  %10705 = vst.msk [vmem:[#allocation4] sm:$0xff] %vm10704_vm10, %v10657_v12  ;;  %v7235_v17 = vadd.f32 %v18307_v43, %v18220_v3  ;;  %v9154_v11 = vld [vmem:[#allocation3 + $0x64] sm:$0xf] }
 0x2a8   : > { %v7828_v5 = vsel %vm17206_vm3, %v14795_v2, 0  ;;  %v9825_v7 = vsel %vm15227_vm2, %v14511_v24, %v9824_v46  ;;  %v9826_v30 = vrot.slane %v9824_v46, 4  ;;  %8582 = vrot.lane.b32.xlu1 %v14431_v36, %s15177_s16  ;;  %v10381_v16 = vsel %vm15281_vm5, %v10376_v50, %v10380_v19  ;;  %v15092_v19 = vld [vmem:[#allocation3 + $0x60] sm:$0xff]   ;;  %v9155_v24 = vld [vmem:[#allocation3 + $0x68] sm:$0x1] }
 0x2a9   : > { %v10391_v34 = vsel %vm15281_vm5, %v10386_v60, %v10390_v41  ;;  %7901 = vst.msk [vmem:[#allocation3 + $0x78] sm:$0xf] %vm7870_vm15, %v7828_v5  ;;  %v14447_v27 = vrot.slane %v8654_v22, 9  ;;  %v7826_v38 = vsel %vm17370_vm7, %v14793_v21, 0  ;;  %v8780_v15 = vrot.slane %v8655_v1, 5  ;;  %v18345_v60 = vpop.f32.mrb[32].mxu0 }
 0x2aa   : > { %v14558_v37 = vcombine.low %v10381_v16, %v10391_v34  ;;  %v9828_v12 = vsel %vm15227_vm2, %v9826_v30, %v9827_v10  ;;  %7899 = vst.msk [vmem:[#allocation3 + $0x70] sm:$0xf] %vm7870_vm15, %v7826_v38  ;;  %v7429_v9 = vmax.f32 %v7235_v17, 0.0  ;;  %v8783_v51 = vrot.slane %v8656_v48, 5  ;;  %v8892_v59 = vpop.permute.xlu0 %8891  ;;  %v18350_v30 = vpop.f32.mrb[33].mxu0 }
 0x2ab   : > { %v14527_v41 = vcombine.low %v9825_v7, %v9828_v12  ;;  %v7227_v3 = vadd.f32 %v18307_v43, %v18234_v54  ;;  %v8781_v2 = vsel %vm15227_vm2, %v14447_v27, %v8780_v15  ;;  %v8782_v39 = vrot.slane %v8780_v15, 4  ;;  %8939 = vst.msk [vmem:[#allocation4 + $0x10] sm:$0xff] %vm8937_vm14, %v8892_v59  ;;  %v8112_v7 = vld [vmem:[#allocation3 + $0x60] sm:$0xf]  ;;  %v8113_v27 = vld [vmem:[#allocation3 + $0x64] sm:$0xf]  ;;  %v9936_v59 = vpop.permute.xlu1 %9935 }
 0x2ac   : > { %10668 = vrot.lane.b32.xlu0 %v14558_v37, %s15182_s7  ;;  %v9349_v46 = vshrl.u32 %v9153_v18, 16  ;;  %v9352_v22 = vshll.u32 %v9153_v18, 16  ;;  %9081 = vrot.lane.b32.xlu1 %v15092_v19, %s15179_s20  ;;  %v14796_v1 = vpack.c.bf16 %v7429_v9, %v7429_v9  ;;  %v9358_v48 = vshll.u32 %v9154_v11, 16  ;;  %9117 = vst.msk [vmem:[#allocation4 + $0x10] sm:$0xff] %vm9115_vm13, %v9070_v8  ;;  %v8114_v37 = vld [vmem:[#allocation3 + $0x68] sm:$0x1] }
 0x2ad   : > { %v7427_v36 = vmax.f32 %v7227_v3, 0.0  ;;  %v9362_v50 = vshrl.u32 %v9154_v11, 16  ;;  %v8784_v54 = vsel %vm15227_vm2, %v8782_v39, %v8783_v51  ;;  %v9368_v21 = vshll.u32 %v9155_v24, 16  ;;  %v18354_v38 = vpop.f32.mrb[34].mxu0 }
 0x2ae   : > { %v9351_v10 = vrot.slane %v9349_v46, 4  ;;  %v9354_v5 = vrot.slane %v9352_v22, 5  ;;  %v7829_v18 = vsel %vm17370_vm7, %v14796_v1, 0  ;;  %v14463_v16 = vcombine.low %v8781_v2, %v8784_v54  ;;  %v11009_v12 = vld [vmem:[#allocation4] sm:$0xff]  ;;  %v18365_v24 = vpop.f32.mrb[35].mxu0  ;;  %v11012_v2 = vld [vmem:[#allocation4 + $0x18] sm:$0xff] }
 0x2af   : > { %v14794_v34 = vpack.c.bf16 %v7427_v36, %v7427_v36  ;;  %v9360_v17 = vrot.slane %v9358_v48, 5  ;;  %7902 = vst.msk [vmem:[#allocation3 + $0x7c] sm:$0xf] %vm7870_vm15, %v7829_v18  ;;  %v9364_v8 = vrot.slane %v9362_v50, 4  ;;  %v9370_v19 = vrot.slane %v9368_v21, 5  ;;  %11201 = vmatmul.mubr.bf16.vlgmr.msra.gmra.mrb[0].mxu1 %v11009_v12 }
 0x2b0   : > { %v18356_v15 = vld [vmem:[#allocation3 + $0x78] sm:$0xe]  ;;  %v9355_v11 = vor.u32 %v9354_v5, %v9351_v10  ;;  %v20802_v9 = vrot.slane %v17866_v45, 5  ;;  %v20803_v51 = vrot.slane %v17842_v32, 9  ;;  %9947 = vrot.lane.b32.xlu1 %v14527_v41, %s15181_s22  ;;  %v20804_v22 = vrot.slane %v17836_v14, 5  ;;  %v9615_v1 = vpop.permute.xlu0 %9614  ;;  %14611 = vmatprep.mubr.msk.bf16.mxu1 %vm8071_vm0, %v11012_v2 }
 0x2b1   : > { %v7827_v46 = vsel %vm17432_vm9, %v14794_v34, 0  ;;  %v8329_v45 = vshrl.u32 %v8112_v7, 16  ;;  %v18377_v36 = vld [vmem:[#allocation3 + $0x70] sm:$0xf]  ;;  %8903 = vrot.lane.b32.xlu0 %v14463_v16, %s15176_s15  ;;  %v9365_v48 = vor.u32 %v9364_v8, %v9360_v17  ;;  %v20805_v54 = vrot.slane %v17991_v23, 5  ;;  %9662 = vst.msk [vmem:[#allocation4 + $0x10] sm:$0xff] %vm9660_vm12, %v9615_v1 }
 0x2b2   : > { %v10834_v3 = vsel %vm15227_vm2, %v20803_v51, %v20802_v9  ;;  %v10837_v32 = vsel %vm15227_vm2, %v17879_v56, %v20804_v22  ;;  %7900 = vst.msk [vmem:[#allocation3 + $0x74] sm:$0xf] %vm7870_vm15, %v7827_v46  ;;  %v9356_v41 = vrot.slane %v9355_v11, 4  ;;  %v20806_v14 = vrot.slane %v17864_v63, 9  ;;  %v10197_v12 = vld [vmem:[#allocation3 + $0x6c] sm:$0xf] }
 0x2b3   : > { %v14586_v50 = vcombine.low %v10834_v3, %v10837_v32  ;;  %v20750_v10 = vrot.slane %v18377_v36, 5  ;;  %v8331_v5 = vrot.slane %v8329_v45, 4  ;;  %v8332_v21 = vshll.u32 %v8112_v7, 16  ;;  %9983 = vst.msk [vmem:[#allocation4 + $0x10] sm:$0xff] %vm9981_vm11, %v9936_v59  ;;  %v10198_v3 = vld [vmem:[#allocation3 + $0x70] sm:$0xf] }
 0x2b4   : > { %v10841_v56 = vsel %vm15227_vm2, %v20806_v14, %v20805_v54  ;;  %v8338_v18 = vshll.u32 %v8113_v27, 16  ;;  %v9361_v16 = vsel %vm15281_vm5, %v9356_v41, %v9360_v17  ;;  %v9366_v34 = vrot.slane %v9365_v48, 4  ;;  %v10114_v17 = vpop.permute.xlu0 %10113  ;;  %v10659_v46 = vpop.permute.xlu1 %10658  ;;  %v9701_v41 = vld [vmem:[#allocation3 + $0x6c] sm:$0xe]  ;;  %v9702_v48 = vld [vmem:[#allocation3 + $0x70] sm:$0xf] }
 0x2b5   : > { %10995 = vst.msk [vmem:[#allocation4 + $0x28] sm:$0xff] %vm8071_vm0, %v14586_v50  ;;  %v8342_v23 = vshrl.u32 %v8113_v27, 16  ;;  %v8348_v63 = vshll.u32 %v8114_v37, 16  ;;  %v18395_v11 = vrot.slane %v20750_v10, 4  ;;  %v8334_v8 = vrot.slane %v8332_v21, 5  ;;  %v15095_v50 = vld [vmem:[#allocation3 + $0x6c] sm:$0xff]  }
 0x2b6   : > { %v8340_v9 = vrot.slane %v8338_v18, 5  ;;  %v20807_v7 = vrot.slane %v18019_v57, 5  ;;  %v9371_v59 = vsel %vm15281_vm5, %v9366_v34, %v9370_v19  ;;  %10161 = vst.msk [vmem:[#allocation4 + $0x10] sm:$0xff] %vm10159_vm1, %v10114_v17  ;;  %v18405_v22 = vld [vmem:[#allocation3 + $0x7c] sm:$0xf]  ;;  %v10393_v57 = vshrl.u32 %v10197_v12, 16 }
 0x2b7   : > { %v8344_v27 = vrot.slane %v8342_v23, 4  ;;  %v8350_v37 = vrot.slane %v8348_v63, 5  ;;  %v14495_v32 = vcombine.low %v9361_v16, %v9371_v59  ;;  %v8335_v45 = vor.u32 %v8334_v8, %v8331_v5  ;;  %10706 = vst.msk [vmem:[#allocation4 + $0x10] sm:$0xff] %vm10704_vm10, %v10659_v46  ;;  %v15112_v10 = vld [vmem:[#allocation3 + $0x6c] sm:$0xff]  }
 0x2b8   : > { %v10844_v51 = vsel %vm15227_vm2, %v18008_v55, %v20807_v7  ;;  %v10396_v1 = vshll.u32 %v10197_v12, 16  ;;  %v20749_v55 = vrot.slane %v18405_v22, 5  ;;  %v10402_v54 = vshll.u32 %v10198_v3, 16  ;;  %8081 = vst.msk [vmem:[#allocation4 + $0x90] sm:$0xff] %vm8071_vm0, %v15112_v10 }
 0x2b9   : > { %v14587_v2 = vcombine.low %v10841_v56, %v10844_v51  ;;  %v8345_v19 = vor.u32 %v8344_v27, %v8340_v9  ;;  %v10406_v14 = vshrl.u32 %v10198_v3, 16  ;;  %v18410_v56 = vld [vmem:[#allocation3 + $0x74] sm:$0x1]  ;;  %9626 = vrot.lane.b32.xlu0 %v14495_v32, %s15178_s17  ;;  %v8336_v21 = vrot.slane %v8335_v45, 4  ;;  %v8659_v51 = vld [vmem:[#allocation3 + $0x68] sm:$0x1]  ;;  %v8894_v3 = vpop.permute.xlu1 %8893 }
 0x2ba   : > { %v10199_v5 = vld [vmem:[#allocation3 + $0x74] sm:$0x1]  ;;  %v10395_v18 = vrot.slane %v10393_v57, 4  ;;  %v7248_v16 = vadd.f32 %v18307_v43, %v18345_v60  ;;  %v7240_v34 = vadd.f32 %v18307_v43, %v18350_v30  ;;  %v18419_v23 = vrot.slane %v20749_v55, 4  ;;  %v8658_v57 = vld [vmem:[#allocation3 + $0x64] sm:$0xf] }
 0x2bb   : > { %10996 = vst.msk [vmem:[#allocation4 + $0x38] sm:$0xff] %vm8071_vm0, %v14587_v2  ;;  %v8346_v12 = vrot.slane %v8345_v19, 4  ;;  %v10398_v8 = vrot.slane %v10396_v1, 5  ;;  %v9703_v7 = vld [vmem:[#allocation3 + $0x74] sm:$0x1]  ;;  %v8341_v17 = vsel %vm15281_vm5, %v8336_v21, %v8340_v9  ;;  %v10404_v59 = vrot.slane %v10402_v54, 5  ;;  %v8573_v39 = vpop.permute.xlu0 %8572 }
 0x2bc   : > { %v10408_v27 = vrot.slane %v10406_v14, 4  ;;  %v10412_v60 = vshll.u32 %v10199_v5, 16  ;;  %v8657_v2 = vld [vmem:[#allocation3 + $0x60] sm:$0xe]  ;;  %v14512_v32 = vrot.slane %v9701_v41, 9  ;;  %v9831_v45 = vrot.slane %v9702_v48, 5 }
 0x2bd   : > { %v8351_v30 = vsel %vm15281_vm5, %v8346_v12, %v8350_v37  ;;  %v10399_v46 = vor.u32 %v10398_v8, %v10395_v18  ;;  %10125 = vrot.lane.b32.xlu0 %v15095_v50, %s15180_s21  ;;  %v9834_v63 = vrot.slane %v9703_v7, 5  ;;  %8619 = vst.msk [vmem:[#allocation4 + $0x20] sm:$0xff] %vm8616_vm6, %v8573_v39  ;;  %v7432_v14 = vmax.f32 %v7248_v16, 0.0  ;;  %v15116_v41 = vld [vmem:[#allocation3 + $0x78] sm:$0xff]   ;;  %v11014_v12 = vld [vmem:[#allocation4 + $0x28] sm:$0xff] }
 0x2be   : > { %v14432_v1 = vcombine.low %v8341_v17, %v8351_v30  ;;  %v10409_v19 = vor.u32 %v10408_v27, %v10404_v59  ;;  %v10414_v55 = vrot.slane %v10412_v60, 5  ;;  %v18430_v54 = vsel %vm15227_vm2, %v14512_v32, %v9831_v45  ;;  %8940 = vst.msk [vmem:[#allocation4 + $0x20] sm:$0xff] %vm8937_vm14, %v8894_v3  ;;  %v11011_v48 = vld [vmem:[#allocation4 + $0x10] sm:$0xff]  ;;  %v9156_v17 = vld [vmem:[#allocation3 + $0x6c] sm:$0xf] }
 0x2bf   : > { %v10400_v9 = vrot.slane %v10399_v46, 4  ;;  %v9833_v37 = vrot.slane %v9831_v45, 4  ;;  %v14448_v50 = vrot.slane %v8657_v2, 9  ;;  %v8787_v5 = vrot.slane %v8658_v57, 5  ;;  %11209 = vmatmul.mubr.bf16.gmra.mrb[4].mxu1 %v11011_v48  ;;  %8082 = vst.msk [vmem:[#allocation4 + $0xa0] sm:$0xff] %vm8071_vm0, %v15116_v41  ;;  %v9617_v3 = vpop.permute.xlu1 %9616  ;;  %v9072_v27 = vpop.permute.xlu0 %9071 }
 0x2c0   : > { %v10410_v21 = vrot.slane %v10409_v19, 4  ;;  %v8790_v18 = vrot.slane %v8659_v51, 5  ;;  %v14799_v7 = vpack.c.bf16 %v7432_v14, %v7432_v14  ;;  %v7430_v16 = vmax.f32 %v7240_v34, 0.0  ;;  %14612 = vmatprep.mubr.msk.bf16.mxu1 %vm8071_vm0, %v11014_v12  ;;  %v9157_v60 = vld [vmem:[#allocation3 + $0x70] sm:$0xf]  ;;  %9118 = vst.msk [vmem:[#allocation4 + $0x20] sm:$0xff] %vm9115_vm13, %v9072_v27 }
 0x2c1   : > { %v10405_v39 = vsel %vm15281_vm5, %v10400_v9, %v10404_v59  ;;  %v9835_v8 = vsel %vm15227_vm2, %v9833_v37, %v9834_v63  ;;  %8584 = vrot.lane.b32.xlu0 %v14432_v1, %s15177_s16  ;;  %v8788_v59 = vsel %vm15227_vm2, %v14448_v50, %v8787_v5  ;;  %v8789_v63 = vrot.slane %v8787_v5, 4  ;;  %v8115_v32 = vld [vmem:[#allocation3 + $0x6c] sm:$0xf]  ;;  %9663 = vst.msk [vmem:[#allocation4 + $0x20] sm:$0xff] %vm9660_vm12, %v9617_v3  ;;  %v9158_v1 = vld [vmem:[#allocation3 + $0x74] sm:$0x1] }
 0x2c2   : > { %v10415_v10 = vsel %vm15281_vm5, %v10410_v21, %v10414_v55  ;;  %v14528_v51 = vcombine.low %v18430_v54, %v9835_v8  ;;  %v7832_v2 = vsel %vm17370_vm7, %v14799_v7, 0  ;;  %v14797_v30 = vpack.c.bf16 %v7430_v16, %v7430_v16  ;;  %v15096_v55 = vld [vmem:[#allocation3 + $0x6c] sm:$0xff]   ;;  %v8117_v12 = vld [vmem:[#allocation3 + $0x74] sm:$0x1] }
 0x2c3   : > { %v14559_v34 = vcombine.low %v10405_v39, %v10415_v10  ;;  %v7251_v46 = vadd.f32 %v18307_v43, %v18354_v38  ;;  %7905 = vst.msk [vmem:[#allocation3 + $0x88] sm:$0xf] %vm7870_vm15, %v7832_v2  ;;  %v8791_v45 = vsel %vm15227_vm2, %v8789_v63, %v8790_v18  ;;  %v7243_v57 = vadd.f32 %v18307_v43, %v18365_v24  ;;  %v8116_v41 = vld [vmem:[#allocation3 + $0x70] sm:$0xf]  ;;  %v10116_v48 = vpop.permute.xlu1 %10115  ;;  %v9938_v21 = vpop.permute.xlu0 %9937  ;;  %v18462_v39 = vld [vmem:[#allocation3 + $0x78] sm:$0xe] }
 0x2c4   : > { %v9373_v19 = vshrl.u32 %v9156_v17, 16  ;;  %v9376_v9 = vshll.u32 %v9156_v17, 16  ;;  %v14464_v54 = vcombine.low %v8788_v59, %v8791_v45  ;;  %v7830_v38 = vsel %vm17432_vm9, %v14797_v30, 0  ;;  %9984 = vst.msk [vmem:[#allocation4 + $0x20] sm:$0xff] %vm9981_vm11, %v9938_v21 }
 0x2c5   : > { %10670 = vrot.lane.b32.xlu1 %v14559_v34, %s15182_s7  ;;  %v7433_v37 = vmax.f32 %v7251_v46, 0.0  ;;  %v9382_v14 = vshll.u32 %v9157_v60, 16  ;;  %9083 = vrot.lane.b32.xlu0 %v15096_v55, %s15179_s20  ;;  %7903 = vst.msk [vmem:[#allocation3 + $0x80] sm:$0xf] %vm7870_vm15, %v7830_v38  ;;  %v7431_v50 = vmax.f32 %v7243_v57, 0.0  ;;  %v9386_v18 = vshrl.u32 %v9157_v60, 16 }
 0x2c6   : > { %v9375_v24 = vrot.slane %v9373_v19, 4  ;;  %v9378_v5 = vrot.slane %v9376_v9, 5  ;;  %v9392_v16 = vshll.u32 %v9158_v1, 16  ;;  %v8353_v17 = vshrl.u32 %v8115_v32, 16  ;;  %10162 = vst.msk [vmem:[#allocation4 + $0x20] sm:$0xff] %vm10159_vm1, %v10116_v48 }
 0x2c7   : > { %v14800_v8 = vpack.c.bf16 %v7433_v37, %v7433_v37  ;;  %v9384_v7 = vrot.slane %v9382_v14, 5  ;;  %v14798_v3 = vpack.c.bf16 %v7431_v50, %v7431_v50  ;;  %v9388_v10 = vrot.slane %v9386_v18, 4  ;;  %v8575_v30 = vpop.permute.xlu1 %8574  ;;  %v10200_v38 = vld [vmem:[#allocation3 + $0x78] sm:$0xf] }
 0x2c8   : > { %v9379_v27 = vor.u32 %v9378_v5, %v9375_v24  ;;  %v8356_v59 = vshll.u32 %v8115_v32, 16  ;;  %v9394_v60 = vrot.slane %v9392_v16, 5  ;;  %v8355_v34 = vrot.slane %v8353_v17, 4  ;;  %v9705_v32 = vld [vmem:[#allocation3 + $0x7c] sm:$0xf]  ;;  %8620 = vst.msk [vmem:[#allocation4 + $0x30] sm:$0xff] %vm8616_vm6, %v8575_v30 }
 0x2c9   : > { %8905 = vrot.lane.b32.xlu1 %v14464_v54, %s15176_s15  ;;  %v7833_v63 = vsel %vm17432_vm9, %v14800_v8, 0  ;;  %v8362_v2 = vshll.u32 %v8116_v41, 16  ;;  %9949 = vrot.lane.b32.xlu0 %v14528_v51, %s15181_s22  ;;  %v7831_v46 = vsel %vm17206_vm3, %v14798_v3, 0  ;;  %v9389_v45 = vor.u32 %v9388_v10, %v9384_v7  ;;  %v10661_v37 = vpop.permute.xlu0 %10660  ;;  %v10201_v24 = vld [vmem:[#allocation3 + $0x7c] sm:$0xf] }
 0x2ca   : > { %7906 = vst.msk [vmem:[#allocation3 + $0x8c] sm:$0xf] %vm7870_vm15, %v7833_v63  ;;  %v9380_v55 = vrot.slane %v9379_v27, 4  ;;  %v8358_v57 = vrot.slane %v8356_v59, 5  ;;  %v18474_v1 = vld [vmem:[#allocation3 + $0x88] sm:$0xf] }
 0x2cb   : > { %7904 = vst.msk [vmem:[#allocation3 + $0x84] sm:$0xf] %vm7870_vm15, %v7831_v46  ;;  %v8364_v19 = vrot.slane %v8362_v2, 5  ;;  %v8366_v9 = vshrl.u32 %v8116_v41, 16  ;;  %v8372_v54 = vshll.u32 %v8117_v12, 16  ;;  %v14513_v51 = vrot.slane %v18462_v39, 9 }
 0x2cc   : > { %v20751_v14 = vrot.slane %v18474_v1, 5  ;;  %v9385_v48 = vsel %vm15281_vm5, %v9380_v55, %v9384_v7  ;;  %v9390_v21 = vrot.slane %v9389_v45, 4  ;;  %v8359_v50 = vor.u32 %v8358_v57, %v8355_v34  ;;  %10707 = vst.msk [vmem:[#allocation4 + $0x20] sm:$0xff] %vm10704_vm10, %v10661_v37  ;;  %v18482_v5 = vld [vmem:[#allocation3 + $0x80] sm:$0x1] }
 0x2cd   : > { %v8368_v18 = vrot.slane %v8366_v9, 4  ;;  %v8374_v8 = vrot.slane %v8372_v54, 5  ;;  %v9706_v41 = vld [vmem:[#allocation3 + $0x80] sm:$0x1]  ;;  %v20808_v12 = vrot.slane %v18002_v44, 5  ;;  %v20809_v39 = vrot.slane %v17983_v61, 9  ;;  %v9074_v9 = vpop.permute.xlu1 %9073 }
 0x2ce   : > { %v20810_v7 = vrot.slane %v18108_v4, 5  ;;  %v18501_v3 = vrot.slane %v20751_v14, 4  ;;  %v9395_v61 = vsel %vm15281_vm5, %v9390_v21, %v9394_v60  ;;  %v8360_v44 = vrot.slane %v8359_v50, 4  ;;  %v8896_v4 = vpop.permute.xlu0 %8895  ;;  %v8660_v45 = vld [vmem:[#allocation3 + $0x6c] sm:$0xe]  ;;  %v15097_v60 = vld [vmem:[#allocation3 + $0x78] sm:$0xff]  }
 0x2cf   : > { %v18490_v16 = vsel %vm15227_vm2, %v20809_v39, %v20808_v12  ;;  %v14496_v10 = vcombine.low %v9385_v48, %v9395_v61  ;;  %v8369_v59 = vor.u32 %v8368_v18, %v8364_v19  ;;  %v9838_v63 = vrot.slane %v9705_v32, 5  ;;  %v8661_v57 = vld [vmem:[#allocation3 + $0x70] sm:$0xf]  ;;  %8941 = vst.msk [vmem:[#allocation4 + $0x30] sm:$0xff] %vm8937_vm14, %v8896_v4  ;;  %v8662_v21 = vld [vmem:[#allocation3 + $0x74] sm:$0x1] }
 0x2d0   : > { %v18497_v17 = vsel %vm15227_vm2, %v18014_v25, %v20810_v7  ;;  %v9841_v34 = vrot.slane %v9706_v41, 5  ;;  %v8365_v2 = vsel %vm15281_vm5, %v8360_v44, %v8364_v19  ;;  %v10202_v25 = vld [vmem:[#allocation3 + $0x80] sm:$0x1]  ;;  %v10417_v30 = vshrl.u32 %v10200_v38, 16  ;;  %9119 = vst.msk [vmem:[#allocation4 + $0x30] sm:$0xff] %vm9115_vm13, %v9074_v9  ;;  %v11016_v9 = vld [vmem:[#allocation4 + $0x38] sm:$0xff] }
 0x2d1   : > { %v10420_v46 = vshll.u32 %v10200_v38, 16  ;;  %v10426_v55 = vshll.u32 %v10201_v24, 16  ;;  %v18509_v54 = vld [vmem:[#allocation3 + $0x8c] sm:$0x1]  ;;  %9628 = vrot.lane.b32.xlu1 %v14496_v10, %s15178_s17  ;;  %v8370_v32 = vrot.slane %v8369_v59, 4  ;;  %v18514_v37 = vsel %vm15227_vm2, %v14513_v51, %v9838_v63  ;;  %v14917_v38 = vpop.f32.mrb[36].mxu0  ;;  %v9940_v7 = vpop.permute.xlu1 %9939 }
 0x2d2   : > { %v9840_v19 = vrot.slane %v9838_v63, 4  ;;  %v10430_v48 = vshrl.u32 %v10201_v24, 16  ;;  %v18518_v18 = vld [vmem:[#allocation3 + $0x84] sm:$0xe]  ;;  %v10419_v41 = vrot.slane %v10417_v30, 4  ;;  %v15099_v14 = vld [vmem:[#allocation3 + $0x78] sm:$0xff]  }
 0x2d3   : > { %v10422_v12 = vrot.slane %v10420_v46, 5  ;;  %v10428_v39 = vrot.slane %v10426_v55, 5  ;;  %v8375_v61 = vsel %vm15281_vm5, %v8370_v32, %v8374_v8  ;;  %v10203_v44 = vld [vmem:[#allocation3 + $0x84] sm:$0xf]  ;;  %v10204_v10 = vld [vmem:[#allocation3 + $0x88] sm:$0xf] }
 0x2d4   : > { %v18525_v51 = vsel %vm15227_vm2, %v9840_v19, %v9841_v34  ;;  %v10432_v24 = vrot.slane %v10430_v48, 4  ;;  %v11013_v59 = vld [vmem:[#allocation4 + $0x20] sm:$0xff]  ;;  %v14433_v63 = vcombine.low %v8365_v2, %v8375_v61  ;;  %v10436_v46 = vshll.u32 %v10202_v25, 16  ;;  %v18529_v55 = vpop.f32.mrb[37].mxu0  ;;  %v10205_v48 = vld [vmem:[#allocation3 + $0x8c] sm:$0x1] }
 0x2d5   : > { %v10423_v30 = vor.u32 %v10422_v12, %v10419_v41  ;;  %11217 = vmatmul.mubr.bf16.gmra.mrb[8].mxu1 %v11013_v59  ;;  %10127 = vrot.lane.b32.xlu1 %v15097_v60, %s15180_s21  ;;  %v14588_v34 = vcombine.low %v18490_v16, %v18497_v17  ;;  %v14449_v32 = vrot.slane %v8660_v45, 9  ;;  %v8794_v19 = vrot.slane %v8661_v57, 5  ;;  %v18534_v50 = vpop.f32.mrb[38].mxu0  ;;  %v9159_v45 = vld [vmem:[#allocation3 + $0x78] sm:$0xf]  ;;  %v9619_v57 = vpop.permute.xlu0 %9618 }
 0x2d6   : > { %v10433_v8 = vor.u32 %v10432_v24, %v10428_v39  ;;  %14613 = vmatprep.mubr.msk.bf16.mxu1 %vm8071_vm0, %v11016_v9  ;;  %v10438_v41 = vrot.slane %v10436_v46, 5  ;;  %v8797_v25 = vrot.slane %v8662_v21, 5  ;;  %v10441_v12 = vshrl.u32 %v10203_v44, 16  ;;  %v18537_v61 = vpop.f32.mrb[39].mxu0  ;;  %v9160_v21 = vld [vmem:[#allocation3 + $0x7c] sm:$0xf] }
 0x2d7   : > { %v10424_v2 = vrot.slane %v10423_v30, 4  ;;  %10997 = vst.msk [vmem:[#allocation4 + $0x48] sm:$0xff] %vm8071_vm0, %v14588_v34  ;;  %v8795_v60 = vsel %vm15227_vm2, %v14449_v32, %v8794_v19  ;;  %v8796_v16 = vrot.slane %v8794_v19, 4  ;;  %v10444_v17 = vshll.u32 %v10203_v44, 16 }
 0x2d8   : > { %v10434_v59 = vrot.slane %v10433_v8, 4  ;;  %v10443_v9 = vrot.slane %v10441_v12, 4  ;;  %v10450_v30 = vshll.u32 %v10204_v10, 16  ;;  %v10454_v46 = vshrl.u32 %v10204_v10, 16  ;;  %9664 = vst.msk [vmem:[#allocation4 + $0x30] sm:$0xff] %vm9660_vm12, %v9619_v57 }
 0x2d9   : > { %v10429_v24 = vsel %vm15281_vm5, %v10424_v2, %v10428_v39  ;;  %8586 = vrot.lane.b32.xlu1 %v14433_v63, %s15177_s16  ;;  %v8798_v44 = vsel %vm15227_vm2, %v8796_v16, %v8797_v25  ;;  %v10446_v34 = vrot.slane %v10444_v17, 5  ;;  %v10460_v32 = vshll.u32 %v10205_v48, 16  ;;  %9985 = vst.msk [vmem:[#allocation4 + $0x30] sm:$0xff] %vm9981_vm11, %v9940_v7  ;;  %v9161_v12 = vld [vmem:[#allocation3 + $0x80] sm:$0x1]  ;;  %v10118_v4 = vpop.permute.xlu0 %10117 }
 0x2da   : > { %v10439_v8 = vsel %vm15281_vm5, %v10434_v59, %v10438_v41  ;;  %v14465_v19 = vcombine.low %v8795_v60, %v8798_v44  ;;  %v10452_v2 = vrot.slane %v10450_v30, 5  ;;  %v10456_v10 = vrot.slane %v10454_v46, 4  ;;  %10163 = vst.msk [vmem:[#allocation4 + $0x30] sm:$0xff] %vm10159_vm1, %v10118_v4 }
 0x2db   : > { %v14560_v39 = vcombine.low %v10429_v24, %v10439_v8  ;;  %v10447_v27 = vor.u32 %v10446_v34, %v10443_v9  ;;  %v10462_v57 = vrot.slane %v10460_v32, 5  ;;  %v7264_v63 = vadd.f32 %v18307_v43, %v14917_v38  ;;  %v8663_v24 = vld [vmem:[#allocation3 + $0x78] sm:$0xe]  ;;  %v15118_v8 = vld [vmem:[#allocation3 + $0x84] sm:$0xff]  }
 0x2dc   : > { %v9397_v28 = vshrl.u32 %v9159_v45, 16  ;;  %v10457_v41 = vor.u32 %v10456_v10, %v10452_v2  ;;  %v9400_v25 = vshll.u32 %v9159_v45, 16  ;;  %v9406_v59 = vshll.u32 %v9160_v21, 16  ;;  %8083 = vst.msk [vmem:[#allocation4 + $0xb0] sm:$0xff] %vm8071_vm0, %v15118_v8 }
 0x2dd   : > { %10672 = vrot.lane.b32.xlu0 %v14560_v39, %s15182_s7  ;;  %v9410_v48 = vshrl.u32 %v9160_v21, 16  ;;  %9085 = vrot.lane.b32.xlu1 %v15099_v14, %s15179_s20  ;;  %v10448_v7 = vrot.slane %v10447_v27, 4  ;;  %v7436_v60 = vmax.f32 %v7264_v63, 0.0  ;;  %v9416_v17 = vshll.u32 %v9161_v12, 16  ;;  %v8664_v21 = vld [vmem:[#allocation3 + $0x7c] sm:$0xf]  ;;  %v8577_v27 = vpop.permute.xlu0 %8576 }
 0x2de   : > { %v9399_v16 = vrot.slane %v9397_v28, 4  ;;  %v10458_v9 = vrot.slane %v10457_v41, 4  ;;  %v9402_v30 = vrot.slane %v9400_v25, 5  ;;  %v9408_v38 = vrot.slane %v9406_v59, 5  ;;  %v8665_v14 = vld [vmem:[#allocation3 + $0x80] sm:$0x1] }
 0x2df   : > { %v9412_v46 = vrot.slane %v9410_v48, 4  ;;  %v10453_v44 = vsel %vm15281_vm5, %v10448_v7, %v10452_v2  ;;  %v14803_v45 = vpack.c.bf16 %v7436_v60, %v7436_v60  ;;  %v9418_v34 = vrot.slane %v9416_v17, 5  ;;  %v9162_v12 = vld [vmem:[#allocation3 + $0x84] sm:$0xf]  ;;  %8621 = vst.msk [vmem:[#allocation4 + $0x40] sm:$0xff] %vm8616_vm6, %v8577_v27  ;;  %v10663_v48 = vpop.permute.xlu1 %10662 }
 0x2e0   : > { %v7256_v4 = vadd.f32 %v18307_v43, %v18529_v55  ;;  %v10463_v28 = vsel %vm15281_vm5, %v10458_v9, %v10462_v57  ;;  %v9403_v32 = vor.u32 %v9402_v30, %v9399_v16  ;;  %v7267_v10 = vadd.f32 %v18307_v43, %v18534_v50  ;;  %10708 = vst.msk [vmem:[#allocation4 + $0x30] sm:$0xff] %vm10704_vm10, %v10663_v48 }
 0x2e1   : > { %8907 = vrot.lane.b32.xlu0 %v14465_v19, %s15176_s15  ;;  %v9413_v39 = vor.u32 %v9412_v46, %v9408_v38  ;;  %v20811_v55 = vcombine.low %v18514_v37, %v18525_v51  ;;  %v14561_v2 = vcombine.low %v10453_v44, %v10463_v28  ;;  %v7836_v19 = vsel %vm17432_vm9, %v14803_v45, 0  ;;  %v9163_v37 = vld [vmem:[#allocation3 + $0x88] sm:$0xf]  ;;  %v9164_v46 = vld [vmem:[#allocation3 + $0x8c] sm:$0x1] }
 0x2e2   : > { %v7434_v57 = vmax.f32 %v7256_v4, 0.0  ;;  %v14450_v63 = vrot.slane %v8663_v24, 9  ;;  %7909 = vst.msk [vmem:[#allocation3 + $0x98] sm:$0xf] %vm7870_vm15, %v7836_v19  ;;  %v9404_v41 = vrot.slane %v9403_v32, 4  ;;  %v7437_v25 = vmax.f32 %v7267_v10, 0.0 }
 0x2e3   : > { %9951 = vrot.lane.b32.xlu1 %v20811_v55, %s15181_s22  ;;  %v9414_v50 = vrot.slane %v9413_v39, 4  ;;  %v8801_v59 = vrot.slane %v8664_v21, 5  ;;  %v8804_v60 = vrot.slane %v8665_v14, 5  ;;  %v7259_v16 = vadd.f32 %v18307_v43, %v18537_v61  ;;  %v8118_v45 = vld [vmem:[#allocation3 + $0x78] sm:$0xf]  ;;  %v8898_v14 = vpop.permute.xlu1 %8897 }
 0x2e4   : > { %v14801_v7 = vpack.c.bf16 %v7434_v57, %v7434_v57  ;;  %v9421_v51 = vshrl.u32 %v9162_v12, 16  ;;  %v9409_v17 = vsel %vm15281_vm5, %v9404_v41, %v9408_v38  ;;  %v14804_v9 = vpack.c.bf16 %v7437_v25, %v7437_v25  ;;  %v8119_v10 = vld [vmem:[#allocation3 + $0x7c] sm:$0xf]  ;;  %v8120_v55 = vld [vmem:[#allocation3 + $0x80] sm:$0x1]  ;;  %8942 = vst.msk [vmem:[#allocation4 + $0x40] sm:$0xff] %vm8937_vm14, %v8898_v14 }
 0x2e5   : > { %v9419_v24 = vsel %vm15281_vm5, %v9414_v50, %v9418_v34  ;;  %v8802_v30 = vsel %vm15227_vm2, %v14450_v63, %v8801_v59  ;;  %v8803_v61 = vrot.slane %v8801_v59, 4  ;;  %v7435_v44 = vmax.f32 %v7259_v16, 0.0  ;;  %v9708_v41 = vld [vmem:[#allocation3 + $0x88] sm:$0xf] }
 0x2e6   : > { %v14497_v8 = vcombine.low %v9409_v17, %v9419_v24  ;;  %v7834_v43 = vsel %vm17206_vm3, %v14801_v7, 0  ;;  %v7837_v38 = vsel %vm17206_vm3, %v14804_v9, 0  ;;  %v9423_v34 = vrot.slane %v9421_v51, 4  ;;  %v15101_v59 = vld [vmem:[#allocation3 + $0x84] sm:$0xff]  }
 0x2e7   : > { %10674 = vrot.lane.b32.xlu1 %v14561_v2, %s15182_s7  ;;  %7907 = vst.msk [vmem:[#allocation3 + $0x90] sm:$0xf] %vm7870_vm15, %v7834_v43  ;;  %v9424_v4 = vshll.u32 %v9162_v12, 16  ;;  %v9430_v21 = vshll.u32 %v9163_v37, 16  ;;  %7910 = vst.msk [vmem:[#allocation3 + $0x9c] sm:$0xf] %vm7870_vm15, %v7837_v38  ;;  %v8805_v27 = vsel %vm15227_vm2, %v8803_v61, %v8804_v60  ;;  %v14802_v28 = vpack.c.bf16 %v7435_v44, %v7435_v44  ;;  %v9076_v2 = vpop.permute.xlu0 %9075 }
 0x2e8   : > { %9630 = vrot.lane.b32.xlu0 %v14497_v8, %s15178_s17  ;;  %v9434_v32 = vshrl.u32 %v9163_v37, 16  ;;  %v9440_v39 = vshll.u32 %v9164_v46, 16  ;;  %v14466_v19 = vcombine.low %v8802_v30, %v8805_v27  ;;  %v8377_v63 = vshrl.u32 %v8118_v45, 16  ;;  %9120 = vst.msk [vmem:[#allocation4 + $0x40] sm:$0xff] %vm9115_vm13, %v9076_v2  ;;  %v9707_v17 = vld [vmem:[#allocation3 + $0x84] sm:$0xe] }
 0x2e9   : > { %v9426_v57 = vrot.slane %v9424_v4, 5  ;;  %v9432_v12 = vrot.slane %v9430_v21, 5  ;;  %v18594_v50 = vld [vmem:[#allocation3 + $0x98] sm:$0x1]  ;;  %v7835_v25 = vsel %vm17370_vm7, %v14802_v28, 0  ;;  %v8380_v7 = vshll.u32 %v8118_v45, 16 }
 0x2ea   : > { %v9436_v48 = vrot.slane %v9434_v32, 4  ;;  %7908 = vst.msk [vmem:[#allocation3 + $0x94] sm:$0xf] %vm7870_vm15, %v7835_v25  ;;  %v9442_v16 = vrot.slane %v9440_v39, 5  ;;  %v8379_v37 = vrot.slane %v8377_v63, 4  ;;  %v8386_v51 = vshll.u32 %v8119_v10, 16 }
 0x2eb   : > { %8909 = vrot.lane.b32.xlu1 %v14466_v19, %s15176_s15  ;;  %v9427_v60 = vor.u32 %v9426_v57, %v9423_v34  ;;  %v11015_v24 = vld [vmem:[#allocation4 + $0x30] sm:$0xff]  ;;  %v8382_v30 = vrot.slane %v8380_v7, 5  ;;  %v8390_v46 = vshrl.u32 %v8119_v10, 16  ;;  %v8396_v8 = vshll.u32 %v8120_v55, 16  ;;  %v9709_v43 = vld [vmem:[#allocation3 + $0x8c] sm:$0x1] }
 0x2ec   : > { %10129 = vrot.lane.b32.xlu0 %v15101_v59, %s15180_s21  ;;  %v9437_v9 = vor.u32 %v9436_v48, %v9432_v12  ;;  %11225 = vmatmul.mubr.bf16.gmra.mrb[12].mxu1 %v11015_v24  ;;  %v11018_v61 = vld [vmem:[#allocation4 + $0x48] sm:$0xff]  ;;  %v10892_v44 = vrot.slane %v18594_v50, 5  ;;  %v8388_v38 = vrot.slane %v8386_v51, 5  ;;  %v9845_v4 = vrot.slane %v9708_v41, 5  ;;  %v9621_v2 = vpop.permute.xlu1 %9620  ;;  %v8121_v25 = vld [vmem:[#allocation3 + $0x84] sm:$0xf]  ;;  %v9942_v59 = vpop.permute.xlu0 %9941 }
 0x2ed   : > { %v9428_v45 = vrot.slane %v9427_v60, 4  ;;  %14614 = vmatprep.mubr.msk.bf16.mxu1 %vm8071_vm0, %v11018_v61  ;;  %v8383_v14 = vor.u32 %v8382_v30, %v8379_v37  ;;  %v8392_v27 = vrot.slane %v8390_v46, 4  ;;  %v14514_v28 = vrot.slane %v9707_v17, 9  ;;  %9665 = vst.msk [vmem:[#allocation4 + $0x40] sm:$0xff] %vm9660_vm12, %v9621_v2  ;;  %v8122_v17 = vld [vmem:[#allocation3 + $0x88] sm:$0xf] }
 0x2ee   : > { %v18603_v34 = vld [vmem:[#allocation3 + $0x90] sm:$0xe]  ;;  %v9438_v21 = vrot.slane %v9437_v9, 4  ;;  %v18605_v32 = vld [vmem:[#allocation3 + $0x9c] sm:$0xe]  ;;  %v8398_v10 = vrot.slane %v8396_v8, 5 }
 0x2ef   : > { %v9433_v39 = vsel %vm15281_vm5, %v9428_v45, %v9432_v12  ;;  %v9847_v55 = vrot.slane %v9845_v4, 4  ;;  %v14578_v19 = vrot.slane %v18603_v34, 9  ;;  %v8384_v63 = vrot.slane %v8383_v14, 4  ;;  %v8123_v24 = vld [vmem:[#allocation3 + $0x8c] sm:$0x1]  ;;  %9986 = vst.msk [vmem:[#allocation4 + $0x40] sm:$0xff] %vm9981_vm11, %v9942_v59 }
 0x2f0   : > { %v9443_v57 = vsel %vm15281_vm5, %v9438_v21, %v9442_v16  ;;  %v8393_v41 = vor.u32 %v8392_v27, %v8388_v38  ;;  %v9848_v7 = vrot.slane %v9709_v43, 5  ;;  %v20812_v60 = vrot.slane %v18087_v62, 5  ;;  %v10206_v46 = vld [vmem:[#allocation3 + $0x90] sm:$0xf]  ;;  %v10120_v45 = vpop.permute.xlu1 %10119  ;;  %v19007_v50 = vld [vmem:[%s20717_s2] ss:$0 sm:$0xff] }
 0x2f1   : > { %v14498_v48 = vcombine.low %v9433_v39, %v9443_v57  ;;  %v20813_v12 = vrot.slane %v18134_v52, 9  ;;  %v20814_v51 = vrot.slane %v18110_v33, 5  ;;  %v18628_v62 = vsel %vm15227_vm2, %v14514_v28, %v9845_v4  ;;  %v15103_v8 = vld [vmem:[#allocation3 + $0x90] sm:$0xff]   ;;  %10164 = vst.msk [vmem:[#allocation4 + $0x40] sm:$0xff] %vm10159_vm1, %v10120_v45 }
 0x2f2   : > { %v8394_v30 = vrot.slane %v8393_v41, 4  ;;  %v8389_v33 = vsel %vm15281_vm5, %v8384_v63, %v8388_v38  ;;  %v8401_v43 = vshrl.u32 %v8121_v25, 16  ;;  %v8404_v61 = vshll.u32 %v8121_v25, 16  ;;  %v10207_v27 = vld [vmem:[#allocation3 + $0x94] sm:$0xf]  ;;  %v14921_v41 = vpop.f32.mrb[40].mxu0 }
 0x2f3   : > { %v10855_v37 = vsel %vm15227_vm2, %v20813_v12, %v20812_v60  ;;  %v10858_v16 = vsel %vm15227_vm2, %v18106_v40, %v20814_v51  ;;  %9632 = vrot.lane.b32.xlu1 %v14498_v48, %s15178_s17  ;;  %v18635_v40 = vsel %vm15227_vm2, %v9847_v55, %v9848_v7  ;;  %v8410_v4 = vshll.u32 %v8122_v17, 16  ;;  %v10208_v63 = vld [vmem:[#allocation3 + $0x98] sm:$0x1]  ;;  %v7271_v7 = vpop.f32.mrb[41].mxu0 }
 0x2f4   : > { %v14589_v52 = vcombine.low %v10855_v37, %v10858_v16  ;;  %v8399_v21 = vsel %vm15281_vm5, %v8394_v30, %v8398_v10  ;;  %v8414_v14 = vshrl.u32 %v8122_v17, 16  ;;  %v20815_v28 = vrot.slane %v18255_v29, 5  ;;  %v18653_v16 = vpop.f32.mrb[42].mxu0  ;;  %v8579_v17 = vpop.permute.xlu1 %8578 }
 0x2f5   : > { %v20816_v38 = vrot.slane %v18245_v6, 9  ;;  %v14434_v55 = vcombine.low %v8389_v33, %v8399_v21  ;;  %v14530_v2 = vcombine.low %v18628_v62, %v18635_v40  ;;  %v8403_v10 = vrot.slane %v8401_v43, 4  ;;  %v15102_v6 = vld [vmem:[#allocation3 + $0x84] sm:$0xff]   ;;  %v9710_v40 = vld [vmem:[#allocation3 + $0x90] sm:$0xe]  ;;  %8622 = vst.msk [vmem:[#allocation4 + $0x50] sm:$0xff] %vm8616_vm6, %v8579_v17 }
 0x2f6   : > { %10998 = vst.msk [vmem:[#allocation4 + $0x58] sm:$0xff] %vm8071_vm0, %v14589_v52  ;;  %v8406_v57 = vrot.slane %v8404_v61, 5  ;;  %v8412_v25 = vrot.slane %v8410_v4, 5  ;;  %v8416_v59 = vrot.slane %v8414_v14, 4  ;;  %v8420_v48 = vshll.u32 %v8123_v24, 16  ;;  %v18655_v24 = vpop.f32.mrb[43].mxu0 }
 0x2f7   : > { %v18646_v39 = vsel %vm15227_vm2, %v20816_v38, %v20815_v28  ;;  %v10465_v29 = vshrl.u32 %v10206_v46, 16  ;;  %8588 = vrot.lane.b32.xlu0 %v14434_v55, %s15177_s16  ;;  %10131 = vrot.lane.b32.xlu1 %v15103_v8, %s15180_s21  ;;  %v10468_v12 = vshll.u32 %v10206_v46, 16  ;;  %v10474_v37 = vshll.u32 %v10207_v27, 16  ;;  %v9711_v21 = vld [vmem:[#allocation3 + $0x94] sm:$0xf]  ;;  %v10665_v55 = vpop.permute.xlu0 %10664 }
 0x2f8   : > { %v8407_v60 = vor.u32 %v8406_v57, %v8403_v10  ;;  %v10478_v51 = vshrl.u32 %v10207_v27, 16  ;;  %v8417_v30 = vor.u32 %v8416_v59, %v8412_v25  ;;  %v8422_v62 = vrot.slane %v8420_v48, 5  ;;  %v18661_v14 = vld [vmem:[%s20717_s2] ss:$0 sm:$0xff]  ;;  %v9712_v38 = vld [vmem:[#allocation3 + $0x98] sm:$0x1] }
 0x2f9   : > { %v10467_v52 = vrot.slane %v10465_v29, 4  ;;  %v10484_v33 = vshll.u32 %v10208_v63, 16  ;;  %v10470_v61 = vrot.slane %v10468_v12, 5  ;;  %v10476_v45 = vrot.slane %v10474_v37, 5  ;;  %10709 = vst.msk [vmem:[#allocation4 + $0x40] sm:$0xff] %vm10704_vm10, %v10665_v55  ;;  %v15120_v55 = vld [vmem:[#allocation3 + $0x90] sm:$0xff]  }
 0x2fa   : > { %v8408_v43 = vrot.slane %v8407_v60, 4  ;;  %v10480_v8 = vrot.slane %v10478_v51, 4  ;;  %v8418_v46 = vrot.slane %v8417_v30, 4  ;;  %v7280_v27 = vadd.f32 %v18661_v14, %v14921_v41  ;;  %v8666_v12 = vld [vmem:[#allocation3 + $0x84] sm:$0xe]  ;;  %8084 = vst.msk [vmem:[#allocation4 + $0xc0] sm:$0xff] %vm8071_vm0, %v15120_v55 }
 0x2fb   : > { %v10486_v4 = vrot.slane %v10484_v33, 5  ;;  %v7272_v28 = vadd.f32 %v18661_v14, %v7271_v7  ;;  %9087 = vrot.lane.b32.xlu0 %v15102_v6, %s15179_s20  ;;  %v10471_v57 = vor.u32 %v10470_v61, %v10467_v52  ;;  %v14515_v59 = vrot.slane %v9710_v40, 9  ;;  %v8667_v33 = vld [vmem:[#allocation3 + $0x88] sm:$0xf]  ;;  %v8668_v40 = vld [vmem:[#allocation3 + $0x8c] sm:$0x1]  ;;  %v8900_v61 = vpop.permute.xlu0 %8899 }
 0x2fc   : > { %v8413_v10 = vsel %vm15281_vm5, %v8408_v43, %v8412_v25  ;;  %v10481_v63 = vor.u32 %v10480_v8, %v10476_v45  ;;  %v8423_v48 = vsel %vm15281_vm5, %v8418_v46, %v8422_v62  ;;  %v7440_v29 = vmax.f32 %v7280_v27, 0.0  ;;  %v9078_v43 = vpop.permute.xlu1 %9077  ;;  %8943 = vst.msk [vmem:[#allocation4 + $0x50] sm:$0xff] %vm8937_vm14, %v8900_v61 }
 0x2fd   : > { %v7438_v60 = vmax.f32 %v7272_v28, 0.0  ;;  %v9852_v41 = vrot.slane %v9711_v21, 5  ;;  %v14435_v7 = vcombine.low %v8413_v10, %v8423_v48  ;;  %v10472_v37 = vrot.slane %v10471_v57, 4  ;;  %v9165_v28 = vld [vmem:[#allocation3 + $0x90] sm:$0xf]  ;;  %9121 = vst.msk [vmem:[#allocation4 + $0x50] sm:$0xff] %vm9115_vm13, %v9078_v43 }
 0x2fe   : > { %v10482_v51 = vrot.slane %v10481_v63, 4  ;;  %v9855_v17 = vrot.slane %v9712_v38, 5  ;;  %v14807_v6 = vpack.c.bf16 %v7440_v29, %v7440_v29  ;;  %v20817_v21 = vrot.slane %v18214_v13, 5  ;;  %v9166_v38 = vld [vmem:[#allocation3 + $0x94] sm:$0xf] }
 0x2ff   : > { %v14805_v30 = vpack.c.bf16 %v7438_v60, %v7438_v60  ;;  %v18673_v25 = vsel %vm15227_vm2, %v14515_v59, %v9852_v41  ;;  %v9854_v52 = vrot.slane %v9852_v41, 4  ;;  %9953 = vrot.lane.b32.xlu0 %v14530_v2, %s15181_s22  ;;  %8590 = vrot.lane.b32.xlu1 %v14435_v7, %s15177_s16  ;;  %v10477_v62 = vsel %vm15281_vm5, %v10472_v37, %v10476_v45  ;;  %v9167_v48 = vld [vmem:[#allocation3 + $0x98] sm:$0x1]  ;;  %v18701_v29 = vld [vmem:[#allocation3 + $0x94] sm:$0xf] }
 0x300   : > { %v10487_v8 = vsel %vm15281_vm5, %v10482_v51, %v10486_v4  ;;  %v10865_v46 = vsel %vm15227_vm2, %v18275_v42, %v20817_v21  ;;  %v14451_v27 = vrot.slane %v8666_v12, 9  ;;  %v7840_v10 = vsel %vm17206_vm3, %v14807_v6, 0  ;;  %v15105_v4 = vld [vmem:[#allocation3 + $0x90] sm:$0xff]   ;;  %v9944_v37 = vpop.permute.xlu1 %9943  ;;  %v11017_v51 = vld [vmem:[#allocation4 + $0x40] sm:$0xff] }
 0x301   : > { %v14562_v2 = vcombine.low %v10477_v62, %v10487_v8  ;;  %v7838_v45 = vsel %vm17370_vm7, %v14805_v30, 0  ;;  %v9856_v13 = vsel %vm15227_vm2, %v9854_v52, %v9855_v17  ;;  %7913 = vst.msk [vmem:[#allocation3 + $0xa8] sm:$0xf] %vm7870_vm15, %v7840_v10  ;;  %v14590_v57 = vcombine.low %v18646_v39, %v10865_v46  ;;  %v8124_v30 = vld [vmem:[#allocation3 + $0x90] sm:$0xf]  ;;  %11233 = vmatmul.mubr.bf16.gmra.mrb[16].mxu1 %v11017_v51 }
 0x302   : > { %7911 = vst.msk [vmem:[#allocation3 + $0xa0] sm:$0xf] %vm7870_vm15, %v7838_v45  ;;  %v14531_v42 = vcombine.low %v18673_v25, %v9856_v13  ;;  %v7283_v63 = vadd.f32 %v18661_v14, %v18653_v16  ;;  %v8808_v59 = vrot.slane %v8667_v33, 5  ;;  %v8811_v60 = vrot.slane %v8668_v40, 5  ;;  %v11020_v25 = vld [vmem:[#allocation4 + $0x58] sm:$0xff]  ;;  %v9623_v21 = vpop.permute.xlu0 %9622 }
 0x303   : > { %v7275_v41 = vadd.f32 %v18661_v14, %v18655_v24  ;;  %v9445_v12 = vshrl.u32 %v9165_v28, 16  ;;  %v9448_v7 = vshll.u32 %v9165_v28, 16  ;;  %9089 = vrot.lane.b32.xlu1 %v15105_v4, %s15179_s20  ;;  %10676 = vrot.lane.b32.xlu0 %v14562_v2, %s15182_s7  ;;  %10999 = vst.msk [vmem:[#allocation4 + $0x68] sm:$0xff] %vm8071_vm0, %v14590_v57  ;;  %v9454_v6 = vshll.u32 %v9166_v38, 16  ;;  %v8125_v45 = vld [vmem:[#allocation3 + $0x94] sm:$0xf] }
 0x304   : > { %v7441_v39 = vmax.f32 %v7283_v63, 0.0  ;;  %v8809_v16 = vsel %vm15227_vm2, %v14451_v27, %v8808_v59  ;;  %v8810_v17 = vrot.slane %v8808_v59, 4  ;;  %v9458_v40 = vshrl.u32 %v9166_v38, 16  ;;  %14615 = vmatprep.mubr.msk.bf16.mxu1 %vm8071_vm0, %v11020_v25  ;;  %v10667_v10 = vpop.permute.xlu1 %10666  ;;  %9666 = vst.msk [vmem:[#allocation4 + $0x50] sm:$0xff] %vm9660_vm12, %v9623_v21 }
 0x305   : > { %v7439_v24 = vmax.f32 %v7275_v41, 0.0  ;;  %v9447_v52 = vrot.slane %v9445_v12, 4  ;;  %v9450_v33 = vrot.slane %v9448_v7, 5  ;;  %v9456_v62 = vrot.slane %v9454_v6, 5  ;;  %9987 = vst.msk [vmem:[#allocation4 + $0x50] sm:$0xff] %vm9981_vm11, %v9944_v37 }
 0x306   : > { %v14808_v43 = vpack.c.bf16 %v7441_v39, %v7441_v39  ;;  %v8812_v61 = vsel %vm15227_vm2, %v8810_v17, %v8811_v60  ;;  %v9464_v8 = vshll.u32 %v9167_v48, 16  ;;  %v9460_v55 = vrot.slane %v9458_v40, 4  ;;  %v8126_v41 = vld [vmem:[#allocation3 + $0x98] sm:$0x1]  ;;  %v10209_v6 = vld [vmem:[#allocation3 + $0x9c] sm:$0xf] }
 0x307   : > { %v14467_v46 = vcombine.low %v8809_v16, %v8812_v61  ;;  %v14806_v27 = vpack.c.bf16 %v7439_v24, %v7439_v24  ;;  %v9451_v28 = vor.u32 %v9450_v33, %v9447_v52  ;;  %v10889_v2 = vrot.slane %v18701_v29, 5  ;;  %9955 = vrot.lane.b32.xlu1 %v14531_v42, %s15181_s22 }
 0x308   : > { %v7841_v38 = vsel %vm17370_vm7, %v14808_v43, 0  ;;  %v8425_v13 = vshrl.u32 %v8124_v30, 16  ;;  %v8428_v4 = vshll.u32 %v8124_v30, 16  ;;  %v15184_v57 = vmov 1983009808   ;;  %v10122_v30 = vpop.permute.xlu0 %10121 }
 0x309   : > { %v18718_v63 = vunpack.c.l.s4 %v15184_v57  ;;  %v18721_v59 = vld [vmem:[#allocation3 + $0xa0] sm:$0xf]  ;;  %7914 = vst.msk [vmem:[#allocation3 + $0xac] sm:$0xf] %vm7870_vm15, %v7841_v38  ;;  %8911 = vrot.lane.b32.xlu0 %v14467_v46, %s15176_s15  ;;  %v7839_v42 = vsel %vm17432_vm9, %v14806_v27, 0  ;;  %v9452_v48 = vrot.slane %v9451_v28, 4  ;;  %v9461_v60 = vor.u32 %v9460_v55, %v9456_v62  ;;  %v8902_v28 = vpop.permute.xlu1 %8901 }
 0x30a   : > { %7912 = vst.msk [vmem:[#allocation3 + $0xa4] sm:$0xf] %vm7870_vm15, %v7839_v42  ;;  %v9466_v12 = vrot.slane %v9464_v8, 5  ;;  %v8427_v7 = vrot.slane %v8425_v13, 4  ;;  %v20818_v51 = vrot.slane %v18377_v36, 5  ;;  %v20819_v37 = vrot.slane %v18251_v47, 9 }
 0x30b   : > { %v20820_v16 = vrot.slane %v18410_v56, 5  ;;  %v10896_v25 = vrot.slane %v18721_v59, 5  ;;  %v9462_v24 = vrot.slane %v9461_v60, 4  ;;  %v8430_v52 = vrot.slane %v8428_v4, 5  ;;  %10165 = vst.msk [vmem:[#allocation4 + $0x50] sm:$0xff] %vm10159_vm1, %v10122_v30 }
 0x30c   : > { %v10869_v39 = vsel %vm15227_vm2, %v20819_v37, %v20818_v51  ;;  %v8434_v33 = vshll.u32 %v8125_v45, 16  ;;  %v9457_v47 = vsel %vm15281_vm5, %v9452_v48, %v9456_v62  ;;  %v8438_v36 = vshrl.u32 %v8125_v45, 16  ;;  %v10210_v56 = vld [vmem:[#allocation3 + $0xa0] sm:$0xf]  ;;  %10710 = vst.msk [vmem:[#allocation4 + $0x50] sm:$0xff] %vm10704_vm10, %v10667_v10 }
 0x30d   : > { %v10872_v17 = vsel %vm15227_vm2, %v18395_v11, %v20820_v16  ;;  %v8444_v40 = vshll.u32 %v8126_v41, 16  ;;  %v9467_v11 = vsel %vm15281_vm5, %v9462_v24, %v9466_v12  ;;  %v8431_v61 = vor.u32 %v8430_v52, %v8427_v7  ;;  %v9714_v46 = vld [vmem:[#allocation3 + $0xa0] sm:$0xf]  ;;  %v18747_v55 = vld [vmem:[#allocation3 + $0xa8] sm:$0xe] }
 0x30e   : > { %v14591_v43 = vcombine.low %v10869_v39, %v10872_v17  ;;  %v8436_v8 = vrot.slane %v8434_v33, 5  ;;  %v10489_v21 = vshrl.u32 %v10209_v6, 16  ;;  %v11396_v27 = vunpack.c.0.s8 %v18718_v63  ;;  %v9713_v42 = vld [vmem:[#allocation3 + $0x9c] sm:$0xe]  ;;  %v18757_v37 = vld [vmem:[#allocation3 + $0x94] sm:$0xf] }
 0x30f   : > { %v14499_v38 = vcombine.low %v9457_v47, %v9467_v11  ;;  %v8440_v62 = vrot.slane %v8438_v36, 4  ;;  %v10492_v45 = vshll.u32 %v10209_v6, 16  ;;  %v8432_v13 = vrot.slane %v8431_v61, 4  ;;  %v15107_v41 = vld [vmem:[#allocation3 + $0x9c] sm:$0xff]   ;;  %v8669_v24 = vld [vmem:[#allocation3 + $0x90] sm:$0xe] }
 0x310   : > { %11000 = vst.msk [vmem:[#allocation4 + $0x78] sm:$0xff] %vm8071_vm0, %v14591_v43  ;;  %v10491_v4 = vrot.slane %v10489_v21, 4  ;;  %v10498_v10 = vshll.u32 %v10210_v56, 16  ;;  %v10502_v57 = vshrl.u32 %v10210_v56, 16  ;;  %v18752_v48 = vrot.slane %v10889_v2, 4  ;;  %v11022_v39 = vld [vmem:[#allocation4 + $0x68] sm:$0xff] }
 0x311   : > { %v18754_v60 = vld [vmem:[#allocation3 + $0xac] sm:$0xf]  ;;  %9634 = vrot.lane.b32.xlu0 %v14499_v38, %s15178_s17  ;;  %v8441_v12 = vor.u32 %v8440_v62, %v8436_v8  ;;  %v10494_v7 = vrot.slane %v10492_v45, 5  ;;  %v9859_v51 = vrot.slane %v9714_v46, 5  ;;  %v18762_v16 = vrot.slane %v10896_v25, 4  ;;  %v9625_v62 = vpop.permute.xlu1 %9624  ;;  %v8581_v45 = vpop.permute.xlu0 %8580 }
 0x312   : > { %v8446_v17 = vrot.slane %v8444_v40, 5  ;;  %v10211_v6 = vld [vmem:[#allocation3 + $0xa4] sm:$0x1]  ;;  %v10500_v30 = vrot.slane %v10498_v10, 5  ;;  %v10504_v47 = vrot.slane %v10502_v57, 4  ;;  %v14516_v43 = vrot.slane %v9713_v42, 9 }
 0x313   : > { %v8442_v52 = vrot.slane %v8441_v12, 4  ;;  %v10495_v33 = vor.u32 %v10494_v7, %v10491_v4  ;;  %v9715_v36 = vld [vmem:[#allocation3 + $0xa4] sm:$0x1]  ;;  %v8671_v56 = vld [vmem:[#allocation3 + $0x98] sm:$0x1]  ;;  %v10903_v11 = vrot.slane %v18754_v60, 5  ;;  %v8437_v61 = vsel %vm15281_vm5, %v8432_v13, %v8436_v8 }
 0x314   : > { %v10508_v21 = vshll.u32 %v10211_v6, 16  ;;  %v9861_v46 = vrot.slane %v9859_v51, 4  ;;  %v9168_v38 = vld [vmem:[#allocation3 + $0x9c] sm:$0xf]  ;;  %v11019_v40 = vld [vmem:[#allocation4 + $0x50] sm:$0xff]  ;;  %v10505_v57 = vor.u32 %v10504_v47, %v10500_v30  ;;  %v9862_v42 = vrot.slane %v9715_v36, 5 }
 0x315   : > { %10133 = vrot.lane.b32.xlu0 %v15107_v41, %s15180_s21  ;;  %v8447_v4 = vsel %vm15281_vm5, %v8442_v52, %v8446_v17  ;;  %v10496_v10 = vrot.slane %v10495_v33, 4  ;;  %8623 = vst.msk [vmem:[#allocation4 + $0x60] sm:$0xff] %vm8616_vm6, %v8581_v45  ;;  %11241 = vmatmul.mubr.bf16.gmra.mrb[20].mxu1 %v11019_v40  ;;  %v18773_v8 = vsel %vm15227_vm2, %v14516_v43, %v9859_v51  ;;  %v8815_v13 = vrot.slane %v18757_v37, 5  ;;  %v9169_v7 = vld [vmem:[#allocation3 + $0xa0] sm:$0xf] }
 0x316   : > { %v10510_v12 = vrot.slane %v10508_v21, 5  ;;  %v9170_v6 = vld [vmem:[#allocation3 + $0xa4] sm:$0x1]  ;;  %v20821_v41 = vrot.slane %v18405_v22, 5  ;;  %v20822_v9 = vrot.slane %v18356_v15, 9  ;;  %8944 = vst.msk [vmem:[#allocation4 + $0x60] sm:$0xff] %vm8937_vm14, %v8902_v28  ;;  %14616 = vmatprep.mubr.msk.bf16.mxu1 %vm8071_vm0, %v11022_v39  ;;  %v14436_v52 = vcombine.low %v8437_v61, %v8447_v4  ;;  %v9080_v21 = vpop.permute.xlu0 %9079 }
 0x317   : > { %v10501_v51 = vsel %vm15281_vm5, %v10496_v10, %v10500_v30  ;;  %v10506_v33 = vrot.slane %v10505_v57, 4  ;;  %v14452_v37 = vrot.slane %v8669_v24, 9  ;;  %v9863_v47 = vsel %vm15227_vm2, %v9861_v46, %v9862_v42  ;;  %v8127_v43 = vld [vmem:[#allocation3 + $0x9c] sm:$0xf]  ;;  %v8128_v30 = vld [vmem:[#allocation3 + $0xa0] sm:$0xf] }
 0x318   : > { %v18782_v17 = vsel %vm15227_vm2, %v20822_v9, %v20821_v41  ;;  %v8817_v22 = vrot.slane %v8815_v13, 4  ;;  %v8818_v36 = vrot.slane %v8671_v56, 5  ;;  %v9469_v15 = vshrl.u32 %v9168_v38, 16  ;;  %v10124_v9 = vpop.permute.xlu1 %10123  ;;  %9122 = vst.msk [vmem:[#allocation4 + $0x60] sm:$0xff] %vm9115_vm13, %v9080_v21  ;;  %v15108_v4 = vld [vmem:[#allocation3 + $0x9c] sm:$0xff]  }
 0x319   : > { %8592 = vrot.lane.b32.xlu0 %v14436_v52, %s15177_s16  ;;  %v10511_v28 = vsel %vm15281_vm5, %v10506_v33, %v10510_v12  ;;  %v9472_v39 = vshll.u32 %v9168_v38, 16  ;;  %v9478_v61 = vshll.u32 %v9169_v7, 16  ;;  %v9482_v45 = vshrl.u32 %v9169_v7, 16  ;;  %9667 = vst.msk [vmem:[#allocation4 + $0x60] sm:$0xff] %vm9660_vm12, %v9625_v62  ;;  %v8129_v7 = vld [vmem:[#allocation3 + $0xa4] sm:$0x1] }
 0x31a   : > { %v14563_v24 = vcombine.low %v10501_v51, %v10511_v28  ;;  %v8819_v46 = vsel %vm15227_vm2, %v8817_v22, %v8818_v36  ;;  %v9471_v56 = vrot.slane %v9469_v15, 4  ;;  %v9488_v40 = vshll.u32 %v9170_v6, 16  ;;  %v9946_v33 = vpop.permute.xlu0 %9945  ;;  %v18801_v22 = vld [vmem:[#allocation3 + $0xa4] sm:$0x1] }
 0x31b   : > { %v14532_v10 = vcombine.low %v18773_v8, %v9863_v47  ;;  %v9474_v57 = vrot.slane %v9472_v39, 5  ;;  %v9480_v42 = vrot.slane %v9478_v61, 5  ;;  %v9484_v12 = vrot.slane %v9482_v45, 4  ;;  %9988 = vst.msk [vmem:[#allocation4 + $0x60] sm:$0xff] %vm9981_vm11, %v9946_v33  ;;  %v18827_v33 = vld [vmem:[#allocation3 + $0xac] sm:$0xf] }
 0x31c   : > { %10678 = vrot.lane.b32.xlu1 %v14563_v24, %s15182_s7  ;;  %v8816_v38 = vsel %vm15227_vm2, %v14452_v37, %v8815_v13  ;;  %v8449_v41 = vshrl.u32 %v8127_v43, 16  ;;  %v8452_v52 = vshll.u32 %v8127_v43, 16  ;;  %v8458_v51 = vshll.u32 %v8128_v30, 16  ;;  %v18807_v13 = vld [vmem:[#allocation3 + $0xa8] sm:$0xf]  ;;  %10166 = vst.msk [vmem:[#allocation4 + $0x60] sm:$0xff] %vm10159_vm1, %v10124_v9  ;;  %v8583_v37 = vpop.permute.xlu1 %8582 }
 0x31d   : > { %9091 = vrot.lane.b32.xlu0 %v15108_v4, %s15179_s20  ;;  %v14468_v62 = vcombine.low %v8816_v38, %v8819_v46  ;;  %v9475_v6 = vor.u32 %v9474_v57, %v9471_v56  ;;  %v9485_v8 = vor.u32 %v9484_v12, %v9480_v42  ;;  %v8462_v47 = vshrl.u32 %v8128_v30, 16  ;;  %v14925_v43 = vpop.f32.mrb[44].mxu0  ;;  %v15123_v46 = vld [vmem:[#allocation3 + $0x9c] sm:$0xff]   ;;  %8624 = vst.msk [vmem:[#allocation4 + $0x70] sm:$0xff] %vm8616_vm6, %v8583_v37  ;;  %v18818_v57 = vld [vmem:[#allocation3 + $0xa8] sm:$0xe] }
 0x31e   : > { %v9490_v36 = vrot.slane %v9488_v40, 5  ;;  %v8451_v15 = vrot.slane %v8449_v41, 4  ;;  %v8454_v21 = vrot.slane %v8452_v52, 5  ;;  %v18805_v28 = vrot.slane %v8458_v51, 5  ;;  %v7287_v9 = vpop.f32.mrb[45].mxu0  ;;  %v15128_v12 = vld [vmem:[#allocation3 + $0xa8] sm:$0xff]  }
 0x31f   : > { %v9476_v39 = vrot.slane %v9475_v6, 4  ;;  %v9486_v61 = vrot.slane %v9485_v8, 4  ;;  %v8464_v45 = vrot.slane %v8462_v47, 4  ;;  %v8468_v24 = vshll.u32 %v8129_v7, 16  ;;  %v14926_v7 = vpop.f32.mrb[46].mxu0  ;;  %8085 = vst.msk [vmem:[#allocation4 + $0xd0] sm:$0xff] %vm8071_vm0, %v15123_v46 }
 0x320   : > { %v18812_v30 = vrot.slane %v10903_v11, 4  ;;  %v10899_v56 = vrot.slane %v18801_v22, 5  ;;  %v7296_v40 = vadd.f32 %v18661_v14, %v14925_v43  ;;  %8913 = vrot.lane.b32.xlu1 %v14468_v62, %s15176_s15  ;;  %v8455_v4 = vor.u32 %v8454_v21, %v8451_v15  ;;  %v10669_v62 = vpop.permute.xlu0 %10668  ;;  %8086 = vst.msk [vmem:[#allocation4 + $0xe0] sm:$0xff] %vm8071_vm0, %v15128_v12  ;;  %v10213_v46 = vld [vmem:[#allocation3 + $0xac] sm:$0xf] }
 0x321   : > { %9957 = vrot.lane.b32.xlu0 %v14532_v10, %s15181_s22  ;;  %v7288_v38 = vadd.f32 %v18661_v14, %v7287_v9  ;;  %v9481_v41 = vsel %vm15281_vm5, %v9476_v39, %v9480_v42  ;;  %v9491_v52 = vsel %vm15281_vm5, %v9486_v61, %v9490_v36  ;;  %v8465_v51 = vor.u32 %v8464_v45, %v18805_v28  ;;  %v7290_v10 = vpop.f32.mrb[47].mxu0 }
 0x322   : > { %v7444_v6 = vmax.f32 %v7296_v40, 0.0  ;;  %v7299_v8 = vadd.f32 %v18661_v14, %v14926_v7  ;;  %v14500_v47 = vcombine.low %v9481_v41, %v9491_v52  ;;  %v10513_v15 = vshrl.u32 %v18807_v13, 16  ;;  %10711 = vst.msk [vmem:[#allocation4 + $0x60] sm:$0xff] %vm10704_vm10, %v10669_v62 }
 0x323   : > { %v7442_v42 = vmax.f32 %v7288_v38, 0.0  ;;  %v7291_v36 = vadd.f32 %v18661_v14, %v7290_v10  ;;  %v8466_v21 = vrot.slane %v8465_v51, 4  ;;  %v8470_v37 = vrot.slane %v8468_v24, 5  ;;  %v15109_v24 = vld [vmem:[#allocation3 + $0xa8] sm:$0xff]   ;;  %v8673_v51 = vld [vmem:[#allocation3 + $0xa0] sm:$0xf] }
 0x324   : > { %v14811_v43 = vpack.c.bf16 %v7444_v6, %v7444_v6  ;;  %v7445_v39 = vmax.f32 %v7299_v8, 0.0  ;;  %9636 = vrot.lane.b32.xlu1 %v14500_v47, %s15178_s17  ;;  %v14517_v61 = vrot.slane %v18818_v57, 9  ;;  %v9866_v45 = vrot.slane %v18827_v33, 5  ;;  %v9171_v10 = vld [vmem:[#allocation3 + $0xa8] sm:$0xf]  ;;  %v8904_v47 = vpop.permute.xlu0 %8903 }
 0x325   : > { %v14809_v40 = vpack.c.bf16 %v7442_v42, %v7442_v42  ;;  %v7443_v9 = vmax.f32 %v7291_v36, 0.0  ;;  %v8456_v7 = vrot.slane %v8455_v4, 4  ;;  %v8471_v12 = vsel %vm15281_vm5, %v8466_v21, %v8470_v37  ;;  %v8674_v37 = vld [vmem:[#allocation3 + $0xa4] sm:$0x1]  ;;  %8945 = vst.msk [vmem:[#allocation4 + $0x70] sm:$0xff] %vm8937_vm14, %v8904_v47 }
 0x326   : > { %v7844_v14 = vsel %vm17370_vm7, %v14811_v43, 0  ;;  %v14812_v38 = vpack.c.bf16 %v7445_v39, %v7445_v39  ;;  %v10515_v41 = vrot.slane %v10513_v15, 4  ;;  %v10516_v52 = vshll.u32 %v18807_v13, 16  ;;  %v9172_v43 = vld [vmem:[#allocation3 + $0xac] sm:$0xf]  ;;  %v9082_v39 = vpop.permute.xlu1 %9081 }
 0x327   : > { %7917 = vst.msk [vmem:[#allocation3 + $0xb8] sm:$0xf] %vm7870_vm15, %v7844_v14  ;;  %v7842_v62 = vsel %vm17432_vm9, %v14809_v40, 0  ;;  %v14810_v6 = vpack.c.bf16 %v7443_v9, %v7443_v9  ;;  %v10522_v8 = vshll.u32 %v10213_v46, 16  ;;  %v10526_v4 = vshrl.u32 %v10213_v46, 16 }
 0x328   : > { %7915 = vst.msk [vmem:[#allocation3 + $0xb0] sm:$0xf] %vm7870_vm15, %v7842_v62  ;;  %v7845_v42 = vsel %vm17432_vm9, %v14812_v38, 0  ;;  %10135 = vrot.lane.b32.xlu1 %v15109_v24, %s15180_s21  ;;  %v8461_v13 = vsel %vm15281_vm5, %v8456_v7, %v18805_v28  ;;  %v10518_v15 = vrot.slane %v10516_v52, 5  ;;  %v20823_v36 = vrot.slane %v18482_v5, 5  ;;  %v11024_v52 = vld [vmem:[#allocation4 + $0x78] sm:$0xff] }
 0x329   : > { %7918 = vst.msk [vmem:[#allocation3 + $0xbc] sm:$0xf] %vm7870_vm15, %v7845_v42  ;;  %v7843_v46 = vsel %vm17206_vm3, %v14810_v6, 0  ;;  %v18862_v40 = vrot.slane %v10522_v8, 5  ;;  %v10528_v28 = vrot.slane %v10526_v4, 4  ;;  %v11021_v7 = vld [vmem:[#allocation4 + $0x60] sm:$0xff] }
 0x32a   : > { %v10879_v21 = vsel %vm15227_vm2, %v18419_v23, %v20823_v36  ;;  %v8672_v5 = vld [vmem:[#allocation3 + $0x9c] sm:$0xe]  ;;  %9123 = vst.msk [vmem:[#allocation4 + $0x70] sm:$0xff] %vm9115_vm13, %v9082_v39  ;;  %v14437_v23 = vcombine.low %v8461_v13, %v8471_v12  ;;  %v10519_v14 = vor.u32 %v10518_v15, %v10515_v41  ;;  %v8822_v38 = vrot.slane %v8673_v51, 5  ;;  %11249 = vmatmul.mubr.bf16.gmra.mrb[24].mxu1 %v11021_v7  ;;  %v15111_v41 = vld [vmem:[#allocation3 + $0xa8] sm:$0xff]  }
 0x32b   : > { %v14592_v9 = vcombine.low %v18782_v17, %v10879_v21  ;;  %7916 = vst.msk [vmem:[#allocation3 + $0xb4] sm:$0xf] %vm7870_vm15, %v7843_v46  ;;  %v9493_v24 = vshrl.u32 %v9171_v10, 16  ;;  %v8825_v62 = vrot.slane %v8674_v37, 5  ;;  %v9496_v6 = vshll.u32 %v9171_v10, 16  ;;  %14617 = vmatprep.mubr.msk.bf16.mxu1 %vm8071_vm0, %v11024_v52  ;;  %v9627_v46 = vpop.permute.xlu0 %9626 }
 0x32c   : > { %v9502_v8 = vshll.u32 %v9172_v43, 16  ;;  %v9506_v4 = vshrl.u32 %v9172_v43, 16  ;;  %8594 = vrot.lane.b32.xlu1 %v14437_v23, %s15177_s16  ;;  %v10529_v17 = vor.u32 %v10528_v28, %v18862_v40  ;;  %v14453_v47 = vrot.slane %v8672_v5, 9  ;;  %v8675_v43 = vld [vmem:[#allocation3 + $0xa8] sm:$0xe]  ;;  %9668 = vst.msk [vmem:[#allocation4 + $0x70] sm:$0xff] %vm9660_vm12, %v9627_v46 }
 0x32d   : > { %11001 = vst.msk [vmem:[#allocation4 + $0x88] sm:$0xff] %vm8071_vm0, %v14592_v9  ;;  %v8824_v42 = vrot.slane %v8822_v38, 4  ;;  %v9495_v12 = vrot.slane %v9493_v24, 4  ;;  %v10520_v51 = vrot.slane %v10519_v14, 4  ;;  %v9498_v13 = vrot.slane %v9496_v6, 5 }
 0x32e   : > { %v18871_v15 = vrot.slane %v9502_v8, 5  ;;  %v9508_v36 = vrot.slane %v9506_v4, 4  ;;  %v18876_v10 = vsub.s32 %v11396_v27, %v17188_v26  ;;  %v9867_v21 = vsel %vm15227_vm2, %v14517_v61, %v9866_v45  ;;  %v10216_v37 = vld [vmem:[#allocation3 + $0xb8] sm:$0xf]  ;;  %v8676_v39 = vld [vmem:[#allocation3 + $0xac] sm:$0xf]  ;;  %v9948_v61 = vpop.permute.xlu1 %9947 }
 0x32f   : > { %v18884_v28 = vld [vmem:[#allocation3 + $0xb8] sm:$0xf]  ;;  %v9718_v9 = vld [vmem:[#allocation3 + $0xb0] sm:$0x1]  ;;  %v9868_v5 = vrot.slane %v9866_v45, 4  ;;  %v18890_v63 = vsel %vm15227_vm2, %v14453_v47, %v8822_v38  ;;  %v18894_v27 = vsel %vm15227_vm2, %v8824_v42, %v8825_v62  ;;  %v10546_v57 = vshll.u32 %v10216_v37, 16 }
 0x330   : > { %9093 = vrot.lane.b32.xlu1 %v15111_v41, %s15179_s20  ;;  %v9869_v7 = vrot.slane %v9718_v9, 5  ;;  %v10214_v23 = vld [vmem:[#allocation3 + $0xb0] sm:$0x1]  ;;  %v10530_v14 = vrot.slane %v10529_v17, 4  ;;  %v9499_v24 = vor.u32 %v9498_v13, %v9495_v12  ;;  %v9509_v33 = vor.u32 %v9508_v36, %v18871_v15  ;;  %9989 = vst.msk [vmem:[#allocation4 + $0x70] sm:$0xff] %vm9981_vm11, %v9948_v61  ;;  %v10126_v12 = vpop.permute.xlu0 %10125 }
 0x331   : > { %v10525_v45 = vsel %vm15281_vm5, %v10520_v51, %v18862_v40  ;;  %v10532_v38 = vshll.u32 %v10214_v23, 16  ;;  %v14454_v52 = vrot.slane %v8675_v43, 9  ;;  %v8829_v62 = vrot.slane %v8676_v39, 5  ;;  %v10217_v47 = vld [vmem:[#allocation3 + $0xbc] sm:$0x1]  ;;  %10167 = vst.msk [vmem:[#allocation4 + $0x70] sm:$0xff] %vm10159_vm1, %v10126_v12 }
 0x332   : > { %v10910_v6 = vrot.slane %v18884_v28, 5  ;;  %v9870_v8 = vsel %vm15227_vm2, %v9868_v5, %v9869_v7  ;;  %v14469_v4 = vcombine.low %v18890_v63, %v18894_v27  ;;  %v10215_v17 = vld [vmem:[#allocation3 + $0xb4] sm:$0xf]  ;;  %v10548_v42 = vrot.slane %v10546_v57, 5  ;;  %v9173_v40 = vld [vmem:[#allocation3 + $0xb0] sm:$0x1] }
 0x333   : > { %v14533_v41 = vcombine.low %v9867_v21, %v9870_v8  ;;  %v10534_v13 = vrot.slane %v10532_v38, 5  ;;  %v10537_v36 = vshrl.u32 %v10215_v17, 16  ;;  %v10540_v46 = vshll.u32 %v10215_v17, 16  ;;  %v8677_v61 = vld [vmem:[#allocation3 + $0xb0] sm:$0x1] }
 0x334   : > { %v10550_v51 = vshrl.u32 %v10216_v37, 16  ;;  %v10556_v43 = vshll.u32 %v10217_v47, 16  ;;  %v9500_v39 = vrot.slane %v9499_v24, 4  ;;  %v9510_v9 = vrot.slane %v9509_v33, 4  ;;  %v9174_v37 = vld [vmem:[#allocation3 + $0xb4] sm:$0xf]  ;;  %v8585_v8 = vpop.permute.xlu0 %8584 }
 0x335   : > { %9959 = vrot.lane.b32.xlu1 %v14533_v41, %s15181_s22  ;;  %v10535_v5 = vsel %vm15281_vm5, %v10530_v14, %v10534_v13  ;;  %v10539_v63 = vrot.slane %v10537_v36, 4  ;;  %v10542_v27 = vrot.slane %v10540_v46, 5  ;;  %v9512_v57 = vshll.u32 %v9173_v40, 16  ;;  %v9175_v12 = vld [vmem:[#allocation3 + $0xb8] sm:$0xf]  ;;  %8625 = vst.msk [vmem:[#allocation4 + $0x80] sm:$0xff] %vm8616_vm6, %v8585_v8 }
 0x336   : > { %v14564_v21 = vcombine.low %v10525_v45, %v10535_v5  ;;  %v10552_v7 = vrot.slane %v10550_v51, 4  ;;  %v10558_v23 = vrot.slane %v10556_v43, 5  ;;  %v18914_v38 = vsel %vm15227_vm2, %v14454_v52, %v8829_v62  ;;  %v8130_v36 = vld [vmem:[#allocation3 + $0xa8] sm:$0xf]  ;;  %v9176_v40 = vld [vmem:[#allocation3 + $0xbc] sm:$0x1] }
 0x337   : > { %v10543_v24 = vor.u32 %v10542_v27, %v10539_v63  ;;  %v9514_v33 = vrot.slane %v9512_v57, 5  ;;  %v8831_v17 = vrot.slane %v8829_v62, 4  ;;  %v8832_v47 = vrot.slane %v8677_v61, 5  ;;  %v10671_v5 = vpop.permute.xlu1 %10670  ;;  %v19001_v29 = vld [vmem:[#allocation3 + $0xbc] sm:$0x1] }
 0x338   : > { %10680 = vrot.lane.b32.xlu0 %v14564_v21, %s15182_s7  ;;  %v10553_v14 = vor.u32 %v10552_v7, %v10548_v42  ;;  %v9517_v41 = vshrl.u32 %v9174_v37, 16  ;;  %v9520_v45 = vshll.u32 %v9174_v37, 16  ;;  %v9526_v13 = vshll.u32 %v9175_v12, 16  ;;  %10712 = vst.msk [vmem:[#allocation4 + $0x70] sm:$0xff] %vm10704_vm10, %v10671_v5 }
 0x339   : > { %v10544_v46 = vrot.slane %v10543_v24, 4  ;;  %v9505_v52 = vsel %vm15281_vm5, %v9500_v39, %v18871_v15  ;;  %v9530_v51 = vshrl.u32 %v9175_v12, 16  ;;  %v20824_v62 = vrot.slane %v18474_v1, 5  ;;  %v8131_v15 = vld [vmem:[#allocation3 + $0xac] sm:$0xf] }
 0x33a   : > { %v20825_v43 = vrot.slane %v18518_v18, 9  ;;  %v10554_v63 = vrot.slane %v10553_v14, 4  ;;  %v9515_v27 = vsel %vm15281_vm5, %v9510_v9, %v9514_v33  ;;  %v8833_v57 = vsel %vm15227_vm2, %v8831_v17, %v8832_v47  ;;  %v8132_v9 = vld [vmem:[#allocation3 + $0xb0] sm:$0x1] }
 0x33b   : > { %v9519_v21 = vrot.slane %v9517_v41, 4  ;;  %v10549_v1 = vsel %vm15281_vm5, %v10544_v46, %v10548_v42  ;;  %v9522_v18 = vrot.slane %v9520_v45, 5  ;;  %v9528_v39 = vrot.slane %v9526_v13, 5  ;;  %v9720_v41 = vld [vmem:[#allocation3 + $0xb8] sm:$0xf] }
 0x33c   : > { %v18927_v61 = vsel %vm15227_vm2, %v20825_v43, %v20824_v62  ;;  %v9532_v7 = vrot.slane %v9530_v51, 4  ;;  %8915 = vrot.lane.b32.xlu0 %v14469_v4, %s15176_s15  ;;  %v10559_v37 = vsel %vm15281_vm5, %v10554_v63, %v10558_v23  ;;  %v9536_v8 = vshll.u32 %v9176_v40, 16  ;;  %v8906_v62 = vpop.permute.xlu1 %8905  ;;  %v9719_v46 = vld [vmem:[#allocation3 + $0xb4] sm:$0xe]  ;;  %v9084_v51 = vpop.permute.xlu0 %9083 }
 0x33d   : > { %v8473_v24 = vshrl.u32 %v8130_v36, 16  ;;  %v8476_v33 = vshll.u32 %v8130_v36, 16  ;;  %v14565_v17 = vcombine.low %v10549_v1, %v10559_v37  ;;  %v9523_v47 = vor.u32 %v9522_v18, %v9519_v21  ;;  %8946 = vst.msk [vmem:[#allocation4 + $0x80] sm:$0xff] %vm8937_vm14, %v8906_v62  ;;  %v9721_v36 = vld [vmem:[#allocation3 + $0xbc] sm:$0x1] }
 0x33e   : > { %v9533_v12 = vor.u32 %v9532_v7, %v9528_v39  ;;  %v8482_v14 = vshll.u32 %v8131_v15, 16  ;;  %v14501_v43 = vcombine.low %v9505_v52, %v9515_v27  ;;  %v8486_v13 = vshrl.u32 %v8131_v15, 16  ;;  %9124 = vst.msk [vmem:[#allocation4 + $0x80] sm:$0xff] %vm9115_vm13, %v9084_v51  ;;  %v8133_v1 = vld [vmem:[#allocation3 + $0xb4] sm:$0xf] }
 0x33f   : > { %v8475_v42 = vrot.slane %v8473_v24, 4  ;;  %v8478_v45 = vrot.slane %v8476_v33, 5  ;;  %10682 = vrot.lane.b32.xlu1 %v14565_v17, %s15182_s7  ;;  %v9524_v4 = vrot.slane %v9523_v47, 4  ;;  %v8492_v40 = vshll.u32 %v8132_v9, 16  ;;  %v8134_v9 = vld [vmem:[#allocation3 + $0xb8] sm:$0xf] }
 0x340   : > { %v8484_v23 = vrot.slane %v8482_v14, 5  ;;  %v20826_v5 = vrot.slane %v18509_v54, 5  ;;  %9638 = vrot.lane.b32.xlu0 %v14501_v43, %s15178_s17  ;;  %v9534_v52 = vrot.slane %v9533_v12, 4  ;;  %v8488_v21 = vrot.slane %v8486_v13, 4  ;;  %v11023_v24 = vld [vmem:[#allocation4 + $0x70] sm:$0xff]  ;;  %v11026_v12 = vld [vmem:[#allocation4 + $0x88] sm:$0xff] }
 0x341   : > { %v8479_v27 = vor.u32 %v8478_v45, %v8475_v42  ;;  %v9873_v15 = vrot.slane %v9720_v41, 5  ;;  %v14470_v18 = vcombine.low %v18914_v38, %v8833_v57  ;;  %v9529_v7 = vsel %vm15281_vm5, %v9524_v4, %v9528_v39  ;;  %v15113_v33 = vld [vmem:[#allocation3 + $0xb4] sm:$0xff]   ;;  %11257 = vmatmul.mubr.bf16.gmra.mrb[28].mxu1 %v11023_v24  ;;  %v8135_v42 = vld [vmem:[#allocation3 + $0xbc] sm:$0x1] }
 0x342   : > { %v10886_v63 = vsel %vm15227_vm2, %v18501_v3, %v20826_v5  ;;  %v9538_v37 = vrot.slane %v9536_v8, 5  ;;  %v14518_v54 = vrot.slane %v9719_v46, 9  ;;  %v8489_v17 = vor.u32 %v8488_v21, %v8484_v23  ;;  %v15131_v43 = vld [vmem:[#allocation3 + $0xb4] sm:$0xff]   ;;  %14618 = vmatprep.mubr.msk.bf16.mxu1 %vm8071_vm0, %v11026_v12  ;;  %v18957_v46 = vld [vmem:[#allocation3 + $0xb0] sm:$0x1] }
 0x343   : > { %v8480_v3 = vrot.slane %v8479_v27, 4  ;;  %v8494_v47 = vrot.slane %v8492_v40, 5  ;;  %v9876_v14 = vrot.slane %v9721_v36, 5  ;;  %8917 = vrot.lane.b32.xlu1 %v14470_v18, %s15176_s15  ;;  %v9875_v41 = vrot.slane %v9873_v15, 4  ;;  %8087 = vst.msk [vmem:[#allocation4 + $0xf0] sm:$0xff] %vm8071_vm0, %v15131_v43  ;;  %v9629_v5 = vpop.permute.xlu1 %9628  ;;  %v9950_v18 = vpop.permute.xlu0 %9949 }
 0x344   : > { %v14593_v62 = vcombine.low %v18927_v61, %v10886_v63  ;;  %v8497_v38 = vshrl.u32 %v8133_v1, 16  ;;  %v8500_v57 = vshll.u32 %v8133_v1, 16  ;;  %10137 = vrot.lane.b32.xlu0 %v15113_v33, %s15180_s21  ;;  %v9539_v39 = vsel %vm15281_vm5, %v9534_v52, %v9538_v37  ;;  %v18965_v36 = vld [vmem:[#allocation3 + $0xbc] sm:$0x1]  ;;  %v18973_v1 = vld [vmem:[#allocation3 + $0xb4] sm:$0xe] }
 0x345   : > { %v8490_v8 = vrot.slane %v8489_v17, 4  ;;  %v8506_v45 = vshll.u32 %v8134_v9, 16  ;;  %v8510_v13 = vshrl.u32 %v8134_v9, 16  ;;  %v14502_v51 = vcombine.low %v9529_v7, %v9539_v39  ;;  %9669 = vst.msk [vmem:[#allocation4 + $0x80] sm:$0xff] %vm9660_vm12, %v9629_v5  ;;  %v8679_v9 = vld [vmem:[#allocation3 + $0xb8] sm:$0xf] }
 0x346   : > { %v18961_v61 = vsel %vm15227_vm2, %v14518_v54, %v9873_v15  ;;  %11002 = vst.msk [vmem:[#allocation4 + $0x98] sm:$0xff] %vm8071_vm0, %v14593_v62  ;;  %v8499_v4 = vrot.slane %v8497_v38, 4  ;;  %v8502_v40 = vrot.slane %v8500_v57, 5  ;;  %v8485_v63 = vsel %vm15281_vm5, %v8480_v3, %v8484_v23  ;;  %v8678_v15 = vld [vmem:[#allocation3 + $0xb4] sm:$0xe] }
 0x347   : > { %v8495_v52 = vsel %vm15281_vm5, %v8490_v8, %v8494_v47  ;;  %v18971_v27 = vrot.slane %v8506_v45, 5  ;;  %v8512_v21 = vrot.slane %v8510_v13, 4  ;;  %9640 = vrot.lane.b32.xlu1 %v14502_v51, %s15178_s17  ;;  %v18979_v37 = vsel %vm15227_vm2, %v9875_v41, %v9876_v14  ;;  %9990 = vst.msk [vmem:[#allocation4 + $0x80] sm:$0xff] %vm9981_vm11, %v9950_v18  ;;  %v14929_v14 = vpop.f32.mrb[48].mxu0  ;;  %v15114_v39 = vld [vmem:[#allocation3 + $0xb4] sm:$0xff]  }
 0x348   : > { %v14438_v7 = vcombine.low %v8485_v63, %v8495_v52  ;;  %v8503_v23 = vor.u32 %v8502_v40, %v8499_v4  ;;  %v8516_v54 = vshll.u32 %v8135_v42, 16  ;;  %v18983_v24 = vrot.slane %v10910_v6, 4  ;;  %v626_v52 = vld [vmem:[%s15234_s23 + $0x12c] sm:$0x1] }
 0x349   : > { %v10906_v33 = vrot.slane %v18957_v46, 5  ;;  %v10890_v3 = vsel %vm15227_vm2, %v14578_v19, %v10889_v2  ;;  %v10893_v17 = vsel %vm15227_vm2, %v18752_v48, %v10892_v44  ;;  %v10913_v47 = vrot.slane %v18965_v36, 5  ;;  %v10128_v19 = vpop.permute.xlu1 %10127  ;;  %v7303_v2 = vpop.f32.mrb[49].mxu0 }
 0x34a   : > { %8596 = vrot.lane.b32.xlu0 %v14438_v7, %s15177_s16  ;;  %v8513_v12 = vor.u32 %v8512_v21, %v18971_v27  ;;  %v14594_v41 = vcombine.low %v10890_v3, %v10893_v17  ;;  %v14455_v34 = vrot.slane %v8678_v15, 9  ;;  %v14581_v62 = vrot.slane %v18973_v1, 9  ;;  %10168 = vst.msk [vmem:[#allocation4 + $0x80] sm:$0xff] %vm10159_vm1, %v10128_v19  ;;  %v14930_v43 = vpop.f32.mrb[50].mxu0  ;;  %v627_v21 = vld [vmem:[%s15234_s23 + $0x130] sm:$0xf] }
 0x34b   : > { %v7312_v44 = vadd.f32 %v19007_v50, %v14929_v14  ;;  %v14534_v48 = vcombine.low %v18961_v61, %v18979_v37  ;;  %v8836_v38 = vrot.slane %v8679_v9, 5  ;;  %v7304_v57 = vadd.f32 %v19007_v50, %v7303_v2  ;;  %v7306_v61 = vpop.f32.mrb[51].mxu0  ;;  %v629_v19 = vld [vmem:[%s15234_s23 + $0x138] sm:$0xf] }
 0x34c   : > { %v8504_v8 = vrot.slane %v8503_v23, 4  ;;  %v8518_v42 = vrot.slane %v8516_v54, 5  ;;  %11003 = vst.msk [vmem:[#allocation4 + $0xa8] sm:$0xff] %vm8071_vm0, %v14594_v41  ;;  %v10900_v45 = vsel %vm15227_vm2, %v18762_v16, %v10899_v56  ;;  %v7315_v51 = vadd.f32 %v19007_v50, %v14930_v43  ;;  %v628_v54 = vld [vmem:[%s15234_s23 + $0x134] sm:$0xf] }
 0x34d   : > { %v7448_v13 = vmax.f32 %v7312_v44, 0.0  ;;  %v8839_v4 = vrot.slane %v19001_v29, 5  ;;  %v20827_v40 = vrot.slane %v18605_v32, 9  ;;  %v7446_v63 = vmax.f32 %v7304_v57, 0.0  ;;  %v8587_v15 = vpop.permute.xlu1 %8586  ;;  %v630_v44 = vld [vmem:[%s15234_s23 + $0x13c] sm:$0x1] }
 0x34e   : > { %v7307_v22 = vadd.f32 %v19007_v50, %v7306_v61  ;;  %9095 = vrot.lane.b32.xlu0 %v15114_v39, %s15179_s20  ;;  %v8514_v16 = vrot.slane %v8513_v12, 4  ;;  %v19032_v56 = vsel %vm15227_vm2, %v14455_v34, %v8836_v38  ;;  %v7449_v18 = vmax.f32 %v7315_v51, 0.0  ;;  %8626 = vst.msk [vmem:[#allocation4 + $0x90] sm:$0xff] %vm8616_vm6, %v8587_v15 }
 0x34f   : > { %v10897_v5 = vsel %vm15227_vm2, %v20827_v40, %v10896_v25  ;;  %v14815_v59 = vpack.c.bf16 %v7448_v13, %v7448_v13  ;;  %v8838_v32 = vrot.slane %v8836_v38, 4  ;;  %v14813_v25 = vpack.c.bf16 %v7446_v63, %v7446_v63  ;;  %v10673_v34 = vpop.permute.xlu0 %10672  ;;  %v1795_v13 = vld [vmem:[%s15234_s23 + $0x130] sm:$0xe]  ;;  %v19066_v63 = vld [vmem:[%s15234_s23 + $0x134] sm:$0xf] }
 0x350   : > { %v14595_v7 = vcombine.low %v10897_v5, %v10900_v45  ;;  %v7447_v37 = vmax.f32 %v7307_v22, 0.0  ;;  %v8509_v23 = vsel %vm15281_vm5, %v8504_v8, %v18971_v27  ;;  %v20828_v9 = vshrl.u32 %v17493_v49, 16  ;;  %10713 = vst.msk [vmem:[#allocation4 + $0x80] sm:$0xff] %vm10704_vm10, %v10673_v34 }
 0x351   : > { %v7848_v17 = vsel %vm17432_vm9, %v14815_v59, 0  ;;  %v14816_v14 = vpack.c.bf16 %v7449_v18, %v7449_v18  ;;  %v1292_v12 = vshll.u32 %v626_v52, 16  ;;  %v1297_v41 = vshrl.u32 %v627_v21, 16  ;;  %v20830_v52 = vld [vmem:[#allocation6_spill] sm:$0xff]  ;;  %v9086_v59 = vpop.permute.xlu1 %9085 }
 0x352   : > { %v1288_v3 = vrot.slane %v20828_v9, 4  ;;  %11004 = vst.msk [vmem:[#allocation4 + $0xb8] sm:$0xff] %vm8071_vm0, %v14595_v7  ;;  %v7846_v29 = vsel %vm17206_vm3, %v14813_v25, 0  ;;  %v14814_v27 = vpack.c.bf16 %v7447_v37, %v7447_v37  ;;  %9961 = vrot.lane.b32.xlu0 %v14534_v48, %s15181_s22  ;;  %v1300_v20 = vshll.u32 %v627_v21, 16  ;;  %v1794_v48 = vld [vmem:[%s15234_s23 + $0x12c] sm:$0x1] }
 0x353   : > { %7921 = vst.msk [vmem:[#allocation3 + $0xc8] sm:$0xf] %vm7870_vm15, %v7848_v17  ;;  %7919 = vst.msk [vmem:[#allocation3 + $0xc0] sm:$0xf] %vm7870_vm15, %v7846_v29  ;;  %v7849_v38 = vsel %vm17138_vm4, %v14816_v14, 0  ;;  %v8519_v35 = vsel %vm15281_vm5, %v8514_v16, %v8518_v42  ;;  %v1299_v57 = vrot.slane %v1297_v41, 4  ;;  %v8908_v42 = vpop.permute.xlu0 %8907  ;;  %v19072_v16 = vsel %vm15227_vm2, %v8838_v32, %v8839_v4 }
 0x354   : > { %v1289_v49 = vor.u32 %v1288_v3, %v17523_v53  ;;  %v1306_v43 = vshll.u32 %v628_v54, 16  ;;  %7922 = vst.msk [vmem:[#allocation3 + $0xcc] sm:$0xf] %vm7870_vm15, %v7849_v38  ;;  %v7847_v53 = vsel %vm17370_vm7, %v14814_v27, 0  ;;  %v1294_v39 = vrot.slane %v1292_v12, 5  ;;  %v11028_v3 = vld [vmem:[#allocation4 + $0x98] sm:$0xff] }
 0x355   : > { %v1302_v8 = vrot.slane %v1300_v20, 5  ;;  %v1310_v45 = vshrl.u32 %v628_v54, 16  ;;  %7920 = vst.msk [vmem:[#allocation3 + $0xc4] sm:$0xf] %vm7870_vm15, %v7847_v53  ;;  %v1316_v61 = vshll.u32 %v629_v19, 16  ;;  %v1320_v40 = vshrl.u32 %v629_v19, 16 }
 0x356   : > { %v1290_v51 = vrot.slane %v1289_v49, 4  ;;  %v1326_v5 = vshll.u32 %v630_v44, 16  ;;  %v19068_v22 = vcombine.low %v8509_v23, %v8519_v35  ;;  %v20831_v21 = vrot.slane %v20830_v52, 5  ;;  %8947 = vst.msk [vmem:[#allocation4 + $0x90] sm:$0xff] %vm8937_vm14, %v8908_v42 }
 0x357   : > { %v1303_v31 = vor.u32 %v1302_v8, %v1299_v57  ;;  %v1308_v18 = vrot.slane %v1306_v43, 5  ;;  %v1312_v7 = vrot.slane %v1310_v45, 4  ;;  %v19077_v25 = vrot.slane %v1316_v61, 5  ;;  %9125 = vst.msk [vmem:[#allocation4 + $0x90] sm:$0xff] %vm9115_vm13, %v9086_v59  ;;  %v11025_v49 = vld [vmem:[#allocation4 + $0x80] sm:$0xff] }
 0x358   : > { %v2101_v15 = vrot.slane %v20831_v21, 4  ;;  %v2102_v37 = vrot.slane %v1794_v48, 5  ;;  %v1322_v54 = vrot.slane %v1320_v40, 4  ;;  %v13464_v9 = vrot.slane %v1795_v13, 9  ;;  %11265 = vmatmul.mubr.bf16.gmra.mrb[32].mxu1 %v11025_v49 }
 0x359   : > { %v1304_v23 = vrot.slane %v1303_v31, 4  ;;  %v2106_v4 = vrot.slane %v19066_v63, 5  ;;  %v1295_v14 = vsel %vm15281_vm5, %v1290_v51, %v1294_v39  ;;  %v19085_v12 = vrot.slane %v1326_v5, 5  ;;  %14619 = vmatprep.mubr.msk.bf16.mxu1 %vm8071_vm0, %v11028_v3  ;;  %v11030_v63 = vld [vmem:[#allocation4 + $0xa8] sm:$0xff] }
 0x35a   : > { %v19081_v32 = vld [vmem:[#allocation3 + $0xc8] sm:$0x1]  ;;  %v20832_v41 = vrot.slane %v18747_v55, 9  ;;  %v10907_v27 = vsel %vm15227_vm2, %v18812_v30, %v10906_v33  ;;  %v19098_v34 = vld [vmem:[#allocation3 + $0xc0] sm:$0xe]  ;;  %v19106_v55 = vsel %vm15227_vm2, %v2101_v15, %v2102_v37  ;;  %v9952_v33 = vpop.permute.xlu1 %9951  ;;  %v14471_v38 = vcombine.low %v19032_v56, %v19072_v16  ;;  %v9631_v13 = vpop.permute.xlu0 %9630 }
 0x35b   : > { %v10220_v17 = vld [vmem:[#allocation3 + $0xc8] sm:$0x1]  ;;  %v1309_v19 = vsel %vm15281_vm5, %v1304_v23, %v1308_v18  ;;  %v19112_v60 = vsel %vm15227_vm2, %v13464_v9, %v2106_v4  ;;  %v10920_v30 = vrot.slane %v19081_v32, 5  ;;  %v19115_v46 = vld [vmem:[#allocation3 + $0xcc] sm:$0xe]  ;;  %v1313_v35 = vor.u32 %v1312_v7, %v1308_v18  ;;  %9670 = vst.msk [vmem:[#allocation4 + $0x90] sm:$0xff] %vm9660_vm12, %v9631_v13 }
 0x35c   : > { %v10904_v29 = vsel %vm15227_vm2, %v20832_v41, %v10903_v11  ;;  %v19100_v20 = vld [vmem:[#allocation3 + $0xc8] sm:$0x1]  ;;  %v10580_v44 = vshll.u32 %v10220_v17, 16  ;;  %v14582_v57 = vrot.slane %v19098_v34, 9  ;;  %v19120_v43 = vld [vmem:[#allocation3 + $0xc4] sm:$0xf]  ;;  %v1323_v53 = vor.u32 %v1322_v54, %v19077_v25 }
 0x35d   : > { %v14596_v11 = vcombine.low %v10904_v29, %v10907_v27  ;;  %v15115_v48 = vld [vmem:[#allocation3 + $0xc0] sm:$0xff]   ;;  %v10911_v39 = vsel %vm15227_vm2, %v14581_v62, %v10910_v6  ;;  %v10914_v8 = vsel %vm15227_vm2, %v18983_v24, %v10913_v47  ;;  %v10917_v45 = vrot.slane %v19120_v43, 5  ;;  %9991 = vst.msk [vmem:[#allocation4 + $0x90] sm:$0xff] %vm9981_vm11, %v9952_v33  ;;  %v9179_v27 = vld [vmem:[#allocation3 + $0xc8] sm:$0x1] }
 0x35e   : > { %v10218_v51 = vld [vmem:[#allocation3 + $0xc0] sm:$0xf]  ;;  %v19137_v61 = vcombine.low %v1295_v14, %v1309_v19  ;;  %v13497_v28 = vcombine.low %v19106_v55, %v19112_v60  ;;  %v14597_v40 = vcombine.low %v10911_v39, %v10914_v8  ;;  %10139 = vrot.lane.b32.xlu1 %v15115_v48, %s15180_s21  ;;  %v10219_v6 = vld [vmem:[#allocation3 + $0xc4] sm:$0xf]  ;;  %v10582_v24 = vrot.slane %v10580_v44, 5  ;;  %v10675_v47 = vpop.permute.xlu1 %10674  ;;  %v10130_v23 = vpop.permute.xlu0 %10129 }
 0x35f   : > { %11005 = vst.msk [vmem:[#allocation4 + $0xc8] sm:$0xff] %vm8071_vm0, %v14596_v11  ;;  %v10561_v36 = vshrl.u32 %v10218_v51, 16  ;;  %v10564_v62 = vshll.u32 %v10218_v51, 16  ;;  %v10570_v5 = vshll.u32 %v10219_v6, 16  ;;  %v10574_v42 = vshrl.u32 %v10219_v6, 16  ;;  %v15117_v11 = vld [vmem:[#allocation3 + $0xc0] sm:$0xff]  }
 0x360   : > { %v9722_v31 = vld [vmem:[#allocation3 + $0xc0] sm:$0xe]  ;;  %v9883_v52 = vrot.slane %v19100_v20, 5  ;;  %v19146_v21 = vrot.slane %v1313_v35, 4  ;;  %11006 = vst.msk [vmem:[#allocation4 + $0xd8] sm:$0xff] %vm8071_vm0, %v14597_v40  ;;  %v19151_v15 = vrot.slane %v10917_v45, 4 }
 0x361   : > { %v10563_v59 = vrot.slane %v10561_v36, 4  ;;  %v10566_v18 = vrot.slane %v10564_v62, 5  ;;  %v9723_v7 = vld [vmem:[#allocation3 + $0xc4] sm:$0xf]  ;;  %v1324_v37 = vrot.slane %v1323_v53, 4  ;;  %v10572_v54 = vrot.slane %v10570_v5, 5 }
 0x362   : > { %v10576_v9 = vrot.slane %v10574_v42, 4  ;;  %v14519_v3 = vrot.slane %v9722_v31, 9  ;;  %v9880_v17 = vrot.slane %v9723_v7, 5  ;;  %v9177_v14 = vld [vmem:[#allocation3 + $0xc0] sm:$0xf]  ;;  %10169 = vst.msk [vmem:[#allocation4 + $0x90] sm:$0xff] %vm10159_vm1, %v10130_v23  ;;  %8598 = vrot.lane.b32.xlu1 %v19068_v22, %s15177_s16  ;;  %v1319_v19 = vsel %vm15281_vm5, %v19146_v21, %v19077_v25  ;;  %v8910_v51 = vpop.permute.xlu1 %8909 }
 0x363   : > { %v10567_v41 = vor.u32 %v10566_v18, %v10563_v59  ;;  %v9178_v29 = vld [vmem:[#allocation3 + $0xc4] sm:$0xf]  ;;  %v9541_v49 = vshrl.u32 %v9177_v14, 16  ;;  %v9544_v20 = vshll.u32 %v9177_v14, 16  ;;  %10714 = vst.msk [vmem:[#allocation4 + $0x90] sm:$0xff] %vm10704_vm10, %v10675_v47  ;;  %v1329_v22 = vsel %vm15281_vm5, %v1324_v37, %v19085_v12 }
 0x364   : > { %v10577_v33 = vor.u32 %v10576_v9, %v10572_v54  ;;  %v9882_v44 = vrot.slane %v9880_v17, 4  ;;  %v9550_v35 = vshll.u32 %v9178_v29, 16  ;;  %v9554_v8 = vshrl.u32 %v9178_v29, 16  ;;  %v10221_v13 = vld [vmem:[#allocation3 + $0xcc] sm:$0xf] }
 0x365   : > { %v10568_v48 = vrot.slane %v10567_v41, 4  ;;  %v9543_v53 = vrot.slane %v9541_v49, 4  ;;  %v9546_v39 = vrot.slane %v9544_v20, 5  ;;  %v9560_v36 = vshll.u32 %v9179_v27, 16  ;;  %v1797_v42 = vld [vmem:[%s15234_s23 + $0x138] sm:$0xf] }
 0x366   : > { %v10578_v40 = vrot.slane %v10577_v33, 4  ;;  %v9884_v25 = vsel %vm15227_vm2, %v9882_v44, %v9883_v52  ;;  %v9552_v6 = vrot.slane %v9550_v35, 5  ;;  %9097 = vrot.lane.b32.xlu1 %v15117_v11, %s15179_s20  ;;  %v9881_v62 = vsel %vm15227_vm2, %v14519_v3, %v9880_v17  ;;  %v1798_v18 = vld [vmem:[%s15234_s23 + $0x13c] sm:$0x1]  ;;  %v13689_v29 = vld [vmem:[%s15234_s23 + $0x140] sm:$0xf]  ;;  %v9633_v35 = vpop.permute.xlu1 %9632 }
 0x367   : > { %v10573_v12 = vsel %vm15281_vm5, %v10568_v48, %v10572_v54  ;;  %v9547_v47 = vor.u32 %v9546_v39, %v9543_v53  ;;  %v9556_v5 = vrot.slane %v9554_v8, 4  ;;  %v14535_v21 = vcombine.low %v9881_v62, %v9884_v25  ;;  %v13688_v14 = vld [vmem:[%s15234_s23 + $0x13c] sm:$0x1]  ;;  %v20833_v11 = vld [vmem:[#allocation7_spill] sm:$0xff]  ;;  %v13822_v16 = vld [vmem:[%s15234_s23 + $0x144] sm:$0xf] }
 0x368   : > { %v10583_v31 = vsel %vm15281_vm5, %v10578_v40, %v10582_v24  ;;  %v10585_v52 = vshrl.u32 %v10221_v13, 16  ;;  %v10588_v59 = vshll.u32 %v10221_v13, 16  ;;  %v9562_v9 = vrot.slane %v9560_v36, 5  ;;  %v20835_v13 = vld [vmem:[#allocation8_spill] sm:$0xff] }
 0x369   : > { %v14566_v7 = vcombine.low %v10573_v12, %v10583_v31  ;;  %v9548_v37 = vrot.slane %v9547_v47, 4  ;;  %v9557_v23 = vor.u32 %v9556_v5, %v9552_v6  ;;  %v2108_v3 = vrot.slane %v2106_v4, 4  ;;  %v8589_v8 = vpop.permute.xlu0 %8588  ;;  %v13691_v12 = vld [vmem:[%s15234_s23 + $0x148] sm:$0xf] }
 0x36a   : > { %v10587_v54 = vrot.slane %v10585_v52, 4  ;;  %v10590_v41 = vrot.slane %v10588_v59, 5  ;;  %v2109_v17 = vrot.slane %v1797_v42, 5  ;;  %v11027_v27 = vld [vmem:[#allocation4 + $0x90] sm:$0xff]  ;;  %9963 = vrot.lane.b32.xlu1 %v14535_v21, %s15181_s22  ;;  %v19181_v49 = vcombine.low %v1319_v19, %v1329_v22  ;;  %v13690_v22 = vld [vmem:[%s15234_s23 + $0x144] sm:$0xf] }
 0x36b   : > { %10684 = vrot.lane.b32.xlu0 %v14566_v7, %s15182_s7  ;;  %v9558_v24 = vrot.slane %v9557_v23, 4  ;;  %v2112_v20 = vrot.slane %v1798_v18, 5  ;;  %v20834_v33 = vshrl.u32 %v20833_v11, 16  ;;  %11273 = vmatmul.mubr.bf16.gmra.mrb[36].mxu1 %v11027_v27  ;;  %v9553_v4 = vsel %vm15281_vm5, %v9548_v37, %v9552_v6  ;;  %8627 = vst.msk [vmem:[#allocation4 + $0xa0] sm:$0xff] %vm8616_vm6, %v8589_v8  ;;  %v13692_v42 = vld [vmem:[%s15234_s23 + $0x14c] sm:$0x1]  ;;  %v10132_v7 = vpop.permute.xlu1 %10131 }
 0x36c   : > { %v10591_v48 = vor.u32 %v10590_v41, %v10587_v54  ;;  %v2111_v53 = vrot.slane %v2109_v17, 4  ;;  %v3543_v39 = vshll.u32 %v13688_v14, 16  ;;  %14620 = vmatprep.mubr.msk.bf16.mxu1 %vm8071_vm0, %v11030_v63  ;;  %v3548_v25 = vshrl.u32 %v13689_v29, 16  ;;  %8948 = vst.msk [vmem:[#allocation4 + $0xa0] sm:$0xff] %vm8937_vm14, %v8910_v51  ;;  %v13820_v18 = vld [vmem:[%s15234_s23 + $0x13c] sm:$0x1] }
 0x36d   : > { %v3539_v44 = vrot.slane %v20834_v33, 4  ;;  %v9563_v19 = vsel %vm15281_vm5, %v9558_v24, %v9562_v9  ;;  %v3551_v36 = vshll.u32 %v13689_v29, 16  ;;  %v19198_v47 = vsel %vm15227_vm2, %v2108_v3, %v2109_v17  ;;  %v13821_v54 = vld [vmem:[%s15234_s23 + $0x140] sm:$0xe]  ;;  %v9088_v41 = vpop.permute.xlu0 %9087  ;;  %v14933_v33 = vpop.f32.mrb[52].mxu0 }
 0x36e   : > { %v14503_v6 = vcombine.low %v9553_v4, %v9563_v19  ;;  %v19194_v62 = vrot.slane %v10591_v48, 4  ;;  %v19202_v5 = vsel %vm15227_vm2, %v2111_v53, %v2112_v20  ;;  %v3545_v21 = vrot.slane %v3543_v39, 5  ;;  %9126 = vst.msk [vmem:[#allocation4 + $0xa0] sm:$0xff] %vm9115_vm13, %v9088_v41  ;;  %v13823_v53 = vld [vmem:[%s15234_s23 + $0x148] sm:$0xf]  ;;  %v7319_v39 = vpop.f32.mrb[53].mxu0 }
 0x36f   : > { %v3540_v40 = vor.u32 %v3539_v44, %v20835_v13  ;;  %8919 = vrot.lane.b32.xlu0 %v14471_v38, %s15176_s15  ;;  %v3550_v52 = vrot.slane %v3548_v25, 4  ;;  %v3553_v59 = vrot.slane %v3551_v36, 5  ;;  %v3557_v37 = vshll.u32 %v13690_v22, 16  ;;  %v20836_v38 = vld [vmem:[#allocation9_spill] sm:$0xff]  ;;  %9671 = vst.msk [vmem:[#allocation4 + $0xa0] sm:$0xff] %vm9660_vm12, %v9633_v35  ;;  %v20838_v33 = vld [vmem:[#allocation10_spill] sm:$0xff] }
 0x370   : > { %v3561_v23 = vshrl.u32 %v13690_v22, 16  ;;  %v3567_v9 = vshll.u32 %v13691_v12, 16  ;;  %v3571_v14 = vshrl.u32 %v13691_v12, 16  ;;  %v13498_v51 = vcombine.low %v19198_v47, %v19202_v5 }
 0x371   : > { %v3541_v31 = vrot.slane %v3540_v40, 4  ;;  %v3554_v3 = vor.u32 %v3553_v59, %v3550_v52  ;;  %v3577_v56 = vshll.u32 %v13692_v42, 16  ;;  %v20837_v17 = vrot.slane %v20836_v38, 5  ;;  %v14934_v40 = vpop.f32.mrb[54].mxu0  ;;  %v9954_v25 = vpop.permute.xlu0 %9953 }
 0x372   : > { %v3559_v27 = vrot.slane %v3557_v37, 5  ;;  %v3563_v24 = vrot.slane %v3561_v23, 4  ;;  %v3569_v20 = vrot.slane %v3567_v9, 5  ;;  %v3573_v11 = vrot.slane %v3571_v14, 4  ;;  %9992 = vst.msk [vmem:[#allocation4 + $0xa0] sm:$0xff] %vm9981_vm11, %v9954_v25  ;;  %v8591_v42 = vpop.permute.xlu1 %8590 }
 0x373   : > { %v4349_v29 = vrot.slane %v20837_v17, 4  ;;  %9642 = vrot.lane.b32.xlu0 %v14503_v6, %s15178_s17  ;;  %v3546_v44 = vsel %vm15281_vm5, %v3541_v31, %v3545_v21  ;;  %v3555_v63 = vrot.slane %v3554_v3, 4  ;;  %v4350_v4 = vrot.slane %v13820_v18, 5  ;;  %v7322_v6 = vpop.f32.mrb[55].mxu0  ;;  %10170 = vst.msk [vmem:[#allocation4 + $0xa0] sm:$0xff] %vm10159_vm1, %v10132_v7 }
 0x374   : > { %v13860_v48 = vrot.slane %v13821_v54, 9  ;;  %v3564_v8 = vor.u32 %v3563_v24, %v3559_v27  ;;  %v3574_v19 = vor.u32 %v3573_v11, %v3569_v20  ;;  %v4354_v22 = vrot.slane %v13822_v16, 5  ;;  %8628 = vst.msk [vmem:[#allocation4 + $0xb0] sm:$0xff] %vm8616_vm6, %v8591_v42  ;;  %v13824_v14 = vld [vmem:[%s15234_s23 + $0x14c] sm:$0x1] }
 0x375   : > { %v7320_v13 = vadd.f32 %v19007_v50, %v7319_v39  ;;  %v3560_v35 = vsel %vm15281_vm5, %v3555_v63, %v3559_v27  ;;  %v3579_v36 = vrot.slane %v3577_v56, 5  ;;  %v19228_v12 = vsel %vm15227_vm2, %v4349_v29, %v4350_v4  ;;  %v10677_v3 = vpop.permute.xlu0 %10676  ;;  %v14084_v56 = vld [vmem:[%s15234_s23 + $0x14c] sm:$0x1]  ;;  %v14085_v16 = vld [vmem:[%s15234_s23 + $0x150] sm:$0xf] }
 0x376   : > { %v3565_v31 = vrot.slane %v3564_v8, 4  ;;  %v4357_v21 = vrot.slane %v13823_v53, 5  ;;  %v7323_v59 = vadd.f32 %v19007_v50, %v7322_v6  ;;  %v3575_v18 = vrot.slane %v3574_v19, 4  ;;  %10715 = vst.msk [vmem:[#allocation4 + $0xa0] sm:$0xff] %vm10704_vm10, %v10677_v3  ;;  %v14086_v29 = vld [vmem:[%s15234_s23 + $0x154] sm:$0xf] }
 0x377   : > { %v7450_v52 = vmax.f32 %v7320_v13, 0.0  ;;  %v19236_v37 = vsel %vm15227_vm2, %v13860_v48, %v4354_v22  ;;  %v19238_v23 = vcombine.low %v3546_v44, %v3560_v35  ;;  %v4356_v7 = vrot.slane %v4354_v22, 4  ;;  %v14087_v53 = vld [vmem:[%s15234_s23 + $0x158] sm:$0xf]  ;;  %v14088_v13 = vld [vmem:[%s15234_s23 + $0x15c] sm:$0x1] }
 0x378   : > { %v3570_v9 = vsel %vm15281_vm5, %v3565_v31, %v3569_v20  ;;  %v7451_v41 = vmax.f32 %v7323_v59, 0.0  ;;  %v3580_v50 = vsel %vm15281_vm5, %v3575_v18, %v3579_v36  ;;  %v13893_v38 = vcombine.low %v19228_v12, %v19236_v37  ;;  %v20840_v35 = vld [vmem:[#allocation11_spill] sm:$0xff]  ;;  %v14216_v42 = vld [vmem:[%s15234_s23 + $0x14c] sm:$0x1] }
 0x379   : > { %v14817_v54 = vpack.c.bf16 %v7450_v52, %v7450_v52  ;;  %v4359_v17 = vrot.slane %v4357_v21, 4  ;;  %v19253_v20 = vcombine.low %v3570_v9, %v3580_v50  ;;  %v4360_v11 = vrot.slane %v13824_v14, 5  ;;  %v14217_v31 = vld [vmem:[%s15234_s23 + $0x150] sm:$0xe]  ;;  %v9090_v52 = vpop.permute.xlu1 %9089  ;;  %v19276_v14 = vld [vmem:[%s15234_s23 + $0x154] sm:$0xf] }
 0x37a   : > { %v14818_v24 = vpack.c.bf16 %v7451_v41, %v7451_v41  ;;  %v20839_v44 = vshrl.u32 %v20838_v33, 16  ;;  %v5791_v4 = vshll.u32 %v14084_v56, 16  ;;  %v5796_v48 = vshrl.u32 %v14085_v16, 16  ;;  %v20841_v50 = vld [vmem:[#allocation12_spill] sm:$0xff]  ;;  %v631_v33 = vld [vmem:[%s15234_s23 + $0x140] sm:$0xf] }
 0x37b   : > { %v7850_v27 = vsel %vm17138_vm4, %v14817_v54, 0  ;;  %v19263_v8 = vsel %vm15227_vm2, %v4356_v7, %v4357_v21  ;;  %v5799_v19 = vshll.u32 %v14085_v16, 16  ;;  %v5805_v22 = vshll.u32 %v14086_v29, 16  ;;  %v8912_v40 = vpop.permute.xlu0 %8911  ;;  %v1803_v37 = vld [vmem:[%s15234_s23 + $0x150] sm:$0xe] }
 0x37c   : > { %7923 = vst.msk [vmem:[#allocation3 + $0xd0] sm:$0xf] %vm7870_vm15, %v7850_v27  ;;  %v5787_v63 = vrot.slane %v20839_v44, 4  ;;  %v7851_v39 = vsel %vm17138_vm4, %v14818_v24, 0  ;;  %v19269_v25 = vsel %vm15227_vm2, %v4359_v17, %v4360_v11  ;;  %v5793_v6 = vrot.slane %v5791_v4, 5  ;;  %v11032_v44 = vld [vmem:[#allocation4 + $0xb8] sm:$0xff] }
 0x37d   : > { %7924 = vst.msk [vmem:[#allocation3 + $0xd4] sm:$0xf] %vm7870_vm15, %v7851_v39  ;;  %v5798_v2 = vrot.slane %v5796_v48, 4  ;;  %v5801_v21 = vrot.slane %v5799_v19, 5  ;;  %v5807_v59 = vrot.slane %v5805_v22, 5  ;;  %v5809_v18 = vshrl.u32 %v14086_v29, 16 }
 0x37e   : > { %v5788_v36 = vor.u32 %v5787_v63, %v20840_v35  ;;  %8949 = vst.msk [vmem:[#allocation4 + $0xb0] sm:$0xff] %vm8937_vm14, %v8912_v40  ;;  %v5815_v9 = vshll.u32 %v14087_v53, 16  ;;  %v5819_v41 = vshrl.u32 %v14087_v53, 16  ;;  %v5825_v3 = vshll.u32 %v14088_v13, 16  ;;  %v11029_v16 = vld [vmem:[#allocation4 + $0xa0] sm:$0xff] }
 0x37f   : > { %9127 = vst.msk [vmem:[#allocation4 + $0xb0] sm:$0xff] %vm9115_vm13, %v9090_v52  ;;  %v20842_v7 = vrot.slane %v20841_v50, 5  ;;  %v5802_v17 = vor.u32 %v5801_v21, %v5798_v2  ;;  %v5811_v27 = vrot.slane %v5809_v18, 4  ;;  %v6598_v11 = vrot.slane %v14216_v42, 5  ;;  %11281 = vmatmul.mubr.bf16.gmra.mrb[40].mxu1 %v11029_v16  ;;  %v9956_v50 = vpop.permute.xlu1 %9955  ;;  %v19326_v16 = vld [vmem:[%s20719_s4] ss:$0 sm:$0xff] }
 0x380   : > { %v5789_v54 = vrot.slane %v5788_v36, 4  ;;  %v5817_v24 = vrot.slane %v5815_v9, 5  ;;  %v13894_v29 = vcombine.low %v19263_v8, %v19269_v25  ;;  %v5821_v63 = vrot.slane %v5819_v41, 4  ;;  %14621 = vmatprep.mubr.msk.bf16.mxu1 %vm8071_vm0, %v11032_v44 }
 0x381   : > { %v6597_v56 = vrot.slane %v20842_v7, 4  ;;  %v5827_v4 = vrot.slane %v5825_v3, 5  ;;  %v14256_v48 = vrot.slane %v14217_v31, 9  ;;  %v5803_v22 = vrot.slane %v5802_v17, 4 }
 0x382   : > { %v5794_v19 = vsel %vm15281_vm5, %v5789_v54, %v5793_v6  ;;  %v5812_v13 = vor.u32 %v5811_v27, %v5807_v59  ;;  %v5822_v2 = vor.u32 %v5821_v63, %v5817_v24  ;;  %v6602_v42 = vrot.slane %v19276_v14, 5 }
 0x383   : > { %v19284_v39 = vld [vmem:[#allocation3 + $0xd0] sm:$0xf]  ;;  %v19291_v40 = vsel %vm15227_vm2, %v6597_v56, %v6598_v11  ;;  %v1331_v31 = vshrl.u32 %v631_v33, 16  ;;  %v9635_v21 = vpop.permute.xlu0 %9634  ;;  %v5808_v54 = vsel %vm15281_vm5, %v5803_v22, %v5807_v59  ;;  %v19306_v14 = vsel %vm15227_vm2, %v14582_v57, %v10917_v45  ;;  %v632_v56 = vld [vmem:[%s15234_s23 + $0x144] sm:$0xf]  ;;  %v11202_v22 = vpop.f32.mrb[0].mxu1 }
 0x384   : > { %v15119_v53 = vld [vmem:[#allocation3 + $0xcc] sm:$0xff]   ;;  %v20753_v35 = vrot.slane %v19284_v39, 5  ;;  %v19295_v52 = vld [vmem:[#allocation3 + $0xd4] sm:$0x1]  ;;  %9672 = vst.msk [vmem:[#allocation4 + $0xb0] sm:$0xff] %vm9660_vm12, %v9635_v21  ;;  %v19319_v34 = vsel %vm15227_vm2, %v19151_v15, %v10920_v30  ;;  %v5813_v45 = vrot.slane %v5812_v13, 4  ;;  %v19328_v17 = vcombine.low %v5794_v19, %v5808_v54 }
 0x385   : > { %v10222_v36 = vld [vmem:[#allocation3 + $0xd0] sm:$0xf]  ;;  %10141 = vrot.lane.b32.xlu0 %v15119_v53, %s15180_s21  ;;  %v10223_v18 = vld [vmem:[#allocation3 + $0xd4] sm:$0x1]  ;;  %9993 = vst.msk [vmem:[#allocation4 + $0xb0] sm:$0xff] %vm9981_vm11, %v9956_v50  ;;  %v5823_v59 = vrot.slane %v5822_v2, 4  ;;  %v19332_v32 = vsel %vm15227_vm2, %v14256_v48, %v6602_v42 }
 0x386   : > { %v10594_v6 = vshll.u32 %v10222_v36, 16  ;;  %v10598_v9 = vshrl.u32 %v10222_v36, 16  ;;  %v19310_v41 = vrot.slane %v20753_v35, 4  ;;  %v10604_v7 = vshll.u32 %v10223_v18, 16  ;;  %v633_v19 = vld [vmem:[%s15234_s23 + $0x148] sm:$0xf] }
 0x387   : > { %v1333_v30 = vrot.slane %v1331_v31, 4  ;;  %v1334_v15 = vshll.u32 %v631_v33, 16  ;;  %v10134_v44 = vpop.permute.xlu0 %10133  ;;  %v5818_v63 = vsel %vm15281_vm5, %v5813_v45, %v5817_v24  ;;  %v5828_v53 = vsel %vm15281_vm5, %v5823_v59, %v5827_v4  ;;  %v11204_v2 = vpop.f32.mrb[1].mxu1  ;;  %v14219_v21 = vld [vmem:[%s15234_s23 + $0x158] sm:$0xf] }
 0x388   : > { %v10596_v57 = vrot.slane %v10594_v6, 5  ;;  %v10600_v43 = vrot.slane %v10598_v9, 4  ;;  %v10606_v11 = vrot.slane %v10604_v7, 5  ;;  %10171 = vst.msk [vmem:[#allocation4 + $0xb0] sm:$0xff] %vm10159_vm1, %v10134_v44  ;;  %v19345_v48 = vcombine.low %v5818_v63, %v5828_v53  ;;  %v11205_v18 = vpop.f32.mrb[2].mxu1 }
 0x389   : > { %1630 = vrot.lane.b32.xlu0 %v19137_v61, %s15168_s27  ;;  %v1336_v13 = vrot.slane %v1334_v15, 5  ;;  %v1340_v36 = vshll.u32 %v632_v56, 16  ;;  %v11203_v61 = vadd.f32 %v19326_v16, %v11202_v22  ;;  %v14289_v31 = vcombine.low %v19291_v40, %v19332_v32  ;;  %v15121_v6 = vld [vmem:[%s15234_s23 + $0x138] ss:$8 sps:$4 sm:$0xff]   ;;  %v14220_v15 = vld [vmem:[%s15234_s23 + $0x15c] sm:$0x1] }
 0x38a   : > { %v10601_v27 = vor.u32 %v10600_v43, %v10596_v57  ;;  %v10597_v33 = vsel %vm15281_vm5, %v19194_v62, %v10596_v57  ;;  %v1344_v4 = vshrl.u32 %v632_v56, 16  ;;  %v1350_v54 = vshll.u32 %v633_v19, 16  ;;  %v11207_v43 = vpop.f32.mrb[3].mxu1  ;;  %v13694_v40 = vld [vmem:[%s15234_s23 + $0x154] sm:$0xf] }
 0x38b   : > { %v1337_v9 = vor.u32 %v1336_v13, %v1333_v30  ;;  %v1342_v62 = vrot.slane %v1340_v36, 5  ;;  %v1354_v50 = vshrl.u32 %v633_v19, 16  ;;  %v11329_v7 = vmax.f32 %v11203_v61, 0.0  ;;  %v8593_v59 = vpop.permute.xlu0 %8592 }
 0x38c   : > { %v10602_v24 = vrot.slane %v10601_v27, 4  ;;  %v11206_v57 = vadd.f32 %v19326_v16, %v11205_v18  ;;  %v1346_v56 = vrot.slane %v1344_v4, 4  ;;  %8629 = vst.msk [vmem:[#allocation4 + $0xc0] sm:$0xff] %vm8616_vm6, %v8593_v59  ;;  %v6604_v44 = vrot.slane %v6602_v42, 4 }
 0x38d   : > { %2318 = vrot.lane.b32.xlu0 %v13497_v28, %s15167_s26  ;;  %v1338_v30 = vrot.slane %v1337_v9, 4  ;;  %v6605_v63 = vrot.slane %v14219_v21, 5  ;;  %v11393_v53 = vcombine.high %v11329_v7, %v11329_v7  ;;  %v11400_v19 = vrot.slane %v11329_v7, %v18876_v10 }
 0x38e   : > { %v10607_v45 = vsel %vm15281_vm5, %v10602_v24, %v10606_v11  ;;  %v11330_v22 = vmax.f32 %v11206_v57, 0.0  ;;  %v1347_v13 = vor.u32 %v1346_v56, %v1342_v62  ;;  %v10679_v11 = vpop.permute.xlu1 %10678  ;;  %v1352_v60 = vrot.slane %v1350_v54, 5 }
 0x38f   : > { %v14567_v27 = vcombine.low %v10597_v33, %v10607_v45  ;;  %v1343_v55 = vsel %vm15281_vm5, %v1338_v30, %v1342_v62  ;;  %v6607_v28 = vrot.slane %v6605_v63, 4  ;;  %v6608_v36 = vrot.slane %v14220_v15, 5  ;;  %10716 = vst.msk [vmem:[#allocation4 + $0xb0] sm:$0xff] %vm10704_vm10, %v10679_v11  ;;  %v9092_v7 = vpop.permute.xlu0 %9091  ;;  %v634_v15 = vld [vmem:[%s15234_s23 + $0x14c] sm:$0x1] }
 0x390   : > { %v11407_v33 = vrot.slane %v11393_v53, %v18876_v10  ;;  %v11408_v61 = vcombine.high %v11400_v19, %v11400_v19  ;;  %v14626_v2 = vrot.slane %v11400_v19, 9  ;;  %v11410_v42 = vcombine.high %v11330_v22, %v11330_v22 }
 0x391   : > { %10686 = vrot.lane.b32.xlu1 %v14567_v27, %s15182_s7  ;;  %2716 = vrot.lane.b32.xlu0 %v15121_v6, %s15165_s24  ;;  %v11417_v24 = vrot.slane %v11330_v22, %v18876_v10  ;;  %v1348_v4 = vrot.slane %v1347_v13, 4  ;;  %v19371_v21 = vsel %vm15227_vm2, %v6604_v44, %v6605_v63  ;;  %v19375_v18 = vsel %vm15227_vm2, %v6607_v28, %v6608_v36  ;;  %v19397_v13 = vld [vmem:[%s15234_s23 + $0x154] sm:$0xf]  ;;  %v15124_v36 = vld [vmem:[%s15234_s23 + $0x148] ss:$8 sps:$4 sm:$0xff]  }
 0x392   : > { %v11409_v9 = vcombine.high %v11407_v33, %v11407_v33  ;;  %v14627_v62 = vrot.slane %v11408_v61, 9  ;;  %v14628_v54 = vrot.slane %v11407_v33, 9  ;;  %v1356_v57 = vrot.slane %v1354_v50, 4  ;;  %v8914_v59 = vpop.permute.xlu1 %8913 }
 0x393   : > { %v11424_v6 = vrot.slane %v11410_v42, %v18876_v10  ;;  %v11425_v43 = vcombine.high %v11417_v24, %v11417_v24  ;;  %v14630_v45 = vrot.slane %v11417_v24, 9  ;;  %v1353_v56 = vsel %vm15281_vm5, %v1348_v4, %v1352_v60  ;;  %8950 = vst.msk [vmem:[#allocation4 + $0xc0] sm:$0xff] %vm8937_vm14, %v8914_v59 }
 0x394   : > { %v14629_v27 = vrot.slane %v11409_v9, 9  ;;  %v19383_v30 = vmax.f32 %v11400_v19, %v14626_v2  ;;  %v19385_v44 = vmax.f32 %v11408_v61, %v14627_v62  ;;  %v19387_v50 = vmax.f32 %v11407_v33, %v14628_v54  ;;  %9128 = vst.msk [vmem:[#allocation4 + $0xc0] sm:$0xff] %vm9115_vm13, %v9092_v7  ;;  %v1800_v2 = vld [vmem:[%s15234_s23 + $0x144] sm:$0xf]  ;;  %v1801_v7 = vld [vmem:[%s15234_s23 + $0x148] sm:$0xf] }
 0x395   : > { %1632 = vrot.lane.b32.xlu1 %v19181_v49, %s15168_s27  ;;  %3881 = vrot.lane.b32.xlu0 %v19238_v23, %s15169_s28  ;;  %v635_v49 = vld [vmem:[%s15234_s23 + $0x150] sm:$0xf]  ;;  %v11426_v63 = vcombine.high %v11424_v6, %v11424_v6  ;;  %v14631_v53 = vrot.slane %v11425_v43, 9  ;;  %v14632_v22 = vrot.slane %v11424_v6, 9  ;;  %v19394_v19 = vcombine.low %v1343_v55, %v1353_v56  ;;  %v1799_v23 = vld [vmem:[%s15234_s23 + $0x140] sm:$0xe] }
 0x396   : > { %v19399_v11 = vmax.f32 %v11409_v9, %v14629_v27  ;;  %v19401_v28 = vmax.f32 %v11417_v24, %v14630_v45  ;;  %v1357_v33 = vor.u32 %v1356_v57, %v1352_v60  ;;  %v1360_v61 = vshll.u32 %v634_v15, 16  ;;  %v9637_v55 = vpop.permute.xlu1 %9636  ;;  %v15122_v62 = vld [vmem:[%s15234_s23 + $0x144] sm:$0xff]   ;;  %v11031_v54 = vld [vmem:[#allocation4 + $0xb0] sm:$0xff]  ;;  %v11210_v60 = vpop.f32.mrb[4].mxu1 }
 0x397   : > { %v14633_v42 = vrot.slane %v11426_v63, 9  ;;  %v19406_v4 = vmax.f32 %v11425_v43, %v14631_v53  ;;  %v14290_v24 = vcombine.low %v19371_v21, %v19375_v18  ;;  %v1365_v9 = vshrl.u32 %v635_v49, 16  ;;  %v9958_v57 = vpop.permute.xlu0 %9957  ;;  %9673 = vst.msk [vmem:[#allocation4 + $0xc0] sm:$0xff] %vm9660_vm12, %v9637_v55  ;;  %11289 = vmatmul.mubr.bf16.gmra.mrb[44].mxu1 %v11031_v54  ;;  %v11034_v43 = vld [vmem:[#allocation4 + $0xc8] sm:$0xff]  ;;  %v11212_v27 = vpop.f32.mrb[5].mxu1 }
 0x398   : > { %v19421_v47 = vrot.slane %v1357_v33, 4  ;;  %v19423_v5 = vrot.slane %v1360_v61, 5  ;;  %v1374_v45 = vshll.u32 %v19397_v13, 16  ;;  %v19426_v59 = vmax.f32 %v11424_v6, %v14632_v22  ;;  %9994 = vst.msk [vmem:[#allocation4 + $0xc0] sm:$0xff] %vm9981_vm11, %v9958_v57  ;;  %14622 = vmatprep.mubr.msk.bf16.mxu1 %vm8071_vm0, %v11034_v43  ;;  %v11213_v53 = vpop.f32.mrb[6].mxu1 }
 0x399   : > { %2320 = vrot.lane.b32.xlu1 %v13498_v51, %s15167_s26  ;;  %4566 = vrot.lane.b32.xlu0 %v13893_v38, %s15166_s25  ;;  %v1368_v51 = vshll.u32 %v635_v49, 16  ;;  %v19428_v56 = vmax.f32 %v11426_v63, %v14633_v42  ;;  %v11211_v15 = vadd.f32 %v19326_v16, %v11210_v60  ;;  %v1367_v12 = vrot.slane %v1365_v9, 4  ;;  %v19435_v38 = vld [vmem:[%s15234_s23 + $0x154] sm:$0xf]  ;;  %v1802_v33 = vld [vmem:[%s15234_s23 + $0x14c] sm:$0x1] }
 0x39a   : > { %v1363_v6 = vsel %vm15281_vm5, %v19421_v47, %v19423_v5  ;;  %v1378_v63 = vshrl.u32 %v19397_v13, 16  ;;  %v13465_v22 = vrot.slane %v1799_v23, 9  ;;  %v11214_v42 = vadd.f32 %v19326_v16, %v11213_v53  ;;  %v11215_v55 = vpop.f32.mrb[7].mxu1  ;;  %v10136_v54 = vpop.permute.xlu1 %10135 }
 0x39b   : > { %v1370_v49 = vrot.slane %v1368_v51, 5  ;;  %v11331_v61 = vmax.f32 %v11211_v15, 0.0  ;;  %v2116_v9 = vrot.slane %v1800_v2, 5  ;;  %v2119_v60 = vrot.slane %v1801_v7, 5  ;;  %10172 = vst.msk [vmem:[#allocation4 + $0xc0] sm:$0xff] %vm10159_vm1, %v10136_v54 }
 0x39c   : > { %v19447_v43 = vrot.slane %v1374_v45, 5  ;;  %v13466_v51 = vrot.slane %v1803_v37, 9  ;;  %v20755_v23 = vrot.slane %v19435_v38, 5  ;;  %v11332_v53 = vmax.f32 %v11214_v42, 0.0 }
 0x39d   : > { %2718 = vrot.lane.b32.xlu1 %v15122_v62, %s15165_s24  ;;  %4964 = vrot.lane.b32.xlu0 %v15124_v36, %s15170_s29  ;;  %v1371_v57 = vor.u32 %v1370_v49, %v1367_v12  ;;  %v11427_v27 = vcombine.high %v11331_v61, %v11331_v61  ;;  %v11434_v15 = vrot.slane %v11331_v61, %v18876_v10  ;;  %v2122_v55 = vrot.slane %v1802_v33, 5 }
 0x39e   : > { %vm12710_vm7 = vcmask 1041409   ;;  %v19453_v2 = vsel %vm15227_vm2, %v13465_v22, %v2116_v9  ;;  %v2118_v7 = vrot.slane %v2116_v9, 4  ;;  %v2121_v54 = vrot.slane %v2119_v60, 4  ;;  %v8595_v49 = vpop.permute.xlu1 %8594 }
 0x39f   : > { %v1372_v62 = vrot.slane %v1371_v57, 4  ;;  %v11441_v36 = vrot.slane %v11427_v27, %v18876_v10  ;;  %v11442_v45 = vcombine.high %v11434_v15, %v11434_v15  ;;  %v14634_v12 = vrot.slane %v11434_v15, 9  ;;  %8630 = vst.msk [vmem:[#allocation4 + $0xd0] sm:$0xff] %vm8616_vm6, %v8595_v49 }
 0x3a0   : > { %vm12712_vm9 = vcmask 1043459   ;;  %v11444_v37 = vcombine.high %v11332_v53, %v11332_v53  ;;  %vm12714_vm4 = vcmask 1045509   ;;  %v11451_v33 = vrot.slane %v11332_v53, %v18876_v10 }
 0x3a1   : > { %3883 = vrot.lane.b32.xlu1 %v19253_v20, %s15169_s28  ;;  %6129 = vrot.lane.b32.xlu0 %v19328_v17, %s15171_s30  ;;  %v1377_v22 = vsel %vm15281_vm5, %v1372_v62, %v19447_v43  ;;  %v2120_v61 = vsel %vm15227_vm2, %v2118_v7, %v2119_v60  ;;  %v19471_v20 = vsel %vm15227_vm2, %v13466_v51, %v20755_v23  ;;  %v14635_v9 = vrot.slane %v11442_v45, 9  ;;  %v15125_v51 = vld [vmem:[%s15234_s23 + $0x154] sm:$0xff]  }
 0x3a2   : > { %v11443_v42 = vcombine.high %v11441_v36, %v11441_v36  ;;  %v14636_v57 = vrot.slane %v11441_v36, 9  ;;  %v12457_v27 = vmax.f32 %v11434_v15, %v14634_v12  ;;  %v11458_v17 = vrot.slane %v11444_v37, %v18876_v10 }
 0x3a3   : > { %v11459_v53 = vcombine.high %v11451_v33, %v11451_v33  ;;  %v14638_v49 = vrot.slane %v11451_v33, 9  ;;  %v19476_v62 = vsel %vm15227_vm2, %v2121_v54, %v2122_v55  ;;  %v12458_v7 = vmax.f32 %v11442_v45, %v14635_v9  ;;  %v13693_v55 = vld [vmem:[%s15234_s23 + $0x150] sm:$0xf] }
 0x3a4   : > { %v14637_v60 = vrot.slane %v11443_v42, 9  ;;  %v12459_v3 = vmax.f32 %v11441_v36, %v14636_v57  ;;  %v12577_v1 = vmax.f32 %v19383_v30, %v12457_v27  ;;  %v11460_v15 = vcombine.high %v11458_v17, %v11458_v17 }
 0x3a5   : > { %4568 = vrot.lane.b32.xlu1 %v13894_v29, %s15166_s25  ;;  %v14639_v12 = vrot.slane %v11459_v53, 9  ;;  %v14640_v37 = vrot.slane %v11458_v17, 9  ;;  %v12461_v35 = vmax.f32 %v11451_v33, %v14638_v49  ;;  %6814 = vrot.lane.b32.xlu0 %v14289_v31, %s15172_s6  ;;  %v12578_v30 = vmax.f32 %v19385_v44, %v12458_v7 }
 0x3a6   : > { %v12460_v54 = vmax.f32 %v11443_v42, %v14637_v60  ;;  %v12579_v36 = vmax.f32 %v19387_v50, %v12459_v3  ;;  %v19496_v8 = vcombine.low %v1363_v6, %v1377_v22  ;;  %v14641_v25 = vrot.slane %v11460_v15, 9 }
 0x3a7   : > { %v12462_v29 = vmax.f32 %v11459_v53, %v14639_v12  ;;  %v12463_v45 = vmax.f32 %v11458_v17, %v14640_v37  ;;  %v12581_v33 = vmax.f32 %v19401_v28, %v12461_v35  ;;  %v19501_v31 = vrot.slane %v12578_v30, 7  ;;  %v13696_v37 = vld [vmem:[%s15234_s23 + $0x15c] sm:$0x1] }
 0x3a8   : > { %v12580_v32 = vmax.f32 %v19399_v11, %v12460_v54  ;;  %v13499_v3 = vcombine.low %v19453_v2, %v2120_v61  ;;  %v3582_v44 = vshrl.u32 %v13693_v55, 16  ;;  %v12464_v50 = vmax.f32 %v11460_v15, %v14641_v25  ;;  %v13695_v61 = vld [vmem:[%s15234_s23 + $0x158] sm:$0xf]  ;;  %v11218_v17 = vpop.f32.mrb[8].mxu1 }
 0x3a9   : > { %4966 = vrot.lane.b32.xlu1 %v15125_v51, %s15170_s29  ;;  %v12582_v47 = vmax.f32 %v19406_v4, %v12462_v29  ;;  %v12583_v5 = vmax.f32 %v19426_v59, %v12463_v45  ;;  %6816 = vrot.lane.b32.xlu0 %v14290_v24, %s15172_s6  ;;  %v3585_v35 = vshll.u32 %v13693_v55, 16  ;;  %v12711_v11 = vsel %vm12710_vm7, %v19501_v31, %v12577_v1  ;;  %v11220_v7 = vpop.f32.mrb[9].mxu1  ;;  %v9094_v51 = vpop.permute.xlu1 %9093 }
 0x3aa   : > { %v19513_v28 = vrot.slane %v12580_v32, 7  ;;  %v3584_v6 = vrot.slane %v3582_v44, 4  ;;  %v3591_v22 = vshll.u32 %v13694_v40, 16  ;;  %v12713_v2 = vsel %vm12712_vm9, %v19501_v31, %v12711_v11  ;;  %v10681_v18 = vpop.permute.xlu0 %10680  ;;  %v11221_v30 = vpop.f32.mrb[10].mxu1  ;;  %v19561_v44 = vld [vmem:[%s15234_s23 + $0x160] sm:$0xf] }
 0x3ab   : > { %v12584_v4 = vmax.f32 %v19428_v56, %v12464_v50  ;;  %v19518_v59 = vrot.slane %v12582_v47, 7  ;;  %v3587_v42 = vrot.slane %v3585_v35, 5  ;;  %v19523_v21 = vsel %vm12714_vm4, %v19501_v31, %v12713_v2  ;;  %10717 = vst.msk [vmem:[#allocation4 + $0xc0] sm:$0xff] %vm10704_vm10, %v10681_v18 }
 0x3ac   : > { %v12721_v1 = vsel %vm12710_vm7, %v19513_v28, %v12579_v36  ;;  %v19529_v24 = vrot.slane %v3591_v22, 5  ;;  %v3595_v56 = vshrl.u32 %v13694_v40, 16  ;;  %v11219_v60 = vadd.f32 %v19326_v16, %v11218_v17  ;;  %v11223_v40 = vpop.f32.mrb[11].mxu1 }
 0x3ad   : > { %6131 = vrot.lane.b32.xlu1 %v19345_v48, %s15171_s30  ;;  %v19533_v9 = vsel %vm12712_vm9, %v19513_v28, %v12721_v1  ;;  %v12728_v57 = vsel %vm12710_vm7, %v19518_v59, %v12581_v33  ;;  %v19537_v27 = vrot.slane %v12584_v4, 7  ;;  %2322 = vrot.lane.b32.xlu0 %v13499_v3, %s15167_s26  ;;  %v15126_v48 = vld [vmem:[%s15234_s23 + $0x150] sm:$0xff]   ;;  %v3588_v53 = vor.u32 %v3587_v42, %v3584_v6 }
 0x3ae   : > { %v12729_v49 = vsel %vm12712_vm9, %v19518_v59, %v12728_v57  ;;  %v3597_v15 = vrot.slane %v3595_v56, 4  ;;  %v3601_v12 = vshll.u32 %v13695_v61, 16  ;;  %v3605_v25 = vshrl.u32 %v13695_v61, 16  ;;  %v8916_v32 = vpop.permute.xlu0 %8915  ;;  %v15139_v40 = vld [vmem:[%s15234_s23 + $0x134] sm:$0xff]  }
 0x3af   : > { %20843 = vst [vmem:[#allocation5_spill] sm:$0xff] %v19537_v27  ;;  %v19548_v55 = vsel %vm12714_vm4, %v19518_v59, %v12729_v49  ;;  %v12735_v54 = vsel %vm12710_vm7, %v19537_v27, %v12583_v5  ;;  %v3589_v36 = vrot.slane %v3588_v53, 4  ;;  %v11333_v45 = vmax.f32 %v11219_v60, 0.0  ;;  %8951 = vst.msk [vmem:[#allocation4 + $0xd0] sm:$0xff] %vm8937_vm14, %v8916_v32 }
 0x3b0   : > { %v19554_v29 = vsel %vm12712_vm9, %v19537_v27, %v12735_v54  ;;  %v11222_v33 = vadd.f32 %v19326_v16, %v11221_v30  ;;  %v3598_v3 = vor.u32 %v3597_v15, %v19529_v24  ;;  %v13500_v50 = vcombine.low %v19476_v62, %v19471_v20  ;;  %9129 = vst.msk [vmem:[#allocation4 + $0xd0] sm:$0xff] %vm9115_vm13, %v9094_v51  ;;  %v13702_v27 = vld [vmem:[%s15234_s23 + $0x174] sm:$0xf] }
 0x3b1   : > { %20844 = vst [vmem:[#allocation6_spill] sm:$0xff] %v19554_v29  ;;  %1634 = vrot.lane.b32.xlu1 %v19394_v19, %s15168_s27  ;;  %2720 = vrot.lane.b32.xlu0 %v15126_v48, %s15165_s24  ;;  %v3603_v47 = vrot.slane %v3601_v12, 5  ;;  %v3607_v5 = vrot.slane %v3605_v25, 4  ;;  %v3611_v35 = vshll.u32 %v13696_v37, 16  ;;  %v11461_v11 = vcombine.high %v11333_v45, %v11333_v45  ;;  %v9960_v19 = vpop.permute.xlu1 %9959  ;;  %v15127_v12 = vld [vmem:[%s15234_s23 + $0x158] ss:$8 sps:$4 sm:$0xff]  }
 0x3b2   : > { %v11468_v6 = vrot.slane %v11333_v45, %v18876_v10  ;;  %v11334_v22 = vmax.f32 %v11222_v33, 0.0  ;;  %v3599_v2 = vrot.slane %v3598_v3, 4  ;;  %v3594_v4 = vsel %vm15281_vm5, %v3589_v36, %v19529_v24  ;;  %v9639_v57 = vpop.permute.xlu0 %9638  ;;  %v11033_v17 = vld [vmem:[#allocation4 + $0xc0] sm:$0xff]  ;;  %v11036_v24 = vld [vmem:[#allocation4 + $0xd8] sm:$0xff]  ;;  %v15138_v33 = vld [vmem:[%s15234_s23 + $0x128] ss:$8 sps:$4 sm:$0xff]  }
 0x3b3   : > { %v3608_v61 = vor.u32 %v3607_v5, %v3603_v47  ;;  %v19572_v42 = vrot.slane %v3611_v35, 5  ;;  %v3616_v20 = vshrl.u32 %v19561_v44, 16  ;;  %v11475_v62 = vrot.slane %v11461_v11, %v18876_v10  ;;  %9674 = vst.msk [vmem:[#allocation4 + $0xd0] sm:$0xff] %vm9660_vm12, %v9639_v57  ;;  %11297 = vmatmul.mubr.bf16.gmra.mrb[48].mxu1 %v11033_v17  ;;  %v19590_v45 = vld [vmem:[%s15234_s23 + $0x164] sm:$0xf] }
 0x3b4   : > { %v11476_v1 = vcombine.high %v11468_v6, %v11468_v6  ;;  %v14642_v18 = vrot.slane %v11468_v6, 9  ;;  %v11478_v56 = vcombine.high %v11334_v22, %v11334_v22  ;;  %v11485_v48 = vrot.slane %v11334_v22, %v18876_v10  ;;  %9995 = vst.msk [vmem:[#allocation4 + $0xd0] sm:$0xff] %vm9981_vm11, %v9960_v19  ;;  %14623 = vmatprep.mubr.msk.bf16.mxu1 %vm8071_vm0, %v11036_v24  ;;  %v13825_v35 = vld [vmem:[%s15234_s23 + $0x150] sm:$0xe]  ;;  %v13826_v11 = vld [vmem:[%s15234_s23 + $0x154] sm:$0xf] }
 0x3b5   : > { %1636 = vrot.lane.b32.xlu1 %v19496_v8, %s15168_s27  ;;  %v3604_v53 = vsel %vm15281_vm5, %v3599_v2, %v3603_v47  ;;  %v19582_v49 = vrot.slane %v3608_v61, 4  ;;  %v3619_v60 = vshll.u32 %v19561_v44, 16  ;;  %v11477_v8 = vcombine.high %v11475_v62, %v11475_v62  ;;  %v10683_v15 = vpop.permute.xlu1 %10682 }
 0x3b6   : > { %v14643_v7 = vrot.slane %v11476_v1, 9  ;;  %v14644_v51 = vrot.slane %v11475_v62, 9  ;;  %v3618_v37 = vrot.slane %v3616_v20, 4  ;;  %v11492_v54 = vrot.slane %v11478_v56, %v18876_v10  ;;  %v10138_v5 = vpop.permute.xlu0 %10137  ;;  %v19623_v56 = vld [vmem:[%s15234_s23 + $0x164] sm:$0xf] }
 0x3b7   : > { %v11493_v30 = vcombine.high %v11485_v48, %v11485_v48  ;;  %v14646_v36 = vrot.slane %v11485_v48, 9  ;;  %v13739_v25 = vcombine.low %v3594_v4, %v3604_v53  ;;  %v14645_v32 = vrot.slane %v11477_v8, 9  ;;  %10173 = vst.msk [vmem:[#allocation4 + $0xd0] sm:$0xff] %vm10159_vm1, %v10138_v5  ;;  %v13827_v4 = vld [vmem:[%s15234_s23 + $0x158] sm:$0xf] }
 0x3b8   : > { %v19594_v3 = vmax.f32 %v11468_v6, %v14642_v18  ;;  %v19596_v44 = vmax.f32 %v11476_v1, %v14643_v7  ;;  %v19598_v47 = vmax.f32 %v11475_v62, %v14644_v51  ;;  %v19603_v22 = vcombine.high %v11492_v54, %v11492_v54  ;;  %10718 = vst.msk [vmem:[#allocation4 + $0xd0] sm:$0xff] %vm10704_vm10, %v10683_v15  ;;  %v13829_v18 = vld [vmem:[%s15234_s23 + $0x160] sm:$0xe] }
 0x3b9   : > { %2324 = vrot.lane.b32.xlu1 %v13500_v50, %s15167_s26  ;;  %v14647_v19 = vrot.slane %v11493_v30, 9  ;;  %v14648_v2 = vrot.slane %v11492_v54, 9  ;;  %3885 = vrot.lane.b32.xlu0 %v13739_v25, %s15169_s28  ;;  %v3614_v6 = vsel %vm15281_vm5, %v19582_v49, %v19572_v42  ;;  %v13828_v50 = vld [vmem:[%s15234_s23 + $0x15c] sm:$0x1]  ;;  %vm20845_vm15 = vcmask 23552   ;;  %v8918_v53 = vpop.permute.xlu1 %8917 }
 0x3ba   : > { %543 = vst.msk [vmem:[#allocation2 + $0xe0] sm:$0xff] %vm20845_vm15, %v15138_v33  ;;  %vm20846_vm3 = vmmov %vm20845_vm15  ;;  %v19615_v61 = vmax.f32 %v11477_v8, %v14645_v32  ;;  %v19617_v20 = vmax.f32 %v11485_v48, %v14646_v36  ;;  %v3621_v62 = vrot.slane %v3619_v60, 5  ;;  %v3625_v1 = vshll.u32 %v19590_v45, 16  ;;  %v14089_v7 = vld [vmem:[%s15234_s23 + $0x160] sm:$0xf] }
 0x3bb   : > { %544 = vst.msk [vmem:[#allocation2 + $0xe8] sm:$0xff] %vm20846_vm3, %v15139_v40  ;;  %v14649_v42 = vrot.slane %v19603_v22, 9  ;;  %v19626_v57 = vmax.f32 %v11493_v30, %v14647_v19  ;;  %v13861_v24 = vrot.slane %v13825_v35, 9  ;;  %v4364_v60 = vrot.slane %v13826_v11, 5  ;;  %v14090_v33 = vld [vmem:[%s15234_s23 + $0x164] sm:$0xf]  ;;  %vm20847_vm15 = vmmov %vm20846_vm3 }
 0x3bc   : > { %v3622_v48 = vor.u32 %v3621_v62, %v3618_v37  ;;  %v19630_v49 = vrot.slane %v3625_v1, 5  ;;  %v4367_v8 = vrot.slane %v13827_v4, 5  ;;  %v19633_v51 = vmax.f32 %v11492_v54, %v14648_v2  ;;  %v8597_v15 = vpop.permute.xlu0 %8596  ;;  %v14091_v35 = vld [vmem:[%s15234_s23 + $0x168] sm:$0xf]  ;;  %v14092_v1 = vld [vmem:[%s15234_s23 + $0x16c] sm:$0x1] }
 0x3bd   : > { %2722 = vrot.lane.b32.xlu1 %v15127_v12, %s15165_s24  ;;  %v4370_v36 = vrot.slane %v13828_v50, 5  ;;  %v13862_v25 = vrot.slane %v13829_v18, 9  ;;  %v20754_v30 = vrot.slane %v19623_v56, 5  ;;  %8631 = vst.msk [vmem:[#allocation4 + $0xe0] sm:$0xff] %vm8616_vm6, %v8597_v15  ;;  %v4365_v37 = vsel %vm15227_vm2, %v13861_v24, %v4364_v60  ;;  %v14093_v18 = vld [vmem:[%s15234_s23 + $0x170] sm:$0xf]  ;;  %v9641_v15 = vpop.permute.xlu1 %9640 }
 0x3be   : > { %v3623_v12 = vrot.slane %v3622_v48, 4  ;;  %v4366_v40 = vrot.slane %v4364_v60, 4  ;;  %v4369_v32 = vrot.slane %v4367_v8, 4  ;;  %8952 = vst.msk [vmem:[#allocation4 + $0xe0] sm:$0xff] %vm8937_vm14, %v8918_v53  ;;  %v14598_v5 = vcombine.low %v19306_v14, %v19319_v34 }
 0x3bf   : > { %v4375_v54 = vsel %vm15227_vm2, %v13862_v25, %v20754_v30  ;;  %v5830_v11 = vshrl.u32 %v14089_v7, 16  ;;  %v5833_v19 = vshll.u32 %v14089_v7, 16  ;;  %v5839_v62 = vshll.u32 %v14090_v33, 16  ;;  %v11035_v48 = vld [vmem:[#allocation4 + $0xd0] sm:$0xff] }
 0x3c0   : > { %v3628_v2 = vsel %vm15281_vm5, %v3623_v12, %v19630_v49  ;;  %v4368_v4 = vsel %vm15227_vm2, %v4366_v40, %v4367_v8  ;;  %v4371_v50 = vsel %vm15227_vm2, %v4369_v32, %v4370_v36  ;;  %v9096_v14 = vpop.permute.xlu0 %9095  ;;  %11007 = vst.msk [vmem:[#allocation4 + $0xe8] sm:$0xff] %vm8071_vm0, %v14598_v5  ;;  %v19659_v7 = vld [vmem:[%s15234_s23 + $0x174] sm:$0xf]  ;;  %11305 = vmatmul.mubr.bf16.gmra.mrb[52].mxu1 %v11035_v48  ;;  %v5843_v25 = vshrl.u32 %v14090_v33, 16  ;;  %v11226_v5 = vpop.f32.mrb[12].mxu1 }
 0x3c1   : > { %v13740_v24 = vcombine.low %v3614_v6, %v3628_v2  ;;  %v13895_v53 = vcombine.low %v4365_v37, %v4368_v4  ;;  %v13896_v34 = vcombine.low %v4371_v50, %v4375_v54  ;;  %v5832_v60 = vrot.slane %v5830_v11, 4  ;;  %9130 = vst.msk [vmem:[#allocation4 + $0xe0] sm:$0xff] %vm9115_vm13, %v9096_v14  ;;  %v15129_v6 = vld [vmem:[%s15234_s23 + $0x160] sm:$0xff]  }
 0x3c2   : > { %v5835_v8 = vrot.slane %v5833_v19, 5  ;;  %v5841_v36 = vrot.slane %v5839_v62, 5  ;;  %v5849_v12 = vshll.u32 %v14091_v35, 16  ;;  %9675 = vst.msk [vmem:[#allocation4 + $0xe0] sm:$0xff] %vm9660_vm12, %v9641_v15  ;;  %v5853_v37 = vshrl.u32 %v14091_v35, 16  ;;  %v11228_v62 = vpop.f32.mrb[13].mxu1 }
 0x3c3   : > { %3887 = vrot.lane.b32.xlu1 %v13740_v24, %s15169_s28  ;;  %4570 = vrot.lane.b32.xlu0 %v13895_v53, %s15166_s25  ;;  %v5859_v40 = vshll.u32 %v14092_v1, 16  ;;  %v5864_v32 = vshrl.u32 %v14093_v18, 16  ;;  %v5867_v54 = vshll.u32 %v14093_v18, 16  ;;  %v5845_v2 = vrot.slane %v5843_v25, 4  ;;  %v15130_v53 = vld [vmem:[%s15234_s23 + $0x168] ss:$8 sps:$4 sm:$0xff]  }
 0x3c4   : > { %v5836_v11 = vor.u32 %v5835_v8, %v5832_v60  ;;  %v5851_v19 = vrot.slane %v5849_v12, 5  ;;  %v5873_v33 = vshll.u32 %v19659_v7, 16  ;;  %v19668_v4 = vmax.f32 %v19603_v22, %v14649_v42  ;;  %v9962_v24 = vpop.permute.xlu0 %9961  ;;  %v19673_v1 = vld [vmem:[%s15234_s23 + $0x160] sm:$0xe]  ;;  %v11229_v18 = vpop.f32.mrb[14].mxu1 }
 0x3c5   : > { %v11227_v50 = vadd.f32 %v19326_v16, %v11226_v5  ;;  %v5855_v35 = vrot.slane %v5853_v37, 4  ;;  %v5866_v14 = vrot.slane %v5864_v32, 4  ;;  %9996 = vst.msk [vmem:[#allocation4 + $0xe0] sm:$0xff] %vm9981_vm11, %v9962_v24  ;;  %v5846_v60 = vor.u32 %v5845_v2, %v5841_v36  ;;  %v19677_v25 = vld [vmem:[%s15234_s23 + $0x164] sm:$0xf]  ;;  %v11231_v12 = vpop.f32.mrb[15].mxu1 }
 0x3c6   : > { %v5837_v48 = vrot.slane %v5836_v11, 4  ;;  %v5861_v15 = vrot.slane %v5859_v40, 5  ;;  %v5869_v8 = vrot.slane %v5867_v54, 5  ;;  %v11230_v42 = vadd.f32 %v19326_v16, %v11229_v18  ;;  %v19685_v5 = vld [vmem:[%s15234_s23 + $0x168] sm:$0xf] }
 0x3c7   : > { %v11335_v22 = vmax.f32 %v11227_v50, 0.0  ;;  %4572 = vrot.lane.b32.xlu1 %v13896_v34, %s15166_s25  ;;  %4968 = vrot.lane.b32.xlu0 %v15129_v6, %s15170_s29  ;;  %v5856_v37 = vor.u32 %v5855_v35, %v5851_v19  ;;  %v19682_v32 = vrot.slane %v5873_v33, 5  ;;  %v11038_v62 = vld [vmem:[#allocation4 + $0xe8] sm:$0xff]  ;;  %v5847_v54 = vrot.slane %v5846_v60, 4 }
 0x3c8   : > { %v5842_v40 = vsel %vm15281_vm5, %v5837_v48, %v5841_v36  ;;  %v5870_v11 = vor.u32 %v5869_v8, %v5866_v14  ;;  %v14257_v2 = vrot.slane %v19673_v1, 9  ;;  %v11336_v18 = vmax.f32 %v11230_v42, 0.0  ;;  %14624 = vmatprep.mubr.msk.bf16.mxu1 %vm8071_vm0, %v11038_v62 }
 0x3c9   : > { %v11495_v50 = vcombine.high %v11335_v22, %v11335_v22  ;;  %v11502_v24 = vrot.slane %v11335_v22, %v18876_v10  ;;  %v5857_v34 = vrot.slane %v5856_v37, 4  ;;  %v5852_v6 = vsel %vm15281_vm5, %v5847_v54, %v5851_v19 }
 0x3ca   : > { %v5871_v33 = vrot.slane %v5870_v11, 4  ;;  %v6612_v35 = vrot.slane %v19677_v25, 5  ;;  %v11512_v1 = vcombine.high %v11336_v18, %v11336_v18  ;;  %v11519_v60 = vrot.slane %v11336_v18, %v18876_v10  ;;  %v15142_v18 = vld [vmem:[%s15234_s23 + $0x140] sm:$0xff]  }
 0x3cb   : > { %v11509_v36 = vrot.slane %v11495_v50, %v18876_v10  ;;  %v11510_v14 = vcombine.high %v11502_v24, %v11502_v24  ;;  %v14650_v48 = vrot.slane %v11502_v24, 9  ;;  %4970 = vrot.lane.b32.xlu1 %v15130_v53, %s15170_s29  ;;  %v14135_v8 = vcombine.low %v5842_v40, %v5852_v6  ;;  %v15143_v40 = vld [vmem:[%s15234_s23 + $0x148] ss:$8 sps:$4 sm:$0xff]   ;;  %545 = vst.msk [vmem:[#allocation2 + $0xf0] sm:$0xff] %vm20847_vm15, %v15142_v18  ;;  %v14224_v18 = vld [vmem:[%s15234_s23 + $0x16c] sm:$0x1]  ;;  %vm20853_vm15 = vmmov %vm20846_vm3 }
 0x3cc   : > { %v5862_v19 = vsel %vm15281_vm5, %v5857_v34, %v5861_v15  ;;  %v5876_v25 = vsel %vm15281_vm5, %v5871_v33, %v19682_v32  ;;  %v11526_v54 = vrot.slane %v11512_v1, %v18876_v10  ;;  %v11527_v11 = vcombine.high %v11519_v60, %v11519_v60  ;;  %546 = vst.msk [vmem:[#allocation2 + $0xf8] sm:$0xff] %vm20846_vm3, %v15143_v40 }
 0x3cd   : > { %v11511_v22 = vcombine.high %v11509_v36, %v11509_v36  ;;  %v14651_v42 = vrot.slane %v11510_v14, 9  ;;  %v14652_v37 = vrot.slane %v11509_v36, 9  ;;  %v12473_v62 = vmax.f32 %v11502_v24, %v14650_v48  ;;  %6133 = vrot.lane.b32.xlu0 %v14135_v8, %s15171_s30 }
 0x3ce   : > { %v14654_v50 = vrot.slane %v11519_v60, 9  ;;  %v14136_v53 = vcombine.low %v5862_v19, %v5876_v25  ;;  %v11528_v33 = vcombine.high %v11526_v54, %v11526_v54  ;;  %v14655_v17 = vrot.slane %v11527_v11, 9 }
 0x3cf   : > { %v14653_v6 = vrot.slane %v11511_v22, 9  ;;  %v12474_v15 = vmax.f32 %v11510_v14, %v14651_v42  ;;  %v12475_v34 = vmax.f32 %v11509_v36, %v14652_v37  ;;  %v12585_v30 = vmax.f32 %v19594_v3, %v12473_v62  ;;  %v637_v3 = vld [vmem:[%s15234_s23 + $0x158] sm:$0xf] }
 0x3d0   : > { %v14656_v23 = vrot.slane %v11526_v54, 9  ;;  %v12477_v12 = vmax.f32 %v11519_v60, %v14654_v50  ;;  %6135 = vrot.lane.b32.xlu1 %v14136_v53, %s15171_s30  ;;  %v10140_v8 = vpop.permute.xlu1 %10139  ;;  %v6613_v36 = vsel %vm15227_vm2, %v14257_v2, %v6612_v35  ;;  %v14657_v14 = vrot.slane %v11528_v33, 9 }
 0x3d1   : > { %v12476_v24 = vmax.f32 %v11511_v22, %v14653_v6  ;;  %v12586_v48 = vmax.f32 %v19596_v44, %v12474_v15  ;;  %v12587_v1 = vmax.f32 %v19598_v47, %v12475_v34  ;;  %v12478_v19 = vmax.f32 %v11527_v11, %v14655_v17  ;;  %10174 = vst.msk [vmem:[#allocation4 + $0xe0] sm:$0xff] %vm10159_vm1, %v10140_v8  ;;  %v14225_v34 = vld [vmem:[%s15234_s23 + $0x170] sm:$0xe] }
 0x3d2   : > { %v12479_v25 = vmax.f32 %v11526_v54, %v14656_v23  ;;  %v12589_v60 = vmax.f32 %v19617_v20, %v12477_v12  ;;  %v6614_v44 = vrot.slane %v6612_v35, 4  ;;  %v1380_v47 = vrot.slane %v1378_v63, 4  ;;  %v638_v54 = vld [vmem:[%s15234_s23 + $0x15c] sm:$0x1] }
 0x3d3   : > { %v12588_v42 = vmax.f32 %v19615_v61, %v12476_v24  ;;  %v19720_v37 = vrot.slane %v12586_v48, 7  ;;  %v12480_v22 = vmax.f32 %v11528_v33, %v14657_v14  ;;  %v12590_v2 = vmax.f32 %v19626_v57, %v12478_v19  ;;  %v19760_v33 = vld [vmem:[%s15234_s23 + $0x174] sm:$0xf]  ;;  %v639_v14 = vld [vmem:[%s15234_s23 + $0x160] sm:$0xf] }
 0x3d4   : > { %v12591_v62 = vmax.f32 %v19633_v51, %v12479_v25  ;;  %v1384_v17 = vshll.u32 %v637_v3, 16  ;;  %v20848_v61 = vrot.slane %v19685_v5, 5  ;;  %v1381_v13 = vor.u32 %v1380_v47, %v19447_v43  ;;  %v8599_v63 = vpop.permute.xlu1 %8598  ;;  %v11234_v47 = vpop.f32.mrb[16].mxu1 }
 0x3d5   : > { %v12742_v23 = vsel %vm12710_vm7, %v19720_v37, %v12585_v30  ;;  %v19728_v20 = vrot.slane %v12588_v42, 7  ;;  %v12592_v51 = vmax.f32 %v19668_v4, %v12480_v22  ;;  %v19738_v12 = vrot.slane %v12590_v2, 7  ;;  %8632 = vst.msk [vmem:[#allocation4 + $0xf0] sm:$0xff] %vm8616_vm6, %v8599_v63  ;;  %v640_v42 = vld [vmem:[%s15234_s23 + $0x164] sm:$0xf]  ;;  %vm20852_vm6 = vmmov %vm20846_vm3 }
 0x3d6   : > { %v6616_v35 = vsel %vm15227_vm2, %v6614_v44, %v20848_v61  ;;  %v12743_v57 = vsel %vm12712_vm9, %v19720_v37, %v12742_v23  ;;  %v1382_v50 = vrot.slane %v1381_v13, 4  ;;  %v1386_v53 = vrot.slane %v1384_v17, 5  ;;  %v11236_v23 = vpop.f32.mrb[17].mxu1 }
 0x3d7   : > { %v14291_v30 = vcombine.low %v6613_v36, %v6616_v35  ;;  %v19744_v11 = vsel %vm12714_vm4, %v19720_v37, %v12743_v57  ;;  %v12749_v43 = vsel %vm12710_vm7, %v19728_v20, %v12587_v1  ;;  %v12756_v40 = vsel %vm12710_vm7, %v19738_v12, %v12589_v60  ;;  %v11237_v13 = vpop.f32.mrb[18].mxu1 }
 0x3d8   : > { %v19751_v4 = vsel %vm12712_vm9, %v19728_v20, %v12749_v43  ;;  %v19755_v6 = vrot.slane %v12592_v51, 7  ;;  %v1388_v15 = vshrl.u32 %v637_v3, 16  ;;  %v12757_v24 = vsel %vm12712_vm9, %v19738_v12, %v12756_v40 }
 0x3d9   : > { %6818 = vrot.lane.b32.xlu0 %v14291_v30, %s15172_s6  ;;  %v1387_v48 = vsel %vm15281_vm5, %v1382_v50, %v1386_v53  ;;  %v1394_v1 = vshll.u32 %v638_v54, 16  ;;  %v20850_v8 = vmov %v20848_v61  ;;  %v19771_v19 = vsel %vm12714_vm4, %v19738_v12, %v12757_v24 }
 0x3da   : > { %20849 = vst [vmem:[#allocation7_spill] sm:$0xff] %v19755_v6  ;;  %v6617_v36 = vrot.slane %v20850_v8, 4  ;;  %v12763_v3 = vsel %vm12710_vm7, %v19755_v6, %v12591_v62  ;;  %v1390_v25 = vrot.slane %v1388_v15, 4  ;;  %v6618_v60 = vrot.slane %v14224_v18, 5  ;;  %v19795_v15 = vld [vmem:[%s15234_s23 + $0x168] sm:$0xf] }
 0x3db   : > { %v19778_v44 = vsel %vm12712_vm9, %v19755_v6, %v12763_v3  ;;  %v1396_v22 = vrot.slane %v1394_v1, 5  ;;  %v14258_v2 = vrot.slane %v14225_v34, 9  ;;  %v20756_v5 = vrot.slane %v19760_v33, 5 }
 0x3dc   : > { %20851 = vst [vmem:[#allocation8_spill] sm:$0xff] %v19778_v44  ;;  %v11235_v17 = vadd.f32 %v19326_v16, %v11234_v47  ;;  %v1391_v61 = vor.u32 %v1390_v25, %v1386_v53  ;;  %v6619_v62 = vsel %vm15227_vm2, %v6617_v36, %v6618_v60  ;;  %v1399_v35 = vshrl.u32 %v639_v14, 16  ;;  %v19791_v16 = vld [vmem:[%s20719_s4] ss:$0 sm:$0xff]  ;;  %v11239_v53 = vpop.f32.mrb[19].mxu1  ;;  %v9098_v60 = vpop.permute.xlu1 %9097 }
 0x3dd   : > { %v6623_v63 = vsel %vm15227_vm2, %v14258_v2, %v20756_v5  ;;  %v1402_v57 = vshll.u32 %v639_v14, 16  ;;  %v1408_v51 = vshll.u32 %v640_v42, 16  ;;  %v1412_v30 = vshrl.u32 %v640_v42, 16  ;;  %v10685_v54 = vpop.permute.xlu0 %10684  ;;  %v13699_v53 = vld [vmem:[%s15234_s23 + $0x168] sm:$0xf] }
 0x3de   : > { %v11337_v43 = vmax.f32 %v11235_v17, 0.0  ;;  %v11238_v50 = vadd.f32 %v19791_v16, %v11237_v13  ;;  %v1392_v18 = vrot.slane %v1391_v61, 4  ;;  %v14292_v40 = vcombine.low %v6619_v62, %v6623_v63  ;;  %10719 = vst.msk [vmem:[#allocation4 + $0xe0] sm:$0xff] %vm10704_vm10, %v10685_v54  ;;  %v15144_v61 = vld [vmem:[%s15234_s23 + $0x154] sm:$0xff]   ;;  %v15145_v62 = vld [vmem:[%s15234_s23 + $0x160] sm:$0xff]  }
 0x3df   : > { %v1401_v34 = vrot.slane %v1399_v35, 4  ;;  %v1404_v24 = vrot.slane %v1402_v57, 5  ;;  %v1410_v1 = vrot.slane %v1408_v51, 5  ;;  %v1414_v8 = vrot.slane %v1412_v30, 4  ;;  %547 = vst.msk [vmem:[#allocation2 + $0x100] sm:$0xff] %vm20852_vm6, %v15144_v61 }
 0x3e0   : > { %v11529_v36 = vcombine.high %v11337_v43, %v11337_v43  ;;  %v11536_v14 = vrot.slane %v11337_v43, %v18876_v10  ;;  %v11338_v3 = vmax.f32 %v11238_v50, 0.0  ;;  %v1397_v25 = vsel %vm15281_vm5, %v1392_v18, %v1396_v22  ;;  %6820 = vrot.lane.b32.xlu0 %v14292_v40, %s15172_s6  ;;  %548 = vst.msk [vmem:[#allocation2 + $0x108] sm:$0xff] %vm20853_vm15, %v15145_v62 }
 0x3e1   : > { %v13441_v42 = vcombine.low %v1387_v48, %v1397_v25  ;;  %v1405_v47 = vor.u32 %v1404_v24, %v1401_v34  ;;  %v1415_v2 = vor.u32 %v1414_v8, %v1410_v1  ;;  %v1418_v17 = vshll.u32 %v19795_v15, 16  ;;  %v8920_v23 = vpop.permute.xlu0 %8919  ;;  %v1805_v8 = vld [vmem:[%s15234_s23 + $0x158] sm:$0xf] }
 0x3e2   : > { %v11543_v35 = vrot.slane %v11529_v36, %v18876_v10  ;;  %v11544_v13 = vcombine.high %v11536_v14, %v11536_v14  ;;  %v14658_v63 = vrot.slane %v11536_v14, 9  ;;  %v11546_v57 = vcombine.high %v11338_v3, %v11338_v3  ;;  %8953 = vst.msk [vmem:[#allocation4 + $0xf0] sm:$0xff] %vm8937_vm14, %v8920_v23  ;;  %v9964_v23 = vpop.permute.xlu1 %9963  ;;  %vm20868_vm14 = vmmov %vm20846_vm3 }
 0x3e3   : > { %v11553_v22 = vrot.slane %v11338_v3, %v18876_v10  ;;  %1638 = vrot.lane.b32.xlu1 %v13441_v42, %s15168_s27  ;;  %v1406_v48 = vrot.slane %v1405_v47, 4  ;;  %v1416_v51 = vrot.slane %v1415_v2, 4  ;;  %v19809_v30 = vrot.slane %v1418_v17, 5  ;;  %9131 = vst.msk [vmem:[#allocation4 + $0xf0] sm:$0xff] %vm9115_vm13, %v9098_v60  ;;  %v1806_v2 = vld [vmem:[%s15234_s23 + $0x15c] sm:$0x1] }
 0x3e4   : > { %v11545_v54 = vcombine.high %v11543_v35, %v11543_v35  ;;  %v14659_v43 = vrot.slane %v11544_v13, 9  ;;  %v14660_v50 = vrot.slane %v11543_v35, 9  ;;  %v11560_v18 = vrot.slane %v11546_v57, %v18876_v10  ;;  %v1807_v17 = vld [vmem:[%s15234_s23 + $0x160] sm:$0xe] }
 0x3e5   : > { %v11561_v40 = vcombine.high %v11553_v22, %v11553_v22  ;;  %v14662_v34 = vrot.slane %v11553_v22, 9  ;;  %v1411_v24 = vsel %vm15281_vm5, %v1406_v48, %v1410_v1  ;;  %v9643_v36 = vpop.permute.xlu0 %9642  ;;  %v11037_v3 = vld [vmem:[#allocation4 + $0xe0] sm:$0xff]  ;;  %v19819_v60 = vmax.f32 %v11536_v14, %v14658_v63  ;;  %v19833_v63 = vld [vmem:[%s15234_s23 + $0x168] sm:$0xf] }
 0x3e6   : > { %v14661_v25 = vrot.slane %v11545_v54, 9  ;;  %v19821_v42 = vmax.f32 %v11544_v13, %v14659_v43  ;;  %v1421_v47 = vsel %vm15281_vm5, %v1416_v51, %v19809_v30  ;;  %9676 = vst.msk [vmem:[#allocation4 + $0xf0] sm:$0xff] %vm9660_vm12, %v9643_v36  ;;  %11313 = vmatmul.mubr.bf16.gmra.mrb[56].mxu1 %v11037_v3  ;;  %v19829_v1 = vmax.f32 %v11543_v35, %v14660_v50  ;;  %v1808_v14 = vld [vmem:[%s15234_s23 + $0x164] sm:$0xf] }
 0x3e7   : > { %v11562_v61 = vcombine.high %v11560_v18, %v11560_v18  ;;  %v14663_v62 = vrot.slane %v11561_v40, 9  ;;  %v14664_v57 = vrot.slane %v11560_v18, 9  ;;  %9997 = vst.msk [vmem:[#allocation4 + $0xf0] sm:$0xff] %vm9981_vm11, %v9964_v23  ;;  %v19838_v48 = vmax.f32 %v11553_v22, %v14662_v34  ;;  %v13700_v22 = vld [vmem:[%s15234_s23 + $0x16c] sm:$0x1] }
 0x3e8   : > { %v19836_v13 = vmax.f32 %v11545_v54, %v14661_v25  ;;  %v13442_v51 = vcombine.low %v1411_v24, %v1421_v47  ;;  %v20854_v43 = vrot.slane %v19435_v38, 5  ;;  %v2129_v5 = vrot.slane %v1805_v8, 5 }
 0x3e9   : > { %v14665_v3 = vrot.slane %v11562_v61, 9  ;;  %v19842_v35 = vmax.f32 %v11561_v40, %v14663_v62  ;;  %v19844_v50 = vmax.f32 %v11560_v18, %v14664_v57  ;;  %v2132_v6 = vrot.slane %v1806_v2, 5  ;;  %v11242_v40 = vpop.f32.mrb[20].mxu1 }
 0x3ea   : > { %v2128_v36 = vrot.slane %v20854_v43, 4  ;;  %1640 = vrot.lane.b32.xlu1 %v13442_v51, %s15168_s27  ;;  %v13467_v44 = vrot.slane %v1807_v17, 9  ;;  %v2136_v23 = vrot.slane %v1808_v14, 5  ;;  %v20759_v54 = vrot.slane %v19833_v63, 5  ;;  %v11244_v17 = vpop.f32.mrb[21].mxu1 }
 0x3eb   : > { %v19850_v34 = vmax.f32 %v11562_v61, %v14665_v3  ;;  %v2131_v24 = vrot.slane %v2129_v5, 4  ;;  %v20855_v18 = vshrl.u32 %v19590_v45, 16  ;;  %v11243_v2 = vadd.f32 %v19791_v16, %v11242_v40  ;;  %v11245_v57 = vpop.f32.mrb[22].mxu1 }
 0x3ec   : > { %v2130_v38 = vsel %vm15227_vm2, %v2128_v36, %v2129_v5  ;;  %v2137_v8 = vsel %vm15227_vm2, %v13467_v44, %v2136_v23  ;;  %v2138_v47 = vrot.slane %v2136_v23, 4  ;;  %v3635_v62 = vshll.u32 %v13699_v53, 16  ;;  %v11247_v3 = vpop.f32.mrb[23].mxu1 }
 0x3ed   : > { %v3631_v25 = vrot.slane %v20855_v18, 4  ;;  %v2133_v61 = vsel %vm15227_vm2, %v2131_v24, %v2132_v6  ;;  %v3639_v5 = vshrl.u32 %v13699_v53, 16  ;;  %v3645_v51 = vshll.u32 %v13700_v22, 16 }
 0x3ee   : > { %v13501_v45 = vcombine.low %v2130_v38, %v2133_v61  ;;  %v2140_v44 = vsel %vm15227_vm2, %v2138_v47, %v20759_v54  ;;  %v11339_v43 = vmax.f32 %v11243_v2, 0.0  ;;  %v11246_v36 = vadd.f32 %v19791_v16, %v11245_v57  ;;  %v15132_v38 = vld [vmem:[%s15234_s23 + $0x164] sm:$0xff]   ;;  %v15133_v47 = vld [vmem:[%s15234_s23 + $0x170] sm:$0xff]  }
 0x3ef   : > { %v3632_v14 = vor.u32 %v3631_v25, %v19630_v49  ;;  %v13502_v23 = vcombine.low %v2137_v8, %v2140_v44  ;;  %v3637_v24 = vrot.slane %v3635_v62, 5  ;;  %v3641_v40 = vrot.slane %v3639_v5, 4  ;;  %v13701_v25 = vld [vmem:[%s15234_s23 + $0x170] sm:$0xf] }
 0x3f0   : > { %2326 = vrot.lane.b32.xlu0 %v13501_v45, %s15167_s26  ;;  %v11563_v49 = vcombine.high %v11339_v43, %v11339_v43  ;;  %v11570_v53 = vrot.slane %v11339_v43, %v18876_v10  ;;  %v11340_v22 = vmax.f32 %v11246_v36, 0.0  ;;  %v3647_v18 = vrot.slane %v3645_v51, 5 }
 0x3f1   : > { %v3633_v6 = vrot.slane %v3632_v14, 4  ;;  %2328 = vrot.lane.b32.xlu1 %v13502_v23, %s15167_s26  ;;  %v3642_v17 = vor.u32 %v3641_v40, %v3637_v24  ;;  %v20856_v8 = vrot.slane %v19284_v39, 5  ;;  %v20857_v62 = vrot.slane %v19115_v46, 9 }
 0x3f2   : > { %v20858_v57 = vrot.slane %v19295_v52, 5  ;;  %v11577_v5 = vrot.slane %v11563_v49, %v18876_v10  ;;  %v11578_v51 = vcombine.high %v11570_v53, %v11570_v53  ;;  %v14666_v45 = vrot.slane %v11570_v53, 9 }
 0x3f3   : > { %v3638_v2 = vsel %vm15281_vm5, %v3633_v6, %v3637_v24  ;;  %v10925_v61 = vsel %vm15227_vm2, %v20857_v62, %v20856_v8  ;;  %v11580_v44 = vcombine.high %v11340_v22, %v11340_v22  ;;  %v11587_v43 = vrot.slane %v11340_v22, %v18876_v10 }
 0x3f4   : > { %v10928_v14 = vsel %vm15227_vm2, %v19310_v41, %v20858_v57  ;;  %v3643_v36 = vrot.slane %v3642_v17, 4  ;;  %v3650_v3 = vshrl.u32 %v13701_v25, 16  ;;  %v11579_v46 = vcombine.high %v11577_v5, %v11577_v5  ;;  %2724 = vrot.lane.b32.xlu0 %v15132_v38, %s15165_s24 }
 0x3f5   : > { %v14599_v39 = vcombine.low %v10925_v61, %v10928_v14  ;;  %v14667_v23 = vrot.slane %v11578_v51, 9  ;;  %v14668_v6 = vrot.slane %v11577_v5, 9  ;;  %v12489_v24 = vmax.f32 %v11570_v53, %v14666_v45  ;;  %2726 = vrot.lane.b32.xlu1 %v15133_v47, %s15165_s24 }
 0x3f6   : > { %v11594_v52 = vrot.slane %v11580_v44, %v18876_v10  ;;  %v11595_v40 = vcombine.high %v11587_v43, %v11587_v43  ;;  %v14670_v41 = vrot.slane %v11587_v43, 9  ;;  %v3648_v49 = vsel %vm15281_vm5, %v3643_v36, %v3647_v18 }
 0x3f7   : > { %11008 = vst.msk [vmem:[#allocation4 + $0xf8] sm:$0xff] %vm8071_vm0, %v14599_v39  ;;  %v14669_v22 = vrot.slane %v11579_v46, 9  ;;  %v12490_v17 = vmax.f32 %v11578_v51, %v14667_v23  ;;  %v12491_v8 = vmax.f32 %v11577_v5, %v14668_v6  ;;  %v12593_v62 = vmax.f32 %v19819_v60, %v12489_v24  ;;  %v10142_v14 = vpop.permute.xlu0 %10141 }
 0x3f8   : > { %v11596_v53 = vcombine.high %v11594_v52, %v11594_v52  ;;  %v14671_v61 = vrot.slane %v11595_v40, 9  ;;  %v14672_v38 = vrot.slane %v11594_v52, 9  ;;  %v12493_v57 = vmax.f32 %v11587_v43, %v14670_v41  ;;  %10175 = vst.msk [vmem:[#allocation4 + $0xf0] sm:$0xff] %vm10159_vm1, %v10142_v14 }
 0x3f9   : > { %v12492_v45 = vmax.f32 %v11579_v46, %v14669_v22  ;;  %v12594_v44 = vmax.f32 %v19821_v42, %v12490_v17  ;;  %v12595_v47 = vmax.f32 %v19829_v1, %v12491_v8  ;;  %v13741_v54 = vcombine.low %v3638_v2, %v3648_v49  ;;  %v13831_v17 = vld [vmem:[%s15234_s23 + $0x168] sm:$0xf]  ;;  %v13832_v8 = vld [vmem:[%s15234_s23 + $0x16c] sm:$0x1] }
 0x3fa   : > { %v14673_v18 = vrot.slane %v11596_v53, 9  ;;  %v12494_v36 = vmax.f32 %v11595_v40, %v14671_v61  ;;  %v12495_v5 = vmax.f32 %v11594_v52, %v14672_v38  ;;  %v12597_v60 = vmax.f32 %v19838_v48, %v12493_v57  ;;  %v19911_v52 = vld [vmem:[%s15234_s23 + $0x178] sm:$0xf]  ;;  %v13833_v38 = vld [vmem:[%s15234_s23 + $0x170] sm:$0xe] }
 0x3fb   : > { %v12596_v51 = vmax.f32 %v19836_v13, %v12492_v45  ;;  %v19901_v39 = vrot.slane %v12594_v44, 7  ;;  %3889 = vrot.lane.b32.xlu0 %v13741_v54, %s15169_s28  ;;  %v3652_v43 = vrot.slane %v3650_v3, 4  ;;  %v3653_v42 = vshll.u32 %v13701_v25, 16  ;;  %v1631_v6 = vpop.permute.xlu0 %1630  ;;  %v13834_v57 = vld [vmem:[%s15234_s23 + $0x174] sm:$0xf] }
 0x3fc   : > { %v12496_v46 = vmax.f32 %v11596_v53, %v14673_v18  ;;  %v12598_v1 = vmax.f32 %v19842_v35, %v12494_v36  ;;  %v12599_v2 = vmax.f32 %v19844_v50, %v12495_v5  ;;  %v3659_v23 = vshll.u32 %v13702_v27, 16  ;;  %v19943_v36 = vld [vmem:[%s15234_s23 + $0x178] sm:$0xf] }
 0x3fd   : > { %v12770_v24 = vsel %vm12710_vm7, %v19901_v39, %v12593_v62  ;;  %v19908_v48 = vrot.slane %v12596_v51, 7  ;;  %v3655_v54 = vrot.slane %v3653_v42, 5  ;;  %v3663_v3 = vshrl.u32 %v13702_v27, 16  ;;  %v19945_v5 = vpop.f32.mrb[24].mxu1 }
 0x3fe   : > { %v11040_v13 = vld [vmem:[#allocation4 + $0xf8] sm:$0xff]  ;;  %vm20860_vm11 = vcmask 48152   ;;  %v12771_v35 = vsel %vm12712_vm9, %v19901_v39, %v12770_v24  ;;  %v12600_v50 = vmax.f32 %v19850_v34, %v12496_v46  ;;  %v19917_v25 = vrot.slane %v12598_v1, 7 }
 0x3ff   : > { %20859 = vst [vmem:[#allocation9_spill] sm:$0xff] %v19908_v48  ;;  %1711 = vst.msk [vmem:[#allocation2 + $0xe0] sm:$0xff] %vm20860_vm11, %v1631_v6  ;;  %14625 = vmatprep.mubr.msk.bf16.mxu1 %vm8071_vm0, %v11040_v13  ;;  %v3661_v40 = vrot.slane %v3659_v23, 5  ;;  %v19922_v41 = vsel %vm12714_vm4, %v19901_v39, %v12771_v35  ;;  %v12777_v27 = vsel %vm12710_vm7, %v19908_v48, %v12595_v47  ;;  %v3665_v22 = vrot.slane %v3663_v3, 4  ;;  %v2319_v14 = vpop.permute.xlu0 %2318  ;;  %v14095_v1 = vld [vmem:[%s15234_s23 + $0x178] sm:$0xf] }
 0x400   : > { %v3656_v49 = vor.u32 %v3655_v54, %v3652_v43  ;;  %v19930_v34 = vsel %vm12712_vm9, %v19908_v48, %v12777_v27  ;;  %v12784_v62 = vsel %vm12710_vm7, %v19917_v25, %v12597_v60  ;;  %v19934_v53 = vrot.slane %v12600_v50, 7  ;;  %2399 = vst.msk [vmem:[#allocation2 + $0xe0] sm:$0xff] %vm2370_vm8, %v2319_v14  ;;  %v11252_v23 = vpop.f32.mrb[25].mxu1  ;;  %v14096_v3 = vld [vmem:[%s15234_s23 + $0x17c] sm:$0x1] }
 0x401   : > { %v3669_v61 = vshll.u32 %v19911_v52, 16  ;;  %v12785_v44 = vsel %vm12712_vm9, %v19917_v25, %v12784_v62  ;;  %v3666_v18 = vor.u32 %v3665_v22, %v3661_v40  ;;  %v20862_v42 = vrot.slane %v19623_v56, 5  ;;  %v14098_v23 = vld [vmem:[%s15234_s23 + $0x184] sm:$0xf] }
 0x402   : > { %20861 = vst [vmem:[#allocation10_spill] sm:$0xff] %v19934_v53  ;;  %v3657_v47 = vrot.slane %v3656_v49, 4  ;;  %v19950_v60 = vsel %vm12714_vm4, %v19917_v25, %v12785_v44  ;;  %v12791_v51 = vsel %vm12710_vm7, %v19934_v53, %v12599_v2  ;;  %v4377_v54 = vrot.slane %v13831_v17, 5  ;;  %v19966_v2 = vpop.f32.mrb[26].mxu1 }
 0x403   : > { %v19954_v43 = vrot.slane %v3669_v61, 5  ;;  %v4376_v46 = vrot.slane %v20862_v42, 4  ;;  %v19961_v6 = vsel %vm12712_vm9, %v19934_v53, %v12791_v51  ;;  %v3667_v13 = vrot.slane %v3666_v18, 4  ;;  %v10687_v35 = vpop.permute.xlu1 %10686  ;;  %v11255_v22 = vpop.f32.mrb[27].mxu1  ;;  %v1814_v53 = vld [vmem:[%s15234_s23 + $0x17c] sm:$0x1] }
 0x404   : > { %20863 = vst [vmem:[#allocation11_spill] sm:$0xff] %v19961_v6  ;;  %v3662_v24 = vsel %vm15281_vm5, %v3657_v47, %v3661_v40  ;;  %v4380_v50 = vrot.slane %v13832_v8, 5  ;;  %v13863_v27 = vrot.slane %v13833_v38, 9  ;;  %v4384_v56 = vrot.slane %v13834_v57, 5  ;;  %10720 = vst.msk [vmem:[#allocation4 + $0xf0] sm:$0xff] %vm10704_vm10, %v10687_v35  ;;  %v2717_v62 = vpop.permute.xlu0 %2716  ;;  %v15134_v22 = vld [vmem:[%s15234_s23 + $0x174] sm:$0xff]  }
 0x405   : > { %v20762_v49 = vrot.slane %v19943_v36, 5  ;;  %v3672_v40 = vsel %vm15281_vm5, %v3667_v13, %v19954_v43  ;;  %v4378_v17 = vsel %vm15227_vm2, %v4376_v46, %v4377_v54  ;;  %v4379_v61 = vrot.slane %v4377_v54, 4  ;;  %v14097_v38 = vld [vmem:[%s15234_s23 + $0x180] sm:$0xf]  ;;  %vm20866_vm10 = vmmov %vm20860_vm11 }
 0x406   : > { %v20864_v14 = vshrl.u32 %v19659_v7, 16  ;;  %vm20865_vm12 = vcmask 97352   ;;  %v13742_v57 = vcombine.low %v3662_v24, %v3672_v40  ;;  %v4385_v44 = vsel %vm15227_vm2, %v13863_v27, %v4384_v56  ;;  %v19991_v27 = vld [vmem:[%s15234_s23 + $0x188] sm:$0xf] }
 0x407   : > { %2797 = vst.msk [vmem:[#allocation2 + $0xe0] sm:$0xff] %vm20865_vm12, %v2717_v62  ;;  %v4386_v47 = vrot.slane %v4384_v56, 4  ;;  %v5883_v18 = vshll.u32 %v14095_v1, 16  ;;  %v4381_v51 = vsel %vm15227_vm2, %v4379_v61, %v4380_v50  ;;  %v5887_v46 = vshrl.u32 %v14095_v1, 16  ;;  %v1633_v13 = vpop.permute.xlu1 %1632  ;;  %vm20872_vm0 = vmmov %vm20865_vm12 }
 0x408   : > { %v5879_v8 = vrot.slane %v20864_v14, 4  ;;  %v5893_v7 = vshll.u32 %v14096_v3, 16  ;;  %3891 = vrot.lane.b32.xlu1 %v13742_v57, %s15169_s28  ;;  %v13897_v24 = vcombine.low %v4378_v17, %v4381_v51  ;;  %v5898_v50 = vshrl.u32 %v14097_v38, 16  ;;  %1712 = vst.msk [vmem:[#allocation2 + $0xe8] sm:$0xff] %vm20866_vm10, %v1633_v13  ;;  %v3882_v1 = vpop.permute.xlu0 %3881  ;;  %v15146_v17 = vld [vmem:[%s15234_s23 + $0x168] ss:$8 sps:$4 sm:$0xff]  }
 0x409   : > { %v4388_v54 = vsel %vm15227_vm2, %v4386_v47, %v20762_v49  ;;  %v5885_v35 = vrot.slane %v5883_v18, 5  ;;  %v5889_v40 = vrot.slane %v5887_v46, 4  ;;  %vm20867_vm13 = vcmask 121952   ;;  %v14228_v47 = vld [vmem:[%s15234_s23 + $0x17c] sm:$0x1]  ;;  %v15135_v18 = vld [vmem:[%s15234_s23 + $0x180] sm:$0xff]  }
 0x40a   : > { %v5880_v42 = vor.u32 %v5879_v8, %v19682_v32  ;;  %v14227_v32 = vld [vmem:[%s15234_s23 + $0x178] sm:$0xf]  ;;  %v13898_v56 = vcombine.low %v4385_v44, %v4388_v54  ;;  %3962 = vst.msk [vmem:[#allocation2 + $0xe0] sm:$0xff] %vm20867_vm13, %v3882_v1  ;;  %4574 = vrot.lane.b32.xlu0 %v13897_v24, %s15166_s25  ;;  %v5900_v61 = vrot.slane %v5898_v50, 4  ;;  %v5901_v14 = vshll.u32 %v14097_v38, 16  ;;  %vm20874_vm15 = vmmov %vm20867_vm13 }
 0x40b   : > { %v5907_v8 = vshll.u32 %v14098_v23, 16  ;;  %v5911_v57 = vshrl.u32 %v14098_v23, 16  ;;  %v5890_v44 = vor.u32 %v5889_v40, %v5885_v35  ;;  %v5895_v13 = vrot.slane %v5893_v7, 5  ;;  %v642_v46 = vld [vmem:[%s15234_s23 + $0x16c] sm:$0x1]  ;;  %v11039_v54 = vld [vmem:[#allocation4 + $0xf0] sm:$0xff]  ;;  %v2321_v1 = vpop.permute.xlu1 %2320 }
 0x40c   : > { %v5881_v62 = vrot.slane %v5880_v42, 4  ;;  %v5917_v42 = vshll.u32 %v19991_v27, 16  ;;  %549 = vst.msk [vmem:[#allocation2 + $0x110] sm:$0xff] %vm20868_vm14, %v15146_v17  ;;  %4576 = vrot.lane.b32.xlu1 %v13898_v56, %s15166_s25  ;;  %v5903_v38 = vrot.slane %v5901_v14, 5  ;;  %v20869_v50 = vrot.slane %v19760_v33, 5  ;;  %11321 = vmatmul.mubr.bf16.gmra.mrb[60].mxu1 %v11039_v54  ;;  %v4567_v7 = vpop.permute.xlu0 %4566  ;;  %v15147_v54 = vld [vmem:[%s15234_s23 + $0x174] sm:$0xff]  }
 0x40d   : > { %v5909_v24 = vrot.slane %v5907_v8, 5  ;;  %v5913_v23 = vrot.slane %v5911_v57, 4  ;;  %v643_v3 = vld [vmem:[%s15234_s23 + $0x170] sm:$0xf]  ;;  %2400 = vst.msk [vmem:[#allocation2 + $0xe8] sm:$0xff] %vm2370_vm8, %v2321_v1  ;;  %v6625_v40 = vrot.slane %v14227_v32, 5 }
 0x40e   : > { %v5886_v51 = vsel %vm15281_vm5, %v5881_v62, %v5885_v35  ;;  %v6624_v49 = vrot.slane %v20869_v50, 4  ;;  %v5891_v35 = vrot.slane %v5890_v44, 4  ;;  %v20012_v62 = vrot.slane %v5917_v42, 5  ;;  %4972 = vrot.lane.b32.xlu0 %v15134_v22, %s15170_s29  ;;  %550 = vst.msk [vmem:[#allocation2 + $0x118] sm:$0xff] %vm20852_vm6, %v15147_v54 }
 0x40f   : > { %v6628_v45 = vrot.slane %v14228_v47, 5  ;;  %vm20870_vm1 = vcmask 146552   ;;  %v5904_v56 = vor.u32 %v5903_v38, %v5900_v61  ;;  %v5914_v33 = vor.u32 %v5913_v23, %v5909_v24  ;;  %v2719_v42 = vpop.permute.xlu1 %2718  ;;  %v644_v38 = vld [vmem:[%s15234_s23 + $0x174] sm:$0xf] }
 0x410   : > { %4647 = vst.msk [vmem:[#allocation2 + $0xe0] sm:$0xff] %vm20870_vm1, %v4567_v7  ;;  %v20871_v17 = vshrl.u32 %v19795_v15, 16  ;;  %v1428_v8 = vshll.u32 %v642_v46, 16  ;;  %v5896_v57 = vsel %vm15281_vm5, %v5891_v35, %v5895_v13  ;;  %v6626_v44 = vsel %vm15227_vm2, %v6624_v49, %v6625_v40  ;;  %4974 = vrot.lane.b32.xlu1 %v15135_v18, %s15170_s29  ;;  %v14229_v46 = vld [vmem:[%s15234_s23 + $0x180] sm:$0xe]  ;;  %v4965_v13 = vpop.permute.xlu0 %4964  ;;  %vm20876_vm12 = vmmov %vm20870_vm1 }
 0x411   : > { %v6627_v32 = vrot.slane %v6625_v40, 4  ;;  %v1433_v47 = vshrl.u32 %v643_v3, 16  ;;  %v14137_v22 = vcombine.low %v5886_v51, %v5896_v57  ;;  %v5905_v61 = vrot.slane %v5904_v56, 4  ;;  %2798 = vst.msk [vmem:[#allocation2 + $0xe8] sm:$0xff] %vm20872_vm0, %v2719_v42  ;;  %v14230_v35 = vld [vmem:[%s15234_s23 + $0x184] sm:$0xf] }
 0x412   : > { %v1424_v14 = vrot.slane %v20871_v17, 4  ;;  %v5915_v1 = vrot.slane %v5914_v33, 4  ;;  %v1430_v23 = vrot.slane %v1428_v8, 5  ;;  %v1436_v7 = vshll.u32 %v643_v3, 16  ;;  %v20040_v40 = vld [vmem:[%s15234_s23 + $0x188] sm:$0xf] }
 0x413   : > { %v6629_v49 = vsel %vm15227_vm2, %v6627_v32, %v6628_v45  ;;  %v1435_v50 = vrot.slane %v1433_v47, 4  ;;  %vm20873_vm3 = vcmask 171152   ;;  %6137 = vrot.lane.b32.xlu0 %v14137_v22, %s15171_s30  ;;  %v1442_v33 = vshll.u32 %v644_v38, 16  ;;  %v20046_v47 = vld [vmem:[%s15234_s23 + $0x178] sm:$0xf] }
 0x414   : > { %v1425_v15 = vor.u32 %v1424_v14, %v19809_v30  ;;  %5045 = vst.msk [vmem:[#allocation2 + $0xe0] sm:$0xff] %vm20873_vm3, %v4965_v13  ;;  %v5910_v30 = vsel %vm15281_vm5, %v5905_v61, %v5909_v24  ;;  %v5920_v18 = vsel %vm15281_vm5, %v5915_v1, %v20012_v62  ;;  %v14293_v51 = vcombine.low %v6626_v44, %v6629_v49  ;;  %v3884_v14 = vpop.permute.xlu1 %3883  ;;  %v6130_v44 = vpop.permute.xlu0 %6129  ;;  %vm20878_vm13 = vmmov %vm20873_vm3  ;;  %v1813_v8 = vld [vmem:[%s15234_s23 + $0x178] sm:$0xf] }
 0x415   : > { %v14138_v3 = vcombine.low %v5910_v30, %v5920_v18  ;;  %v1438_v56 = vrot.slane %v1436_v7, 5  ;;  %v1446_v17 = vshrl.u32 %v644_v38, 16  ;;  %v11251_v57 = vadd.f32 %v19791_v16, %v19945_v5  ;;  %3963 = vst.msk [vmem:[#allocation2 + $0xe8] sm:$0xff] %vm20874_vm15, %v3884_v14 }
 0x416   : > { %v1426_v45 = vrot.slane %v1425_v15, 4  ;;  %v14259_v32 = vrot.slane %v14229_v46, 9  ;;  %v6632_v24 = vrot.slane %v14230_v35, 5  ;;  %v1444_v54 = vrot.slane %v1442_v33, 5 }
 0x417   : > { %6139 = vrot.lane.b32.xlu1 %v14138_v3, %s15171_s30  ;;  %v1439_v42 = vor.u32 %v1438_v56, %v1435_v50  ;;  %v20763_v22 = vrot.slane %v20040_v40, 5  ;;  %v11254_v61 = vadd.f32 %v19791_v16, %v19966_v2  ;;  %vm20875_vm11 = vcmask 195752   ;;  %6822 = vrot.lane.b32.xlu0 %v14293_v51, %s15172_s6  ;;  %v20069_v56 = vpop.f32.mrb[28].mxu1 }
 0x418   : > { %6210 = vst.msk [vmem:[#allocation2 + $0xe0] sm:$0xff] %vm20875_vm11, %v6130_v44  ;;  %v11341_v5 = vmax.f32 %v11251_v57, 0.0  ;;  %v6633_v1 = vsel %vm15227_vm2, %v14259_v32, %v6632_v24  ;;  %v6634_v38 = vrot.slane %v6632_v24, 4  ;;  %v1448_v15 = vrot.slane %v1446_v17, 4  ;;  %v4569_v7 = vpop.permute.xlu1 %4568  ;;  %v6815_v18 = vpop.permute.xlu0 %6814  ;;  %vm20880_vm14 = vmmov %vm20875_vm11 }
 0x419   : > { %v1431_v46 = vsel %vm15281_vm5, %v1426_v45, %v1430_v23  ;;  %v1440_v13 = vrot.slane %v1439_v42, 4  ;;  %v11342_v49 = vmax.f32 %v11254_v61, 0.0  ;;  %v1452_v50 = vshll.u32 %v20046_v47, 16  ;;  %4648 = vst.msk [vmem:[#allocation2 + $0xe8] sm:$0xff] %vm20876_vm12, %v4569_v7  ;;  %v11260_v32 = vpop.f32.mrb[29].mxu1 }
 0x41a   : > { %v11597_v35 = vcombine.high %v11341_v5, %v11341_v5  ;;  %v11604_v16 = vrot.slane %v11341_v5, %v18876_v10  ;;  %v6636_v2 = vsel %vm15227_vm2, %v6634_v38, %v20763_v22  ;;  %v1449_v30 = vor.u32 %v1448_v15, %v1444_v54  ;;  %v20076_v61 = vpop.f32.mrb[30].mxu1  ;;  %v1811_v32 = vld [vmem:[%s15234_s23 + $0x170] sm:$0xe] }
 0x41b   : > { %v1445_v23 = vsel %vm15281_vm5, %v1440_v13, %v1444_v54  ;;  %v14294_v51 = vcombine.low %v6633_v1, %v6636_v2  ;;  %v11614_v45 = vcombine.high %v11342_v49, %v11342_v49  ;;  %v11621_v3 = vrot.slane %v11342_v49, %v18876_v10  ;;  %v11263_v13 = vpop.f32.mrb[31].mxu1 }
 0x41c   : > { %vm20877_vm10 = vcmask 220352   ;;  %v13443_v33 = vcombine.low %v1431_v46, %v1445_v23  ;;  %v11611_v17 = vrot.slane %v11597_v35, %v18876_v10  ;;  %v11612_v14 = vcombine.high %v11604_v16, %v11604_v16  ;;  %v4967_v5 = vpop.permute.xlu1 %4966  ;;  %v6817_v49 = vpop.permute.xlu0 %6816  ;;  %v1810_v23 = vld [vmem:[%s15234_s23 + $0x16c] sm:$0x1] }
 0x41d   : > { %6895 = vst.msk [vmem:[#allocation2 + $0xe0] sm:$0xff] %vm20877_vm10, %v6815_v18  ;;  %v14674_v57 = vrot.slane %v11604_v16, 9  ;;  %6824 = vrot.lane.b32.xlu0 %v14294_v51, %s15172_s6  ;;  %v11628_v24 = vrot.slane %v11614_v45, %v18876_v10  ;;  %v11629_v44 = vcombine.high %v11621_v3, %v11621_v3  ;;  %v14678_v42 = vrot.slane %v11621_v3, 9  ;;  %v646_v18 = vld [vmem:[%s15234_s23 + $0x17c] sm:$0x1]  ;;  %vm20881_vm1 = vmmov %vm20877_vm10 }
 0x41e   : > { %v1456_v54 = vshrl.u32 %v20046_v47, 16  ;;  %1642 = vrot.lane.b32.xlu1 %v13443_v33, %s15168_s27  ;;  %v11613_v1 = vcombine.high %v11611_v17, %v11611_v17  ;;  %v14675_v38 = vrot.slane %v11612_v14, 9  ;;  %v14676_v15 = vrot.slane %v11611_v17, 9  ;;  %5046 = vst.msk [vmem:[#allocation2 + $0xe8] sm:$0xff] %vm20878_vm13, %v4967_v5  ;;  %v1812_v5 = vld [vmem:[%s15234_s23 + $0x174] sm:$0xf] }
 0x41f   : > { %v20079_v46 = vrot.slane %v1449_v30, 4  ;;  %v20082_v7 = vmax.f32 %v11604_v16, %v14674_v57  ;;  %v20084_v47 = vcombine.high %v11628_v24, %v11628_v24  ;;  %v14679_v35 = vrot.slane %v11629_v44, 9 }
 0x420   : > { %v14680_v2 = vrot.slane %v11628_v24, 9  ;;  %v14677_v51 = vrot.slane %v11613_v1, 9  ;;  %v20088_v45 = vmax.f32 %v11612_v14, %v14675_v38  ;;  %v20090_v30 = vmax.f32 %v11621_v3, %v14678_v42  ;;  %v6132_v6 = vpop.permute.xlu1 %6131  ;;  %v13704_v38 = vld [vmem:[%s15234_s23 + $0x17c] sm:$0x1] }
 0x421   : > { %v1454_v33 = vrot.slane %v1452_v50, 5  ;;  %v20094_v13 = vmax.f32 %v11611_v17, %v14676_v15  ;;  %v20097_v57 = vmax.f32 %v11629_v44, %v14679_v35  ;;  %v1458_v22 = vrot.slane %v1456_v54, 4  ;;  %6211 = vst.msk [vmem:[#allocation2 + $0xe8] sm:$0xff] %vm20880_vm14, %v6132_v6  ;;  %v2323_v17 = vpop.permute.xlu0 %2322 }
 0x422   : > { %v20101_v29 = vmax.f32 %v11613_v1, %v14677_v51  ;;  %v20103_v14 = vmax.f32 %v11628_v24, %v14680_v2  ;;  %v1462_v3 = vshll.u32 %v646_v18, 16  ;;  %v20879_v50 = vrot.slane %v19833_v63, 5  ;;  %v13705_v1 = vld [vmem:[%s15234_s23 + $0x180] sm:$0xf]  ;;  %6896 = vst.msk [vmem:[#allocation2 + $0xe8] sm:$0xff] %vm20881_vm1, %v6817_v49 }
 0x423   : > { %v1455_v44 = vsel %vm15281_vm5, %v20079_v46, %v1454_v33  ;;  %v1459_v54 = vor.u32 %v1458_v22, %v1454_v33  ;;  %v2142_v35 = vrot.slane %v1810_v23, 5  ;;  %v13468_v16 = vrot.slane %v1811_v32, 9 }
 0x424   : > { %v2141_v42 = vrot.slane %v20879_v50, 4  ;;  %v6931_v15 = vld [vmem:[#allocation2 + $0xe0] sm:$0xff]  ;;  %vm20882_vm0 = vcmask 220160   ;;  %v1464_v63 = vrot.slane %v1462_v3, 5  ;;  %v2146_v24 = vrot.slane %v1812_v5, 5  ;;  %v1635_v33 = vpop.permute.xlu1 %1634 }
 0x425   : > { %14935 = vmatprep.mubr.msk.bf16.mxu0 %vm20882_vm0, %v6931_v15  ;;  %v2149_v2 = vrot.slane %v1813_v8, 5  ;;  %v2152_v6 = vrot.slane %v1814_v53, 5  ;;  %v1460_v18 = vrot.slane %v1459_v54, 4  ;;  %v20883_v22 = vshrl.u32 %v19911_v52, 16  ;;  %v13706_v5 = vld [vmem:[%s15234_s23 + $0x184] sm:$0xf]  ;;  %v2721_v54 = vpop.permute.xlu0 %2720  ;;  %vm20888_vm11 = vmmov %vm20882_vm0 }
 0x426   : > { %v2143_v51 = vsel %vm15227_vm2, %v2141_v42, %v2142_v35  ;;  %v3679_v23 = vshll.u32 %v13704_v38, 16  ;;  %v2147_v49 = vsel %vm15227_vm2, %v13468_v16, %v2146_v24  ;;  %v2148_v32 = vrot.slane %v2146_v24, 4  ;;  %v15136_v50 = vld [vmem:[%s15234_s23 + $0x178] ss:$8 sps:$4 sm:$0xff]   ;;  %v13707_v15 = vld [vmem:[%s15234_s23 + $0x188] sm:$0xf] }
 0x427   : > { %v3675_v46 = vrot.slane %v20883_v22, 4  ;;  %v2151_v3 = vrot.slane %v2149_v2, 4  ;;  %v3684_v8 = vshrl.u32 %v13705_v1, 16  ;;  %vm20884_vm3 = vcmask 48152   ;;  %v13708_v16 = vld [vmem:[%s15234_s23 + $0x18c] sm:$0x1] }
 0x428   : > { %1713 = vst.msk [vmem:[#allocation2 + $0xf0] sm:$0xff] %vm20884_vm3, %v1635_v33  ;;  %v1465_v53 = vsel %vm15281_vm5, %v1460_v18, %v1464_v63  ;;  %v13503_v52 = vcombine.low %v2143_v51, %v2147_v49  ;;  %v20127_v38 = vrot.slane %v3679_v23, 5  ;;  %v2150_v24 = vsel %vm15227_vm2, %v2148_v32, %v2149_v2  ;;  %v13836_v18 = vld [vmem:[%s15234_s23 + $0x17c] sm:$0x1]  ;;  %v13837_v51 = vld [vmem:[%s15234_s23 + $0x180] sm:$0xe]  ;;  %v1637_v49 = vpop.permute.xlu1 %1636  ;;  %vm20886_vm15 = vmmov %vm20884_vm3 }
 0x429   : > { %v3676_v42 = vor.u32 %v3675_v46, %v19954_v43  ;;  %2401 = vst.msk [vmem:[#allocation2 + $0xf0] sm:$0xff] %vm2370_vm8, %v2323_v17  ;;  %v13444_v35 = vcombine.low %v1455_v44, %v1465_v53  ;;  %v2153_v22 = vsel %vm15227_vm2, %v2151_v3, %v2152_v6  ;;  %v3686_v63 = vrot.slane %v3684_v8, 4  ;;  %v13838_v33 = vld [vmem:[%s15234_s23 + $0x184] sm:$0xf]  ;;  %v13839_v44 = vld [vmem:[%s15234_s23 + $0x188] sm:$0xf] }
 0x42a   : > { %vm20885_vm6 = vcmask 97352   ;;  %2330 = vrot.lane.b32.xlu0 %v13503_v52, %s15167_s26  ;;  %v13504_v43 = vcombine.low %v2150_v24, %v2153_v22  ;;  %v3687_v17 = vshll.u32 %v13705_v1, 16  ;;  %v3693_v23 = vshll.u32 %v13706_v5, 16  ;;  %1714 = vst.msk [vmem:[#allocation2 + $0xf8] sm:$0xff] %vm20886_vm15, %v1637_v49  ;;  %v6932_v8 = vld [vmem:[#allocation2 + $0xe8] sm:$0xff] }
 0x42b   : > { %2799 = vst.msk [vmem:[#allocation2 + $0xf0] sm:$0xff] %vm20885_vm6, %v2721_v54  ;;  %v3677_v46 = vrot.slane %v3676_v42, 4  ;;  %1644 = vrot.lane.b32.xlu1 %v13444_v35, %s15168_s27  ;;  %v3697_v2 = vshrl.u32 %v13706_v5, 16  ;;  %v3703_v32 = vshll.u32 %v13707_v15, 16  ;;  %v3707_v6 = vshrl.u32 %v13707_v15, 16  ;;  %14936 = vmatmul.mubr.msk.bf16.gmra.mrb[56].mxu0 %vm20888_vm11, %v6932_v8  ;;  %vm20891_vm10 = vmmov %vm20885_vm6  ;;  %s14764_s27 = sshll.u32 %s20948_s19, 4 }
 0x42c   : > { %v3713_v3 = vshll.u32 %v13708_v16, 16  ;;  %v3689_v52 = vrot.slane %v3687_v17, 5  ;;  %v3695_v42 = vrot.slane %v3693_v23, 5  ;;  %v20887_v1 = vrot.slane %v19943_v36, 5  ;;  %v13840_v24 = vld [vmem:[%s15234_s23 + $0x18c] sm:$0x1] }
 0x42d   : > { %v3682_v53 = vsel %vm15281_vm5, %v3677_v46, %v20127_v38  ;;  %v3699_v5 = vrot.slane %v3697_v2, 4  ;;  %v3705_v15 = vrot.slane %v3703_v32, 5  ;;  %v3709_v16 = vrot.slane %v3707_v6, 4  ;;  %v2325_v46 = vpop.permute.xlu1 %2324  ;;  %v15137_v17 = vld [vmem:[%s15234_s23 + $0x184] sm:$0xff]   ;;  %v14100_v2 = vld [vmem:[%s15234_s23 + $0x18c] sm:$0x1]  ;;  %v3886_v32 = vpop.permute.xlu0 %3885 }
 0x42e   : > { %v4389_v54 = vrot.slane %v20887_v1, 4  ;;  %v3715_v35 = vrot.slane %v3713_v3, 5  ;;  %2728 = vrot.lane.b32.xlu0 %v15136_v50, %s15165_s24  ;;  %v3690_v22 = vor.u32 %v3689_v52, %v3686_v63  ;;  %v4390_v49 = vrot.slane %v13836_v18, 5  ;;  %2402 = vst.msk [vmem:[#allocation2 + $0xf8] sm:$0xff] %vm2370_vm8, %v2325_v46 }
 0x42f   : > { %v13864_v48 = vrot.slane %v13837_v51, 9  ;;  %v4394_v38 = vrot.slane %v13838_v33, 5  ;;  %2332 = vrot.lane.b32.xlu1 %v13504_v43, %s15167_s26  ;;  %v3700_v36 = vor.u32 %v3699_v5, %v3695_v42  ;;  %v3710_v23 = vor.u32 %v3709_v16, %v3705_v15 }
 0x430   : > { %v4397_v1 = vrot.slane %v13839_v44, 5  ;;  %v4400_v8 = vrot.slane %v13840_v24, 5  ;;  %v3691_v6 = vrot.slane %v3690_v22, 4  ;;  %v4391_v50 = vsel %vm15227_vm2, %v4389_v54, %v4390_v49  ;;  %v14101_v24 = vld [vmem:[%s15234_s23 + $0x190] sm:$0xf] }
 0x431   : > { %v4395_v63 = vsel %vm15227_vm2, %v13864_v48, %v4394_v38  ;;  %v4396_v18 = vrot.slane %v4394_v38, 4  ;;  %vm20889_vm12 = vcmask 121952   ;;  %v3701_v51 = vrot.slane %v3700_v36, 4  ;;  %v14102_v54 = vld [vmem:[%s15234_s23 + $0x194] sm:$0xf]  ;;  %v2723_v22 = vpop.permute.xlu1 %2722 }
 0x432   : > { %3964 = vst.msk [vmem:[#allocation2 + $0xf0] sm:$0xff] %vm20889_vm12, %v3886_v32  ;;  %v3711_v33 = vrot.slane %v3710_v23, 4  ;;  %v13899_v43 = vcombine.low %v4391_v50, %v4395_v63  ;;  %v4399_v44 = vrot.slane %v4397_v1, 4  ;;  %v3696_v3 = vsel %vm15281_vm5, %v3691_v6, %v3695_v42  ;;  %v14103_v36 = vld [vmem:[%s15234_s23 + $0x198] sm:$0xf]  ;;  %vm20894_vm13 = vmmov %vm20889_vm12 }
 0x433   : > { %v4398_v52 = vsel %vm15227_vm2, %v4396_v18, %v4397_v1  ;;  %v20890_v5 = vshrl.u32 %v19991_v27, 16  ;;  %v5927_v16 = vshll.u32 %v14100_v2, 16  ;;  %2730 = vrot.lane.b32.xlu1 %v15137_v17, %s15165_s24  ;;  %v13743_v49 = vcombine.low %v3682_v53, %v3696_v3  ;;  %v14104_v23 = vld [vmem:[%s15234_s23 + $0x19c] sm:$0x1]  ;;  %v20178_v27 = vpop.f32.mrb[32].mxu1  ;;  %2800 = vst.msk [vmem:[#allocation2 + $0xf8] sm:$0xff] %vm20891_vm10, %v2723_v22 }
 0x434   : > { %v3706_v38 = vsel %vm15281_vm5, %v3701_v51, %v3705_v15  ;;  %v3716_v42 = vsel %vm15281_vm5, %v3711_v33, %v3715_v35  ;;  %v4401_v46 = vsel %vm15227_vm2, %v4399_v44, %v4400_v8  ;;  %v14232_v32 = vld [vmem:[%s15234_s23 + $0x18c] sm:$0x1]  ;;  %v11268_v15 = vpop.f32.mrb[33].mxu1  ;;  %v5932_v35 = vshrl.u32 %v14101_v24, 16  ;;  %v14233_v63 = vld [vmem:[%s15234_s23 + $0x190] sm:$0xe] }
 0x435   : > { %v5923_v48 = vrot.slane %v20890_v5, 4  ;;  %v13744_v1 = vcombine.low %v3706_v38, %v3716_v42  ;;  %v13900_v2 = vcombine.low %v4398_v52, %v4401_v46  ;;  %v5929_v17 = vrot.slane %v5927_v16, 5  ;;  %3893 = vrot.lane.b32.xlu0 %v13743_v49, %s15169_s28  ;;  %v20185_v18 = vpop.f32.mrb[34].mxu1  ;;  %v14234_v22 = vld [vmem:[%s15234_s23 + $0x194] sm:$0xf] }
 0x436   : > { %v5935_v6 = vshll.u32 %v14101_v24, 16  ;;  %v5941_v8 = vshll.u32 %v14102_v54, 16  ;;  %v5945_v50 = vshrl.u32 %v14102_v54, 16  ;;  %v5951_v33 = vshll.u32 %v14103_v36, 16  ;;  %v14235_v46 = vld [vmem:[%s15234_s23 + $0x198] sm:$0xf] }
 0x437   : > { %v5924_v53 = vor.u32 %v5923_v48, %v20012_v62  ;;  %v5955_v44 = vshrl.u32 %v14103_v36, 16  ;;  %v5961_v3 = vshll.u32 %v14104_v23, 16  ;;  %v11271_v62 = vpop.f32.mrb[35].mxu1  ;;  %3895 = vrot.lane.b32.xlu1 %v13744_v1, %s15169_s28  ;;  %v5934_v52 = vrot.slane %v5932_v35, 4  ;;  %v15140_v36 = vld [vmem:[%s15234_s23 + $0x188] ss:$8 sps:$4 sm:$0xff]  }
 0x438   : > { %v5937_v5 = vrot.slane %v5935_v6, 5  ;;  %v5943_v48 = vrot.slane %v5941_v8, 5  ;;  %v5947_v16 = vrot.slane %v5945_v50, 4  ;;  %v20892_v24 = vrot.slane %v20084_v47, 9  ;;  %v3888_v6 = vpop.permute.xlu1 %3887  ;;  %v4571_v8 = vpop.permute.xlu0 %4570 }
 0x439   : > { %v5925_v51 = vrot.slane %v5924_v53, 4  ;;  %v5953_v49 = vrot.slane %v5951_v33, 5  ;;  %v5957_v38 = vrot.slane %v5955_v44, 4  ;;  %v5963_v42 = vrot.slane %v5961_v3, 5  ;;  %4578 = vrot.lane.b32.xlu0 %v13899_v43, %s15166_s25  ;;  %v20202_v33 = vld [vmem:[%s20719_s4] ss:$0 sm:$0xff] }
 0x43a   : > { %v20192_v54 = vmax.f32 %v20084_v47, %v20892_v24  ;;  %v5938_v23 = vor.u32 %v5937_v5, %v5934_v52  ;;  %v5948_v1 = vor.u32 %v5947_v16, %v5943_v48  ;;  %v20893_v53 = vrot.slane %v20040_v40, 5  ;;  %3965 = vst.msk [vmem:[#allocation2 + $0xf8] sm:$0xff] %vm20894_vm13, %v3888_v6  ;;  %v15141_v40 = vld [vmem:[%s15234_s23 + $0x194] sm:$0xff]  }
 0x43b   : > { %v6638_v35 = vrot.slane %v14232_v32, 5  ;;  %v5958_v50 = vor.u32 %v5957_v38, %v5953_v49  ;;  %v14260_v47 = vrot.slane %v14233_v63, 9  ;;  %v6642_v62 = vrot.slane %v14234_v22, 5  ;;  %4580 = vrot.lane.b32.xlu1 %v13900_v2, %s15166_s25  ;;  %v14236_v22 = vld [vmem:[%s15234_s23 + $0x19c] sm:$0x1] }
 0x43c   : > { %v6637_v15 = vrot.slane %v20893_v53, 4  ;;  %v11259_v43 = vadd.f32 %v20202_v33, %v20069_v56  ;;  %vm20895_vm14 = vcmask 146552   ;;  %v5930_v32 = vsel %vm15281_vm5, %v5925_v51, %v5929_v17  ;;  %v4573_v38 = vpop.permute.xlu1 %4572 }
 0x43d   : > { %4649 = vst.msk [vmem:[#allocation2 + $0xf0] sm:$0xff] %vm20895_vm14, %v4571_v8  ;;  %v5939_v63 = vrot.slane %v5938_v23, 4  ;;  %v5949_v44 = vrot.slane %v5948_v1, 4  ;;  %v6645_v3 = vrot.slane %v14235_v46, 5  ;;  %v5959_v52 = vrot.slane %v5958_v50, 4  ;;  %4976 = vrot.lane.b32.xlu0 %v15140_v36, %s15170_s29  ;;  %v4969_v46 = vpop.permute.xlu0 %4968  ;;  %vm20896_vm1 = vmmov %vm20895_vm14 }
 0x43e   : > { %v6639_v5 = vsel %vm15227_vm2, %v6637_v15, %v6638_v35  ;;  %v11343_v16 = vmax.f32 %v11259_v43, 0.0  ;;  %v6644_v56 = vrot.slane %v6642_v62, 4  ;;  %v6643_v17 = vsel %vm15227_vm2, %v14260_v47, %v6642_v62  ;;  %4650 = vst.msk [vmem:[#allocation2 + $0xf8] sm:$0xff] %vm20896_vm1, %v4573_v38 }
 0x43f   : > { %v5944_v24 = vsel %vm15281_vm5, %v5939_v63, %v5943_v48  ;;  %v5954_v2 = vsel %vm15281_vm5, %v5949_v44, %v5953_v49  ;;  %v6647_v51 = vrot.slane %v6645_v3, 4  ;;  %v5964_v1 = vsel %vm15281_vm5, %v5959_v52, %v5963_v42  ;;  %4978 = vrot.lane.b32.xlu1 %v15141_v40, %s15170_s29 }
 0x440   : > { %v14139_v23 = vcombine.low %v5930_v32, %v5944_v24  ;;  %v11631_v53 = vcombine.high %v11343_v16, %v11343_v16  ;;  %v11638_v15 = vrot.slane %v11343_v16, %v18876_v10  ;;  %vm20897_vm0 = vcmask 171152   ;;  %v4971_v40 = vpop.permute.xlu1 %4970 }
 0x441   : > { %5047 = vst.msk [vmem:[#allocation2 + $0xf0] sm:$0xff] %vm20897_vm0, %v4969_v46  ;;  %v14140_v48 = vcombine.low %v5954_v2, %v5964_v1  ;;  %v6646_v49 = vsel %vm15227_vm2, %v6644_v56, %v6645_v3  ;;  %v6648_v36 = vrot.slane %v14236_v22, 5  ;;  %v11262_v35 = vadd.f32 %v20202_v33, %v20076_v61  ;;  %vm20898_vm5 = vmmov %vm20897_vm0  ;;  %v6134_v2 = vpop.permute.xlu0 %6133 }
 0x442   : > { %v11645_v58 = vrot.slane %v11631_v53, %v18876_v10  ;;  %v11646_v42 = vcombine.high %v11638_v15, %v11638_v15  ;;  %v14682_v6 = vrot.slane %v11638_v15, 9  ;;  %v11267_v8 = vadd.f32 %v20202_v33, %v20178_v27  ;;  %6141 = vrot.lane.b32.xlu0 %v14139_v23, %s15171_s30  ;;  %5048 = vst.msk [vmem:[#allocation2 + $0xf8] sm:$0xff] %vm20898_vm5, %v4971_v40 }
 0x443   : > { %v14295_v50 = vcombine.low %v6639_v5, %v6643_v17  ;;  %v6649_v47 = vsel %vm15227_vm2, %v6647_v51, %v6648_v36  ;;  %v11344_v62 = vmax.f32 %v11262_v35, 0.0  ;;  %v20240_v43 = vadd.f32 %v20202_v33, %v20185_v18  ;;  %6143 = vrot.lane.b32.xlu1 %v14140_v48, %s15171_s30  ;;  %v11274_v5 = vpop.f32.mrb[36].mxu1  ;;  %s224_s30 = scalar_lea.vmem %s20720_s5, %s14764_s27 }
 0x444   : > { %v11647_v61 = vcombine.high %v11645_v58, %v11645_v58  ;;  %v14683_v32 = vrot.slane %v11646_v42, 9  ;;  %v14684_v63 = vrot.slane %v11645_v58, 9  ;;  %v12505_v44 = vmax.f32 %v11638_v15, %v14682_v6  ;;  %v11276_v24 = vpop.f32.mrb[37].mxu1 }
 0x445   : > { %v14296_v27 = vcombine.low %v6646_v49, %v6649_v47  ;;  %v11648_v3 = vcombine.high %v11344_v62, %v11344_v62  ;;  %v11655_v52 = vrot.slane %v11344_v62, %v18876_v10  ;;  %v11345_v0 = vmax.f32 %v11267_v8, 0.0  ;;  %v11277_v23 = vpop.f32.mrb[38].mxu1  ;;  %v6136_v49 = vpop.permute.xlu1 %6135 }
 0x446   : > { %v14685_v16 = vrot.slane %v11647_v61, 9  ;;  %v12506_v22 = vmax.f32 %v11646_v42, %v14683_v32  ;;  %v12507_v56 = vmax.f32 %v11645_v58, %v14684_v63  ;;  %v12601_v18 = vmax.f32 %v20082_v7, %v12505_v44  ;;  %6826 = vrot.lane.b32.xlu0 %v14295_v50, %s15172_s6  ;;  %v11279_v7 = vpop.f32.mrb[39].mxu1 }
 0x447   : > { %v11662_v17 = vrot.slane %v11648_v3, %v18876_v10  ;;  %v11663_v51 = vcombine.high %v11655_v52, %v11655_v52  ;;  %v14686_v38 = vrot.slane %v11655_v52, 9  ;;  %v11665_v46 = vcombine.high %v11345_v0, %v11345_v0  ;;  %6828 = vrot.lane.b32.xlu1 %v14296_v27, %s15172_s6 }
 0x448   : > { %vm20899_vm2 = vcmask 195752   ;;  %v12508_v1 = vmax.f32 %v11647_v61, %v14685_v16  ;;  %v12602_v53 = vmax.f32 %v20088_v45, %v12506_v22  ;;  %v12603_v15 = vmax.f32 %v20094_v13, %v12507_v56 }
 0x449   : > { %6212 = vst.msk [vmem:[#allocation2 + $0xf0] sm:$0xff] %vm20899_vm2, %v6134_v2  ;;  %v11672_v48 = vrot.slane %v11345_v0, %v18876_v10  ;;  %v11664_v36 = vcombine.high %v11662_v17, %v11662_v17  ;;  %v14687_v35 = vrot.slane %v11663_v51, 9  ;;  %v14688_v58 = vrot.slane %v11662_v17, 9  ;;  %vm20900_vm3 = vmmov %vm20899_vm2 }
 0x44a   : > { %v12509_v42 = vmax.f32 %v11655_v52, %v14686_v38  ;;  %6213 = vst.msk [vmem:[#allocation2 + $0xf8] sm:$0xff] %vm20900_vm3, %v6136_v49  ;;  %v12604_v6 = vmax.f32 %v20101_v29, %v12508_v1  ;;  %v20255_v8 = vrot.slane %v12602_v53, 7  ;;  %v11679_v45 = vrot.slane %v11665_v46, %v18876_v10 }
 0x44b   : > { %v11680_v50 = vcombine.high %v11672_v48, %v11672_v48  ;;  %v14689_v13 = vrot.slane %v11664_v36, 9  ;;  %v12510_v47 = vmax.f32 %v11663_v51, %v14687_v35  ;;  %v12511_v62 = vmax.f32 %v11662_v17, %v14688_v58  ;;  %v6819_v51 = vpop.permute.xlu0 %6818 }
 0x44c   : > { %v12605_v40 = vmax.f32 %v20090_v30, %v12509_v42  ;;  %v12798_v61 = vsel %vm12710_vm7, %v20255_v8, %v12601_v18  ;;  %v20261_v32 = vrot.slane %v12604_v6, 7  ;;  %v11681_v63 = vcombine.high %v11679_v45, %v11679_v45 }
 0x44d   : > { %v14690_v44 = vrot.slane %v11672_v48, 9  ;;  %v12799_v29 = vsel %vm12712_vm9, %v20255_v8, %v12798_v61  ;;  %v12512_v27 = vmax.f32 %v11664_v36, %v14689_v13  ;;  %v12606_v3 = vmax.f32 %v20097_v57, %v12510_v47 }
 0x44e   : > { %v12607_v52 = vmax.f32 %v20103_v14, %v12511_v62  ;;  %v20269_v0 = vsel %vm12714_vm4, %v20255_v8, %v12799_v29  ;;  %v12805_v30 = vsel %vm12710_vm7, %v20261_v32, %v12603_v15  ;;  %v14691_v16 = vrot.slane %v11680_v50, 9 }
 0x44f   : > { %v14692_v22 = vrot.slane %v11679_v45, 9  ;;  %v20275_v56 = vsel %vm12712_vm9, %v20261_v32, %v12805_v30  ;;  %v12608_v18 = vmax.f32 %v20192_v54, %v12512_v27  ;;  %v20278_v24 = vrot.slane %v12606_v3, 7 }
 0x450   : > { %vm12716_vm6 = vcmask 1047559   ;;  %v14693_v57 = vrot.slane %v11681_v63, 9  ;;  %v20280_v14 = vmax.f32 %v11672_v48, %v14690_v44  ;;  %v20282_v2 = vmax.f32 %v11680_v50, %v14691_v16 }
 0x451   : > { %v11346_v17 = vmax.f32 %v20240_v43, 0.0  ;;  %v12812_v38 = vsel %vm12710_vm7, %v20278_v24, %v12605_v40  ;;  %v20287_v46 = vrot.slane %v12608_v18, 7  ;;  %v20289_v1 = vmax.f32 %v11679_v45, %v14692_v22 }
 0x452   : > { %v11275_v54 = vadd.f32 %v20202_v33, %v11274_v5  ;;  %vm20901_vm15 = vcmask 220352   ;;  %v12813_v53 = vsel %vm12712_vm9, %v20278_v24, %v12812_v38  ;;  %v11278_v43 = vadd.f32 %v20202_v33, %v11277_v23  ;;  %v6821_v16 = vpop.permute.xlu0 %6820 }
 0x453   : > { %6897 = vst.msk [vmem:[#allocation2 + $0xf0] sm:$0xff] %vm20901_vm15, %v6819_v51  ;;  %v11682_v15 = vcombine.high %v11346_v17, %v11346_v17  ;;  %v11689_v48 = vrot.slane %v11346_v17, %v18876_v10  ;;  %v20299_v7 = vsel %vm12714_vm4, %v20278_v24, %v12813_v53  ;;  %v12819_v49 = vsel %vm12710_vm7, %v20287_v46, %v12607_v52  ;;  %vm20902_vm11 = vmmov %vm20901_vm15 }
 0x454   : > { %v11347_v36 = vmax.f32 %v11275_v54, 0.0  ;;  %v20306_v5 = vsel %vm12716_vm6, %v19501_v31, %v19523_v21  ;;  %v20310_v35 = vsel %vm12712_vm9, %v20287_v46, %v12819_v49  ;;  %v11348_v50 = vmax.f32 %v11278_v43, 0.0  ;;  %6898 = vst.msk [vmem:[#allocation2 + $0xf8] sm:$0xff] %vm20902_vm11, %v6821_v16  ;;  %v11282_v49 = vpop.f32.mrb[40].mxu1 }
 0x455   : > { %v11696_v58 = vrot.slane %v11682_v15, %v18876_v10  ;;  %v11697_v23 = vcombine.high %v11689_v48, %v11689_v48  ;;  %v14694_v42 = vrot.slane %v11689_v48, 9  ;;  %v20317_v13 = vsel %vm12716_vm6, %v19720_v37, %v19744_v11  ;;  %v1639_v43 = vpop.permute.xlu1 %1638 }
 0x456   : > { %v11699_v6 = vcombine.high %v11347_v36, %v11347_v36  ;;  %v11706_v45 = vrot.slane %v11347_v36, %v18876_v10  ;;  %v12516_v47 = vmax.f32 %v11681_v63, %v14693_v57  ;;  %v11716_v29 = vcombine.high %v11348_v50, %v11348_v50 }
 0x457   : > { %v11698_v31 = vcombine.high %v11696_v58, %v11696_v58  ;;  %v14695_v21 = vrot.slane %v11697_v23, 9  ;;  %v14696_v62 = vrot.slane %v11696_v58, 9  ;;  %v20320_v3 = vmax.f32 %v11689_v48, %v14694_v42 }
 0x458   : > { %v11713_v40 = vrot.slane %v11699_v6, %v18876_v10  ;;  %v11714_v61 = vcombine.high %v11706_v45, %v11706_v45  ;;  %v14698_v44 = vrot.slane %v11706_v45, 9  ;;  %v11723_v30 = vrot.slane %v11348_v50, %v18876_v10 }
 0x459   : > { %v14697_v27 = vrot.slane %v11698_v31, 9  ;;  %v12518_v52 = vmax.f32 %v11697_v23, %v14695_v21  ;;  %vm20903_vm12 = vcmask 220160   ;;  %v12519_v57 = vmax.f32 %v11696_v58, %v14696_v62 }
 0x45a   : > { %v6933_v22 = vld [vmem:[#allocation2 + $0xf0] sm:$0xff]  ;;  %v11715_v18 = vcombine.high %v11713_v40, %v11713_v40  ;;  %v14699_v37 = vrot.slane %v11714_v61, 9  ;;  %v14700_v11 = vrot.slane %v11713_v40, 9  ;;  %v12521_v63 = vmax.f32 %v11706_v45, %v14698_v44  ;;  %v11284_v45 = vpop.f32.mrb[41].mxu1  ;;  %vm20905_vm13 = vmmov %vm20903_vm12 }
 0x45b   : > { %14939 = vmatprep.mubr.msk.bf16.mxu0 %vm20903_vm12, %v6933_v22  ;;  %v11730_v17 = vrot.slane %v11716_v29, %v18876_v10  ;;  %v11731_v51 = vcombine.high %v11723_v30, %v11723_v30  ;;  %v14702_v38 = vrot.slane %v11723_v30, 9  ;;  %vm20904_vm10 = vcmask 48152  }
 0x45c   : > { %v14701_v54 = vrot.slane %v11715_v18, 9  ;;  %v12522_v53 = vmax.f32 %v11714_v61, %v14699_v37  ;;  %v12523_v15 = vmax.f32 %v11713_v40, %v14700_v11  ;;  %v12609_v48 = vmax.f32 %v20280_v14, %v12521_v63  ;;  %1715 = vst.msk [vmem:[#allocation2 + $0x100] sm:$0xff] %vm20904_vm10, %v1639_v43  ;;  %v11285_v61 = vpop.f32.mrb[42].mxu1  ;;  %vm20906_vm14 = vmmov %vm20904_vm10 }
 0x45d   : > { %v11732_v36 = vcombine.high %v11730_v17, %v11730_v17  ;;  %v14703_v23 = vrot.slane %v11731_v51, 9  ;;  %v14704_v42 = vrot.slane %v11730_v17, 9  ;;  %v12525_v6 = vmax.f32 %v11723_v30, %v14702_v38  ;;  %v11287_v16 = vpop.f32.mrb[43].mxu1 }
 0x45e   : > { %v12524_v50 = vmax.f32 %v11715_v18, %v14701_v54  ;;  %v12610_v58 = vmax.f32 %v20282_v2, %v12522_v53  ;;  %v12611_v21 = vmax.f32 %v20289_v1, %v12523_v15  ;;  %v11283_v62 = vadd.f32 %v20202_v33, %v11282_v49  ;;  %v6934_v54 = vld [vmem:[#allocation2 + $0xf8] sm:$0xff] }
 0x45f   : > { %v14705_v40 = vrot.slane %v11732_v36, 9  ;;  %v12526_v44 = vmax.f32 %v11731_v51, %v14703_v23  ;;  %v12527_v14 = vmax.f32 %v11730_v17, %v14704_v42  ;;  %v12613_v29 = vmax.f32 %v20320_v3, %v12525_v6  ;;  %14940 = vmatmul.mubr.msk.bf16.gmra.mrb[60].mxu0 %vm20905_vm13, %v6934_v54 }
 0x460   : > { %v15185_v22 = vmov 1934713408   ;;  %v12520_v30 = vmax.f32 %v11698_v31, %v14697_v27  ;;  %v12612_v11 = vmax.f32 %v12516_v47, %v12524_v50  ;;  %v20332_v63 = vrot.slane %v12610_v58, 7 }
 0x461   : > { %v12969_v37 = vunpack.c.l.s4 %v15185_v22  ;;  %v12528_v18 = vmax.f32 %v11732_v36, %v14705_v40  ;;  %v12614_v38 = vmax.f32 %v12518_v52, %v12526_v44  ;;  %v12615_v2 = vmax.f32 %v12519_v57, %v12527_v14  ;;  %v1641_v52 = vpop.permute.xlu1 %1640 }
 0x462   : > { %v12773_v1 = vsel %vm12716_vm6, %v19901_v39, %v19922_v41  ;;  %v12826_v17 = vsel %vm12710_vm7, %v20332_v63, %v12609_v48  ;;  %v20339_v51 = vrot.slane %v12612_v11, 7  ;;  %v11349_v3 = vmax.f32 %v11283_v62, 0.0  ;;  %1716 = vst.msk [vmem:[#allocation2 + $0x108] sm:$0xff] %vm20906_vm14, %v1641_v52  ;;  %v2327_v58 = vpop.permute.xlu0 %2326  ;;  %v20914_v52 = vld [vmem:[#allocation11_spill] sm:$0xff] }
 0x463   : > { %v12827_v47 = vsel %vm12712_vm9, %v20332_v63, %v12826_v17  ;;  %v12616_v31 = vmax.f32 %v12520_v30, %v12528_v18  ;;  %v20344_v27 = vrot.slane %v12614_v38, 7  ;;  %v11286_v57 = vadd.f32 %v20202_v33, %v11285_v61  ;;  %2403 = vst.msk [vmem:[#allocation2 + $0x100] sm:$0xff] %vm2370_vm8, %v2327_v58 }
 0x464   : > { %v12970_v53 = vunpack.c.0.s8 %v12969_v37  ;;  %v20349_v39 = vsel %vm12714_vm4, %v20332_v63, %v12827_v47  ;;  %v12833_v41 = vsel %vm12710_vm7, %v20339_v51, %v12611_v21  ;;  %v11733_v42 = vcombine.high %v11349_v3, %v11349_v3  ;;  %v20912_v47 = vld [vmem:[#allocation8_spill] sm:$0xff] }
 0x465   : > { %v20356_v15 = vsel %vm12712_vm9, %v20339_v51, %v12833_v41  ;;  %v12840_v48 = vsel %vm12710_vm7, %v20344_v27, %v12613_v29  ;;  %v20360_v43 = vrot.slane %v12616_v31, 7  ;;  %v11350_v6 = vmax.f32 %v11286_v57, 0.0  ;;  %v2329_v40 = vpop.permute.xlu1 %2328  ;;  %v20915_v57 = vld [vmem:[#allocation10_spill] sm:$0xff] }
 0x466   : > { %v12841_v49 = vsel %vm12712_vm9, %v20344_v27, %v12840_v48  ;;  %v20371_v45 = vsub.s32 %v12970_v53, %v17188_v26  ;;  %v11740_v21 = vrot.slane %v11349_v3, %v18876_v10  ;;  %v12801_v62 = vsel %vm12716_vm6, %v20255_v8, %v20269_v0  ;;  %2404 = vst.msk [vmem:[#allocation2 + $0x108] sm:$0xff] %vm2370_vm8, %v2329_v40 }
 0x467   : > { %v20366_v36 = vsel %vm12714_vm4, %v20344_v27, %v12841_v49  ;;  %v12847_v23 = vsel %vm12710_vm7, %v20360_v43, %v12615_v2  ;;  %v12967_v61 = vcombine.low %v20306_v5, %v20317_v13  ;;  %v12976_v44 = vcombine.low %v12773_v1, %v12801_v62  ;;  %v20909_v2 = vld [vmem:[#allocation9_spill] sm:$0xff]  ;;  %v20910_v1 = vld [vmem:[#allocation6_spill] sm:$0xff] }
 0x468   : > { %v20375_v50 = vsel %vm12712_vm9, %v20360_v43, %v12847_v23  ;;  %v12731_v26 = vsel %vm12716_vm6, %v19518_v59, %v19548_v55  ;;  %v12759_v14 = vsel %vm12716_vm6, %v19738_v12, %v19771_v19  ;;  %v11747_v29 = vrot.slane %v11733_v42, %v18876_v10  ;;  %v2725_v55 = vpop.permute.xlu0 %2724 }
 0x469   : > { %v11750_v8 = vcombine.high %v11350_v6, %v11350_v6  ;;  %v20393_v0 = vrot.slane %v12967_v61, %v20371_v45  ;;  %v20396_v5 = vrot.slane %v12976_v44, %v20371_v45  ;;  %v20401_v13 = vsel %vm12716_vm6, %v19917_v25, %v19950_v60  ;;  %v2727_v12 = vpop.permute.xlu1 %2726 }
 0x46a   : > { %v13039_v59 = vcombine.low %v12731_v26, %v12759_v14  ;;  %v11748_v16 = vcombine.high %v11740_v21, %v11740_v21  ;;  %vm20907_vm1 = vcmask 97352   ;;  %v12723_v37 = vsel %vm12714_vm4, %v19513_v28, %v19533_v9  ;;  %v11290_v62 = vpop.f32.mrb[44].mxu1 }
 0x46b   : > { %2801 = vst.msk [vmem:[#allocation2 + $0x100] sm:$0xff] %vm20907_vm1, %v2725_v55  ;;  %v14754_v19 = vcombine.high %v20393_v0, %v20396_v5  ;;  %v12751_v25 = vsel %vm12714_vm4, %v19728_v20, %v19751_v4  ;;  %vm20908_vm0 = vmmov %vm20907_vm1  ;;  %v11749_v60 = vcombine.high %v11747_v29, %v11747_v29  ;;  %v11757_v30 = vrot.slane %v11350_v6, %v18876_v10  ;;  %v20911_v4 = vld [vmem:[#allocation5_spill] sm:$0xff]  ;;  %v11292_v44 = vpop.f32.mrb[45].mxu1 }
 0x46c   : > { %v20407_v22 = vrot.slane %v13039_v59, %v20371_v45  ;;  %2802 = vst.msk [vmem:[#allocation2 + $0x108] sm:$0xff] %vm20908_vm0, %v2727_v12  ;;  %v12724_v11 = vsel %vm12716_vm6, %v19513_v28, %v12723_v37  ;;  %v12752_v18 = vsel %vm12716_vm6, %v19728_v20, %v12751_v25  ;;  %v11764_v38 = vrot.slane %v11750_v8, %v18876_v10  ;;  %v20913_v20 = vld [vmem:[#allocation7_spill] sm:$0xff]  ;;  %v11293_v59 = vpop.f32.mrb[46].mxu1 }
 0x46d   : > { %v12779_v9 = vsel %vm12714_vm4, %v20909_v2, %v19930_v34  ;;  %v13003_v54 = vcombine.low %v12724_v11, %v12752_v18  ;;  %v12737_v17 = vsel %vm12714_vm4, %v20911_v4, %v20910_v1  ;;  %v12765_v31 = vsel %vm12714_vm4, %v20913_v20, %v20912_v47  ;;  %v3890_v23 = vpop.permute.xlu0 %3889  ;;  %v11295_v11 = vpop.f32.mrb[47].mxu1 }
 0x46e   : > { %v20430_v3 = vsel %vm12716_vm6, %v20909_v2, %v12779_v9  ;;  %v12738_v28 = vsel %vm12716_vm6, %v20911_v4, %v12737_v17  ;;  %v12793_v34 = vsel %vm12714_vm4, %v20915_v57, %v20914_v52  ;;  %v14706_v53 = vrot.slane %v11740_v21, 9 }
 0x46f   : > { %v20441_v41 = vrot.slane %v13003_v54, %v20371_v45  ;;  %v12766_v48 = vsel %vm12716_vm6, %v20913_v20, %v12765_v31  ;;  %v20447_v49 = vsel %vm12716_vm6, %v20915_v57, %v12793_v34  ;;  %v14707_v42 = vrot.slane %v11748_v16, 9 }
 0x470   : > { %v14708_v6 = vrot.slane %v11747_v29, 9  ;;  %v11765_v58 = vcombine.high %v11757_v30, %v11757_v30  ;;  %v13075_v61 = vcombine.low %v12738_v28, %v12766_v48  ;;  %vm20916_vm5 = vcmask 121952  }
 0x471   : > { %3966 = vst.msk [vmem:[#allocation2 + $0x100] sm:$0xff] %vm20916_vm5, %v3890_v23  ;;  %v11291_v40 = vadd.f32 %v20202_v33, %v11290_v62  ;;  %v14709_v26 = vrot.slane %v11749_v60, 9  ;;  %v11766_v14 = vcombine.high %v11764_v38, %v11764_v38  ;;  %v14710_v8 = vrot.slane %v11757_v30, 9  ;;  %vm20917_vm2 = vmmov %vm20916_vm5 }
 0x472   : > { %v20452_v55 = vrot.slane %v13075_v61, %v20371_v45  ;;  %v20454_v12 = vmax.f32 %v11740_v21, %v14706_v53  ;;  %v11294_v25 = vadd.f32 %v20202_v33, %v11293_v59  ;;  %v12530_v18 = vmax.f32 %v11748_v16, %v14707_v42 }
 0x473   : > { %v11351_v37 = vmax.f32 %v11291_v40, 0.0  ;;  %v20457_v2 = vmax.f32 %v11747_v29, %v14708_v6  ;;  %v14711_v9 = vrot.slane %v11765_v58, 9  ;;  %v14712_v54 = vrot.slane %v11764_v38, 9 }
 0x474   : > { %v11352_v17 = vmax.f32 %v11294_v25, 0.0  ;;  %v12815_v28 = vsel %vm12716_vm6, %v20278_v24, %v20299_v7  ;;  %v12532_v47 = vmax.f32 %v11749_v60, %v14709_v26  ;;  %v14713_v21 = vrot.slane %v11766_v14, 9 }
 0x475   : > { %v11767_v1 = vcombine.high %v11351_v37, %v11351_v37  ;;  %v11774_v4 = vrot.slane %v11351_v37, %v18876_v10  ;;  %v20463_v20 = vmax.f32 %v11757_v30, %v14710_v8  ;;  %v13048_v31 = vcombine.low %v20401_v13, %v12815_v28 }
 0x476   : > { %v11784_v57 = vcombine.high %v11352_v17, %v11352_v17  ;;  %v12534_v34 = vmax.f32 %v11765_v58, %v14711_v9  ;;  %v20467_v53 = vmax.f32 %v11764_v38, %v14712_v54  ;;  %v11791_v48 = vrot.slane %v11352_v17, %v18876_v10 }
 0x477   : > { %v11781_v16 = vrot.slane %v11767_v1, %v18876_v10  ;;  %v11782_v29 = vcombine.high %v11774_v4, %v11774_v4  ;;  %v14714_v52 = vrot.slane %v11774_v4, 9  ;;  %v20471_v23 = vrot.slane %v13048_v31, %v20371_v45 }
 0x478   : > { %v11798_v42 = vrot.slane %v11784_v57, %v18876_v10  ;;  %v11799_v13 = vcombine.high %v11791_v48, %v11791_v48  ;;  %v14718_v6 = vrot.slane %v11791_v48, 9  ;;  %v12829_v62 = vsel %vm12716_vm6, %v20332_v63, %v20349_v39 }
 0x479   : > { %v11783_v24 = vcombine.high %v11781_v16, %v11781_v16  ;;  %v14715_v7 = vrot.slane %v11782_v29, 9  ;;  %v14716_v60 = vrot.slane %v11781_v16, 9  ;;  %v12537_v30 = vmax.f32 %v11774_v4, %v14714_v52 }
 0x47a   : > { %v11800_v44 = vcombine.high %v11798_v42, %v11798_v42  ;;  %v14719_v26 = vrot.slane %v11799_v13, 9  ;;  %v14720_v8 = vrot.slane %v11798_v42, 9  ;;  %v12541_v59 = vmax.f32 %v11791_v48, %v14718_v6  ;;  %v3892_v37 = vpop.permute.xlu1 %3891 }
 0x47b   : > { %v14717_v58 = vrot.slane %v11783_v24, 9  ;;  %v12538_v38 = vmax.f32 %v11782_v29, %v14715_v7  ;;  %v12539_v61 = vmax.f32 %v11781_v16, %v14716_v60  ;;  %v12617_v40 = vmax.f32 %v20454_v12, %v12537_v30  ;;  %3967 = vst.msk [vmem:[#allocation2 + $0x108] sm:$0xff] %vm20917_vm2, %v3892_v37 }
 0x47c   : > { %v14758_v54 = vcombine.high %v20407_v22, %v20471_v23  ;;  %v14721_v63 = vrot.slane %v11800_v44, 9  ;;  %v12542_v39 = vmax.f32 %v11799_v13, %v14719_v26  ;;  %v12543_v1 = vmax.f32 %v11798_v42, %v14720_v8  ;;  %v4575_v17 = vpop.permute.xlu0 %4574 }
 0x47d   : > { %v12540_v25 = vmax.f32 %v11783_v24, %v14717_v58  ;;  %v12618_v11 = vmax.f32 %v12530_v18, %v12538_v38  ;;  %v12619_v9 = vmax.f32 %v20457_v2, %v12539_v61  ;;  %v12621_v4 = vmax.f32 %v20463_v20, %v12541_v59 }
 0x47e   : > { %v12536_v12 = vmax.f32 %v11766_v14, %v14713_v21  ;;  %v12807_v18 = vsel %vm12714_vm4, %v20261_v32, %v20275_v56  ;;  %vm20918_vm3 = vcmask 146552   ;;  %v12544_v2 = vmax.f32 %v11800_v44, %v14721_v63  ;;  %v4577_v57 = vpop.permute.xlu1 %4576 }
 0x47f   : > { %v12620_v28 = vmax.f32 %v12532_v47, %v12540_v25  ;;  %v12853_v31 = vrot.slane %v12618_v11, 7  ;;  %4651 = vst.msk [vmem:[#allocation2 + $0x100] sm:$0xff] %vm20918_vm3, %v4575_v17  ;;  %v12622_v16 = vmax.f32 %v12534_v34, %v12542_v39  ;;  %v12623_v29 = vmax.f32 %v20467_v53, %v12543_v1  ;;  %vm20919_vm15 = vmmov %vm20918_vm3 }
 0x480   : > { %v12808_v52 = vsel %vm12716_vm6, %v20261_v32, %v12807_v18  ;;  %v12843_v47 = vsel %vm12716_vm6, %v20344_v27, %v20366_v36  ;;  %4652 = vst.msk [vmem:[#allocation2 + $0x108] sm:$0xff] %vm20919_vm15, %v4577_v57  ;;  %v12624_v34 = vmax.f32 %v12536_v12, %v12544_v2  ;;  %v12821_v32 = vsel %vm12714_vm4, %v20287_v46, %v20310_v35  ;;  %v4973_v53 = vpop.permute.xlu0 %4972 }
 0x481   : > { %v12854_v20 = vsel %vm12710_vm7, %v12853_v31, %v12617_v40  ;;  %v12860_v14 = vrot.slane %v12620_v28, 7  ;;  %v13012_v21 = vcombine.low %v20430_v3, %v12808_v52  ;;  %v12867_v48 = vrot.slane %v12622_v16, 7 }
 0x482   : > { %v12855_v56 = vsel %vm12712_vm9, %v12853_v31, %v12854_v20  ;;  %v12822_v27 = vsel %vm12716_vm6, %v20287_v46, %v12821_v32  ;;  %vm20920_vm11 = vcmask 171152   ;;  %v12874_v30 = vrot.slane %v12624_v34, 7  ;;  %v4975_v42 = vpop.permute.xlu1 %4974 }
 0x483   : > { %v12856_v24 = vsel %vm12714_vm4, %v12853_v31, %v12855_v56  ;;  %v12861_v7 = vsel %vm12710_vm7, %v12860_v14, %v12619_v9  ;;  %v20503_v60 = vrot.slane %v13012_v21, %v20371_v45  ;;  %5049 = vst.msk [vmem:[#allocation2 + $0x100] sm:$0xff] %vm20920_vm11, %v4973_v53  ;;  %v12868_v3 = vsel %vm12710_vm7, %v12867_v48, %v12621_v4  ;;  %vm20921_vm12 = vmmov %vm20920_vm11 }
 0x484   : > { %v12862_v36 = vsel %vm12712_vm9, %v12860_v14, %v12861_v7  ;;  %v12857_v35 = vsel %vm12716_vm6, %v12853_v31, %v12856_v24  ;;  %v12869_v13 = vsel %vm12712_vm9, %v12867_v48, %v12868_v3  ;;  %v12835_v58 = vsel %vm12714_vm4, %v20339_v51, %v20356_v15  ;;  %5050 = vst.msk [vmem:[#allocation2 + $0x108] sm:$0xff] %vm20921_vm12, %v4975_v42 }
 0x485   : > { %v12985_v6 = vcombine.low %v12829_v62, %v12857_v35  ;;  %v12863_v38 = vsel %vm12714_vm4, %v12860_v14, %v12862_v36  ;;  %v12870_v46 = vsel %vm12714_vm4, %v12867_v48, %v12869_v13  ;;  %v12875_v61 = vsel %vm12710_vm7, %v12874_v30, %v12623_v29  ;;  %v6138_v26 = vpop.permute.xlu0 %6137 }
 0x486   : > { %v12836_v40 = vsel %vm12716_vm6, %v20339_v51, %v12835_v58  ;;  %v12864_v44 = vsel %vm12716_vm6, %v12860_v14, %v12863_v38  ;;  %v12876_v62 = vsel %vm12712_vm9, %v12874_v30, %v12875_v61  ;;  %v12871_v15 = vsel %vm12716_vm6, %v12867_v48, %v12870_v46  ;;  %v11298_v18 = vpop.f32.mrb[48].mxu1 }
 0x487   : > { %v20524_v8 = vrot.slane %v12985_v6, %v20371_v45  ;;  %v13021_v59 = vcombine.low %v12836_v40, %v12864_v44  ;;  %vm20922_vm10 = vcmask 195752   ;;  %v13057_v37 = vcombine.low %v12843_v47, %v12871_v15  ;;  %v11300_v29 = vpop.f32.mrb[49].mxu1 }
 0x488   : > { %6214 = vst.msk [vmem:[#allocation2 + $0x100] sm:$0xff] %vm20922_vm10, %v6138_v26  ;;  %v13161_v25 = vcombine.low %v20441_v41, %v20503_v60  ;;  %v12849_v51 = vsel %vm12714_vm4, %v20360_v43, %v20375_v50  ;;  %v12877_v11 = vsel %vm12714_vm4, %v12874_v30, %v12876_v62  ;;  %v13084_v1 = vcombine.low %v20447_v49, %v12822_v27  ;;  %vm20923_vm13 = vmmov %vm20922_vm10  ;;  %v11301_v20 = vpop.f32.mrb[50].mxu1 }
 0x489   : > { %v20535_v9 = vrot.slane %v13021_v59, %v20371_v45  ;;  %v12850_v63 = vsel %vm12716_vm6, %v20360_v43, %v12849_v51  ;;  %v12878_v39 = vsel %vm12716_vm6, %v12874_v30, %v12877_v11  ;;  %v6140_v4 = vpop.permute.xlu1 %6139  ;;  %v20542_v12 = vrot.slane %v13057_v37, %v20371_v45  ;;  %v6823_v28 = vpop.permute.xlu0 %6822 }
 0x48a   : > { %v13093_v17 = vcombine.low %v12850_v63, %v12878_v39  ;;  %v14756_v50 = vcombine.high %v20441_v41, %v20503_v60  ;;  %6215 = vst.msk [vmem:[#allocation2 + $0x108] sm:$0xff] %vm20923_vm13, %v6140_v4  ;;  %v20548_v31 = vrot.slane %v13084_v1, %v20371_v45  ;;  %vm20924_vm14 = vcmask 220352   ;;  %v11303_v21 = vpop.f32.mrb[51].mxu1 }
 0x48b   : > { %6899 = vst.msk [vmem:[#allocation2 + $0x100] sm:$0xff] %vm20924_vm14, %v6823_v28  ;;  %v11299_v16 = vadd.f32 %v20202_v33, %v11298_v18  ;;  %v11302_v47 = vadd.f32 %v20202_v33, %v11301_v20  ;;  %vm20925_vm1 = vmmov %vm20924_vm14  ;;  %vm20926_vm0 = vcmask 48152   ;;  %vm20927_vm5 = vcmask 220160  }
 0x48c   : > { %v20556_v2 = vrot.slane %v13093_v17, %v20371_v45  ;;  %v13255_v52 = vcombine.low %v20452_v55, %v20548_v31  ;;  %vm20928_vm2 = vmmov %vm20927_vm5  ;;  %vm20930_vm15 = vcmask 97352   ;;  %vm20934_vm10 = vcmask 146552  }
 0x48d   : > { %v11353_v14 = vmax.f32 %v11299_v16, 0.0  ;;  %v11354_v32 = vmax.f32 %v11302_v47, 0.0  ;;  %vm20929_vm3 = vmmov %vm20926_vm0  ;;  %vm20936_vm14 = vcmask 171152  }
 0x48e   : > { %vm20931_vm11 = vmmov %vm20930_vm15 }
 0x48f   : > { %v6825_v56 = vpop.permute.xlu0 %6824  ;;  %v11801_v48 = vcombine.high %v11353_v14, %v11353_v14  ;;  %v11808_v24 = vrot.slane %v11353_v14, %v18876_v10  ;;  %v11818_v27 = vcombine.high %v11354_v32, %v11354_v32  ;;  %v11825_v3 = vrot.slane %v11354_v32, %v18876_v10  ;;  %vm20935_vm13 = vmmov %vm20934_vm10 }
 0x490   : > { %v1643_v34 = vpop.permute.xlu1 %1642  ;;  %6900 = vst.msk [vmem:[#allocation2 + $0x108] sm:$0xff] %vm20925_vm1, %v6825_v56  ;;  %vm20937_vm1 = vmmov %vm20936_vm14 }
 0x491   : > { %1717 = vst.msk [vmem:[#allocation2 + $0x110] sm:$0xff] %vm20926_vm0, %v1643_v34  ;;  %v11815_v7 = vrot.slane %v11801_v48, %v18876_v10  ;;  %v11816_v36 = vcombine.high %v11808_v24, %v11808_v24  ;;  %v11832_v42 = vrot.slane %v11818_v27, %v18876_v10  ;;  %v14722_v6 = vrot.slane %v11808_v24, 9 }
 0x492   : > { %v6935_v53 = vld [vmem:[#allocation2 + $0x100] sm:$0xff]  ;;  %v11833_v40 = vcombine.high %v11825_v3, %v11825_v3  ;;  %v14726_v63 = vrot.slane %v11825_v3, 9  ;;  %vm20938_vm0 = vcmask 195752  }
 0x493   : > { %14943 = vmatprep.mubr.msk.bf16.mxu0 %vm20927_vm5, %v6935_v53  ;;  %v11817_v35 = vcombine.high %v11815_v7, %v11815_v7  ;;  %v11306_v13 = vpop.f32.mrb[52].mxu1  ;;  %v14723_v46 = vrot.slane %v11816_v36, 9  ;;  %v14724_v61 = vrot.slane %v11815_v7, 9  ;;  %v11834_v11 = vcombine.high %v11832_v42, %v11832_v42  ;;  %vm20939_vm5 = vmmov %vm20938_vm0 }
 0x494   : > { %v11307_v58 = vadd.f32 %v20202_v33, %v11306_v13  ;;  %v11308_v38 = vpop.f32.mrb[53].mxu1  ;;  %v12545_v39 = vmax.f32 %v11808_v24, %v14722_v6  ;;  %v14727_v16 = vrot.slane %v11833_v40, 9  ;;  %v14728_v29 = vrot.slane %v11832_v42, 9 }
 0x495   : > { %v11309_v44 = vpop.f32.mrb[54].mxu1  ;;  %v14725_v51 = vrot.slane %v11817_v35, 9  ;;  %v12546_v28 = vmax.f32 %v11816_v36, %v14723_v46  ;;  %v12547_v18 = vmax.f32 %v11815_v7, %v14724_v61  ;;  %v14729_v48 = vrot.slane %v11834_v11, 9 }
 0x496   : > { %v11355_v62 = vmax.f32 %v11307_v58, 0.0  ;;  %v11310_v15 = vadd.f32 %v20202_v33, %v11309_v44  ;;  %v11311_v59 = vpop.f32.mrb[55].mxu1  ;;  %v12549_v32 = vmax.f32 %v11825_v3, %v14726_v63 }
 0x497   : > { %v6936_v30 = vld [vmem:[#allocation2 + $0x108] sm:$0xff]  ;;  %v12548_v34 = vmax.f32 %v11817_v35, %v14725_v51  ;;  %v12551_v59 = vmax.f32 %v11832_v42, %v14728_v29 }
 0x498   : > { %14944 = vmatmul.mubr.msk.bf16.gmra.mrb[64].mxu0 %vm20928_vm2, %v6936_v30  ;;  %v11835_v1 = vcombine.high %v11355_v62, %v11355_v62  ;;  %v11842_v4 = vrot.slane %v11355_v62, %v18876_v10  ;;  %v11356_v17 = vmax.f32 %v11310_v15, 0.0  ;;  %v12550_v30 = vmax.f32 %v11833_v40, %v14727_v16 }
 0x499   : > { %vm20940_vm2 = vcmask 220352  }
 0x49a   : > { %v11849_v33 = vrot.slane %v11835_v1, %v18876_v10  ;;  %v11850_v14 = vcombine.high %v11842_v4, %v11842_v4  ;;  %v14730_v47 = vrot.slane %v11842_v4, 9  ;;  %v11852_v21 = vcombine.high %v11356_v17, %v11356_v17 }
 0x49b   : > { %v11859_v53 = vrot.slane %v11356_v17, %v18876_v10 }
 0x49c   : > { %v2331_v26 = vpop.permute.xlu0 %2330  ;;  %v11851_v24 = vcombine.high %v11849_v33, %v11849_v33  ;;  %v14731_v7 = vrot.slane %v11850_v14, 9  ;;  %v14732_v27 = vrot.slane %v11849_v33, 9  ;;  %v12553_v36 = vmax.f32 %v11842_v4, %v14730_v47 }
 0x49d   : > { %v1645_v37 = vpop.permute.xlu1 %1644  ;;  %2405 = vst.msk [vmem:[#allocation2 + $0x110] sm:$0xff] %vm2370_vm8, %v2331_v26  ;;  %v11866_v13 = vrot.slane %v11852_v21, %v18876_v10  ;;  %v11867_v6 = vcombine.high %v11859_v53, %v11859_v53  ;;  %v14734_v58 = vrot.slane %v11859_v53, 9 }
 0x49e   : > { %1718 = vst.msk [vmem:[#allocation2 + $0x118] sm:$0xff] %vm20929_vm3, %v1645_v37  ;;  %v14733_v38 = vrot.slane %v11851_v24, 9  ;;  %v12554_v46 = vmax.f32 %v11850_v14, %v14731_v7  ;;  %v12555_v61 = vmax.f32 %v11849_v33, %v14732_v27  ;;  %v12625_v44 = vmax.f32 %v12545_v39, %v12553_v36  ;;  %vm20941_vm3 = vmmov %vm20940_vm2 }
 0x49f   : > { %v11868_v26 = vcombine.high %v11866_v13, %v11866_v13  ;;  %v14735_v3 = vrot.slane %v11867_v6, 9  ;;  %v14736_v62 = vrot.slane %v11866_v13, 9  ;;  %v12557_v15 = vmax.f32 %v11859_v53, %v14734_v58 }
 0x4a0   : > { %v2729_v20 = vpop.permute.xlu0 %2728  ;;  %v12556_v37 = vmax.f32 %v11851_v24, %v14733_v38  ;;  %v12626_v51 = vmax.f32 %v12546_v28, %v12554_v46  ;;  %v12627_v63 = vmax.f32 %v12547_v18, %v12555_v61  ;;  %v12552_v14 = vmax.f32 %v11834_v11, %v14729_v48 }
 0x4a1   : > { %v2333_v56 = vpop.permute.xlu1 %2332  ;;  %2803 = vst.msk [vmem:[#allocation2 + $0x110] sm:$0xff] %vm20930_vm15, %v2729_v20  ;;  %v14737_v1 = vrot.slane %v11868_v26, 9  ;;  %v12558_v4 = vmax.f32 %v11867_v6, %v14735_v3  ;;  %v12559_v17 = vmax.f32 %v11866_v13, %v14736_v62  ;;  %v12629_v16 = vmax.f32 %v12549_v32, %v12557_v15 }
 0x4a2   : > { %2406 = vst.msk [vmem:[#allocation2 + $0x118] sm:$0xff] %vm2370_vm8, %v2333_v56  ;;  %vm20932_vm8 = vcmask 121952   ;;  %v12628_v20 = vmax.f32 %v12548_v34, %v12556_v37  ;;  %v12881_v39 = vrot.slane %v12626_v51, 7  ;;  %vm20942_vm15 = vcmask 220160  }
 0x4a3   : > { %v12560_v47 = vmax.f32 %v11868_v26, %v14737_v1  ;;  %v12630_v21 = vmax.f32 %v12550_v30, %v12558_v4  ;;  %v12631_v56 = vmax.f32 %v12551_v59, %v12559_v17  ;;  %vm20933_vm12 = vmmov %vm20932_vm8 }
 0x4a4   : > { %v12882_v42 = vsel %vm12710_vm7, %v12881_v39, %v12625_v44  ;;  %v12888_v28 = vrot.slane %v12628_v20, 7 }
 0x4a5   : > { %v2731_v35 = vpop.permute.xlu1 %2730  ;;  %v12883_v29 = vsel %vm12712_vm9, %v12881_v39, %v12882_v42  ;;  %v12632_v53 = vmax.f32 %v12552_v14, %v12560_v47  ;;  %v12895_v24 = vrot.slane %v12630_v21, 7 }
 0x4a6   : > { %2804 = vst.msk [vmem:[#allocation2 + $0x118] sm:$0xff] %vm20931_vm11, %v2731_v35  ;;  %v12884_v34 = vsel %vm12714_vm4, %v12881_v39, %v12883_v29  ;;  %v12889_v32 = vsel %vm12710_vm7, %v12888_v28, %v12627_v63  ;;  %vm20943_vm11 = vmmov %vm20942_vm15 }
 0x4a7   : > { %v3894_v40 = vpop.permute.xlu0 %3893  ;;  %v12890_v48 = vsel %vm12712_vm9, %v12888_v28, %v12889_v32  ;;  %v12896_v7 = vsel %vm12710_vm7, %v12895_v24, %v12629_v16  ;;  %v12902_v27 = vrot.slane %v12632_v53, 7  ;;  %v20593_v36 = vsel %vm12716_vm6, %v12881_v39, %v12884_v34  ;;  %v15155_v16 = vld [vmem:[%s20719_s4] ss:$0 sm:$0xff] }
 0x4a8   : > { %3968 = vst.msk [vmem:[#allocation2 + $0x110] sm:$0xff] %vm20932_vm8, %v3894_v40  ;;  %v12897_v30 = vsel %vm12712_vm9, %v12895_v24, %v12896_v7  ;;  %v12891_v13 = vsel %vm12714_vm4, %v12888_v28, %v12890_v48 }
 0x4a9   : > { %v3896_v33 = vpop.permute.xlu1 %3895  ;;  %v12898_v58 = vsel %vm12714_vm4, %v12895_v24, %v12897_v30  ;;  %v12903_v38 = vsel %vm12710_vm7, %v12902_v27, %v12631_v56  ;;  %v20601_v46 = vsel %vm12716_vm6, %v12888_v28, %v12891_v13 }
 0x4aa   : > { %3969 = vst.msk [vmem:[#allocation2 + $0x118] sm:$0xff] %vm20933_vm12, %v3896_v33  ;;  %v12904_v61 = vsel %vm12712_vm9, %v12902_v27, %v12903_v38  ;;  %v20606_v44 = vsel %vm12716_vm6, %v12895_v24, %v12898_v58 }
 0x4ab   : > { %v4579_v18 = vpop.permute.xlu0 %4578  ;;  %v12905_v26 = vsel %vm12714_vm4, %v12902_v27, %v12904_v61 }
 0x4ac   : > { %4653 = vst.msk [vmem:[#allocation2 + $0x110] sm:$0xff] %vm20934_vm10, %v4579_v18  ;;  %v20611_v3 = vsel %vm12716_vm6, %v12902_v27, %v12905_v26 }
 0x4ad   : > { %v4581_v11 = vpop.permute.xlu1 %4580 }
 0x4ae   : > { %4654 = vst.msk [vmem:[#allocation2 + $0x118] sm:$0xff] %vm20935_vm13, %v4581_v11 }
 0x4af   : > { %v4977_v6 = vpop.permute.xlu0 %4976 }
 0x4b0   : > { %5051 = vst.msk [vmem:[#allocation2 + $0x110] sm:$0xff] %vm20936_vm14, %v4977_v6 }
 0x4b1   : > { %v4979_v35 = vpop.permute.xlu1 %4978 }
 0x4b2   : > { %5052 = vst.msk [vmem:[#allocation2 + $0x118] sm:$0xff] %vm20937_vm1, %v4979_v35 }
 0x4b4   : > { %v6142_v62 = vpop.permute.xlu0 %6141 }
 0x4b5   : > { %6216 = vst.msk [vmem:[#allocation2 + $0x110] sm:$0xff] %vm20938_vm0, %v6142_v62  ;;  %v6144_v15 = vpop.permute.xlu1 %6143 }
 0x4b6   : > { %6217 = vst.msk [vmem:[#allocation2 + $0x118] sm:$0xff] %vm20939_vm5, %v6144_v15 }
 0x4b8   : > { %v6827_v59 = vpop.permute.xlu0 %6826 }
 0x4b9   : > { %6901 = vst.msk [vmem:[#allocation2 + $0x110] sm:$0xff] %vm20940_vm2, %v6827_v59  ;;  %v6829_v37 = vpop.permute.xlu1 %6828  ;;  %v11314_v51 = vpop.f32.mrb[56].mxu1 }
 0x4ba   : > { %6902 = vst.msk [vmem:[#allocation2 + $0x118] sm:$0xff] %vm20941_vm3, %v6829_v37  ;;  %v11316_v63 = vpop.f32.mrb[57].mxu1  ;;  %v11315_v20 = vadd.f32 %v15155_v16, %v11314_v51 }
 0x4bb   : > { %v11317_v1 = vpop.f32.mrb[58].mxu1 }
 0x4bc   : > { %v11319_v4 = vpop.f32.mrb[59].mxu1  ;;  %v11357_v39 = vmax.f32 %v11315_v20, 0.0  ;;  %v11318_v33 = vadd.f32 %v15155_v16, %v11317_v1 }
 0x4be   : > { %v11869_v14 = vcombine.high %v11357_v39, %v11357_v39  ;;  %v11358_v47 = vmax.f32 %v11318_v33, 0.0  ;;  %v11876_v21 = vrot.slane %v11357_v39, %v18876_v10 }
 0x4c0   : > { %v6937_v40 = vld [vmem:[#allocation2 + $0x110] sm:$0xff]  ;;  %v11883_v56 = vrot.slane %v11869_v14, %v18876_v10  ;;  %v11886_v42 = vcombine.high %v11358_v47, %v11358_v47  ;;  %v11884_v28 = vcombine.high %v11876_v21, %v11876_v21  ;;  %v11893_v18 = vrot.slane %v11358_v47, %v18876_v10 }
 0x4c1   : > { %14947 = vmatprep.mubr.msk.bf16.mxu0 %vm20942_vm15, %v6937_v40  ;;  %v6938_v17 = vld [vmem:[#allocation2 + $0x118] sm:$0xff]  ;;  %v14738_v34 = vrot.slane %v11876_v21, 9 }
 0x4c2   : > { %14948 = vmatmul.mubr.msk.bf16.gmra.mrb[68].mxu0 %vm20943_vm11, %v6938_v17  ;;  %v11885_v29 = vcombine.high %v11883_v56, %v11883_v56  ;;  %v11900_v53 = vrot.slane %v11886_v42, %v18876_v10  ;;  %v14739_v48 = vrot.slane %v11884_v28, 9  ;;  %v14740_v7 = vrot.slane %v11883_v56, 9 }
 0x4c3   : > { %v11901_v27 = vcombine.high %v11893_v18, %v11893_v18  ;;  %v14742_v35 = vrot.slane %v11893_v18, 9  ;;  %v12561_v26 = vmax.f32 %v11876_v21, %v14738_v34 }
 0x4c4   : > { %v14741_v38 = vrot.slane %v11885_v29, 9  ;;  %v11902_v61 = vcombine.high %v11900_v53, %v11900_v53  ;;  %v12562_v37 = vmax.f32 %v11884_v28, %v14739_v48  ;;  %v12563_v51 = vmax.f32 %v11883_v56, %v14740_v7 }
 0x4c5   : > { %v14743_v63 = vrot.slane %v11901_v27, 9  ;;  %v14744_v40 = vrot.slane %v11900_v53, 9  ;;  %v12565_v33 = vmax.f32 %v11893_v18, %v14742_v35 }
 0x4c6   : > { %v12564_v39 = vmax.f32 %v11885_v29, %v14741_v38 }
 0x4c7   : > { %v12566_v34 = vmax.f32 %v11901_v27, %v14743_v63  ;;  %v12567_v18 = vmax.f32 %v11900_v53, %v14744_v40 }
 0x4df   : > { %v11322_v24 = vpop.f32.mrb[60].mxu1 }
 0x4e0   : > { %v11323_v32 = vadd.f32 %v15155_v16, %v11322_v24  ;;  %v11324_v11 = vpop.f32.mrb[61].mxu1 }
 0x4e1   : > { %v11325_v30 = vpop.f32.mrb[62].mxu1 }
 0x4e2   : > { %v11359_v13 = vmax.f32 %v11323_v32, 0.0  ;;  %v11326_v6 = vadd.f32 %v15155_v16, %v11325_v30  ;;  %v11327_v58 = vpop.f32.mrb[63].mxu1  ;;  %v14745_v16 = vrot.slane %v11902_v61, 9 }
 0x4e4   : > { %v11903_v62 = vcombine.high %v11359_v13, %v11359_v13  ;;  %v11910_v15 = vrot.slane %v11359_v13, %v18876_v10  ;;  %v11360_v59 = vmax.f32 %v11326_v6, 0.0 }
 0x4e6   : > { %v11917_v1 = vrot.slane %v11903_v62, %v18876_v10  ;;  %v11918_v4 = vcombine.high %v11910_v15, %v11910_v15  ;;  %v14746_v17 = vrot.slane %v11910_v15, 9  ;;  %v11920_v20 = vcombine.high %v11360_v59, %v11360_v59 }
 0x4e7   : > { %v11927_v14 = vrot.slane %v11360_v59, %v18876_v10 }
 0x4e8   : > { %v11919_v47 = vcombine.high %v11917_v1, %v11917_v1  ;;  %v14747_v21 = vrot.slane %v11918_v4, 9  ;;  %v14748_v42 = vrot.slane %v11917_v1, 9  ;;  %v12569_v24 = vmax.f32 %v11910_v15, %v14746_v17 }
 0x4e9   : > { %v11934_v28 = vrot.slane %v11920_v20, %v18876_v10  ;;  %v11935_v56 = vcombine.high %v11927_v14, %v11927_v14  ;;  %v14750_v32 = vrot.slane %v11927_v14, 9  ;;  %v12568_v20 = vmax.f32 %v11902_v61, %v14745_v16 }
 0x4ea   : > { %v14749_v11 = vrot.slane %v11919_v47, 9  ;;  %v12570_v48 = vmax.f32 %v11918_v4, %v14747_v21  ;;  %v12571_v7 = vmax.f32 %v11917_v1, %v14748_v42  ;;  %v12633_v30 = vmax.f32 %v12561_v26, %v12569_v24 }
 0x4eb   : > { %v11936_v13 = vcombine.high %v11934_v28, %v11934_v28  ;;  %v14751_v6 = vrot.slane %v11935_v56, 9  ;;  %v14752_v29 = vrot.slane %v11934_v28, 9  ;;  %v12573_v58 = vmax.f32 %v11927_v14, %v14750_v32 }
 0x4ec   : > { %v12572_v38 = vmax.f32 %v11919_v47, %v14749_v11  ;;  %v12634_v35 = vmax.f32 %v12562_v37, %v12570_v48  ;;  %v12635_v62 = vmax.f32 %v12563_v51, %v12571_v7 }
 0x4ed   : > { %v14753_v59 = vrot.slane %v11936_v13, 9  ;;  %v12574_v49 = vmax.f32 %v11935_v56, %v14751_v6  ;;  %v12575_v15 = vmax.f32 %v11934_v28, %v14752_v29  ;;  %v12637_v27 = vmax.f32 %v12565_v33, %v12573_v58 }
 0x4ee   : > { %v12636_v63 = vmax.f32 %v12564_v39, %v12572_v38  ;;  %v12909_v17 = vrot.slane %v12634_v35, 7  ;;  %v13193_v38 = vrot.slane %v14756_v50, %v18876_v10  ;;  %v20944_v50 = vcombine.high %v20452_v55, %v20548_v31 }
 0x4ef   : > { %v12576_v43 = vmax.f32 %v11936_v13, %v14753_v59  ;;  %v12638_v57 = vmax.f32 %v12566_v34, %v12574_v49  ;;  %v12639_v4 = vmax.f32 %v12567_v18, %v12575_v15 }
 0x4f0   : > { %v12910_v26 = vsel %vm12710_vm7, %v12909_v17, %v12633_v30  ;;  %v12916_v1 = vrot.slane %v12636_v63, 7  ;;  %v13145_v30 = vrot.slane %v14754_v19, %v18876_v10  ;;  %v13169_v19 = vrot.slane %v13161_v25, %v18876_v10 }
 0x4f1   : > { %v12911_v21 = vsel %vm12712_vm9, %v12909_v17, %v12910_v26  ;;  %v12640_v14 = vmax.f32 %v12568_v20, %v12576_v43  ;;  %v12923_v53 = vrot.slane %v12638_v57, 7  ;;  %v13287_v63 = vrot.slane %v20944_v50, %v18876_v10 }
 0x4f2   : > { %v12912_v37 = vsel %vm12714_vm4, %v12909_v17, %v12911_v21  ;;  %v12917_v51 = vsel %vm12710_vm7, %v12916_v1, %v12635_v62 }
 0x4f3   : > { %v12918_v40 = vsel %vm12712_vm9, %v12916_v1, %v12917_v51  ;;  %v12924_v39 = vsel %vm12710_vm7, %v12923_v53, %v12637_v27  ;;  %v12930_v33 = vrot.slane %v12640_v14, 7  ;;  %v12913_v61 = vsel %vm12716_vm6, %v12909_v17, %v12912_v37 }
 0x4f4   : > { %v12925_v49 = vsel %vm12712_vm9, %v12923_v53, %v12924_v39  ;;  %v12994_v16 = vcombine.low %v20593_v36, %v12913_v61  ;;  %v12919_v47 = vsel %vm12714_vm4, %v12916_v1, %v12918_v40  ;;  %v20945_v14 = vcombine.low %v20393_v0, %v20396_v5 }
 0x4f5   : > { %v12926_v43 = vsel %vm12714_vm4, %v12923_v53, %v12925_v49  ;;  %v12931_v57 = vsel %vm12710_vm7, %v12930_v33, %v12639_v4  ;;  %v12920_v42 = vsel %vm12716_vm6, %v12916_v1, %v12919_v47  ;;  %v20946_v51 = vcombine.low %v20407_v22, %v20471_v23 }
 0x4f6   : > { %v12932_v24 = vsel %vm12712_vm9, %v12930_v33, %v12931_v57  ;;  %v13001_v34 = vrot.slane %v12994_v16, %v20371_v45  ;;  %v12927_v28 = vsel %vm12716_vm6, %v12923_v53, %v12926_v43  ;;  %v13030_v56 = vcombine.low %v20601_v46, %v12920_v42 }
 0x4f7   : > { %v13066_v32 = vcombine.low %v20606_v44, %v12927_v28  ;;  %v12933_v36 = vsel %vm12714_vm4, %v12930_v33, %v12932_v24  ;;  %v13239_v44 = vrot.slane %v14758_v54, %v18876_v10  ;;  %v13123_v53 = vrot.slane %v20945_v14, %v18876_v10 }
 0x4f8   : > { %v14755_v11 = vcombine.high %v20524_v8, %v13001_v34  ;;  %v13037_v48 = vrot.slane %v13030_v56, %v20371_v45  ;;  %v12934_v7 = vsel %vm12716_vm6, %v12930_v33, %v12933_v36  ;;  %v13116_v55 = vcombine.low %v20524_v8, %v13001_v34 }
 0x4f9   : > { %v13073_v13 = vrot.slane %v13066_v32, %v20371_v45  ;;  %v13102_v6 = vcombine.low %v20611_v3, %v12934_v7  ;;  %v13217_v40 = vrot.slane %v20946_v51, %v18876_v10  ;;  %vm13299_vm7 = vcmask 261120  }
 0x4fa   : > { %v13152_v46 = vrot.slane %v14755_v11, %v18876_v10  ;;  %v13162_v29 = vcombine.low %v20535_v9, %v13037_v48  ;;  %v14757_v58 = vcombine.high %v20535_v9, %v13037_v48  ;;  %v13263_v9 = vrot.slane %v13255_v52, %v18876_v10 }
 0x4fb   : > { %v14759_v18 = vcombine.high %v20542_v12, %v13073_v13  ;;  %v13109_v3 = vrot.slane %v13102_v6, %v20371_v45  ;;  %v13210_v31 = vcombine.low %v20542_v12, %v13073_v13  ;;  %v13130_v21 = vrot.slane %v13116_v55, %v18876_v10 }
 0x4fc   : > { %v13153_v35 = vcombine.low %v13145_v30, %v13152_v46  ;;  %v13176_v54 = vrot.slane %v13162_v29, %v18876_v10  ;;  %v13200_v62 = vrot.slane %v14757_v58, %v18876_v10  ;;  %vm13301_vm9 = vcmask 523264  }
 0x4fd   : > { %v13246_v25 = vrot.slane %v14759_v18, %v18876_v10  ;;  %v13256_v45 = vcombine.low %v20556_v2, %v13109_v3  ;;  %v14761_v15 = vcombine.high %v20556_v2, %v13109_v3  ;;  %v13224_v37 = vrot.slane %v13210_v31, %v18876_v10 }
 0x4fe   : > { %v14937_v59 = vpop.f32.mrb[56].mxu0  ;;  %13154 = vrot.lane.b32.xlu0 %v13153_v35, %s15176_s15  ;;  %v13177_v41 = vcombine.low %v13169_v19, %v13176_v54  ;;  %v13201_v60 = vcombine.low %v13193_v38, %v13200_v62  ;;  %v13131_v39 = vcombine.low %v13123_v53, %v13130_v21  ;;  %vm13303_vm4 = vcmask 785408  }
 0x4ff   : > { %v7335_v27 = vpop.f32.mrb[57].mxu0  ;;  %v13247_v17 = vcombine.low %v13239_v44, %v13246_v25  ;;  %v13270_v20 = vrot.slane %v13256_v45, %v18876_v10  ;;  %v13294_v4 = vrot.slane %v14761_v15, %v18876_v10  ;;  %v13225_v33 = vcombine.low %v13217_v40, %v13224_v37 }
 0x500   : > { %v14938_v52 = vpop.f32.mrb[58].mxu0 }
 0x501   : > { %v7338_v26 = vpop.f32.mrb[59].mxu0  ;;  %13248 = vrot.lane.b32.xlu1 %v13247_v17, %s15176_s15  ;;  %v13271_v2 = vcombine.low %v13263_v9, %v13270_v20  ;;  %v13295_v1 = vcombine.low %v13287_v63, %v13294_v4 }
 0x502   : > { %13178 = vrot.lane.b32.xlu0 %v13177_v41, %s15178_s17 }
 0x505   : > { %13272 = vrot.lane.b32.xlu1 %v13271_v2, %s15178_s17 }
 0x506   : > { %13202 = vrot.lane.b32.xlu0 %v13201_v60, %s15180_s21 }
 0x509   : > { %13296 = vrot.lane.b32.xlu1 %v13295_v1, %s15180_s21 }
 0x532   : > { %v14941_v8 = vpop.f32.mrb[60].mxu0 }
 0x533   : > { %v7351_v61 = vpop.f32.mrb[61].mxu0 }
 0x534   : > { %v14942_v12 = vpop.f32.mrb[62].mxu0 }
 0x535   : > { %v7354_v49 = vpop.f32.mrb[63].mxu0 }
 0x56b   : > { %v14945_v16 = vpop.f32.mrb[64].mxu0 }
 0x56c   : > { %v7367_v47 = vpop.f32.mrb[65].mxu0 }
 0x56d   : > { %v14946_v43 = vpop.f32.mrb[66].mxu0 }
 0x56e   : > { %v7370_v57 = vpop.f32.mrb[67].mxu0 }
 0x570   : > { %v13155_v0 = vpop.permute.xlu0 %13154 }
 0x571   : > { %v13300_v22 = vsel %vm13299_vm7, %v13131_v39, %v13155_v0 }
 0x573   : > { %v13249_v5 = vpop.permute.xlu1 %13248 }
 0x574   : > { %v13179_v42 = vpop.permute.xlu0 %13178  ;;  %v13305_v28 = vsel %vm13299_vm7, %v13225_v33, %v13249_v5 }
 0x575   : > { %v13302_v10 = vsel %vm13301_vm9, %v13300_v22, %v13179_v42 }
 0x577   : > { %v13273_v23 = vpop.permute.xlu1 %13272 }
 0x578   : > { %v13203_v24 = vpop.permute.xlu0 %13202  ;;  %v13306_v56 = vsel %vm13301_vm9, %v13305_v28, %v13273_v23 }
 0x579   : > { %v13304_v34 = vsel %vm13303_vm4, %v13302_v10, %v13203_v24 }
 0x57a   : > { %13308 = vst [vmem:[%s224_s30] sm:$0xff] %v13304_v34 }
 0x57b   : > { %v13297_v32 = vpop.permute.xlu1 %13296 }
 0x57c   : > { %v13307_v36 = vsel %vm13303_vm4, %v13306_v56, %v13297_v32 }
 0x57d   : > { %13309 = vst [vmem:[%s224_s30 + $0x8] sm:$0xff] %v13307_v36 }
 0x595   : > { %v14949_v11 = vpop.f32.mrb[68].mxu0 }
 0x596   : > { %v7383_v48 = vpop.f32.mrb[69].mxu0 }
 0x597   : > { %v14950_v7 = vpop.f32.mrb[70].mxu0 }
 0x598   : > { %v7386_v30 = vpop.f32.mrb[71].mxu0 }
 0x599 PF: > { %s15_s18 = sadd.s32 1, %s15163_s18  }
 0x59a   : > { %p12_p4 = scmp.ge.s32.totalorder %s15_s18, 4  }
 0x59c   :  { %14 = sbr.rel (!%p12_p4) target bundleno = 1 (0x1), region = 74 }

</bundles_post_ra>
